<compile_context>
chip_gen: v7x
topology: tpu7x:2x2x1
jax: 0.10.0
libtpu: 0.0.40
codegen_flags: <defaults>
</compile_context>

<pallas_src>
import functools

import numpy as np
import jax
import jax.numpy as jnp
from jax.experimental import pallas as pl
from jax.experimental.pallas import tpu as pltpu


# ----------------------------------------------------------------------------
# Fused Pallas kernel: 7 matmuls (4 "unrolled" convs + 3 linears) + ReLUs.
# Activations: (B, K) rows, bf16 into the MXU, f32 accumulate/epilogue.
# ----------------------------------------------------------------------------
def _qnet_fused_kernel(x_ref, u1_ref, u2_ref, u3_ref, u4_ref,
                       w1_ref, b1_ref, w2_ref, b2_ref, w3_ref, b3_ref,
                       o_ref):
    def mm(a, w_ref):
        return jnp.dot(a.astype(w_ref.dtype), w_ref[...],
                       preferred_element_type=jnp.float32)

    h = x_ref[...]                                           # (B, 16)   f32
    h = jnp.maximum(mm(h, u1_ref), 0.0)                      # (B, 512)  conv1+ReLU
    h = jnp.maximum(mm(h, u2_ref), 0.0)                      # (B, 1024) conv2+ReLU
    h = jnp.maximum(mm(h, u3_ref), 0.0)                      # (B, 1024) conv3+ReLU
    h = jnp.maximum(mm(h, u4_ref), 0.0)                      # (B, 1024) conv4+ReLU
    h = jnp.maximum(mm(h, w1_ref) + b1_ref[...], 0.0)        # (B, 512)  fc1+ReLU
    h = jnp.maximum(mm(h, w2_ref) + b2_ref[...], 0.0)        # (B, 128)  fc2+ReLU
    h = mm(h, w3_ref) + b3_ref[...]                          # (B, 128)  fc3 (lane-padded)
    o_ref[...] = h.astype(o_ref.dtype)


@functools.partial(jax.jit, static_argnames=("out_dim",))
def qnet_forward(x, packed, out_dim):
    """x: anything reshapeable to (B, 16) — matches PyTorch x.view(B, 1, 4, 4)."""
    B = x.shape[0]
    x2 = x.reshape(B, 16).astype(jnp.float32)

    operands = (x2,
                packed["u1"], packed["u2"], packed["u3"], packed["u4"],
                packed["w1"], packed["b1"],
                packed["w2"], packed["b2"],
                packed["w3"], packed["b3"])

    y = pl.pallas_call(
        _qnet_fused_kernel,
        out_shape=jax.ShapeDtypeStruct((B, 128), jnp.float32),
        in_specs=[pl.BlockSpec(op.shape, lambda: (0, 0)) for op in operands],
        out_specs=pl.BlockSpec((B, 128), lambda: (0, 0)),
        compiler_params=pltpu.CompilerParams(vmem_limit_bytes=32 * 1024 * 1024),
    )(*operands)
    return y[:, :out_dim]


# ----------------------------------------------------------------------------
# Synthetic parameters in PyTorch layouts (only sequential3 is used by forward).
# ----------------------------------------------------------------------------
def init_params(output_dim, key):
    ks = jax.random.split(key, 10)
    s = 0.05

    def nrm(k, shape):
        return s * jax.random.normal(k, shape, dtype=jnp.float32)

    return dict(
        c1=nrm(ks[0], (32, 1, 3, 3)),     # Conv2d(1, 32, 3x3, pad=1, no bias)
        c2=nrm(ks[1], (64, 32, 3, 3)),    # Conv2d(32, 64)
        c3=nrm(ks[2], (64, 64, 3, 3)),    # Conv2d(64, 64)
        c4=nrm(ks[3], (64, 64, 3, 3)),    # Conv2d(64, 64)
        w1=nrm(ks[4], (512, 64 * 4 * 4)), b1=nrm(ks[5], (512,)),          # Linear(1024,512)
        w2=nrm(ks[6], (128, 512)),        b2=nrm(ks[7], (128,)),          # Linear(512,128)
        w3=nrm(ks[8], (output_dim, 128)), b3=nrm(ks[9], (output_dim,)),   # Linear(128,out)
    )


# ----------------------------------------------------------------------------
# One-time repacking into the kernel's MXU-friendly (K, N) layouts.
# ----------------------------------------------------------------------------
def _unroll_conv3x3(wt, H=4, W=4):
    """(Cout, Cin, 3, 3) torch conv weight -> dense (H*W*Cin, H*W*Cout) matrix U
    such that conv2d(x, pad=1) == x_hwc_flat @ U, with activations flattened per
    batch as q = (h*W + w)*C + c (HWC order)."""
    wt = np.asarray(wt, np.float32)
    Cout, Cin = wt.shape[0], wt.shape[1]
    U = np.zeros((H * W * Cin, H * W * Cout), np.float32)
    for ho in range(H):
        for wo in range(W):
            po = ho * W + wo
            for kh in range(3):
                for kw in range(3):
                    hi, wi = ho + kh - 1, wo + kw - 1
                    if 0 <= hi < H and 0 <= wi < W:
                        pi = hi * W + wi
                        # U[pi*Cin + i, po*Cout + o] = wt[o, i, kh, kw]
                        U[pi * Cin:(pi + 1) * Cin,
                          po * Cout:(po + 1) * Cout] = wt[:, :, kh, kw].T
    return U


def pack_params(p, weight_dtype=jnp.bfloat16):
    # fc1: PyTorch flattens NCHW (m = c*16 + p); kernel activations are HWC
    # (q = p*64 + c) -> fold the permutation into W1 once.
    w1 = np.asarray(p["w1"], np.float32)                      # (512, 1024)
    w1p = w1.T.reshape(64, 16, 512).transpose(1, 0, 2).reshape(1024, 512)
    w2p = np.asarray(p["w2"], np.float32).T                   # (512, 128)

    out_dim = int(p["w3"].shape[0])
    w3p = np.zeros((128, 128), np.float32)                    # lane-pad N -> 128
    w3p[:, :out_dim] = np.asarray(p["w3"], np.float32).T
    b3p = np.zeros((1, 128), np.float32)
    b3p[0, :out_dim] = np.asarray(p["b3"], np.float32)

    wd = weight_dtype
    packed = dict(
        u1=jnp.asarray(_unroll_conv3x3(p["c1"]), wd),         # (16, 512)
        u2=jnp.asarray(_unroll_conv3x3(p["c2"]), wd),         # (512, 1024)
        u3=jnp.asarray(_unroll_conv3x3(p["c3"]), wd),         # (1024, 1024)
        u4=jnp.asarray(_unroll_conv3x3(p["c4"]), wd),         # (1024, 1024)
        w1=jnp.asarray(w1p, wd),
        b1=jnp.asarray(np.asarray(p["b1"], np.float32).reshape(1, 512)),
        w2=jnp.asarray(w2p, wd),
        b2=jnp.asarray(np.asarray(p["b2"], np.float32).reshape(1, 128)),
        w3=jnp.asarray(w3p, wd),
        b3=jnp.asarray(b3p),
    )
    return packed, out_dim


if __name__ == "__main__":
    key = jax.random.PRNGKey(0)
    k_params, k_x = jax.random.split(key)

    batch = 2
    input_dim = 16        # forward() requires input reshapeable to (B, 1, 4, 4)
    output_dim = 4        # QNet `output`
    # (QNet `hidden`, sequential1 and sequential2 are unused by forward().)

    params = init_params(output_dim, k_params)
    packed, out_dim = pack_params(params)            # one-time weight repack
    x = jax.random.normal(k_x, (batch, input_dim), dtype=jnp.float32)

    y = qnet_forward(x, packed, out_dim=out_dim)
    y = jax.block_until_ready(y)
    assert y.shape == (batch, output_dim), y.shape
    assert bool(jnp.all(jnp.isfinite(y))), "non-finite output"
    print("KERNEL_OK")
</pallas_src>

<mosaic_0001>
module attributes {stable_mosaic.version = 11 : i64} {
  func.func @_qnet_fused_kernel(%arg0: memref<2x16xf32, #tpu.memory_space<vmem>>, %arg1: memref<16x512xbf16, #tpu.memory_space<vmem>>, %arg2: memref<512x1024xbf16, #tpu.memory_space<vmem>>, %arg3: memref<1024x1024xbf16, #tpu.memory_space<vmem>>, %arg4: memref<1024x1024xbf16, #tpu.memory_space<vmem>>, %arg5: memref<1024x512xbf16, #tpu.memory_space<vmem>>, %arg6: memref<1x512xf32, #tpu.memory_space<vmem>>, %arg7: memref<512x128xbf16, #tpu.memory_space<vmem>>, %arg8: memref<1x128xf32, #tpu.memory_space<vmem>>, %arg9: memref<128x128xbf16, #tpu.memory_space<vmem>>, %arg10: memref<1x128xf32, #tpu.memory_space<vmem>>, %arg11: memref<2x128xf32, #tpu.memory_space<vmem>>) attributes {dimension_semantics = [], scalar_prefetch = 0 : i64, scratch_operands = 0 : i64, tpu.core_type = #tpu.core_type<tc>} {
    %c0 = arith.constant 0 : index
    %c0_0 = arith.constant 0 : index
    %0 = vector.load %arg0[%c0, %c0_0] : memref<2x16xf32, #tpu.memory_space<vmem>>, vector<2x16xf32>
    %1 = arith.truncf %0 : vector<2x16xf32> to vector<2x16xbf16>
    %c0_1 = arith.constant 0 : index
    %c0_2 = arith.constant 0 : index
    %2 = vector.load %arg1[%c0_1, %c0_2] : memref<16x512xbf16, #tpu.memory_space<vmem>>, vector<16x512xbf16>
    %cst = arith.constant dense<0.000000e+00> : vector<2x512xf32>
    %3 = tpu.matmul %1, %2, %cst {dimension_numbers = #tpu.dot_dimension_numbers<[1], [0], [0], [1], [0, 0, 1, 1], [], []>} : vector<2x16xbf16>, vector<16x512xbf16>, vector<2x512xf32> -> vector<2x512xf32>
    %cst_3 = arith.constant 0.000000e+00 : f32
    %4 = vector.broadcast %cst_3 : f32 to vector<2x512xf32>
    %5 = arith.maximumf %3, %4 : vector<2x512xf32>
    %6 = arith.truncf %5 : vector<2x512xf32> to vector<2x512xbf16>
    %c0_4 = arith.constant 0 : index
    %c0_5 = arith.constant 0 : index
    %7 = vector.load %arg2[%c0_4, %c0_5] : memref<512x1024xbf16, #tpu.memory_space<vmem>>, vector<512x1024xbf16>
    %cst_6 = arith.constant dense<0.000000e+00> : vector<2x1024xf32>
    %8 = tpu.matmul %6, %7, %cst_6 {dimension_numbers = #tpu.dot_dimension_numbers<[1], [0], [0], [1], [0, 0, 1, 1], [], []>} : vector<2x512xbf16>, vector<512x1024xbf16>, vector<2x1024xf32> -> vector<2x1024xf32>
    %cst_7 = arith.constant 0.000000e+00 : f32
    %9 = vector.broadcast %cst_7 : f32 to vector<2x1024xf32>
    %10 = arith.maximumf %8, %9 : vector<2x1024xf32>
    %11 = arith.truncf %10 : vector<2x1024xf32> to vector<2x1024xbf16>
    %c0_8 = arith.constant 0 : index
    %c0_9 = arith.constant 0 : index
    %12 = vector.load %arg3[%c0_8, %c0_9] : memref<1024x1024xbf16, #tpu.memory_space<vmem>>, vector<1024x1024xbf16>
    %cst_10 = arith.constant dense<0.000000e+00> : vector<2x1024xf32>
    %13 = tpu.matmul %11, %12, %cst_10 {dimension_numbers = #tpu.dot_dimension_numbers<[1], [0], [0], [1], [0, 0, 1, 1], [], []>} : vector<2x1024xbf16>, vector<1024x1024xbf16>, vector<2x1024xf32> -> vector<2x1024xf32>
    %cst_11 = arith.constant 0.000000e+00 : f32
    %14 = vector.broadcast %cst_11 : f32 to vector<2x1024xf32>
    %15 = arith.maximumf %13, %14 : vector<2x1024xf32>
    %16 = arith.truncf %15 : vector<2x1024xf32> to vector<2x1024xbf16>
    %c0_12 = arith.constant 0 : index
    %c0_13 = arith.constant 0 : index
    %17 = vector.load %arg4[%c0_12, %c0_13] : memref<1024x1024xbf16, #tpu.memory_space<vmem>>, vector<1024x1024xbf16>
    %cst_14 = arith.constant dense<0.000000e+00> : vector<2x1024xf32>
    %18 = tpu.matmul %16, %17, %cst_14 {dimension_numbers = #tpu.dot_dimension_numbers<[1], [0], [0], [1], [0, 0, 1, 1], [], []>} : vector<2x1024xbf16>, vector<1024x1024xbf16>, vector<2x1024xf32> -> vector<2x1024xf32>
    %cst_15 = arith.constant 0.000000e+00 : f32
    %19 = vector.broadcast %cst_15 : f32 to vector<2x1024xf32>
    %20 = arith.maximumf %18, %19 : vector<2x1024xf32>
    %21 = arith.truncf %20 : vector<2x1024xf32> to vector<2x1024xbf16>
    %c0_16 = arith.constant 0 : index
    %c0_17 = arith.constant 0 : index
    %22 = vector.load %arg5[%c0_16, %c0_17] : memref<1024x512xbf16, #tpu.memory_space<vmem>>, vector<1024x512xbf16>
    %cst_18 = arith.constant dense<0.000000e+00> : vector<2x512xf32>
    %23 = tpu.matmul %21, %22, %cst_18 {dimension_numbers = #tpu.dot_dimension_numbers<[1], [0], [0], [1], [0, 0, 1, 1], [], []>} : vector<2x1024xbf16>, vector<1024x512xbf16>, vector<2x512xf32> -> vector<2x512xf32>
    %c0_19 = arith.constant 0 : index
    %c0_20 = arith.constant 0 : index
    %24 = vector.load %arg6[%c0_19, %c0_20] : memref<1x512xf32, #tpu.memory_space<vmem>>, vector<1x512xf32>
    %25 = vector.broadcast %24 : vector<1x512xf32> to vector<2x512xf32>
    %26 = arith.addf %23, %25 : vector<2x512xf32>
    %cst_21 = arith.constant 0.000000e+00 : f32
    %27 = vector.broadcast %cst_21 : f32 to vector<2x512xf32>
    %28 = arith.maximumf %26, %27 : vector<2x512xf32>
    %29 = arith.truncf %28 : vector<2x512xf32> to vector<2x512xbf16>
    %c0_22 = arith.constant 0 : index
    %c0_23 = arith.constant 0 : index
    %30 = vector.load %arg7[%c0_22, %c0_23] : memref<512x128xbf16, #tpu.memory_space<vmem>>, vector<512x128xbf16>
    %cst_24 = arith.constant dense<0.000000e+00> : vector<2x128xf32>
    %31 = tpu.matmul %29, %30, %cst_24 {dimension_numbers = #tpu.dot_dimension_numbers<[1], [0], [0], [1], [0, 0, 1, 1], [], []>} : vector<2x512xbf16>, vector<512x128xbf16>, vector<2x128xf32> -> vector<2x128xf32>
    %c0_25 = arith.constant 0 : index
    %c0_26 = arith.constant 0 : index
    %32 = vector.load %arg8[%c0_25, %c0_26] : memref<1x128xf32, #tpu.memory_space<vmem>>, vector<1x128xf32>
    %33 = vector.broadcast %32 : vector<1x128xf32> to vector<2x128xf32>
    %34 = arith.addf %31, %33 : vector<2x128xf32>
    %cst_27 = arith.constant 0.000000e+00 : f32
    %35 = vector.broadcast %cst_27 : f32 to vector<2x128xf32>
    %36 = arith.maximumf %34, %35 : vector<2x128xf32>
    %37 = arith.truncf %36 : vector<2x128xf32> to vector<2x128xbf16>
    %c0_28 = arith.constant 0 : index
    %c0_29 = arith.constant 0 : index
    %38 = vector.load %arg9[%c0_28, %c0_29] : memref<128x128xbf16, #tpu.memory_space<vmem>>, vector<128x128xbf16>
    %cst_30 = arith.constant dense<0.000000e+00> : vector<2x128xf32>
    %39 = tpu.matmul %37, %38, %cst_30 {dimension_numbers = #tpu.dot_dimension_numbers<[1], [0], [0], [1], [0, 0, 1, 1], [], []>} : vector<2x128xbf16>, vector<128x128xbf16>, vector<2x128xf32> -> vector<2x128xf32>
    %c0_31 = arith.constant 0 : index
    %c0_32 = arith.constant 0 : index
    %40 = vector.load %arg10[%c0_31, %c0_32] : memref<1x128xf32, #tpu.memory_space<vmem>>, vector<1x128xf32>
    %41 = vector.broadcast %40 : vector<1x128xf32> to vector<2x128xf32>
    %42 = arith.addf %39, %41 : vector<2x128xf32>
    %c0_33 = arith.constant 0 : index
    %c0_34 = arith.constant 0 : index
    %43 = vector.load %arg11[%c0_33, %c0_34] : memref<2x128xf32, #tpu.memory_space<vmem>>, vector<2x128xf32>
    tpu.vector_store %arg11[%c0_33, %c0_34], %42 {strides = array<i32>} : memref<2x128xf32, #tpu.memory_space<vmem>>, vector<2x128xf32>,
    return
  }
}

</mosaic_0001>

<bundles_post_ra>
// kernel: qnet_forward.1
= control target key start
LH: loop header
LB: loop body
LE: loop exit
PB: predicated region body
PF: predicated region fallthrough
CT: control target
= control target key end

     0   :  { %16 = vsyncpa [#allocation3], 0  ;;  %s14974_s0 = inlined_call_operand.hbm [shape: f32[2,16], index: 0, kind: input, shape index: {}]   ;;  %s14975_s1 = inlined_call_operand.hbm [shape: bf16[16,512], index: 1, kind: input, shape index: {}]   ;;  %s14976_s2 = inlined_call_operand.hbm [shape: bf16[512,1024], index: 2, kind: input, shape index: {}]   ;;  %s14977_s3 = inlined_call_operand.hbm [shape: bf16[1024,1024], index: 3, kind: input, shape index: {}]   ;;  %s14978_s4 = inlined_call_operand.hbm [shape: bf16[1024,1024], index: 4, kind: input, shape index: {}]   ;;  %s14979_s5 = inlined_call_operand.hbm [shape: bf16[1024,512], index: 5, kind: input, shape index: {}]   ;;  %s14980_s6 = inlined_call_operand.hbm [shape: f32[1,512], index: 6, kind: input, shape index: {}]   ;;  %s14981_s7 = inlined_call_operand.hbm [shape: bf16[512,128], index: 7, kind: input, shape index: {}]   ;;  %s14982_s8 = inlined_call_operand.hbm [shape: f32[1,128], index: 8, kind: input, shape index: {}]   ;;  %s14983_s9 = inlined_call_operand.hbm [shape: bf16[128,128], index: 9, kind: input, shape index: {}]   ;;  %s14984_s10 = inlined_call_operand.hbm [shape: f32[1,128], index: 10, kind: input, shape index: {}]   ;;  %s14985_s11 = inlined_call_operand.hbm [shape: f32[2,128], index: 11, kind: output, shape index: {}]  }
   0x1   :  { %17 = vsyncpa [#allocation6], 0 }
   0x2   :  { %18 = vsyncpa [#allocation9], 0 }
   0x3   :  { %19 = vsyncpa [#allocation12], 0 }
   0x4   :  { %20 = vsyncpa [#allocation15], 0 }
   0x5   :  { %21 = vsyncpa [#allocation18], 0 }
   0x6   :  { %22 = vsyncpa [#allocation4], 0  ;;  %s14566_s17 = smov [#allocation5]   ;;  %s14288_s21 = scalar_lea.hbm %s14975_s1, 512 }
   0x7   :  { %s38_s18 = sshll.u32 %s14566_s17, 4  ;;  %p14289_p0 = scmp.ne.s32.totalorder %s14975_s1, %s14288_s21  ;;  %s39_s18 = int_to_ptr.vmem [resolvable:$true] %s38_s18 }
   0x8   :  { %p14292_p1 = scmp.lt.u32.totalorder %s14288_s21, %s14975_s1 }
   0xa   :  { %p14294_p2 = pnand %p14292_p1, %p14289_p0 }
   0xc   :  { %14297 = shalt.err (!%p14294_p2)
}
   0xd   :  { %s14298_s26 = scalar_lea.vmem %s39_s18, 512  ;;  %p14303_p4 = scmp.lt.s32.totalorder %s39_s18, %s39_s18 }
   0xe   :  { %p14299_p3 = scmp.ne.s32.totalorder %s39_s18, %s14298_s26  ;;  %p14304_p5 = scmp.lt.s32.totalorder %s14298_s26, %s14298_s26 }
  0x10   :  { %p14305_p6 = por %p14304_p5, %p14303_p4 }
  0x12   :  { %p14306_p7 = pnand %p14305_p6, %p14299_p3 }
  0x14   :  { %14309 = shalt.err (!%p14306_p7)
}
  0x15   :  { %s14567_s27 = smov 256   ;;  %s14568_s28 = smov 16  }
  0x16   :  { %44 = dma.hbm_to_vmem [thread:$0]  %s14975_s1, 512, %s39_s18, [#allocation6], %s14567_s27, %s14567_s27, %s14568_s28  }
  0x17   :  { %s14569_s12 = smov [#allocation8]   ;;  %s14570_s14 = smov [#allocation11]  }
  0x18   :  { %s62_s13 = sshll.u32 %s14569_s12, 4  ;;  %s86_s15 = sshll.u32 %s14570_s14, 4  ;;  %s63_s13 = int_to_ptr.vmem [resolvable:$true] %s62_s13  ;;  %s87_s15 = int_to_ptr.vmem [resolvable:$true] %s86_s15 }
  0x19   :  { %s14310_s19 = scalar_lea.hbm %s14977_s3, 65536 }
  0x1a   :  { %p14311_p8 = scmp.ne.s32.totalorder %s14977_s3, %s14310_s19  ;;  %p14314_p9 = scmp.lt.u32.totalorder %s14310_s19, %s14977_s3 }
  0x1c   :  { %p14316_p10 = pnand %p14314_p9, %p14311_p8 }
  0x1e   :  { %14319 = shalt.err (!%p14316_p10)
}
  0x1f   :  { %s14320_s1 = scalar_lea.vmem %s63_s13, 65536  ;;  %p14325_p12 = scmp.lt.s32.totalorder %s63_s13, %s63_s13 }
  0x20   :  { %p14321_p11 = scmp.ne.s32.totalorder %s63_s13, %s14320_s1  ;;  %p14326_p13 = scmp.lt.s32.totalorder %s14320_s1, %s14320_s1 }
  0x22   :  { %p14327_p0 = por %p14326_p13, %p14325_p12 }
  0x24   :  { %p14328_p1 = pnand %p14327_p0, %p14321_p11 }
  0x26   :  { %14331 = shalt.err (!%p14328_p1)
}
  0x27   :  { %s14571_s18 = smov 512   ;;  %s14572_s24 = smov 32  }
  0x28   :  { %68 = dma.hbm_to_vmem [thread:$0]  %s14977_s3, 65536, %s63_s13, [#allocation9], %s14571_s18, %s14571_s18, %s14572_s24  }
  0x29   :  { %s14332_s12 = scalar_lea.hbm %s14979_s5, 32768 }
  0x2a   :  { %p14333_p2 = scmp.ne.s32.totalorder %s14979_s5, %s14332_s12  ;;  %p14336_p3 = scmp.lt.u32.totalorder %s14332_s12, %s14979_s5 }
  0x2c   :  { %p14338_p4 = pnand %p14336_p3, %p14333_p2 }
  0x2e   :  { %14341 = shalt.err (!%p14338_p4)
}
  0x2f   :  { %s14342_s20 = scalar_lea.vmem %s87_s15, 32768  ;;  %p14347_p6 = scmp.lt.s32.totalorder %s87_s15, %s87_s15 }
  0x30   :  { %p14343_p5 = scmp.ne.s32.totalorder %s87_s15, %s14342_s20  ;;  %p14348_p7 = scmp.lt.s32.totalorder %s14342_s20, %s14342_s20 }
  0x32   :  { %p14349_p8 = por %p14348_p7, %p14347_p6 }
  0x34   :  { %p14350_p9 = pnand %p14349_p8, %p14343_p5 }
  0x36   :  { %14353 = shalt.err (!%p14350_p9)
}
  0x37   :  { %92 = dma.hbm_to_vmem [thread:$0]  %s14979_s5, 32768, %s87_s15, [#allocation12], %s14567_s27, %s14567_s27, %s14568_s28  }
  0x38   :  { %s14573_s21 = smov [#allocation14]   ;;  %s14354_s25 = scalar_lea.hbm %s14981_s7, 4096 }
  0x39   :  { %s108_s22 = sshll.u32 %s14573_s21, 4  ;;  %p14355_p10 = scmp.ne.s32.totalorder %s14981_s7, %s14354_s25  ;;  %s109_s22 = int_to_ptr.vmem [resolvable:$true] %s108_s22 }
  0x3a   :  { %p14358_p11 = scmp.lt.u32.totalorder %s14354_s25, %s14981_s7 }
  0x3c   :  { %p14360_p12 = pnand %p14358_p11, %p14355_p10 }
  0x3e   :  { %14363 = shalt.err (!%p14360_p12)
}
  0x3f   :  { %s14364_s14 = scalar_lea.vmem %s109_s22, 4096  ;;  %p14369_p0 = scmp.lt.s32.totalorder %s109_s22, %s109_s22 }
  0x40   :  { %p14365_p13 = scmp.ne.s32.totalorder %s109_s22, %s14364_s14  ;;  %p14370_p1 = scmp.lt.s32.totalorder %s14364_s14, %s14364_s14 }
  0x42   :  { %p14371_p2 = por %p14370_p1, %p14369_p0 }
  0x44   :  { %p14372_p3 = pnand %p14371_p2, %p14365_p13 }
  0x46   :  { %14375 = shalt.err (!%p14372_p3)
}
  0x47   :  { %s14574_s5 = smov 64   ;;  %s14575_s27 = smov 4  }
  0x48   :  { %114 = dma.hbm_to_vmem [thread:$0]  %s14981_s7, 4096, %s109_s22, [#allocation15], %s14574_s5, %s14574_s5, %s14575_s27  }
  0x49   :  { %s14576_s16 = smov [#allocation17]   ;;  %s14577_s19 = smov [#allocation2]  }
  0x4a   :  { %s130_s17 = sshll.u32 %s14576_s16, 4  ;;  %s29_s20 = sshll.u32 %s14577_s19, 4  ;;  %s131_s17 = int_to_ptr.vmem [resolvable:$true] %s130_s17  ;;  %s30_s20 = int_to_ptr.vmem [resolvable:$true] %s29_s20 }
  0x4b   :  { %s14376_s21 = scalar_lea.hbm %s14983_s9, 1024 }
  0x4c   :  { %p14377_p4 = scmp.ne.s32.totalorder %s14983_s9, %s14376_s21  ;;  %p14380_p5 = scmp.lt.u32.totalorder %s14376_s21, %s14983_s9 }
  0x4e   :  { %p14382_p6 = pnand %p14380_p5, %p14377_p4 }
  0x50   :  { %14385 = shalt.err (!%p14382_p6)
}
  0x51   :  { %s14386_s7 = scalar_lea.vmem %s131_s17, 1024  ;;  %p14391_p8 = scmp.lt.s32.totalorder %s131_s17, %s131_s17 }
  0x52   :  { %p14387_p7 = scmp.ne.s32.totalorder %s131_s17, %s14386_s7  ;;  %p14392_p9 = scmp.lt.s32.totalorder %s14386_s7, %s14386_s7 }
  0x54   :  { %p14393_p10 = por %p14392_p9, %p14391_p8 }
  0x56   :  { %p14394_p11 = pnand %p14393_p10, %p14387_p7 }
  0x58   :  { %14397 = shalt.err (!%p14394_p11)
}
  0x59   :  { %136 = dma.hbm_to_vmem [thread:$0]  %s14983_s9, 1024, %s131_s17, [#allocation18], %s14574_s5, %s14574_s5, %s14575_s27  }
  0x5a   :  { %s14398_s14 = scalar_lea.hbm %s14974_s0, 32 }
  0x5b   :  { %p14399_p12 = scmp.ne.s32.totalorder %s14974_s0, %s14398_s14  ;;  %p14402_p13 = scmp.lt.u32.totalorder %s14398_s14, %s14974_s0 }
  0x5d   :  { %p14404_p0 = pnand %p14402_p13, %p14399_p12 }
  0x5f   :  { %14407 = shalt.err (!%p14404_p0)
}
  0x60   :  { %s14408_s3 = scalar_lea.vmem %s30_s20, 32  ;;  %p14413_p2 = scmp.lt.s32.totalorder %s30_s20, %s30_s20 }
  0x61   :  { %p14409_p1 = scmp.ne.s32.totalorder %s30_s20, %s14408_s3  ;;  %p14414_p3 = scmp.lt.s32.totalorder %s14408_s3, %s14408_s3 }
  0x63   :  { %p14415_p4 = por %p14414_p3, %p14413_p2 }
  0x65   :  { %p14416_p5 = pnand %p14415_p4, %p14409_p1 }
  0x67   :  { %14419 = shalt.err (!%p14416_p5)
}
  0x68   :  { %32 = dma.hbm_to_vmem [thread:$0]  %s14974_s0, 32, %s30_s20, [#allocation3]  }
  0x69   :  { %s14578_s27 = smov [#allocation7]   ;;  %s14579_s13 = smov [#allocation10]  }
  0x6a   :  { %s50_s17 = sshll.u32 %s14578_s27, 4  ;;  %s74_s21 = sshll.u32 %s14579_s13, 4  ;;  %s51_s17 = int_to_ptr.vmem [resolvable:$true] %s50_s17  ;;  %s14728_s21 = int_to_ptr.vmem [resolvable:$true] %s74_s21 }
  0x6b   :  { %s14420_s25 = scalar_lea.hbm %s14976_s2, 32768 }
  0x6c   :  { %p14421_p6 = scmp.ne.s32.totalorder %s14976_s2, %s14420_s25  ;;  %p14424_p7 = scmp.lt.u32.totalorder %s14420_s25, %s14976_s2 }
  0x6e   :  { %p14426_p8 = pnand %p14424_p7, %p14421_p6 }
  0x70   :  { %14429 = shalt.err (!%p14426_p8)
}
  0x71   :  { %s14430_s0 = scalar_lea.vmem %s51_s17, 32768  ;;  %p14435_p10 = scmp.lt.s32.totalorder %s51_s17, %s51_s17 }
  0x72   :  { %p14431_p9 = scmp.ne.s32.totalorder %s51_s17, %s14430_s0  ;;  %p14436_p11 = scmp.lt.s32.totalorder %s14430_s0, %s14430_s0 }
  0x74   :  { %p14437_p12 = por %p14436_p11, %p14435_p10 }
  0x76   :  { %p14438_p13 = pnand %p14437_p12, %p14431_p9 }
  0x78   :  { %14441 = shalt.err (!%p14438_p13)
}
  0x79   :  { %56 = dma.hbm_to_vmem [thread:$0]  %s14976_s2, 32768, %s51_s17, [#allocation6], %s14571_s18, %s14571_s18, %s14572_s24  }
  0x7a   :  { %s14442_s28 = scalar_lea.hbm %s14978_s4, 65536 }
  0x7b   :  { %p14443_p0 = scmp.ne.s32.totalorder %s14978_s4, %s14442_s28  ;;  %p14446_p1 = scmp.lt.u32.totalorder %s14442_s28, %s14978_s4 }
  0x7d   :  { %p14448_p2 = pnand %p14446_p1, %p14443_p0 }
  0x7f   :  { %14451 = shalt.err (!%p14448_p2)
}
  0x80   :  { %s14452_s9 = scalar_lea.vmem %s14728_s21, 65536  ;;  %p14457_p4 = scmp.lt.s32.totalorder %s14728_s21, %s14728_s21 }
  0x81   :  { %p14453_p3 = scmp.ne.s32.totalorder %s14728_s21, %s14452_s9  ;;  %p14458_p5 = scmp.lt.s32.totalorder %s14452_s9, %s14452_s9 }
  0x83   :  { %p14459_p6 = por %p14458_p5, %p14457_p4 }
  0x85   :  { %p14460_p7 = pnand %p14459_p6, %p14453_p3 }
  0x87   :  { %14463 = shalt.err (!%p14460_p7)
}
  0x88   :  { %80 = dma.hbm_to_vmem [thread:$0]  %s14978_s4, 65536, %s14728_s21, [#allocation9], %s14571_s18, %s14571_s18, %s14572_s24  }
  0x89   :  { %s14580_s27 = smov [#allocation13]   ;;  %s14581_s13 = smov [#allocation16]  }
  0x8a   :  { %s99_s17 = sshll.u32 %s14580_s27, 4  ;;  %s121_s23 = sshll.u32 %s14581_s13, 4  ;;  %s100_s17 = int_to_ptr.vmem [resolvable:$true] %s99_s17  ;;  %s122_s23 = int_to_ptr.vmem [resolvable:$true] %s121_s23 }
  0x8b   :  { %s14464_s26 = scalar_lea.hbm %s14980_s6, 64 }
  0x8c   :  { %p14465_p8 = scmp.ne.s32.totalorder %s14980_s6, %s14464_s26  ;;  %p14468_p9 = scmp.lt.u32.totalorder %s14464_s26, %s14980_s6 }
  0x8e   :  { %p14470_p10 = pnand %p14468_p9, %p14465_p8 }
  0x90   :  { %14473 = shalt.err (!%p14470_p10)
}
  0x91   :  { %s14474_s4 = scalar_lea.vmem %s100_s17, 64  ;;  %p14479_p12 = scmp.lt.s32.totalorder %s100_s17, %s100_s17 }
  0x92   :  { %p14475_p11 = scmp.ne.s32.totalorder %s100_s17, %s14474_s4  ;;  %p14480_p13 = scmp.lt.s32.totalorder %s14474_s4, %s14474_s4 }
  0x94   :  { %p14481_p0 = por %p14480_p13, %p14479_p12 }
  0x96   :  { %p14482_p1 = pnand %p14481_p0, %p14475_p11 }
  0x98   :  { %14485 = shalt.err (!%p14482_p1)
}
  0x99   :  { %102 = dma.hbm_to_vmem [thread:$0]  %s14980_s6, 64, %s100_s17, [#allocation12]  }
  0x9a   :  { %s14486_s30 = scalar_lea.hbm %s14982_s8, 16 }
  0x9b   :  { %p14487_p2 = scmp.ne.s32.totalorder %s14982_s8, %s14486_s30  ;;  %p14490_p3 = scmp.lt.u32.totalorder %s14486_s30, %s14982_s8 }
  0x9d   :  { %p14492_p4 = pnand %p14490_p3, %p14487_p2 }
  0x9f   :  { %14495 = shalt.err (!%p14492_p4)
}
  0xa0   :  { %s14496_s16 = scalar_lea.vmem %s122_s23, 16  ;;  %s14500_s19 = scalar_lea.vmem %s122_s23, 32 }
  0xa1   :  { %p14497_p5 = scmp.ne.s32.totalorder %s122_s23, %s14496_s16  ;;  %p14501_p6 = scmp.lt.s32.totalorder %s122_s23, %s122_s23 }
  0xa2   :  { %p14502_p7 = scmp.lt.s32.totalorder %s14500_s19, %s14496_s16 }
  0xa4   :  { %p14503_p8 = por %p14502_p7, %p14501_p6 }
  0xa6   :  { %p14504_p9 = pnand %p14503_p8, %p14497_p5 }
  0xa8   :  { %14507 = shalt.err (!%p14504_p9)
}
  0xa9   :  { %124 = dma.hbm_to_vmem [thread:$0]  %s14982_s8, 16, %s122_s23, [#allocation15]  }
  0xaa   :  { %s14582_s9 = smov [#allocation19]   ;;  %s14508_s17 = scalar_lea.hbm %s14984_s10, 16 }
  0xab   :  { %s143_s2 = sshll.u32 %s14582_s9, 4  ;;  %p14509_p10 = scmp.ne.s32.totalorder %s14984_s10, %s14508_s17  ;;  %s144_s2 = int_to_ptr.vmem [resolvable:$true] %s143_s2 }
  0xac   :  { %p14512_p11 = scmp.lt.u32.totalorder %s14508_s17, %s14984_s10 }
  0xae   :  { %p14514_p12 = pnand %p14512_p11, %p14509_p10 }
  0xb0   :  { %14517 = shalt.err (!%p14514_p12)
}
  0xb1   :  { %s14518_s7 = scalar_lea.vmem %s144_s2, 16  ;;  %s14522_s8 = scalar_lea.vmem %s144_s2, 32 }
  0xb2   :  { %p14519_p13 = scmp.ne.s32.totalorder %s144_s2, %s14518_s7  ;;  %p14523_p0 = scmp.lt.s32.totalorder %s144_s2, %s144_s2 }
  0xb3   :  { %p14524_p1 = scmp.lt.s32.totalorder %s14522_s8, %s14518_s7 }
  0xb5   :  { %p14525_p2 = por %p14524_p1, %p14523_p0 }
  0xb7   :  { %p14526_p3 = pnand %p14525_p2, %p14519_p13 }
  0xb9   :  { %14529 = shalt.err (!%p14526_p3)
}
  0xba   :  { %146 = dma.hbm_to_vmem [thread:$0]  %s14984_s10, 16, %s144_s2, [#allocation18]  }
  0xbb   :  { %14552 = dma.done.wait [#allocation3], 32  }
  0xbc   :  { %14553 = vsyncadd [#allocation3], 4294967264 }
  0xbd   :  { %14554 = dma.done.wait [#allocation6], 33280  }
  0xbe   :  { %14555 = vsyncadd [#allocation6], 4294934016 }
  0xbf   :  { %14556 = dma.done.wait [#allocation9], 131072  }
  0xc0   :  { %14557 = vsyncadd [#allocation9], 4294836224 }
  0xc1   :  { %14558 = dma.done.wait [#allocation12], 32832  }
  0xc2   :  { %14559 = vsyncadd [#allocation12], 4294934464 }
  0xc3   :  { %14560 = dma.done.wait [#allocation15], 4112  }
  0xc4   :  { %14561 = vsyncadd [#allocation15], 4294963184 }
  0xc5   :  { %14562 = dma.done.wait [#allocation18], 1040  }
  0xc6   :  { %14563 = vsyncadd [#allocation18], 4294966256  ;;  %v14583_v0 = vmov 0   ;;  %v13858_v1 = vld [vmem:[#allocation5 + $0x4] ss:$16 sps:$4 sm:$0xff]   ;;  %vm207_vm0 = vcmask 130048  }
  0xc7   :  { %243 = vmatprep.mubr.bf16.mxu1 %v14583_v0  ;;  %v13860_v2 = vld [vmem:[#allocation5] ss:$16 sps:$4 sm:$0xff]   ;;  %v181_v3 = vld [vmem:[#allocation2] sm:$0x3]  ;;  %211 = vmatprep.subr.bf16.mxu1 %v13858_v1  ;;  %v13861_v5 = vld [vmem:[#allocation5 + $0x8] ss:$16 sps:$4 sm:$0xff]  }
  0xc8   :  { %v182_v4 = vpack.c.bf16 %v181_v3, %v181_v3  ;;  %v13863_v6 = vld [vmem:[#allocation5 + $0xc] ss:$16 sps:$4 sm:$0xff]   ;;  %212 = vmatpush1.bf16.msra.mxu1 %v13860_v2  ;;  %v301_v7 = vld [vmem:[#allocation7] sm:$0xff]  ;;  %vm14585_vm1 = vmmov 0   ;;  %s14586_s10 = smov [#allocation20]  }
  0xc9   :  { %v305_v8 = vld [vmem:[#allocation7 + $0x20] sm:$0xff]  ;;  %v302_v9 = vld [vmem:[#allocation7 + $0x8] sm:$0xff]  ;;  %252 = vmatprep.subr.bf16.mxu1 %v13863_v6  ;;  %s12026_s29 = sshll.u32 %s14586_s10, 4  ;;  %s12027_s29 = int_to_ptr.vmem [resolvable:$true] %s12026_s29 }
  0xca   :  { %v12047_v10 = vcombine.high %v301_v7, %v305_v8  ;;  %v306_v11 = vld [vmem:[#allocation7 + $0x28] sm:$0xff]  ;;  %v12046_v12 = vcombine.low %v301_v7, %v305_v8  ;;  %v309_v13 = vld [vmem:[#allocation7 + $0x40] sm:$0xff]  ;;  %s14530_s0 = scalar_lea.vmem %s12027_s29, 32  ;;  %p14535_p5 = scmp.lt.s32.totalorder %s12027_s29, %s12027_s29 }
  0xcb   :  { %v313_v14 = vld [vmem:[#allocation7 + $0x60] sm:$0xff]  ;;  %v12049_v15 = vcombine.high %v302_v9, %v306_v11  ;;  %12044 = vmatmul.mubr.msk.bf16.vlgmr.msra.gmra.mrb[0].mxu1 %vm207_vm0, %v182_v4  ;;  %v310_v20 = vld [vmem:[#allocation7 + $0x48] sm:$0xff]  ;;  %v12048_v25 = vcombine.low %v302_v9, %v306_v11  ;;  %p14531_p4 = scmp.ne.s32.totalorder %s12027_s29, %s14530_s0  ;;  %p14536_p6 = scmp.lt.s32.totalorder %s14530_s0, %s14530_s0 }
  0xcc   :  { %v12055_v16 = vcombine.high %v309_v13, %v313_v14  ;;  %1837 = vmatprep.subr.bf16.mxu0 %v12047_v10  ;;  %v317_v17 = vld [vmem:[#allocation7 + $0x80] sm:$0xff]  ;;  %253 = vmatpush1.bf16.msra.mxu1 %v13861_v5  ;;  %v12054_v19 = vcombine.low %v309_v13, %v313_v14  ;;  %v314_v21 = vld [vmem:[#allocation7 + $0x68] sm:$0xff] }
  0xcd   :  { %v321_v18 = vld [vmem:[#allocation7 + $0xa0] sm:$0xff]  ;;  %284 = vmatprep.mubr.bf16.mxu1 %v14583_v0  ;;  %1919 = vmatprep.subr.bf16.mxu1 %v12049_v15  ;;  %v12057_v26 = vcombine.high %v310_v20, %v314_v21  ;;  %v318_v28 = vld [vmem:[#allocation7 + $0x88] sm:$0xff]  ;;  %v12056_v33 = vcombine.low %v310_v20, %v314_v21  ;;  %p14537_p7 = por %p14536_p6, %p14535_p5 }
  0xce   :  { %1838 = vmatpush1.bf16.msra.mxu0 %v12046_v12  ;;  %v12063_v22 = vcombine.high %v317_v17, %v321_v18  ;;  %v325_v23 = vld [vmem:[#allocation7 + $0xc0] sm:$0xff]  ;;  %v12062_v27 = vcombine.low %v317_v17, %v321_v18  ;;  %v322_v29 = vld [vmem:[#allocation7 + $0xa8] sm:$0xff] }
  0xcf   :  { %1839 = vmatprep.subr.bf16.mxu0 %v12055_v16  ;;  %v329_v24 = vld [vmem:[#allocation7 + $0xe0] sm:$0xff]  ;;  %v12065_v34 = vcombine.high %v318_v28, %v322_v29  ;;  %v326_v36 = vld [vmem:[#allocation7 + $0xc8] sm:$0xff]  ;;  %v12064_v41 = vcombine.low %v318_v28, %v322_v29  ;;  %p14538_p8 = pnand %p14537_p7, %p14531_p4 }
  0xd0   :  { %v12071_v30 = vcombine.high %v325_v23, %v329_v24  ;;  %v333_v31 = vld [vmem:[#allocation7 + $0x100] sm:$0xff]  ;;  %v12070_v35 = vcombine.low %v325_v23, %v329_v24  ;;  %v330_v37 = vld [vmem:[#allocation7 + $0xe8] sm:$0xff] }
  0xd1   :  { %v337_v32 = vld [vmem:[#allocation7 + $0x120] sm:$0xff]  ;;  %v12073_v42 = vcombine.high %v326_v36, %v330_v37  ;;  %v334_v44 = vld [vmem:[#allocation7 + $0x108] sm:$0xff]  ;;  %v12072_v49 = vcombine.low %v326_v36, %v330_v37 }
  0xd2   :  { %1840 = vmatpush1.bf16.msra.mxu0 %v12054_v19  ;;  %v12079_v38 = vcombine.high %v333_v31, %v337_v32  ;;  %v341_v39 = vld [vmem:[#allocation7 + $0x140] sm:$0xff]  ;;  %v12078_v43 = vcombine.low %v333_v31, %v337_v32  ;;  %v338_v45 = vld [vmem:[#allocation7 + $0x128] sm:$0xff] }
  0xd3   :  { %1841 = vmatprep.subr.bf16.mxu0 %v12063_v22  ;;  %12045 = vmatmul.mubr.msk.bf16.vlgmr.msra.gmra.mrb[4].mxu1 %vm207_vm0, %v182_v4  ;;  %v345_v40 = vld [vmem:[#allocation7 + $0x160] sm:$0xff]  ;;  %v342_v50 = vld [vmem:[#allocation7 + $0x148] sm:$0xff]  ;;  %v12081_v52 = vcombine.high %v334_v44, %v338_v45  ;;  %v12080_v57 = vcombine.low %v334_v44, %v338_v45 }
  0xd4   :  { %1920 = vmatpush1.bf16.msra.mxu1 %v12048_v25  ;;  %v12087_v46 = vcombine.high %v341_v39, %v345_v40  ;;  %v349_v47 = vld [vmem:[#allocation7 + $0x180] sm:$0xff]  ;;  %v346_v51 = vld [vmem:[#allocation7 + $0x168] sm:$0xff]  ;;  %v12086_v53 = vcombine.low %v341_v39, %v345_v40 }
  0xd5   :  { %1921 = vmatprep.subr.bf16.mxu1 %v12057_v26  ;;  %v353_v48 = vld [vmem:[#allocation7 + $0x1a0] sm:$0xff]  ;;  %v350_v58 = vld [vmem:[#allocation7 + $0x188] sm:$0xff]  ;;  %v12089_v60 = vcombine.high %v342_v50, %v346_v51  ;;  %v12088_v1 = vcombine.low %v342_v50, %v346_v51 }
  0xd6   :  { %1842 = vmatpush1.bf16.msra.mxu0 %v12062_v27  ;;  %v357_v54 = vld [vmem:[#allocation7 + $0x1c0] sm:$0xff]  ;;  %v12095_v56 = vcombine.high %v349_v47, %v353_v48  ;;  %v354_v59 = vld [vmem:[#allocation7 + $0x1a8] sm:$0xff]  ;;  %v12094_v61 = vcombine.low %v349_v47, %v353_v48 }
  0xd7   :  { %1843 = vmatprep.subr.bf16.mxu0 %v12071_v30  ;;  %v361_v55 = vld [vmem:[#allocation7 + $0x1e0] sm:$0xff]  ;;  %v358_v2 = vld [vmem:[#allocation7 + $0x1c8] sm:$0xff]  ;;  %v12097_v4 = vcombine.high %v350_v58, %v354_v59  ;;  %v12096_v9 = vcombine.low %v350_v58, %v354_v59 }
  0xd8   :  { %1922 = vmatpush1.bf16.msra.mxu1 %v12056_v33  ;;  %v365_v62 = vld [vmem:[#allocation7 + $0x200] sm:$0xff]  ;;  %v12103_v0 = vcombine.high %v357_v54, %v361_v55  ;;  %v362_v3 = vld [vmem:[#allocation7 + $0x1e8] sm:$0xff]  ;;  %v12102_v5 = vcombine.low %v357_v54, %v361_v55 }
  0xd9   :  { %1923 = vmatprep.subr.bf16.mxu1 %v12065_v34  ;;  %v369_v63 = vld [vmem:[#allocation7 + $0x220] sm:$0xff]  ;;  %v366_v10 = vld [vmem:[#allocation7 + $0x208] sm:$0xff]  ;;  %v12105_v12 = vcombine.high %v358_v2, %v362_v3  ;;  %v12104_v17 = vcombine.low %v358_v2, %v362_v3 }
  0xda   :  { %1844 = vmatpush1.bf16.msra.mxu0 %v12070_v35  ;;  %v373_v6 = vld [vmem:[#allocation7 + $0x240] sm:$0xff]  ;;  %v12111_v8 = vcombine.high %v365_v62, %v369_v63  ;;  %v370_v11 = vld [vmem:[#allocation7 + $0x228] sm:$0xff]  ;;  %v12110_v13 = vcombine.low %v365_v62, %v369_v63 }
  0xdb   :  { %1845 = vmatprep.subr.bf16.mxu0 %v12079_v38  ;;  %v377_v7 = vld [vmem:[#allocation7 + $0x260] sm:$0xff]  ;;  %v374_v18 = vld [vmem:[#allocation7 + $0x248] sm:$0xff]  ;;  %v12113_v20 = vcombine.high %v366_v10, %v370_v11  ;;  %v12112_v25 = vcombine.low %v366_v10, %v370_v11 }
  0xdc   :  { %1924 = vmatpush1.bf16.msra.mxu1 %v12064_v41  ;;  %v381_v14 = vld [vmem:[#allocation7 + $0x280] sm:$0xff]  ;;  %v12119_v16 = vcombine.high %v373_v6, %v377_v7  ;;  %v378_v19 = vld [vmem:[#allocation7 + $0x268] sm:$0xff]  ;;  %v12118_v21 = vcombine.low %v373_v6, %v377_v7 }
  0xdd   :  { %1925 = vmatprep.subr.bf16.mxu1 %v12073_v42  ;;  %v385_v15 = vld [vmem:[#allocation7 + $0x2a0] sm:$0xff]  ;;  %v382_v26 = vld [vmem:[#allocation7 + $0x288] sm:$0xff]  ;;  %v12121_v28 = vcombine.high %v374_v18, %v378_v19  ;;  %v12120_v33 = vcombine.low %v374_v18, %v378_v19 }
  0xde   :  { %1846 = vmatpush1.bf16.msra.mxu0 %v12078_v43  ;;  %v389_v22 = vld [vmem:[#allocation7 + $0x2c0] sm:$0xff]  ;;  %v12127_v24 = vcombine.high %v381_v14, %v385_v15  ;;  %v386_v27 = vld [vmem:[#allocation7 + $0x2a8] sm:$0xff]  ;;  %v12126_v29 = vcombine.low %v381_v14, %v385_v15 }
  0xdf   :  { %1847 = vmatprep.subr.bf16.mxu0 %v12087_v46  ;;  %v393_v23 = vld [vmem:[#allocation7 + $0x2e0] sm:$0xff]  ;;  %v390_v34 = vld [vmem:[#allocation7 + $0x2c8] sm:$0xff]  ;;  %v12129_v36 = vcombine.high %v382_v26, %v386_v27  ;;  %v12128_v41 = vcombine.low %v382_v26, %v386_v27 }
  0xe0   :  { %1926 = vmatpush1.bf16.msra.mxu1 %v12072_v49  ;;  %v397_v30 = vld [vmem:[#allocation7 + $0x300] sm:$0xff]  ;;  %v12135_v32 = vcombine.high %v389_v22, %v393_v23  ;;  %v394_v35 = vld [vmem:[#allocation7 + $0x2e8] sm:$0xff]  ;;  %v12134_v37 = vcombine.low %v389_v22, %v393_v23 }
  0xe1   :  { %1927 = vmatprep.subr.bf16.mxu1 %v12081_v52  ;;  %v401_v31 = vld [vmem:[#allocation7 + $0x320] sm:$0xff]  ;;  %v398_v42 = vld [vmem:[#allocation7 + $0x308] sm:$0xff]  ;;  %v12137_v44 = vcombine.high %v390_v34, %v394_v35  ;;  %v12136_v49 = vcombine.low %v390_v34, %v394_v35 }
  0xe2   :  { %1848 = vmatpush1.bf16.msra.mxu0 %v12086_v53  ;;  %v405_v38 = vld [vmem:[#allocation7 + $0x340] sm:$0xff]  ;;  %v12143_v40 = vcombine.high %v397_v30, %v401_v31  ;;  %v402_v43 = vld [vmem:[#allocation7 + $0x328] sm:$0xff]  ;;  %v12142_v45 = vcombine.low %v397_v30, %v401_v31 }
  0xe3   :  { %1849 = vmatprep.subr.bf16.mxu0 %v12095_v56  ;;  %v409_v39 = vld [vmem:[#allocation7 + $0x360] sm:$0xff]  ;;  %v406_v50 = vld [vmem:[#allocation7 + $0x348] sm:$0xff]  ;;  %v12145_v52 = vcombine.high %v398_v42, %v402_v43  ;;  %v12144_v55 = vcombine.low %v398_v42, %v402_v43 }
  0xe4   :  { %1928 = vmatpush1.bf16.msra.mxu1 %v12080_v57  ;;  %v413_v46 = vld [vmem:[#allocation7 + $0x380] sm:$0xff]  ;;  %v12151_v48 = vcombine.high %v405_v38, %v409_v39  ;;  %v410_v51 = vld [vmem:[#allocation7 + $0x368] sm:$0xff]  ;;  %v12150_v53 = vcombine.low %v405_v38, %v409_v39 }
  0xe5   :  { %1929 = vmatprep.subr.bf16.mxu1 %v12089_v60  ;;  %v417_v47 = vld [vmem:[#allocation7 + $0x3a0] sm:$0xff]  ;;  %v414_v56 = vld [vmem:[#allocation7 + $0x388] sm:$0xff]  ;;  %v12153_v58 = vcombine.high %v406_v50, %v410_v51  ;;  %v12152_v60 = vcombine.low %v406_v50, %v410_v51 }
  0xe6   :  { %1850 = vmatpush1.bf16.msra.mxu0 %v12094_v61  ;;  %v12159_v54 = vcombine.high %v413_v46, %v417_v47  ;;  %v418_v57 = vld [vmem:[#allocation7 + $0x3a8] sm:$0xff]  ;;  %v12158_v59 = vcombine.low %v413_v46, %v417_v47  ;;  %v421_v63 = vld [vmem:[#allocation7 + $0x3c0] sm:$0xff] }
  0xe7   :  { %1851 = vmatprep.subr.bf16.mxu0 %v12103_v0  ;;  %v12161_v61 = vcombine.high %v414_v56, %v418_v57  ;;  %v12160_v62 = vcombine.low %v414_v56, %v418_v57  ;;  %v425_v0 = vld [vmem:[#allocation7 + $0x3e0] sm:$0xff]  ;;  %v426_v3 = vld [vmem:[#allocation7 + $0x3e8] sm:$0xff] }
  0xe8   :  { %1930 = vmatpush1.bf16.msra.mxu1 %v12088_v1  ;;  %v422_v1 = vld [vmem:[#allocation7 + $0x3c8] sm:$0xff]  ;;  %v12167_v2 = vcombine.high %v421_v63, %v425_v0  ;;  %v12166_v6 = vcombine.low %v421_v63, %v425_v0  ;;  %v429_v7 = vld [vmem:[#allocation7 + $0x400] sm:$0xff] }
  0xe9   :  { %1931 = vmatprep.subr.bf16.mxu1 %v12097_v4  ;;  %v12168_v4 = vcombine.low %v422_v1, %v426_v3  ;;  %v434_v11 = vld [vmem:[#allocation7 + $0x428] sm:$0xff]  ;;  %v437_v18 = vld [vmem:[#allocation7 + $0x440] sm:$0xff] }
  0xea   :  { %1852 = vmatpush1.bf16.msra.mxu0 %v12102_v5  ;;  %v12169_v5 = vcombine.high %v422_v1, %v426_v3  ;;  %v438_v22 = vld [vmem:[#allocation7 + $0x448] sm:$0xff]  ;;  %v449_v30 = vld [vmem:[#allocation7 + $0x4a0] sm:$0xff] }
  0xeb   :  { %1853 = vmatprep.subr.bf16.mxu0 %v12111_v8  ;;  %v433_v8 = vld [vmem:[#allocation7 + $0x420] sm:$0xff]  ;;  %v442_v23 = vld [vmem:[#allocation7 + $0x468] sm:$0xff] }
  0xec   :  { %1932 = vmatpush1.bf16.msra.mxu1 %v12096_v9  ;;  %v430_v9 = vld [vmem:[#allocation7 + $0x408] sm:$0xff]  ;;  %v12175_v10 = vcombine.high %v429_v7, %v433_v8  ;;  %v12184_v34 = vcombine.low %v438_v22, %v442_v23  ;;  %v453_v38 = vld [vmem:[#allocation7 + $0x4c0] sm:$0xff] }
  0xed   :  { %1933 = vmatprep.subr.bf16.mxu1 %v12105_v12  ;;  %v12174_v12 = vcombine.low %v429_v7, %v433_v8  ;;  %v12177_v14 = vcombine.high %v430_v9, %v434_v11  ;;  %v446_v31 = vld [vmem:[#allocation7 + $0x488] sm:$0xff]  ;;  %v461_v51 = vld [vmem:[#allocation7 + $0x500] sm:$0xff] }
  0xee   :  { %1854 = vmatpush1.bf16.msra.mxu0 %v12110_v13  ;;  %v12176_v13 = vcombine.low %v430_v9, %v434_v11  ;;  %v458_v42 = vld [vmem:[#allocation7 + $0x4e8] sm:$0xff]  ;;  %v477_v3 = vld [vmem:[#allocation7 + $0x580] sm:$0xff] }
  0xef   :  { %1855 = vmatprep.subr.bf16.mxu0 %v12119_v16  ;;  %v485_v11 = vld [vmem:[#allocation7 + $0x5c0] sm:$0xff] }
  0xf0   :  { %1934 = vmatpush1.bf16.msra.mxu1 %v12104_v17 }
  0xf1   :  { %1935 = vmatprep.subr.bf16.mxu1 %v12113_v20 }
  0xf2   :  { %1856 = vmatpush1.bf16.msra.mxu0 %v12118_v21  ;;  %v441_v21 = vld [vmem:[#allocation7 + $0x460] sm:$0xff] }
  0xf3   :  { %1857 = vmatprep.subr.bf16.mxu0 %v12127_v24  ;;  %v12183_v27 = vcombine.high %v437_v18, %v441_v21 }
  0xf4   :  { %1936 = vmatpush1.bf16.msra.mxu1 %v12112_v25 }
  0xf5   :  { %1937 = vmatprep.subr.bf16.mxu1 %v12121_v28  ;;  %v12185_v28 = vcombine.high %v438_v22, %v442_v23  ;;  %v498_v22 = vld [vmem:[#allocation7 + $0x628] sm:$0xff] }
  0xf6   :  { %1858 = vmatpush1.bf16.msra.mxu0 %v12126_v29  ;;  %v445_v29 = vld [vmem:[#allocation7 + $0x480] sm:$0xff] }
  0xf7   :  { %1859 = vmatprep.subr.bf16.mxu0 %v12135_v32  ;;  %v450_v32 = vld [vmem:[#allocation7 + $0x4a8] sm:$0xff]  ;;  %v12190_v46 = vcombine.low %v445_v29, %v449_v30 }
  0xf8   :  { %1938 = vmatpush1.bf16.msra.mxu1 %v12120_v33  ;;  %v12182_v33 = vcombine.low %v437_v18, %v441_v21  ;;  %v12192_v47 = vcombine.low %v446_v31, %v450_v32  ;;  %v494_v21 = vld [vmem:[#allocation7 + $0x608] sm:$0xff] }
  0xf9   :  { %1939 = vmatprep.subr.bf16.mxu1 %v12129_v36  ;;  %v12191_v36 = vcombine.high %v445_v29, %v449_v30  ;;  %v501_v29 = vld [vmem:[#allocation7 + $0x640] sm:$0xff] }
  0xfa   :  { %1860 = vmatpush1.bf16.msra.mxu0 %v12134_v37  ;;  %v12193_v37 = vcombine.high %v446_v31, %v450_v32  ;;  %v505_v30 = vld [vmem:[#allocation7 + $0x660] sm:$0xff]  ;;  %v502_v31 = vld [vmem:[#allocation7 + $0x648] sm:$0xff] }
  0xfb   :  { %1861 = vmatprep.subr.bf16.mxu0 %v12143_v40  ;;  %v457_v40 = vld [vmem:[#allocation7 + $0x4e0] sm:$0xff]  ;;  %v506_v32 = vld [vmem:[#allocation7 + $0x668] sm:$0xff] }
  0xfc   :  { %1940 = vmatpush1.bf16.msra.mxu1 %v12128_v41  ;;  %v454_v41 = vld [vmem:[#allocation7 + $0x4c8] sm:$0xff] }
  0xfd   :  { %1941 = vmatprep.subr.bf16.mxu1 %v12137_v44  ;;  %v12201_v50 = vcombine.high %v454_v41, %v458_v42  ;;  %v12200_v56 = vcombine.low %v454_v41, %v458_v42  ;;  %v514_v41 = vld [vmem:[#allocation7 + $0x6a8] sm:$0xff]  ;;  %v12246_v42 = vcombine.low %v501_v29, %v505_v30 }
  0xfe   :  { %1862 = vmatpush1.bf16.msra.mxu0 %v12142_v45 }
  0xff   :  { %1863 = vmatprep.subr.bf16.mxu0 %v12151_v48 }
 0x100   :  { %1942 = vmatpush1.bf16.msra.mxu1 %v12136_v49  ;;  %v12199_v49 = vcombine.high %v453_v38, %v457_v40 }
 0x101   :  { %1943 = vmatprep.subr.bf16.mxu1 %v12145_v52  ;;  %v465_v52 = vld [vmem:[#allocation7 + $0x520] sm:$0xff] }
 0x102   :  { %1864 = vmatpush1.bf16.msra.mxu0 %v12150_v53  ;;  %v462_v53 = vld [vmem:[#allocation7 + $0x508] sm:$0xff]  ;;  %v12207_v57 = vcombine.high %v461_v51, %v465_v52  ;;  %v12206_v63 = vcombine.low %v461_v51, %v465_v52 }
 0x103   :  { %1865 = vmatprep.subr.bf16.mxu0 %v12159_v54  ;;  %v466_v54 = vld [vmem:[#allocation7 + $0x528] sm:$0xff] }
 0x104   :  { %1944 = vmatpush1.bf16.msra.mxu1 %v12144_v55  ;;  %v12198_v55 = vcombine.low %v453_v38, %v457_v40  ;;  %v12208_v0 = vcombine.low %v462_v53, %v466_v54  ;;  %v509_v38 = vld [vmem:[#allocation7 + $0x680] sm:$0xff]  ;;  %v510_v40 = vld [vmem:[#allocation7 + $0x688] sm:$0xff] }
 0x105   :  { %1945 = vmatprep.subr.bf16.mxu1 %v12153_v58  ;;  %v12209_v58 = vcombine.high %v462_v53, %v466_v54  ;;  %v12256_v52 = vcombine.low %v510_v40, %v514_v41 }
 0x106   :  { %1866 = vmatpush1.bf16.msra.mxu0 %v12158_v59  ;;  %v469_v59 = vld [vmem:[#allocation7 + $0x540] sm:$0xff] }
 0x107   :  { %1867 = vmatprep.subr.bf16.mxu0 %v12167_v2 }
 0x108   :  { %1946 = vmatpush1.bf16.msra.mxu1 %v12152_v60  ;;  %v473_v60 = vld [vmem:[#allocation7 + $0x560] sm:$0xff] }
 0x109   :  { %1947 = vmatprep.subr.bf16.mxu1 %v12161_v61  ;;  %v470_v61 = vld [vmem:[#allocation7 + $0x548] sm:$0xff]  ;;  %v12215_v1 = vcombine.high %v469_v59, %v473_v60  ;;  %v12214_v7 = vcombine.low %v469_v59, %v473_v60 }
 0x10a   :  { %1868 = vmatpush1.bf16.msra.mxu0 %v12166_v6  ;;  %v482_v6 = vld [vmem:[#allocation7 + $0x5a8] sm:$0xff] }
 0x10b   :  { %1878 = vmatprep.subr.bf16.mxu0 %v12175_v10 }
 0x10c   :  { %1948 = vmatpush1.bf16.msra.mxu1 %v12160_v62  ;;  %v474_v62 = vld [vmem:[#allocation7 + $0x568] sm:$0xff] }
 0x10d   :  { %1949 = vmatprep.subr.bf16.mxu1 %v12169_v5  ;;  %v12217_v2 = vcombine.high %v470_v61, %v474_v62  ;;  %v478_v5 = vld [vmem:[#allocation7 + $0x588] sm:$0xff]  ;;  %v12216_v8 = vcombine.low %v470_v61, %v474_v62 }
 0x10e   :  { %v12225_v10 = vcombine.high %v478_v5, %v482_v6 }
 0x110   :  { %1950 = vmatpush1.bf16.msra.mxu1 %v12168_v4  ;;  %v481_v4 = vld [vmem:[#allocation7 + $0x5a0] sm:$0xff] }
 0x111   :  { %1960 = vmatprep.subr.bf16.mxu1 %v12177_v14  ;;  %v12223_v9 = vcombine.high %v477_v3, %v481_v4  ;;  %v490_v14 = vld [vmem:[#allocation7 + $0x5e8] sm:$0xff] }
 0x19e   :  { %v245_v15 = vpop.f32.mrb[0].mxu1 }
 0x19f   :  { %v293_v16 = vmax.f32 %v245_v15, 0.0  ;;  %v247_v17 = vpop.f32.mrb[1].mxu1  ;;  %v12222_v15 = vcombine.low %v477_v3, %v481_v4 }
 0x1a0   :  { %v294_v19 = vmax.f32 %v247_v17, 0.0  ;;  %v249_v20 = vpop.f32.mrb[2].mxu1 }
 0x1a1   :  { %v250_v24 = vpop.f32.mrb[3].mxu1  ;;  %v14805_v26 = vpack.c.bf16 %v293_v16, %v293_v16  ;;  %v12224_v16 = vcombine.low %v478_v5, %v482_v6  ;;  %v497_v20 = vld [vmem:[#allocation7 + $0x620] sm:$0xff] }
 0x1a2   :  { %v14803_v25 = vpack.c.bf16 %v294_v19, %v294_v19  ;;  %v493_v19 = vld [vmem:[#allocation7 + $0x600] sm:$0xff] }
 0x1a4   :  { %1869 = vmatprep.mubr.bf16.mxu0 %v14803_v25  ;;  %1951 = vmatprep.mubr.bf16.mxu1 %v14803_v25 }
 0x1a5   :  { %1870 = vmatmul.mubr.bf16.vlgmr.msra.gmra.mrb[0].mxu0 %v14805_v26  ;;  %1952 = vmatmul.mubr.bf16.vlgmr.msra.gmra.mrb[8].mxu1 %v14805_v26 }
 0x1a6   :  { %1879 = vmatpush1.bf16.msra.mxu0 %v12174_v12  ;;  %1961 = vmatpush1.bf16.msra.mxu1 %v12176_v13  ;;  %v14811_v35 = vpop.f32.mrb[4].mxu1  ;;  %v489_v12 = vld [vmem:[#allocation7 + $0x5e0] sm:$0xff]  ;;  %v486_v13 = vld [vmem:[#allocation7 + $0x5c8] sm:$0xff] }
 0x1a7   :  { %1880 = vmatprep.subr.bf16.mxu0 %v12183_v27  ;;  %1962 = vmatprep.subr.bf16.mxu1 %v12185_v28  ;;  %v288_v39 = vpop.f32.mrb[5].mxu1  ;;  %v12231_v17 = vcombine.high %v485_v11, %v489_v12  ;;  %v12233_v18 = vcombine.high %v486_v13, %v490_v14  ;;  %v12230_v23 = vcombine.low %v485_v11, %v489_v12 }
 0x1a8   :  { %v296_v43 = vmax.f32 %v288_v39, 0.0  ;;  %v290_v44 = vpop.f32.mrb[6].mxu1  ;;  %v12232_v24 = vcombine.low %v486_v13, %v490_v14  ;;  %v12239_v27 = vcombine.high %v493_v19, %v497_v20  ;;  %v12241_v28 = vcombine.high %v494_v21, %v498_v22  ;;  %v513_v39 = vld [vmem:[#allocation7 + $0x6a0] sm:$0xff] }
 0x1a9   :  { %v291_v45 = vpop.f32.mrb[7].mxu1  ;;  %v12255_v44 = vcombine.high %v509_v38, %v513_v39  ;;  %v12254_v51 = vcombine.low %v509_v38, %v513_v39  ;;  %v316_v38 = vld [vmem:[#allocation7 + $0x78] sm:$0xff] }
 0x1aa   :  { %1881 = vmatpush1.bf16.msra.mxu0 %v12182_v33  ;;  %1963 = vmatpush1.bf16.msra.mxu1 %v12184_v34  ;;  %v14813_v48 = vpack.c.bf16 %v296_v43, %v296_v43  ;;  %v12238_v33 = vcombine.low %v493_v19, %v497_v20  ;;  %v12240_v34 = vcombine.low %v494_v21, %v498_v22 }
 0x1ab   :  { %1882 = vmatprep.subr.bf16.mxu0 %v12191_v36  ;;  %1964 = vmatprep.subr.bf16.mxu1 %v12193_v37  ;;  %v12247_v36 = vcombine.high %v501_v29, %v505_v30  ;;  %v12249_v37 = vcombine.high %v502_v31, %v506_v32  ;;  %v12248_v43 = vcombine.low %v502_v31, %v506_v32  ;;  %v295_v31 = vmax.f32 %v14811_v35, 0.0  ;;  %v323_v35 = vld [vmem:[#allocation7 + $0xb0] sm:$0xff] }
 0x1ac   :  { %1910 = vmatprep.mubr.bf16.mxu0 %v14813_v48  ;;  %1992 = vmatprep.mubr.bf16.mxu1 %v14813_v48  ;;  %v12257_v45 = vcombine.high %v510_v40, %v514_v41 }
 0x1ad   :  { %v14818_v40 = vpack.c.bf16 %v295_v31, %v295_v31  ;;  %v368_v31 = vld [vmem:[#allocation7 + $0x218] sm:$0xff] }
 0x1ae   :  { %1883 = vmatpush1.bf16.msra.mxu0 %v12190_v46  ;;  %1965 = vmatpush1.bf16.msra.mxu1 %v12192_v47  ;;  %v517_v46 = vld [vmem:[#allocation7 + $0x6c0] sm:$0xff] }
 0x1af   :  { %1884 = vmatprep.subr.bf16.mxu0 %v12199_v49  ;;  %1966 = vmatprep.subr.bf16.mxu1 %v12201_v50  ;;  %v521_v47 = vld [vmem:[#allocation7 + $0x6e0] sm:$0xff]  ;;  %v518_v49 = vld [vmem:[#allocation7 + $0x6c8] sm:$0xff] }
 0x1b0   :  { %v522_v50 = vld [vmem:[#allocation7 + $0x6e8] sm:$0xff]  ;;  %v12263_v53 = vcombine.high %v517_v46, %v521_v47  ;;  %v12262_v59 = vcombine.low %v517_v46, %v521_v47  ;;  %v324_v46 = vld [vmem:[#allocation7 + $0xb8] sm:$0xff] }
 0x1b1   :  { %v12265_v54 = vcombine.high %v518_v49, %v522_v50  ;;  %v12264_v60 = vcombine.low %v518_v49, %v522_v50 }
 0x1b2   :  { %1885 = vmatpush1.bf16.msra.mxu0 %v12198_v55  ;;  %1967 = vmatpush1.bf16.msra.mxu1 %v12200_v56  ;;  %v525_v55 = vld [vmem:[#allocation7 + $0x700] sm:$0xff] }
 0x1b3   :  { %1886 = vmatprep.subr.bf16.mxu0 %v12207_v57  ;;  %1968 = vmatprep.subr.bf16.mxu1 %v12209_v58  ;;  %v529_v56 = vld [vmem:[#allocation7 + $0x720] sm:$0xff]  ;;  %v526_v57 = vld [vmem:[#allocation7 + $0x708] sm:$0xff] }
 0x1b4   :  { %v530_v58 = vld [vmem:[#allocation7 + $0x728] sm:$0xff]  ;;  %v12271_v61 = vcombine.high %v525_v55, %v529_v56  ;;  %v12270_v3 = vcombine.low %v525_v55, %v529_v56  ;;  %v332_v55 = vld [vmem:[#allocation7 + $0xf8] sm:$0xff] }
 0x1b5   :  { %v12273_v62 = vcombine.high %v526_v57, %v530_v58  ;;  %v12272_v4 = vcombine.low %v526_v57, %v530_v58 }
 0x1b6   :  { %1887 = vmatpush1.bf16.msra.mxu0 %v12206_v63  ;;  %1969 = vmatpush1.bf16.msra.mxu1 %v12208_v0  ;;  %v533_v63 = vld [vmem:[#allocation7 + $0x740] sm:$0xff] }
 0x1b7   :  { %1888 = vmatprep.subr.bf16.mxu0 %v12215_v1  ;;  %1970 = vmatprep.subr.bf16.mxu1 %v12217_v2  ;;  %v537_v0 = vld [vmem:[#allocation7 + $0x760] sm:$0xff]  ;;  %v534_v1 = vld [vmem:[#allocation7 + $0x748] sm:$0xff] }
 0x1b8   :  { %v538_v2 = vld [vmem:[#allocation7 + $0x768] sm:$0xff]  ;;  %v12279_v5 = vcombine.high %v533_v63, %v537_v0  ;;  %v12278_v11 = vcombine.low %v533_v63, %v537_v0 }
 0x1b9   :  { %v12281_v6 = vcombine.high %v534_v1, %v538_v2  ;;  %v12280_v12 = vcombine.low %v534_v1, %v538_v2 }
 0x1ba   :  { %1889 = vmatpush1.bf16.msra.mxu0 %v12214_v7  ;;  %1971 = vmatpush1.bf16.msra.mxu1 %v12216_v8  ;;  %v541_v7 = vld [vmem:[#allocation7 + $0x780] sm:$0xff] }
 0x1bb   :  { %1890 = vmatprep.subr.bf16.mxu0 %v12223_v9  ;;  %1972 = vmatprep.subr.bf16.mxu1 %v12225_v10  ;;  %v545_v8 = vld [vmem:[#allocation7 + $0x7a0] sm:$0xff]  ;;  %v542_v9 = vld [vmem:[#allocation7 + $0x788] sm:$0xff] }
 0x1bc   :  { %v546_v10 = vld [vmem:[#allocation7 + $0x7a8] sm:$0xff]  ;;  %v12287_v13 = vcombine.high %v541_v7, %v545_v8  ;;  %v12286_v19 = vcombine.low %v541_v7, %v545_v8 }
 0x1bd   :  { %v12289_v14 = vcombine.high %v542_v9, %v546_v10  ;;  %v12288_v20 = vcombine.low %v542_v9, %v546_v10 }
 0x1be   :  { %1891 = vmatpush1.bf16.msra.mxu0 %v12222_v15  ;;  %1973 = vmatpush1.bf16.msra.mxu1 %v12224_v16  ;;  %v549_v15 = vld [vmem:[#allocation7 + $0x7c0] sm:$0xff] }
 0x1bf   :  { %1892 = vmatprep.subr.bf16.mxu0 %v12231_v17  ;;  %1974 = vmatprep.subr.bf16.mxu1 %v12233_v18  ;;  %v553_v16 = vld [vmem:[#allocation7 + $0x7e0] sm:$0xff]  ;;  %v550_v17 = vld [vmem:[#allocation7 + $0x7c8] sm:$0xff] }
 0x1c0   :  { %v554_v18 = vld [vmem:[#allocation7 + $0x7e8] sm:$0xff]  ;;  %v12295_v21 = vcombine.high %v549_v15, %v553_v16  ;;  %v12294_v29 = vcombine.low %v549_v15, %v553_v16 }
 0x1c1   :  { %v12297_v22 = vcombine.high %v550_v17, %v554_v18  ;;  %v12296_v30 = vcombine.low %v550_v17, %v554_v18 }
 0x1c2   :  { %1893 = vmatpush1.bf16.msra.mxu0 %v12230_v23  ;;  %1975 = vmatpush1.bf16.msra.mxu1 %v12232_v24  ;;  %v303_v23 = vld [vmem:[#allocation7 + $0x10] sm:$0xff] }
 0x1c3   :  { %1894 = vmatprep.subr.bf16.mxu0 %v12239_v27  ;;  %1976 = vmatprep.subr.bf16.mxu1 %v12241_v28  ;;  %v307_v24 = vld [vmem:[#allocation7 + $0x30] sm:$0xff]  ;;  %v304_v27 = vld [vmem:[#allocation7 + $0x18] sm:$0xff] }
 0x1c4   :  { %v308_v28 = vld [vmem:[#allocation7 + $0x38] sm:$0xff]  ;;  %v12051_v32 = vcombine.high %v303_v23, %v307_v24  ;;  %v12050_v39 = vcombine.low %v303_v23, %v307_v24 }
 0x1c5   :  { %v12052_v41 = vcombine.low %v304_v27, %v308_v28 }
 0x1c6   :  { %1895 = vmatpush1.bf16.msra.mxu0 %v12238_v33  ;;  %1977 = vmatpush1.bf16.msra.mxu1 %v12240_v34  ;;  %v12053_v33 = vcombine.high %v304_v27, %v308_v28  ;;  %v311_v34 = vld [vmem:[#allocation7 + $0x50] sm:$0xff] }
 0x1c7   :  { %1896 = vmatprep.subr.bf16.mxu0 %v12247_v36  ;;  %1978 = vmatprep.subr.bf16.mxu1 %v12249_v37  ;;  %v315_v36 = vld [vmem:[#allocation7 + $0x70] sm:$0xff]  ;;  %v312_v37 = vld [vmem:[#allocation7 + $0x58] sm:$0xff] }
 0x1c8   :  { %v12058_v47 = vcombine.low %v311_v34, %v315_v36  ;;  %v12060_v49 = vcombine.low %v312_v37, %v316_v38 }
 0x1ca   :  { %1897 = vmatpush1.bf16.msra.mxu0 %v12246_v42  ;;  %1979 = vmatpush1.bf16.msra.mxu1 %v12248_v43  ;;  %v12059_v42 = vcombine.high %v311_v34, %v315_v36  ;;  %v12061_v43 = vcombine.high %v312_v37, %v316_v38  ;;  %v375_v38 = vld [vmem:[#allocation7 + $0x250] sm:$0xff] }
 0x1cb   :  { %1898 = vmatprep.subr.bf16.mxu0 %v12255_v44  ;;  %1980 = vmatprep.subr.bf16.mxu1 %v12257_v45  ;;  %v319_v44 = vld [vmem:[#allocation7 + $0x90] sm:$0xff]  ;;  %v320_v45 = vld [vmem:[#allocation7 + $0x98] sm:$0xff] }
 0x1cc   :  { %v12067_v50 = vcombine.high %v319_v44, %v323_v35  ;;  %v12066_v56 = vcombine.low %v319_v44, %v323_v35  ;;  %v12068_v57 = vcombine.low %v320_v45, %v324_v46 }
 0x1ce   :  { %1899 = vmatpush1.bf16.msra.mxu0 %v12254_v51  ;;  %1981 = vmatpush1.bf16.msra.mxu1 %v12256_v52  ;;  %v12069_v51 = vcombine.high %v320_v45, %v324_v46  ;;  %v327_v52 = vld [vmem:[#allocation7 + $0xd0] sm:$0xff] }
 0x1cf   :  { %1900 = vmatprep.subr.bf16.mxu0 %v12263_v53  ;;  %1982 = vmatprep.subr.bf16.mxu1 %v12265_v54  ;;  %v331_v53 = vld [vmem:[#allocation7 + $0xf0] sm:$0xff]  ;;  %v328_v54 = vld [vmem:[#allocation7 + $0xd8] sm:$0xff] }
 0x1d0   :  { %v12075_v58 = vcombine.high %v327_v52, %v331_v53  ;;  %v12074_v63 = vcombine.low %v327_v52, %v331_v53  ;;  %v12076_v0 = vcombine.low %v328_v54, %v332_v55  ;;  %v383_v46 = vld [vmem:[#allocation7 + $0x290] sm:$0xff] }
 0x1d2   :  { %1901 = vmatpush1.bf16.msra.mxu0 %v12262_v59  ;;  %1983 = vmatpush1.bf16.msra.mxu1 %v12264_v60  ;;  %v12077_v59 = vcombine.high %v328_v54, %v332_v55  ;;  %v335_v60 = vld [vmem:[#allocation7 + $0x110] sm:$0xff] }
 0x1d3   :  { %1902 = vmatprep.subr.bf16.mxu0 %v12271_v61  ;;  %1984 = vmatprep.subr.bf16.mxu1 %v12273_v62  ;;  %v339_v61 = vld [vmem:[#allocation7 + $0x130] sm:$0xff]  ;;  %v340_v62 = vld [vmem:[#allocation7 + $0x138] sm:$0xff] }
 0x1d4   :  { %v12083_v1 = vcombine.high %v335_v60, %v339_v61  ;;  %v12082_v7 = vcombine.low %v335_v60, %v339_v61  ;;  %v391_v55 = vld [vmem:[#allocation7 + $0x2d0] sm:$0xff] }
 0x1d6   :  { %1903 = vmatpush1.bf16.msra.mxu0 %v12270_v3  ;;  %1985 = vmatpush1.bf16.msra.mxu1 %v12272_v4  ;;  %v343_v3 = vld [vmem:[#allocation7 + $0x150] sm:$0xff] }
 0x1d7   :  { %1904 = vmatprep.subr.bf16.mxu0 %v12279_v5  ;;  %1986 = vmatprep.subr.bf16.mxu1 %v12281_v6  ;;  %v347_v4 = vld [vmem:[#allocation7 + $0x170] sm:$0xff]  ;;  %v344_v5 = vld [vmem:[#allocation7 + $0x158] sm:$0xff] }
 0x1d8   :  { %v348_v6 = vld [vmem:[#allocation7 + $0x178] sm:$0xff]  ;;  %v12091_v9 = vcombine.high %v343_v3, %v347_v4  ;;  %v12090_v15 = vcombine.low %v343_v3, %v347_v4 }
 0x1d9   :  { %v12093_v10 = vcombine.high %v344_v5, %v348_v6  ;;  %v12092_v16 = vcombine.low %v344_v5, %v348_v6  ;;  %v407_v6 = vld [vmem:[#allocation7 + $0x350] sm:$0xff] }
 0x1da   :  { %1905 = vmatpush1.bf16.msra.mxu0 %v12278_v11  ;;  %1987 = vmatpush1.bf16.msra.mxu1 %v12280_v12  ;;  %v351_v11 = vld [vmem:[#allocation7 + $0x190] sm:$0xff] }
 0x1db   :  { %1906 = vmatprep.subr.bf16.mxu0 %v12287_v13  ;;  %1988 = vmatprep.subr.bf16.mxu1 %v12289_v14  ;;  %v355_v12 = vld [vmem:[#allocation7 + $0x1b0] sm:$0xff]  ;;  %v352_v13 = vld [vmem:[#allocation7 + $0x198] sm:$0xff] }
 0x1dc   :  { %v356_v14 = vld [vmem:[#allocation7 + $0x1b8] sm:$0xff]  ;;  %v12099_v17 = vcombine.high %v351_v11, %v355_v12  ;;  %v12098_v23 = vcombine.low %v351_v11, %v355_v12 }
 0x1dd   :  { %v12101_v18 = vcombine.high %v352_v13, %v356_v14  ;;  %v12100_v24 = vcombine.low %v352_v13, %v356_v14  ;;  %v415_v14 = vld [vmem:[#allocation7 + $0x390] sm:$0xff] }
 0x1de   :  { %1907 = vmatpush1.bf16.msra.mxu0 %v12286_v19  ;;  %1989 = vmatpush1.bf16.msra.mxu1 %v12288_v20  ;;  %v359_v19 = vld [vmem:[#allocation7 + $0x1d0] sm:$0xff] }
 0x1df   :  { %1908 = vmatprep.subr.bf16.mxu0 %v12295_v21  ;;  %1990 = vmatprep.subr.bf16.mxu1 %v12297_v22  ;;  %v363_v20 = vld [vmem:[#allocation7 + $0x1f0] sm:$0xff]  ;;  %v360_v21 = vld [vmem:[#allocation7 + $0x1d8] sm:$0xff] }
 0x1e0   :  { %v364_v22 = vld [vmem:[#allocation7 + $0x1f8] sm:$0xff]  ;;  %v12107_v27 = vcombine.high %v359_v19, %v363_v20 }
 0x1e1   :  { %v12109_v28 = vcombine.high %v360_v21, %v364_v22  ;;  %v12108_v34 = vcombine.low %v360_v21, %v364_v22  ;;  %v423_v22 = vld [vmem:[#allocation7 + $0x3d0] sm:$0xff] }
 0x1e2   :  { %1909 = vmatpush1.bf16.msra.mxu0 %v12294_v29  ;;  %1991 = vmatpush1.bf16.msra.mxu1 %v12296_v30  ;;  %v367_v29 = vld [vmem:[#allocation7 + $0x210] sm:$0xff] }
 0x1e3   :  { %2001 = vmatprep.subr.bf16.mxu0 %v12051_v32  ;;  %2083 = vmatprep.subr.bf16.mxu1 %v12053_v33  ;;  %v371_v30 = vld [vmem:[#allocation7 + $0x230] sm:$0xff]  ;;  %v372_v32 = vld [vmem:[#allocation7 + $0x238] sm:$0xff]  ;;  %v12106_v33 = vcombine.low %v359_v19, %v363_v20 }
 0x1e4   :  { %v12115_v36 = vcombine.high %v367_v29, %v371_v30  ;;  %v12117_v37 = vcombine.high %v368_v31, %v372_v32  ;;  %v12116_v44 = vcombine.low %v368_v31, %v372_v32  ;;  %v431_v32 = vld [vmem:[#allocation7 + $0x410] sm:$0xff] }
 0x1e5   :  { %1911 = vmatmul.mubr.bf16.vlgmr.msra.gmra.mrb[0].mxu0 %v14818_v40  ;;  %1993 = vmatmul.mubr.bf16.vlgmr.msra.gmra.mrb[8].mxu1 %v14818_v40 }
 0x1e6   :  { %2002 = vmatpush1.bf16.msra.mxu0 %v12050_v39  ;;  %2033 = vmatprep.mubr.bf16.mxu0 %v14803_v25  ;;  %v379_v39 = vld [vmem:[#allocation7 + $0x270] sm:$0xff] }
 0x1e7   :  { %2084 = vmatpush1.bf16.msra.mxu1 %v12052_v41  ;;  %2115 = vmatprep.mubr.bf16.mxu1 %v14803_v25  ;;  %v336_v25 = vld [vmem:[#allocation7 + $0x118] sm:$0xff]  ;;  %v12123_v35 = vcombine.high %v375_v38, %v379_v39 }
 0x1e8   :  { %2003 = vmatprep.subr.bf16.mxu0 %v12059_v42  ;;  %2085 = vmatprep.subr.bf16.mxu1 %v12061_v43  ;;  %v12085_v2 = vcombine.high %v336_v25, %v340_v62  ;;  %v12084_v8 = vcombine.low %v336_v25, %v340_v62  ;;  %v376_v41 = vld [vmem:[#allocation7 + $0x258] sm:$0xff]  ;;  %v12114_v43 = vcombine.low %v367_v29, %v371_v30  ;;  %v399_v62 = vld [vmem:[#allocation7 + $0x310] sm:$0xff] }
 0x1e9   :  { %v380_v42 = vld [vmem:[#allocation7 + $0x278] sm:$0xff] }
 0x1ea   :  { %2004 = vmatpush1.bf16.msra.mxu0 %v12058_v47  ;;  %v12125_v45 = vcombine.high %v376_v41, %v380_v42  ;;  %v387_v47 = vld [vmem:[#allocation7 + $0x2b0] sm:$0xff]  ;;  %v12124_v52 = vcombine.low %v376_v41, %v380_v42 }
 0x1eb   :  { %2086 = vmatpush1.bf16.msra.mxu1 %v12060_v49  ;;  %2005 = vmatprep.subr.bf16.mxu0 %v12067_v50  ;;  %v384_v49 = vld [vmem:[#allocation7 + $0x298] sm:$0xff]  ;;  %v12131_v53 = vcombine.high %v383_v46, %v387_v47  ;;  %v439_v42 = vld [vmem:[#allocation7 + $0x450] sm:$0xff] }
 0x1ec   :  { %2087 = vmatprep.subr.bf16.mxu1 %v12069_v51  ;;  %v388_v50 = vld [vmem:[#allocation7 + $0x2b8] sm:$0xff]  ;;  %v12122_v51 = vcombine.low %v375_v38, %v379_v39 }
 0x1ed   :  { %v12133_v54 = vcombine.high %v384_v49, %v388_v50  ;;  %v12132_v60 = vcombine.low %v384_v49, %v388_v50  ;;  %v447_v49 = vld [vmem:[#allocation7 + $0x490] sm:$0xff] }
 0x1ee   :  { %2006 = vmatpush1.bf16.msra.mxu0 %v12066_v56  ;;  %v395_v56 = vld [vmem:[#allocation7 + $0x2f0] sm:$0xff] }
 0x1ef   :  { %2088 = vmatpush1.bf16.msra.mxu1 %v12068_v57  ;;  %2007 = vmatprep.subr.bf16.mxu0 %v12075_v58  ;;  %v392_v57 = vld [vmem:[#allocation7 + $0x2d8] sm:$0xff]  ;;  %v12139_v61 = vcombine.high %v391_v55, %v395_v56  ;;  %v451_v50 = vld [vmem:[#allocation7 + $0x4b0] sm:$0xff] }
 0x1f0   :  { %2089 = vmatprep.subr.bf16.mxu1 %v12077_v59  ;;  %v396_v58 = vld [vmem:[#allocation7 + $0x2f8] sm:$0xff]  ;;  %v12130_v59 = vcombine.low %v383_v46, %v387_v47 }
 0x1f1   :  { %v12141_v25 = vcombine.high %v392_v57, %v396_v58  ;;  %v12140_v3 = vcombine.low %v392_v57, %v396_v58  ;;  %v455_v58 = vld [vmem:[#allocation7 + $0x4d0] sm:$0xff] }
 0x1f2   :  { %2008 = vmatpush1.bf16.msra.mxu0 %v12074_v63  ;;  %v403_v63 = vld [vmem:[#allocation7 + $0x330] sm:$0xff] }
 0x1f3   :  { %2090 = vmatpush1.bf16.msra.mxu1 %v12076_v0  ;;  %2009 = vmatprep.subr.bf16.mxu0 %v12083_v1  ;;  %v400_v0 = vld [vmem:[#allocation7 + $0x318] sm:$0xff]  ;;  %v12147_v4 = vcombine.high %v399_v62, %v403_v63 }
 0x1f4   :  { %2091 = vmatprep.subr.bf16.mxu1 %v12085_v2  ;;  %v404_v1 = vld [vmem:[#allocation7 + $0x338] sm:$0xff]  ;;  %v12138_v2 = vcombine.low %v391_v55, %v395_v56  ;;  %v12195_v56 = vcombine.high %v447_v49, %v451_v50 }
 0x1f5   :  { %v12149_v5 = vcombine.high %v400_v0, %v404_v1  ;;  %v12148_v11 = vcombine.low %v400_v0, %v404_v1  ;;  %v463_v0 = vld [vmem:[#allocation7 + $0x510] sm:$0xff] }
 0x1f6   :  { %2010 = vmatpush1.bf16.msra.mxu0 %v12082_v7  ;;  %v411_v7 = vld [vmem:[#allocation7 + $0x370] sm:$0xff] }
 0x1f7   :  { %2092 = vmatpush1.bf16.msra.mxu1 %v12084_v8  ;;  %2011 = vmatprep.subr.bf16.mxu0 %v12091_v9  ;;  %v408_v8 = vld [vmem:[#allocation7 + $0x358] sm:$0xff]  ;;  %v12155_v12 = vcombine.high %v407_v6, %v411_v7  ;;  %v467_v1 = vld [vmem:[#allocation7 + $0x530] sm:$0xff] }
 0x1f8   :  { %2093 = vmatprep.subr.bf16.mxu1 %v12093_v10  ;;  %v412_v9 = vld [vmem:[#allocation7 + $0x378] sm:$0xff]  ;;  %v12146_v10 = vcombine.low %v399_v62, %v403_v63 }
 0x1f9   :  { %v12157_v13 = vcombine.high %v408_v8, %v412_v9  ;;  %v12156_v19 = vcombine.low %v408_v8, %v412_v9  ;;  %v475_v8 = vld [vmem:[#allocation7 + $0x570] sm:$0xff]  ;;  %v472_v9 = vld [vmem:[#allocation7 + $0x558] sm:$0xff] }
 0x1fa   :  { %2012 = vmatpush1.bf16.msra.mxu0 %v12090_v15  ;;  %v419_v15 = vld [vmem:[#allocation7 + $0x3b0] sm:$0xff] }
 0x1fb   :  { %2094 = vmatpush1.bf16.msra.mxu1 %v12092_v16  ;;  %2013 = vmatprep.subr.bf16.mxu0 %v12099_v17  ;;  %v416_v16 = vld [vmem:[#allocation7 + $0x398] sm:$0xff]  ;;  %v12163_v20 = vcombine.high %v415_v14, %v419_v15 }
 0x1fc   :  { %2095 = vmatprep.subr.bf16.mxu1 %v12101_v18  ;;  %v420_v17 = vld [vmem:[#allocation7 + $0x3b8] sm:$0xff]  ;;  %v12154_v18 = vcombine.low %v407_v6, %v411_v7  ;;  %v471_v7 = vld [vmem:[#allocation7 + $0x550] sm:$0xff] }
 0x1fd   :  { %v12165_v21 = vcombine.high %v416_v16, %v420_v17  ;;  %v12164_v29 = vcombine.low %v416_v16, %v420_v17  ;;  %v483_v16 = vld [vmem:[#allocation7 + $0x5b0] sm:$0xff]  ;;  %v480_v17 = vld [vmem:[#allocation7 + $0x598] sm:$0xff] }
 0x1fe   :  { %2014 = vmatpush1.bf16.msra.mxu0 %v12098_v23  ;;  %v427_v23 = vld [vmem:[#allocation7 + $0x3f0] sm:$0xff] }
 0x1ff   :  { %2096 = vmatpush1.bf16.msra.mxu1 %v12100_v24  ;;  %2015 = vmatprep.subr.bf16.mxu0 %v12107_v27  ;;  %v424_v24 = vld [vmem:[#allocation7 + $0x3d8] sm:$0xff]  ;;  %v12171_v30 = vcombine.high %v423_v22, %v427_v23 }
 0x200   :  { %2097 = vmatprep.subr.bf16.mxu1 %v12109_v28  ;;  %v428_v27 = vld [vmem:[#allocation7 + $0x3f8] sm:$0xff]  ;;  %v12162_v28 = vcombine.low %v415_v14, %v419_v15  ;;  %v479_v15 = vld [vmem:[#allocation7 + $0x590] sm:$0xff] }
 0x201   :  { %v12173_v31 = vcombine.high %v424_v24, %v428_v27  ;;  %v12172_v38 = vcombine.low %v424_v24, %v428_v27  ;;  %v491_v24 = vld [vmem:[#allocation7 + $0x5f0] sm:$0xff]  ;;  %v488_v27 = vld [vmem:[#allocation7 + $0x5d8] sm:$0xff] }
 0x202   :  { %2016 = vmatpush1.bf16.msra.mxu0 %v12106_v33  ;;  %v435_v33 = vld [vmem:[#allocation7 + $0x430] sm:$0xff] }
 0x203   :  { %2098 = vmatpush1.bf16.msra.mxu1 %v12108_v34  ;;  %2017 = vmatprep.subr.bf16.mxu0 %v12115_v36  ;;  %v432_v34 = vld [vmem:[#allocation7 + $0x418] sm:$0xff]  ;;  %v12179_v39 = vcombine.high %v431_v32, %v435_v33 }
 0x204   :  { %2099 = vmatprep.subr.bf16.mxu1 %v12117_v37  ;;  %v436_v36 = vld [vmem:[#allocation7 + $0x438] sm:$0xff]  ;;  %v12170_v37 = vcombine.low %v423_v22, %v427_v23  ;;  %v487_v23 = vld [vmem:[#allocation7 + $0x5d0] sm:$0xff] }
 0x205   :  { %v12181_v41 = vcombine.high %v432_v34, %v436_v36  ;;  %v12180_v46 = vcombine.low %v432_v34, %v436_v36  ;;  %v499_v34 = vld [vmem:[#allocation7 + $0x630] sm:$0xff]  ;;  %v496_v36 = vld [vmem:[#allocation7 + $0x618] sm:$0xff] }
 0x206   :  { %2018 = vmatpush1.bf16.msra.mxu0 %v12114_v43  ;;  %v443_v43 = vld [vmem:[#allocation7 + $0x470] sm:$0xff] }
 0x207   :  { %2100 = vmatpush1.bf16.msra.mxu1 %v12116_v44  ;;  %2019 = vmatprep.subr.bf16.mxu0 %v12123_v35  ;;  %v12178_v44 = vcombine.low %v431_v32, %v435_v33  ;;  %v440_v35 = vld [vmem:[#allocation7 + $0x458] sm:$0xff]  ;;  %v12187_v47 = vcombine.high %v439_v42, %v443_v43  ;;  %v495_v33 = vld [vmem:[#allocation7 + $0x610] sm:$0xff] }
 0x208   :  { %2101 = vmatprep.subr.bf16.mxu1 %v12125_v45  ;;  %v444_v45 = vld [vmem:[#allocation7 + $0x478] sm:$0xff] }
 0x209   :  { %v12188_v55 = vcombine.low %v440_v35, %v444_v45 }
 0x20a   :  { %2020 = vmatpush1.bf16.msra.mxu0 %v12122_v51  ;;  %v12189_v51 = vcombine.high %v440_v35, %v444_v45  ;;  %v504_v35 = vld [vmem:[#allocation7 + $0x658] sm:$0xff] }
 0x20b   :  { %2102 = vmatpush1.bf16.msra.mxu1 %v12124_v52  ;;  %2021 = vmatprep.subr.bf16.mxu0 %v12131_v53  ;;  %v448_v52 = vld [vmem:[#allocation7 + $0x498] sm:$0xff] }
 0x20c   :  { %2103 = vmatprep.subr.bf16.mxu1 %v12133_v54  ;;  %v452_v53 = vld [vmem:[#allocation7 + $0x4b8] sm:$0xff]  ;;  %v12186_v54 = vcombine.low %v439_v42, %v443_v43  ;;  %v503_v43 = vld [vmem:[#allocation7 + $0x650] sm:$0xff] }
 0x20d   :  { %v12197_v57 = vcombine.high %v448_v52, %v452_v53  ;;  %v508_v45 = vld [vmem:[#allocation7 + $0x678] sm:$0xff] }
 0x20e   :  { %2022 = vmatpush1.bf16.msra.mxu0 %v12130_v59  ;;  %v459_v59 = vld [vmem:[#allocation7 + $0x4f0] sm:$0xff] }
 0x20f   :  { %2104 = vmatpush1.bf16.msra.mxu1 %v12132_v60  ;;  %2023 = vmatprep.subr.bf16.mxu0 %v12139_v61  ;;  %v456_v60 = vld [vmem:[#allocation7 + $0x4d8] sm:$0xff]  ;;  %v12203_v62 = vcombine.high %v455_v58, %v459_v59 }
 0x210   :  { %2105 = vmatprep.subr.bf16.mxu1 %v12141_v25  ;;  %v460_v61 = vld [vmem:[#allocation7 + $0x4f8] sm:$0xff]  ;;  %v12194_v25 = vcombine.low %v447_v49, %v451_v50  ;;  %v12253_v50 = vcombine.high %v504_v35, %v508_v45 }
 0x211   :  { %v12205_v63 = vcombine.high %v456_v60, %v460_v61 }
 0x212   :  { %2024 = vmatpush1.bf16.msra.mxu0 %v12138_v2  ;;  %v464_v2 = vld [vmem:[#allocation7 + $0x518] sm:$0xff] }
 0x213   :  { %2106 = vmatpush1.bf16.msra.mxu1 %v12140_v3  ;;  %2025 = vmatprep.subr.bf16.mxu0 %v12147_v4  ;;  %v468_v3 = vld [vmem:[#allocation7 + $0x538] sm:$0xff]  ;;  %v12204_v4 = vcombine.low %v456_v60, %v460_v61  ;;  %v523_v60 = vld [vmem:[#allocation7 + $0x6f0] sm:$0xff] }
 0x214   :  { %2107 = vmatprep.subr.bf16.mxu1 %v12149_v5  ;;  %v12211_v5 = vcombine.high %v463_v0, %v467_v1  ;;  %v12213_v6 = vcombine.high %v464_v2, %v468_v3  ;;  %v520_v61 = vld [vmem:[#allocation7 + $0x6d8] sm:$0xff] }
 0x216   :  { %2026 = vmatpush1.bf16.msra.mxu0 %v12146_v10  ;;  %v476_v10 = vld [vmem:[#allocation7 + $0x578] sm:$0xff] }
 0x217   :  { %2108 = vmatpush1.bf16.msra.mxu1 %v12148_v11  ;;  %2027 = vmatprep.subr.bf16.mxu0 %v12155_v12  ;;  %v12210_v11 = vcombine.low %v463_v0, %v467_v1  ;;  %v12212_v12 = vcombine.low %v464_v2, %v468_v3  ;;  %v12221_v14 = vcombine.high %v472_v9, %v476_v10  ;;  %v527_v1 = vld [vmem:[#allocation7 + $0x710] sm:$0xff]  ;;  %v528_v3 = vld [vmem:[#allocation7 + $0x718] sm:$0xff] }
 0x218   :  { %2109 = vmatprep.subr.bf16.mxu1 %v12157_v13  ;;  %v12219_v13 = vcombine.high %v471_v7, %v475_v8  ;;  %v531_v2 = vld [vmem:[#allocation7 + $0x730] sm:$0xff] }
 0x21a   :  { %2028 = vmatpush1.bf16.msra.mxu0 %v12154_v18  ;;  %v484_v18 = vld [vmem:[#allocation7 + $0x5b8] sm:$0xff] }
 0x21b   :  { %2110 = vmatpush1.bf16.msra.mxu1 %v12156_v19  ;;  %2029 = vmatprep.subr.bf16.mxu0 %v12163_v20  ;;  %v12218_v19 = vcombine.low %v471_v7, %v475_v8  ;;  %v12220_v20 = vcombine.low %v472_v9, %v476_v10  ;;  %v12229_v22 = vcombine.high %v480_v17, %v484_v18  ;;  %v535_v8 = vld [vmem:[#allocation7 + $0x750] sm:$0xff]  ;;  %v536_v10 = vld [vmem:[#allocation7 + $0x758] sm:$0xff] }
 0x21c   :  { %2111 = vmatprep.subr.bf16.mxu1 %v12165_v21  ;;  %v12227_v21 = vcombine.high %v479_v15, %v483_v16  ;;  %v539_v9 = vld [vmem:[#allocation7 + $0x770] sm:$0xff] }
 0x21e   :  { %2030 = vmatpush1.bf16.msra.mxu0 %v12162_v28  ;;  %v492_v28 = vld [vmem:[#allocation7 + $0x5f8] sm:$0xff] }
 0x21f   :  { %2112 = vmatpush1.bf16.msra.mxu1 %v12164_v29  ;;  %2031 = vmatprep.subr.bf16.mxu0 %v12171_v30  ;;  %v12226_v29 = vcombine.low %v479_v15, %v483_v16  ;;  %v12228_v30 = vcombine.low %v480_v17, %v484_v18  ;;  %v12237_v32 = vcombine.high %v488_v27, %v492_v28  ;;  %v543_v16 = vld [vmem:[#allocation7 + $0x790] sm:$0xff]  ;;  %v544_v18 = vld [vmem:[#allocation7 + $0x798] sm:$0xff] }
 0x220   :  { %2113 = vmatprep.subr.bf16.mxu1 %v12173_v31  ;;  %v12235_v31 = vcombine.high %v487_v23, %v491_v24  ;;  %v547_v17 = vld [vmem:[#allocation7 + $0x7b0] sm:$0xff] }
 0x222   :  { %2032 = vmatpush1.bf16.msra.mxu0 %v12170_v37  ;;  %v500_v37 = vld [vmem:[#allocation7 + $0x638] sm:$0xff] }
 0x223   :  { %2114 = vmatpush1.bf16.msra.mxu1 %v12172_v38  ;;  %2042 = vmatprep.subr.bf16.mxu0 %v12179_v39  ;;  %v12234_v38 = vcombine.low %v487_v23, %v491_v24  ;;  %v12236_v39 = vcombine.low %v488_v27, %v492_v28  ;;  %v12245_v42 = vcombine.high %v496_v36, %v500_v37  ;;  %v551_v24 = vld [vmem:[#allocation7 + $0x7d0] sm:$0xff]  ;;  %v552_v28 = vld [vmem:[#allocation7 + $0x7d8] sm:$0xff] }
 0x224   :  { %2124 = vmatprep.subr.bf16.mxu1 %v12181_v41  ;;  %v12243_v41 = vcombine.high %v495_v33, %v499_v34  ;;  %v555_v27 = vld [vmem:[#allocation7 + $0x7f0] sm:$0xff] }
 0x225   :  { %2034 = vmatmul.mubr.bf16.vlgmr.msra.gmra.mrb[4].mxu0 %v14805_v26 }
 0x226   :  { %2116 = vmatmul.mubr.bf16.vlgmr.msra.gmra.mrb[12].mxu1 %v14805_v26  ;;  %2043 = vmatpush1.bf16.msra.mxu0 %v12178_v44  ;;  %v12196_v26 = vcombine.low %v448_v52, %v452_v53  ;;  %v507_v44 = vld [vmem:[#allocation7 + $0x670] sm:$0xff]  ;;  %v512_v53 = vld [vmem:[#allocation7 + $0x698] sm:$0xff] }
 0x227   :  { %2074 = vmatprep.mubr.bf16.mxu0 %v14813_v48  ;;  %2125 = vmatpush1.bf16.msra.mxu1 %v12180_v46  ;;  %v12242_v46 = vcombine.low %v495_v33, %v499_v34  ;;  %v12251_v49 = vcombine.high %v503_v43, %v507_v44  ;;  %v515_v52 = vld [vmem:[#allocation7 + $0x6b0] sm:$0xff]  ;;  %v2181_v34 = vld [vmem:[#allocation8] sm:$0xff] }
 0x228   :  { %2156 = vmatprep.mubr.bf16.mxu1 %v14813_v48  ;;  %2044 = vmatprep.subr.bf16.mxu0 %v12187_v47  ;;  %v12202_v48 = vcombine.low %v455_v58, %v459_v59  ;;  %v12244_v47 = vcombine.low %v496_v36, %v500_v37  ;;  %v519_v59 = vld [vmem:[#allocation7 + $0x6d0] sm:$0xff]  ;;  %v2185_v36 = vld [vmem:[#allocation8 + $0x20] sm:$0xff]  ;;  %v2182_v37 = vld [vmem:[#allocation8 + $0x8] sm:$0xff] }
 0x229   :  { %2126 = vmatprep.subr.bf16.mxu1 %v12189_v51  ;;  %v511_v51 = vld [vmem:[#allocation7 + $0x690] sm:$0xff] }
 0x22a   :  { %2045 = vmatpush1.bf16.msra.mxu0 %v12186_v54  ;;  %v516_v54 = vld [vmem:[#allocation7 + $0x6b8] sm:$0xff] }
 0x22b   :  { %2127 = vmatpush1.bf16.msra.mxu1 %v12188_v55  ;;  %2046 = vmatprep.subr.bf16.mxu0 %v12195_v56  ;;  %v12250_v55 = vcombine.low %v503_v43, %v507_v44  ;;  %v12252_v56 = vcombine.low %v504_v35, %v508_v45  ;;  %v12261_v58 = vcombine.high %v512_v53, %v516_v54  ;;  %v2189_v44 = vld [vmem:[#allocation8 + $0x40] sm:$0xff]  ;;  %v2190_v45 = vld [vmem:[#allocation8 + $0x48] sm:$0xff] }
 0x22c   :  { %2128 = vmatprep.subr.bf16.mxu1 %v12197_v57  ;;  %v12259_v57 = vcombine.high %v511_v51, %v515_v52  ;;  %v2193_v35 = vld [vmem:[#allocation8 + $0x60] sm:$0xff] }
 0x22e   :  { %2047 = vmatpush1.bf16.msra.mxu0 %v12194_v25  ;;  %v524_v25 = vld [vmem:[#allocation7 + $0x6f8] sm:$0xff] }
 0x22f   :  { %2129 = vmatpush1.bf16.msra.mxu1 %v12196_v26  ;;  %2048 = vmatprep.subr.bf16.mxu0 %v12203_v62  ;;  %v12258_v26 = vcombine.low %v511_v51, %v515_v52  ;;  %v12260_v62 = vcombine.low %v512_v53, %v516_v54  ;;  %v12269_v0 = vcombine.high %v520_v61, %v524_v25  ;;  %v2197_v52 = vld [vmem:[#allocation8 + $0x80] sm:$0xff]  ;;  %v2198_v54 = vld [vmem:[#allocation8 + $0x88] sm:$0xff] }
 0x230   :  { %2130 = vmatprep.subr.bf16.mxu1 %v12205_v63  ;;  %v12267_v63 = vcombine.high %v519_v59, %v523_v60  ;;  %v2201_v53 = vld [vmem:[#allocation8 + $0xa0] sm:$0xff] }
 0x232   :  { %2049 = vmatpush1.bf16.msra.mxu0 %v12202_v48  ;;  %v532_v48 = vld [vmem:[#allocation7 + $0x738] sm:$0xff] }
 0x233   :  { %2131 = vmatpush1.bf16.msra.mxu1 %v12204_v4  ;;  %2050 = vmatprep.subr.bf16.mxu0 %v12211_v5  ;;  %v12266_v4 = vcombine.low %v519_v59, %v523_v60  ;;  %v12268_v5 = vcombine.low %v520_v61, %v524_v25  ;;  %v12277_v7 = vcombine.high %v528_v3, %v532_v48  ;;  %v2205_v60 = vld [vmem:[#allocation8 + $0xc0] sm:$0xff]  ;;  %v2206_v25 = vld [vmem:[#allocation8 + $0xc8] sm:$0xff] }
 0x234   :  { %2132 = vmatprep.subr.bf16.mxu1 %v12213_v6  ;;  %v12275_v6 = vcombine.high %v527_v1, %v531_v2  ;;  %v2209_v61 = vld [vmem:[#allocation8 + $0xe0] sm:$0xff] }
 0x236   :  { %2051 = vmatpush1.bf16.msra.mxu0 %v12210_v11  ;;  %v540_v11 = vld [vmem:[#allocation7 + $0x778] sm:$0xff] }
 0x237   :  { %2133 = vmatpush1.bf16.msra.mxu1 %v12212_v12  ;;  %2052 = vmatprep.subr.bf16.mxu0 %v12219_v13  ;;  %v12274_v12 = vcombine.low %v527_v1, %v531_v2  ;;  %v12276_v13 = vcombine.low %v528_v3, %v532_v48  ;;  %v12285_v15 = vcombine.high %v536_v10, %v540_v11  ;;  %v2213_v1 = vld [vmem:[#allocation8 + $0x100] sm:$0xff]  ;;  %v2214_v3 = vld [vmem:[#allocation8 + $0x108] sm:$0xff] }
 0x238   :  { %2134 = vmatprep.subr.bf16.mxu1 %v12221_v14  ;;  %v12283_v14 = vcombine.high %v535_v8, %v539_v9  ;;  %v2217_v2 = vld [vmem:[#allocation8 + $0x120] sm:$0xff]  ;;  %v2218_v48 = vld [vmem:[#allocation8 + $0x128] sm:$0xff] }
 0x23a   :  { %2053 = vmatpush1.bf16.msra.mxu0 %v12218_v19  ;;  %v548_v19 = vld [vmem:[#allocation7 + $0x7b8] sm:$0xff] }
 0x23b   :  { %2135 = vmatpush1.bf16.msra.mxu1 %v12220_v20  ;;  %2054 = vmatprep.subr.bf16.mxu0 %v12227_v21  ;;  %v12282_v20 = vcombine.low %v535_v8, %v539_v9  ;;  %v12284_v21 = vcombine.low %v536_v10, %v540_v11  ;;  %v12293_v23 = vcombine.high %v544_v18, %v548_v19  ;;  %v2221_v8 = vld [vmem:[#allocation8 + $0x140] sm:$0xff]  ;;  %v2222_v10 = vld [vmem:[#allocation8 + $0x148] sm:$0xff] }
 0x23c   :  { %2136 = vmatprep.subr.bf16.mxu1 %v12229_v22  ;;  %v12291_v22 = vcombine.high %v543_v16, %v547_v17  ;;  %v2225_v9 = vld [vmem:[#allocation8 + $0x160] sm:$0xff]  ;;  %v2226_v11 = vld [vmem:[#allocation8 + $0x168] sm:$0xff] }
 0x23e   :  { %2055 = vmatpush1.bf16.msra.mxu0 %v12226_v29  ;;  %v556_v29 = vld [vmem:[#allocation7 + $0x7f8] sm:$0xff] }
 0x23f   :  { %2137 = vmatpush1.bf16.msra.mxu1 %v12228_v30  ;;  %2056 = vmatprep.subr.bf16.mxu0 %v12235_v31  ;;  %v12290_v30 = vcombine.low %v543_v16, %v547_v17  ;;  %v12292_v31 = vcombine.low %v544_v18, %v548_v19  ;;  %v12301_v33 = vcombine.high %v552_v28, %v556_v29  ;;  %v2229_v16 = vld [vmem:[#allocation8 + $0x180] sm:$0xff]  ;;  %v2230_v18 = vld [vmem:[#allocation8 + $0x188] sm:$0xff] }
 0x240   :  { %2138 = vmatprep.subr.bf16.mxu1 %v12237_v32  ;;  %v12299_v32 = vcombine.high %v551_v24, %v555_v27  ;;  %v2233_v17 = vld [vmem:[#allocation8 + $0x1a0] sm:$0xff]  ;;  %v2234_v19 = vld [vmem:[#allocation8 + $0x1a8] sm:$0xff] }
 0x242   :  { %2057 = vmatpush1.bf16.msra.mxu0 %v12234_v38  ;;  %v2186_v38 = vld [vmem:[#allocation8 + $0x28] sm:$0xff] }
 0x243   :  { %2139 = vmatpush1.bf16.msra.mxu1 %v12236_v39  ;;  %2058 = vmatprep.subr.bf16.mxu0 %v12243_v41  ;;  %v12298_v39 = vcombine.low %v551_v24, %v555_v27  ;;  %v12300_v41 = vcombine.low %v552_v28, %v556_v29  ;;  %v12305_v43 = vcombine.high %v2182_v37, %v2186_v38  ;;  %v2237_v24 = vld [vmem:[#allocation8 + $0x1c0] sm:$0xff]  ;;  %v2238_v28 = vld [vmem:[#allocation8 + $0x1c8] sm:$0xff] }
 0x244   :  { %2140 = vmatprep.subr.bf16.mxu1 %v12245_v42  ;;  %v12303_v42 = vcombine.high %v2181_v34, %v2185_v36  ;;  %v2241_v27 = vld [vmem:[#allocation8 + $0x1e0] sm:$0xff]  ;;  %v2242_v29 = vld [vmem:[#allocation8 + $0x1e8] sm:$0xff] }
 0x246   :  { %2059 = vmatpush1.bf16.msra.mxu0 %v12242_v46  ;;  %v2194_v46 = vld [vmem:[#allocation8 + $0x68] sm:$0xff] }
 0x247   :  { %2141 = vmatpush1.bf16.msra.mxu1 %v12244_v47  ;;  %2060 = vmatprep.subr.bf16.mxu0 %v12251_v49  ;;  %v12302_v47 = vcombine.low %v2181_v34, %v2185_v36  ;;  %v12304_v49 = vcombine.low %v2182_v37, %v2186_v38  ;;  %v12313_v51 = vcombine.high %v2190_v45, %v2194_v46  ;;  %v2245_v34 = vld [vmem:[#allocation8 + $0x200] sm:$0xff]  ;;  %v2246_v37 = vld [vmem:[#allocation8 + $0x208] sm:$0xff] }
 0x248   :  { %2142 = vmatprep.subr.bf16.mxu1 %v12253_v50  ;;  %v12311_v50 = vcombine.high %v2189_v44, %v2193_v35  ;;  %v2249_v36 = vld [vmem:[#allocation8 + $0x220] sm:$0xff]  ;;  %v2250_v38 = vld [vmem:[#allocation8 + $0x228] sm:$0xff] }
 0x24a   :  { %2061 = vmatpush1.bf16.msra.mxu0 %v12250_v55  ;;  %v2202_v55 = vld [vmem:[#allocation8 + $0xa8] sm:$0xff] }
 0x24b   :  { %2143 = vmatpush1.bf16.msra.mxu1 %v12252_v56  ;;  %2062 = vmatprep.subr.bf16.mxu0 %v12259_v57  ;;  %v12310_v56 = vcombine.low %v2189_v44, %v2193_v35  ;;  %v12312_v57 = vcombine.low %v2190_v45, %v2194_v46  ;;  %v12321_v59 = vcombine.high %v2198_v54, %v2202_v55  ;;  %v2253_v44 = vld [vmem:[#allocation8 + $0x240] sm:$0xff]  ;;  %v2254_v45 = vld [vmem:[#allocation8 + $0x248] sm:$0xff] }
 0x24c   :  { %2144 = vmatprep.subr.bf16.mxu1 %v12261_v58  ;;  %v12319_v58 = vcombine.high %v2197_v52, %v2201_v53  ;;  %v2257_v35 = vld [vmem:[#allocation8 + $0x260] sm:$0xff]  ;;  %v2258_v46 = vld [vmem:[#allocation8 + $0x268] sm:$0xff] }
 0x24e   :  { %2063 = vmatpush1.bf16.msra.mxu0 %v12258_v26  ;;  %v2210_v26 = vld [vmem:[#allocation8 + $0xe8] sm:$0xff] }
 0x24f   :  { %2145 = vmatpush1.bf16.msra.mxu1 %v12260_v62  ;;  %2064 = vmatprep.subr.bf16.mxu0 %v12267_v63  ;;  %v12318_v62 = vcombine.low %v2197_v52, %v2201_v53  ;;  %v12320_v63 = vcombine.low %v2198_v54, %v2202_v55  ;;  %v2261_v52 = vld [vmem:[#allocation8 + $0x280] sm:$0xff]  ;;  %v2262_v54 = vld [vmem:[#allocation8 + $0x288] sm:$0xff] }
 0x250   :  { %2146 = vmatprep.subr.bf16.mxu1 %v12269_v0  ;;  %v12327_v0 = vcombine.high %v2205_v60, %v2209_v61  ;;  %v2265_v53 = vld [vmem:[#allocation8 + $0x2a0] sm:$0xff]  ;;  %v2266_v55 = vld [vmem:[#allocation8 + $0x2a8] sm:$0xff] }
 0x252   :  { %2065 = vmatpush1.bf16.msra.mxu0 %v12266_v4  ;;  %v12326_v4 = vcombine.low %v2205_v60, %v2209_v61  ;;  %v2269_v60 = vld [vmem:[#allocation8 + $0x2c0] sm:$0xff] }
 0x253   :  { %2147 = vmatpush1.bf16.msra.mxu1 %v12268_v5  ;;  %2066 = vmatprep.subr.bf16.mxu0 %v12275_v6  ;;  %v12328_v5 = vcombine.low %v2206_v25, %v2210_v26  ;;  %v12335_v6 = vcombine.high %v2213_v1, %v2217_v2  ;;  %v2273_v61 = vld [vmem:[#allocation8 + $0x2e0] sm:$0xff] }
 0x254   :  { %2148 = vmatprep.subr.bf16.mxu1 %v12277_v7  ;;  %v12337_v7 = vcombine.high %v2214_v3, %v2218_v48 }
 0x256   :  { %2067 = vmatpush1.bf16.msra.mxu0 %v12274_v12  ;;  %v12334_v12 = vcombine.low %v2213_v1, %v2217_v2  ;;  %v2277_v1 = vld [vmem:[#allocation8 + $0x300] sm:$0xff] }
 0x257   :  { %2149 = vmatpush1.bf16.msra.mxu1 %v12276_v13  ;;  %2068 = vmatprep.subr.bf16.mxu0 %v12283_v14  ;;  %v12336_v13 = vcombine.low %v2214_v3, %v2218_v48  ;;  %v12343_v14 = vcombine.high %v2221_v8, %v2225_v9  ;;  %v2281_v2 = vld [vmem:[#allocation8 + $0x320] sm:$0xff]  ;;  %v2278_v3 = vld [vmem:[#allocation8 + $0x308] sm:$0xff] }
 0x258   :  { %2150 = vmatprep.subr.bf16.mxu1 %v12285_v15  ;;  %v12345_v15 = vcombine.high %v2222_v10, %v2226_v11  ;;  %v2282_v48 = vld [vmem:[#allocation8 + $0x328] sm:$0xff] }
 0x25a   :  { %2069 = vmatpush1.bf16.msra.mxu0 %v12282_v20  ;;  %v12342_v20 = vcombine.low %v2221_v8, %v2225_v9  ;;  %v2285_v8 = vld [vmem:[#allocation8 + $0x340] sm:$0xff] }
 0x25b   :  { %2151 = vmatpush1.bf16.msra.mxu1 %v12284_v21  ;;  %2070 = vmatprep.subr.bf16.mxu0 %v12291_v22  ;;  %v12344_v21 = vcombine.low %v2222_v10, %v2226_v11  ;;  %v12351_v22 = vcombine.high %v2229_v16, %v2233_v17  ;;  %v2289_v9 = vld [vmem:[#allocation8 + $0x360] sm:$0xff]  ;;  %v2286_v10 = vld [vmem:[#allocation8 + $0x348] sm:$0xff] }
 0x25c   :  { %2152 = vmatprep.subr.bf16.mxu1 %v12293_v23  ;;  %v12353_v23 = vcombine.high %v2230_v18, %v2234_v19  ;;  %v2290_v11 = vld [vmem:[#allocation8 + $0x368] sm:$0xff] }
 0x25e   :  { %2071 = vmatpush1.bf16.msra.mxu0 %v12290_v30  ;;  %v12350_v30 = vcombine.low %v2229_v16, %v2233_v17  ;;  %v2293_v16 = vld [vmem:[#allocation8 + $0x380] sm:$0xff] }
 0x25f   :  { %2153 = vmatpush1.bf16.msra.mxu1 %v12292_v31  ;;  %2072 = vmatprep.subr.bf16.mxu0 %v12299_v32  ;;  %v12352_v31 = vcombine.low %v2230_v18, %v2234_v19  ;;  %v12359_v32 = vcombine.high %v2237_v24, %v2241_v27  ;;  %v2297_v17 = vld [vmem:[#allocation8 + $0x3a0] sm:$0xff]  ;;  %v2294_v18 = vld [vmem:[#allocation8 + $0x388] sm:$0xff] }
 0x260   :  { %2154 = vmatprep.subr.bf16.mxu1 %v12301_v33  ;;  %v12361_v33 = vcombine.high %v2238_v28, %v2242_v29  ;;  %v2298_v19 = vld [vmem:[#allocation8 + $0x3a8] sm:$0xff] }
 0x262   :  { %2073 = vmatpush1.bf16.msra.mxu0 %v12298_v39  ;;  %v12358_v39 = vcombine.low %v2237_v24, %v2241_v27  ;;  %v2301_v24 = vld [vmem:[#allocation8 + $0x3c0] sm:$0xff] }
 0x263   :  { %2155 = vmatpush1.bf16.msra.mxu1 %v12300_v41  ;;  %5253 = vmatprep.subr.bf16.mxu0 %v12303_v42  ;;  %v12360_v41 = vcombine.low %v2238_v28, %v2242_v29  ;;  %v12367_v42 = vcombine.high %v2245_v34, %v2249_v36  ;;  %v2305_v27 = vld [vmem:[#allocation8 + $0x3e0] sm:$0xff]  ;;  %v2302_v28 = vld [vmem:[#allocation8 + $0x3c8] sm:$0xff] }
 0x264   :  { %5417 = vmatprep.subr.bf16.mxu1 %v12305_v43  ;;  %v12369_v43 = vcombine.high %v2246_v37, %v2250_v38  ;;  %v2306_v29 = vld [vmem:[#allocation8 + $0x3e8] sm:$0xff] }
 0x265   :  { %2075 = vmatmul.mubr.bf16.vlgmr.msra.gmra.mrb[4].mxu0 %v14818_v40 }
 0x266   :  { %2157 = vmatmul.mubr.bf16.vlgmr.msra.gmra.mrb[12].mxu1 %v14818_v40  ;;  %5254 = vmatpush1.bf16.msra.mxu0 %v12302_v47  ;;  %v12329_v40 = vcombine.high %v2206_v25, %v2210_v26  ;;  %v12366_v47 = vcombine.low %v2245_v34, %v2249_v36  ;;  %v2270_v25 = vld [vmem:[#allocation8 + $0x2c8] sm:$0xff]  ;;  %v2309_v34 = vld [vmem:[#allocation8 + $0x400] sm:$0xff] }
 0x267   :  { %5418 = vmatpush1.bf16.msra.mxu1 %v12304_v49  ;;  %5255 = vmatprep.subr.bf16.mxu0 %v12311_v50  ;;  %v12368_v49 = vcombine.low %v2246_v37, %v2250_v38  ;;  %v12375_v50 = vcombine.high %v2253_v44, %v2257_v35  ;;  %v2274_v26 = vld [vmem:[#allocation8 + $0x2e8] sm:$0xff]  ;;  %v2313_v36 = vld [vmem:[#allocation8 + $0x420] sm:$0xff] }
 0x268   :  { %5419 = vmatprep.subr.bf16.mxu1 %v12313_v51  ;;  %v12377_v51 = vcombine.high %v2254_v45, %v2258_v46  ;;  %v2310_v37 = vld [vmem:[#allocation8 + $0x408] sm:$0xff] }
 0x269   :  { %v2314_v38 = vld [vmem:[#allocation8 + $0x428] sm:$0xff] }
 0x26a   :  { %5256 = vmatpush1.bf16.msra.mxu0 %v12310_v56  ;;  %v12374_v56 = vcombine.low %v2253_v44, %v2257_v35 }
 0x26b   :  { %5420 = vmatpush1.bf16.msra.mxu1 %v12312_v57  ;;  %5257 = vmatprep.subr.bf16.mxu0 %v12319_v58  ;;  %v12376_v57 = vcombine.low %v2254_v45, %v2258_v46  ;;  %v12383_v58 = vcombine.high %v2261_v52, %v2265_v53 }
 0x26c   :  { %5421 = vmatprep.subr.bf16.mxu1 %v12321_v59  ;;  %v12385_v59 = vcombine.high %v2262_v54, %v2266_v55 }
 0x26e   :  { %5258 = vmatpush1.bf16.msra.mxu0 %v12318_v62  ;;  %v12382_v62 = vcombine.low %v2261_v52, %v2265_v53  ;;  %v2317_v52 = vld [vmem:[#allocation8 + $0x440] sm:$0xff] }
 0x26f   :  { %5422 = vmatpush1.bf16.msra.mxu1 %v12320_v63  ;;  %5259 = vmatprep.subr.bf16.mxu0 %v12327_v0  ;;  %v12384_v63 = vcombine.low %v2262_v54, %v2266_v55  ;;  %v12391_v0 = vcombine.high %v2269_v60, %v2273_v61 }
 0x270   :  { %5423 = vmatprep.subr.bf16.mxu1 %v12329_v40  ;;  %v12393_v40 = vcombine.high %v2270_v25, %v2274_v26 }
 0x272   :  { %5260 = vmatpush1.bf16.msra.mxu0 %v12326_v4  ;;  %v12390_v4 = vcombine.low %v2269_v60, %v2273_v61  ;;  %v12430_v60 = vcombine.low %v2309_v34, %v2313_v36  ;;  %v12432_v61 = vcombine.low %v2310_v37, %v2314_v38 }
 0x273   :  { %5424 = vmatpush1.bf16.msra.mxu1 %v12328_v5  ;;  %5261 = vmatprep.subr.bf16.mxu0 %v12335_v6  ;;  %v12392_v5 = vcombine.low %v2270_v25, %v2274_v26  ;;  %v12399_v6 = vcombine.high %v2277_v1, %v2281_v2  ;;  %v2325_v26 = vld [vmem:[#allocation8 + $0x480] sm:$0xff] }
 0x274   :  { %5425 = vmatprep.subr.bf16.mxu1 %v12337_v7  ;;  %v12401_v7 = vcombine.high %v2278_v3, %v2282_v48 }
 0x276   :  { %5262 = vmatpush1.bf16.msra.mxu0 %v12334_v12  ;;  %v12398_v12 = vcombine.low %v2277_v1, %v2281_v2  ;;  %v2330_v1 = vld [vmem:[#allocation8 + $0x4a8] sm:$0xff] }
 0x277   :  { %5426 = vmatpush1.bf16.msra.mxu1 %v12336_v13  ;;  %5263 = vmatprep.subr.bf16.mxu0 %v12343_v14  ;;  %v12400_v13 = vcombine.low %v2278_v3, %v2282_v48  ;;  %v12407_v14 = vcombine.high %v2285_v8, %v2289_v9 }
 0x278   :  { %5427 = vmatprep.subr.bf16.mxu1 %v12345_v15  ;;  %v12409_v15 = vcombine.high %v2286_v10, %v2290_v11 }
 0x27a   :  { %5264 = vmatpush1.bf16.msra.mxu0 %v12342_v20  ;;  %v12406_v20 = vcombine.low %v2285_v8, %v2289_v9  ;;  %v2334_v8 = vld [vmem:[#allocation8 + $0x4c8] sm:$0xff] }
 0x27b   :  { %5428 = vmatpush1.bf16.msra.mxu1 %v12344_v21  ;;  %5265 = vmatprep.subr.bf16.mxu0 %v12351_v22  ;;  %v12408_v21 = vcombine.low %v2286_v10, %v2290_v11  ;;  %v12415_v22 = vcombine.high %v2293_v16, %v2297_v17  ;;  %v2338_v9 = vld [vmem:[#allocation8 + $0x4e8] sm:$0xff] }
 0x27c   :  { %5429 = vmatprep.subr.bf16.mxu1 %v12353_v23  ;;  %v12417_v23 = vcombine.high %v2294_v18, %v2298_v19 }
 0x27e   :  { %5266 = vmatpush1.bf16.msra.mxu0 %v12350_v30  ;;  %v12414_v30 = vcombine.low %v2293_v16, %v2297_v17  ;;  %v2342_v16 = vld [vmem:[#allocation8 + $0x508] sm:$0xff] }
 0x27f   :  { %5430 = vmatpush1.bf16.msra.mxu1 %v12352_v31  ;;  %5267 = vmatprep.subr.bf16.mxu0 %v12359_v32  ;;  %v12416_v31 = vcombine.low %v2294_v18, %v2298_v19  ;;  %v12423_v32 = vcombine.high %v2301_v24, %v2305_v27  ;;  %v2346_v17 = vld [vmem:[#allocation8 + $0x528] sm:$0xff]  ;;  %v12456_v19 = vcombine.low %v2334_v8, %v2338_v9 }
 0x280   :  { %5431 = vmatprep.subr.bf16.mxu1 %v12361_v33  ;;  %v12425_v33 = vcombine.high %v2302_v28, %v2306_v29 }
 0x282   :  { %5268 = vmatpush1.bf16.msra.mxu0 %v12358_v39  ;;  %v12422_v39 = vcombine.low %v2301_v24, %v2305_v27  ;;  %v2350_v24 = vld [vmem:[#allocation8 + $0x548] sm:$0xff] }
 0x283   :  { %5432 = vmatpush1.bf16.msra.mxu1 %v12360_v41  ;;  %5269 = vmatprep.subr.bf16.mxu0 %v12367_v42  ;;  %v12424_v41 = vcombine.low %v2302_v28, %v2306_v29  ;;  %v12431_v42 = vcombine.high %v2309_v34, %v2313_v36  ;;  %v2354_v27 = vld [vmem:[#allocation8 + $0x568] sm:$0xff]  ;;  %v12464_v29 = vcombine.low %v2342_v16, %v2346_v17 }
 0x284   :  { %5433 = vmatprep.subr.bf16.mxu1 %v12369_v43  ;;  %v12433_v43 = vcombine.high %v2310_v37, %v2314_v38  ;;  %v2358_v34 = vld [vmem:[#allocation8 + $0x588] sm:$0xff]  ;;  %v12472_v38 = vcombine.low %v2350_v24, %v2354_v27 }
 0x285   :  { %v2362_v36 = vld [vmem:[#allocation8 + $0x5a8] sm:$0xff] }
 0x286   :  { %5270 = vmatpush1.bf16.msra.mxu0 %v12366_v47 }
 0x287   :  { %5434 = vmatpush1.bf16.msra.mxu1 %v12368_v49  ;;  %5271 = vmatprep.subr.bf16.mxu0 %v12375_v50 }
 0x288   :  { %5435 = vmatprep.subr.bf16.mxu1 %v12377_v51 }
 0x28a   :  { %5272 = vmatpush1.bf16.msra.mxu0 %v12374_v56  ;;  %v2321_v56 = vld [vmem:[#allocation8 + $0x460] sm:$0xff] }
 0x28b   :  { %5436 = vmatpush1.bf16.msra.mxu1 %v12376_v57  ;;  %5273 = vmatprep.subr.bf16.mxu0 %v12383_v58  ;;  %v2318_v57 = vld [vmem:[#allocation8 + $0x448] sm:$0xff]  ;;  %v12438_v3 = vcombine.low %v2317_v52, %v2321_v56 }
 0x28c   :  { %5437 = vmatprep.subr.bf16.mxu1 %v12385_v59  ;;  %v2322_v58 = vld [vmem:[#allocation8 + $0x468] sm:$0xff] }
 0x28d   :  { %v12440_v48 = vcombine.low %v2318_v57, %v2322_v58 }
 0x28e   :  { %5274 = vmatpush1.bf16.msra.mxu0 %v12382_v62  ;;  %v12439_v62 = vcombine.high %v2317_v52, %v2321_v56  ;;  %v2377_v52 = vld [vmem:[#allocation8 + $0x620] sm:$0xff] }
 0x28f   :  { %5438 = vmatpush1.bf16.msra.mxu1 %v12384_v63  ;;  %5275 = vmatprep.subr.bf16.mxu0 %v12391_v0  ;;  %v12441_v63 = vcombine.high %v2318_v57, %v2322_v58  ;;  %v2329_v0 = vld [vmem:[#allocation8 + $0x4a0] sm:$0xff] }
 0x290   :  { %5439 = vmatprep.subr.bf16.mxu1 %v12393_v40  ;;  %v2326_v40 = vld [vmem:[#allocation8 + $0x488] sm:$0xff]  ;;  %v12446_v10 = vcombine.low %v2325_v26, %v2329_v0 }
 0x291   :  { %v12448_v11 = vcombine.low %v2326_v40, %v2330_v1 }
 0x292   :  { %5276 = vmatpush1.bf16.msra.mxu0 %v12390_v4  ;;  %v12447_v4 = vcombine.high %v2325_v26, %v2329_v0  ;;  %v2382_v26 = vld [vmem:[#allocation8 + $0x648] sm:$0xff] }
 0x293   :  { %5440 = vmatpush1.bf16.msra.mxu1 %v12392_v5  ;;  %5277 = vmatprep.subr.bf16.mxu0 %v12399_v6  ;;  %v12449_v5 = vcombine.high %v2326_v40, %v2330_v1  ;;  %v2333_v6 = vld [vmem:[#allocation8 + $0x4c0] sm:$0xff] }
 0x294   :  { %5441 = vmatprep.subr.bf16.mxu1 %v12401_v7  ;;  %v2337_v7 = vld [vmem:[#allocation8 + $0x4e0] sm:$0xff] }
 0x295   :  { %v12454_v18 = vcombine.low %v2333_v6, %v2337_v7 }
 0x296   :  { %5278 = vmatpush1.bf16.msra.mxu0 %v12398_v12  ;;  %v12455_v12 = vcombine.high %v2333_v6, %v2337_v7 }
 0x297   :  { %5442 = vmatpush1.bf16.msra.mxu1 %v12400_v13  ;;  %5279 = vmatprep.subr.bf16.mxu0 %v12407_v14  ;;  %v12457_v13 = vcombine.high %v2334_v8, %v2338_v9  ;;  %v2341_v14 = vld [vmem:[#allocation8 + $0x500] sm:$0xff] }
 0x298   :  { %5443 = vmatprep.subr.bf16.mxu1 %v12409_v15  ;;  %v2345_v15 = vld [vmem:[#allocation8 + $0x520] sm:$0xff] }
 0x299   :  { %v12462_v28 = vcombine.low %v2341_v14, %v2345_v15 }
 0x29a   :  { %5280 = vmatpush1.bf16.msra.mxu0 %v12406_v20  ;;  %v12463_v20 = vcombine.high %v2341_v14, %v2345_v15 }
 0x29b   :  { %5444 = vmatpush1.bf16.msra.mxu1 %v12408_v21  ;;  %5281 = vmatprep.subr.bf16.mxu0 %v12415_v22  ;;  %v12465_v21 = vcombine.high %v2342_v16, %v2346_v17  ;;  %v2349_v22 = vld [vmem:[#allocation8 + $0x540] sm:$0xff] }
 0x29c   :  { %5445 = vmatprep.subr.bf16.mxu1 %v12417_v23  ;;  %v2353_v23 = vld [vmem:[#allocation8 + $0x560] sm:$0xff] }
 0x29d   :  { %v12470_v37 = vcombine.low %v2349_v22, %v2353_v23 }
 0x29e   :  { %5282 = vmatpush1.bf16.msra.mxu0 %v12414_v30  ;;  %v12471_v30 = vcombine.high %v2349_v22, %v2353_v23 }
 0x29f   :  { %5446 = vmatpush1.bf16.msra.mxu1 %v12416_v31  ;;  %5283 = vmatprep.subr.bf16.mxu0 %v12423_v32  ;;  %v12473_v31 = vcombine.high %v2350_v24, %v2354_v27  ;;  %v2357_v32 = vld [vmem:[#allocation8 + $0x580] sm:$0xff] }
 0x2a0   :  { %5447 = vmatprep.subr.bf16.mxu1 %v12425_v33  ;;  %v2361_v33 = vld [vmem:[#allocation8 + $0x5a0] sm:$0xff] }
 0x2a2   :  { %5284 = vmatpush1.bf16.msra.mxu0 %v12422_v39  ;;  %v12479_v39 = vcombine.high %v2357_v32, %v2361_v33 }
 0x2a3   :  { %5448 = vmatpush1.bf16.msra.mxu1 %v12424_v41  ;;  %5294 = vmatprep.subr.bf16.mxu0 %v12431_v42  ;;  %v12481_v41 = vcombine.high %v2358_v34, %v2362_v36  ;;  %v2365_v42 = vld [vmem:[#allocation8 + $0x5c0] sm:$0xff] }
 0x2a4   :  { %5458 = vmatprep.subr.bf16.mxu1 %v12433_v43  ;;  %v2369_v43 = vld [vmem:[#allocation8 + $0x5e0] sm:$0xff] }
 0x2b8   :  { %v1912_v44 = vpop.f32.mrb[0].mxu0  ;;  %v14830_v35 = vpop.f32.mrb[8].mxu1 }
 0x2b9   :  { %v2165_v45 = vmax.f32 %v1912_v44, 0.0  ;;  %v1914_v46 = vpop.f32.mrb[1].mxu0  ;;  %v1996_v47 = vpop.f32.mrb[9].mxu1  ;;  %v2366_v44 = vld [vmem:[#allocation8 + $0x5c8] sm:$0xff] }
 0x2ba   :  { %v2166_v49 = vmax.f32 %v1914_v46, 0.0  ;;  %v1916_v50 = vpop.f32.mrb[2].mxu0  ;;  %v1998_v51 = vpop.f32.mrb[10].mxu1  ;;  %v2168_v53 = vmax.f32 %v1996_v47, 0.0  ;;  %v12478_v46 = vcombine.low %v2357_v32, %v2361_v33  ;;  %v12480_v47 = vcombine.low %v2358_v34, %v2362_v36 }
 0x2bb   :  { %v1917_v54 = vpop.f32.mrb[3].mxu0  ;;  %v1999_v55 = vpop.f32.mrb[11].mxu1  ;;  %v14834_v25 = vpack.c.bf16 %v2165_v45, %v2165_v45  ;;  %v2370_v45 = vld [vmem:[#allocation8 + $0x5e8] sm:$0xff]  ;;  %v2373_v51 = vld [vmem:[#allocation8 + $0x600] sm:$0xff] }
 0x2bc   :  { %v14832_v59 = vpack.c.bf16 %v2166_v49, %v2166_v49  ;;  %v14838_v2 = vpack.c.bf16 %v2168_v53, %v2168_v53  ;;  %v12487_v49 = vcombine.high %v2365_v42, %v2369_v43  ;;  %v12489_v50 = vcombine.high %v2366_v44, %v2370_v45  ;;  %v2374_v53 = vld [vmem:[#allocation8 + $0x608] sm:$0xff] }
 0x2bd   :  { %v2378_v54 = vld [vmem:[#allocation8 + $0x628] sm:$0xff]  ;;  %v12486_v55 = vcombine.low %v2365_v42, %v2369_v43  ;;  %v12488_v56 = vcombine.low %v2366_v44, %v2370_v45  ;;  %v12495_v57 = vcombine.high %v2373_v51, %v2377_v52 }
 0x2be   :  { %5285 = vmatprep.mubr.bf16.mxu0 %v14832_v59  ;;  %5449 = vmatprep.mubr.bf16.mxu1 %v14832_v59  ;;  %v12497_v58 = vcombine.high %v2374_v53, %v2378_v54  ;;  %v12496_v0 = vcombine.low %v2374_v53, %v2378_v54 }
 0x2bf   :  { %5286 = vmatmul.mubr.bf16.vlgmr.msra.gmra.mrb[8].mxu0 %v14834_v25  ;;  %5450 = vmatmul.mubr.bf16.vlgmr.msra.gmra.mrb[16].mxu1 %v14834_v25 }
 0x2c0   :  { %5295 = vmatpush1.bf16.msra.mxu0 %v12430_v60  ;;  %5459 = vmatpush1.bf16.msra.mxu1 %v12432_v61  ;;  %v2381_v60 = vld [vmem:[#allocation8 + $0x640] sm:$0xff] }
 0x2c1   :  { %5326 = vmatprep.mubr.bf16.mxu0 %v14838_v2  ;;  %5490 = vmatprep.mubr.bf16.mxu1 %v14838_v2  ;;  %v2385_v61 = vld [vmem:[#allocation8 + $0x660] sm:$0xff] }
 0x2c2   :  { %5296 = vmatprep.subr.bf16.mxu0 %v12439_v62  ;;  %5460 = vmatprep.subr.bf16.mxu1 %v12441_v63  ;;  %v2386_v62 = vld [vmem:[#allocation8 + $0x668] sm:$0xff]  ;;  %v12494_v63 = vcombine.low %v2373_v51, %v2377_v52  ;;  %v12503_v40 = vcombine.high %v2381_v60, %v2385_v61  ;;  %v12502_v6 = vcombine.low %v2381_v60, %v2385_v61 }
 0x2c3   :  { %v12505_v1 = vcombine.high %v2382_v26, %v2386_v62  ;;  %v12504_v7 = vcombine.low %v2382_v26, %v2386_v62  ;;  %v2167_v26 = vmax.f32 %v14830_v35, 0.0  ;;  %v2457_v35 = vld [vmem:[#allocation8 + $0x8a0] sm:$0xff] }
 0x2c4   :  { %5297 = vmatpush1.bf16.msra.mxu0 %v12438_v3  ;;  %5461 = vmatpush1.bf16.msra.mxu1 %v12440_v48  ;;  %v2389_v3 = vld [vmem:[#allocation8 + $0x680] sm:$0xff] }
 0x2c5   :  { %5298 = vmatprep.subr.bf16.mxu0 %v12447_v4  ;;  %5462 = vmatprep.subr.bf16.mxu1 %v12449_v5  ;;  %v2393_v48 = vld [vmem:[#allocation8 + $0x6a0] sm:$0xff]  ;;  %v2390_v4 = vld [vmem:[#allocation8 + $0x688] sm:$0xff] }
 0x2c6   :  { %v2394_v5 = vld [vmem:[#allocation8 + $0x6a8] sm:$0xff]  ;;  %v12511_v8 = vcombine.high %v2389_v3, %v2393_v48  ;;  %v12510_v14 = vcombine.low %v2389_v3, %v2393_v48 }
 0x2c7   :  { %v12513_v9 = vcombine.high %v2390_v4, %v2394_v5  ;;  %v12512_v15 = vcombine.low %v2390_v4, %v2394_v5  ;;  %v2450_v3 = vld [vmem:[#allocation8 + $0x868] sm:$0xff]  ;;  %v14845_v5 = vpack.c.bf16 %v2167_v26, %v2167_v26  ;;  %v2505_v26 = vld [vmem:[#allocation8 + $0xa20] sm:$0xff] }
 0x2c8   :  { %5299 = vmatpush1.bf16.msra.mxu0 %v12446_v10  ;;  %5463 = vmatpush1.bf16.msra.mxu1 %v12448_v11  ;;  %v2397_v10 = vld [vmem:[#allocation8 + $0x6c0] sm:$0xff] }
 0x2c9   :  { %5300 = vmatprep.subr.bf16.mxu0 %v12455_v12  ;;  %5464 = vmatprep.subr.bf16.mxu1 %v12457_v13  ;;  %v2401_v11 = vld [vmem:[#allocation8 + $0x6e0] sm:$0xff]  ;;  %v2398_v12 = vld [vmem:[#allocation8 + $0x6c8] sm:$0xff] }
 0x2ca   :  { %v2402_v13 = vld [vmem:[#allocation8 + $0x6e8] sm:$0xff]  ;;  %v12519_v16 = vcombine.high %v2397_v10, %v2401_v11  ;;  %v12518_v22 = vcombine.low %v2397_v10, %v2401_v11 }
 0x2cb   :  { %v12521_v17 = vcombine.high %v2398_v12, %v2402_v13  ;;  %v12520_v23 = vcombine.low %v2398_v12, %v2402_v13  ;;  %v2458_v10 = vld [vmem:[#allocation8 + $0x8a8] sm:$0xff] }
 0x2cc   :  { %5301 = vmatpush1.bf16.msra.mxu0 %v12454_v18  ;;  %5465 = vmatpush1.bf16.msra.mxu1 %v12456_v19  ;;  %v2405_v18 = vld [vmem:[#allocation8 + $0x700] sm:$0xff] }
 0x2cd   :  { %5302 = vmatprep.subr.bf16.mxu0 %v12463_v20  ;;  %5466 = vmatprep.subr.bf16.mxu1 %v12465_v21  ;;  %v2409_v19 = vld [vmem:[#allocation8 + $0x720] sm:$0xff]  ;;  %v2406_v20 = vld [vmem:[#allocation8 + $0x708] sm:$0xff] }
 0x2ce   :  { %v2410_v21 = vld [vmem:[#allocation8 + $0x728] sm:$0xff]  ;;  %v12527_v24 = vcombine.high %v2405_v18, %v2409_v19  ;;  %v12526_v32 = vcombine.low %v2405_v18, %v2409_v19 }
 0x2cf   :  { %v12529_v27 = vcombine.high %v2406_v20, %v2410_v21  ;;  %v12528_v33 = vcombine.low %v2406_v20, %v2410_v21  ;;  %v2466_v18 = vld [vmem:[#allocation8 + $0x8e8] sm:$0xff] }
 0x2d0   :  { %5303 = vmatpush1.bf16.msra.mxu0 %v12462_v28  ;;  %5467 = vmatpush1.bf16.msra.mxu1 %v12464_v29  ;;  %v2413_v28 = vld [vmem:[#allocation8 + $0x740] sm:$0xff] }
 0x2d1   :  { %5304 = vmatprep.subr.bf16.mxu0 %v12471_v30  ;;  %5468 = vmatprep.subr.bf16.mxu1 %v12473_v31  ;;  %v2417_v29 = vld [vmem:[#allocation8 + $0x760] sm:$0xff]  ;;  %v2414_v30 = vld [vmem:[#allocation8 + $0x748] sm:$0xff] }
 0x2d2   :  { %v2418_v31 = vld [vmem:[#allocation8 + $0x768] sm:$0xff]  ;;  %v12535_v34 = vcombine.high %v2413_v28, %v2417_v29  ;;  %v12534_v42 = vcombine.low %v2413_v28, %v2417_v29 }
 0x2d3   :  { %v12537_v36 = vcombine.high %v2414_v30, %v2418_v31  ;;  %v12536_v43 = vcombine.low %v2414_v30, %v2418_v31  ;;  %v2474_v28 = vld [vmem:[#allocation8 + $0x928] sm:$0xff] }
 0x2d4   :  { %5305 = vmatpush1.bf16.msra.mxu0 %v12470_v37  ;;  %5469 = vmatpush1.bf16.msra.mxu1 %v12472_v38  ;;  %v2421_v37 = vld [vmem:[#allocation8 + $0x780] sm:$0xff] }
 0x2d5   :  { %5306 = vmatprep.subr.bf16.mxu0 %v12479_v39  ;;  %5470 = vmatprep.subr.bf16.mxu1 %v12481_v41  ;;  %v2425_v38 = vld [vmem:[#allocation8 + $0x7a0] sm:$0xff]  ;;  %v2422_v39 = vld [vmem:[#allocation8 + $0x788] sm:$0xff] }
 0x2d6   :  { %v2426_v41 = vld [vmem:[#allocation8 + $0x7a8] sm:$0xff]  ;;  %v12543_v44 = vcombine.high %v2421_v37, %v2425_v38  ;;  %v12542_v51 = vcombine.low %v2421_v37, %v2425_v38 }
 0x2d7   :  { %v12545_v45 = vcombine.high %v2422_v39, %v2426_v41  ;;  %v12544_v52 = vcombine.low %v2422_v39, %v2426_v41  ;;  %v2482_v37 = vld [vmem:[#allocation8 + $0x968] sm:$0xff] }
 0x2d8   :  { %5307 = vmatpush1.bf16.msra.mxu0 %v12478_v46  ;;  %5471 = vmatpush1.bf16.msra.mxu1 %v12480_v47  ;;  %v2429_v46 = vld [vmem:[#allocation8 + $0x7c0] sm:$0xff] }
 0x2d9   :  { %5308 = vmatprep.subr.bf16.mxu0 %v12487_v49  ;;  %5472 = vmatprep.subr.bf16.mxu1 %v12489_v50  ;;  %v2433_v47 = vld [vmem:[#allocation8 + $0x7e0] sm:$0xff]  ;;  %v2430_v49 = vld [vmem:[#allocation8 + $0x7c8] sm:$0xff] }
 0x2da   :  { %v2434_v50 = vld [vmem:[#allocation8 + $0x7e8] sm:$0xff]  ;;  %v12551_v53 = vcombine.high %v2429_v46, %v2433_v47  ;;  %v12550_v60 = vcombine.low %v2429_v46, %v2433_v47 }
 0x2db   :  { %v12553_v54 = vcombine.high %v2430_v49, %v2434_v50  ;;  %v12552_v61 = vcombine.low %v2430_v49, %v2434_v50  ;;  %v2490_v46 = vld [vmem:[#allocation8 + $0x9a8] sm:$0xff] }
 0x2dc   :  { %5309 = vmatpush1.bf16.msra.mxu0 %v12486_v55  ;;  %5473 = vmatpush1.bf16.msra.mxu1 %v12488_v56  ;;  %v2437_v55 = vld [vmem:[#allocation8 + $0x800] sm:$0xff] }
 0x2dd   :  { %5310 = vmatprep.subr.bf16.mxu0 %v12495_v57  ;;  %5474 = vmatprep.subr.bf16.mxu1 %v12497_v58  ;;  %v2441_v56 = vld [vmem:[#allocation8 + $0x820] sm:$0xff]  ;;  %v2438_v57 = vld [vmem:[#allocation8 + $0x808] sm:$0xff] }
 0x2de   :  { %v2442_v58 = vld [vmem:[#allocation8 + $0x828] sm:$0xff]  ;;  %v12559_v62 = vcombine.high %v2437_v55, %v2441_v56  ;;  %v12558_v48 = vcombine.low %v2437_v55, %v2441_v56 }
 0x2df   :  { %v12560_v4 = vcombine.low %v2438_v57, %v2442_v58  ;;  %v2498_v55 = vld [vmem:[#allocation8 + $0x9e8] sm:$0xff] }
 0x2e0   :  { %5311 = vmatpush1.bf16.msra.mxu0 %v12494_v63  ;;  %5475 = vmatpush1.bf16.msra.mxu1 %v12496_v0  ;;  %v12561_v63 = vcombine.high %v2438_v57, %v2442_v58  ;;  %v2445_v0 = vld [vmem:[#allocation8 + $0x840] sm:$0xff] }
 0x2e1   :  { %5312 = vmatprep.subr.bf16.mxu0 %v12503_v40  ;;  %5476 = vmatprep.subr.bf16.mxu1 %v12505_v1  ;;  %v2449_v40 = vld [vmem:[#allocation8 + $0x860] sm:$0xff]  ;;  %v2446_v1 = vld [vmem:[#allocation8 + $0x848] sm:$0xff] }
 0x2e2   :  { %v12566_v11 = vcombine.low %v2445_v0, %v2449_v40  ;;  %v12568_v12 = vcombine.low %v2446_v1, %v2450_v3 }
 0x2e4   :  { %5313 = vmatpush1.bf16.msra.mxu0 %v12502_v6  ;;  %5477 = vmatpush1.bf16.msra.mxu1 %v12504_v7  ;;  %v12567_v6 = vcombine.high %v2445_v0, %v2449_v40  ;;  %v12569_v7 = vcombine.high %v2446_v1, %v2450_v3 }
 0x2e5   :  { %5314 = vmatprep.subr.bf16.mxu0 %v12511_v8  ;;  %5478 = vmatprep.subr.bf16.mxu1 %v12513_v9  ;;  %v2453_v8 = vld [vmem:[#allocation8 + $0x880] sm:$0xff]  ;;  %v2454_v9 = vld [vmem:[#allocation8 + $0x888] sm:$0xff] }
 0x2e6   :  { %v12575_v13 = vcombine.high %v2453_v8, %v2457_v35  ;;  %v12574_v19 = vcombine.low %v2453_v8, %v2457_v35  ;;  %v12576_v20 = vcombine.low %v2454_v9, %v2458_v10 }
 0x2e8   :  { %5315 = vmatpush1.bf16.msra.mxu0 %v12510_v14  ;;  %5479 = vmatpush1.bf16.msra.mxu1 %v12512_v15  ;;  %v12577_v14 = vcombine.high %v2454_v9, %v2458_v10  ;;  %v2461_v15 = vld [vmem:[#allocation8 + $0x8c0] sm:$0xff] }
 0x2e9   :  { %5316 = vmatprep.subr.bf16.mxu0 %v12519_v16  ;;  %5480 = vmatprep.subr.bf16.mxu1 %v12521_v17  ;;  %v2465_v16 = vld [vmem:[#allocation8 + $0x8e0] sm:$0xff]  ;;  %v2462_v17 = vld [vmem:[#allocation8 + $0x8c8] sm:$0xff] }
 0x2ea   :  { %v12583_v21 = vcombine.high %v2461_v15, %v2465_v16  ;;  %v12582_v29 = vcombine.low %v2461_v15, %v2465_v16  ;;  %v12584_v30 = vcombine.low %v2462_v17, %v2466_v18 }
 0x2ec   :  { %5317 = vmatpush1.bf16.msra.mxu0 %v12518_v22  ;;  %5481 = vmatpush1.bf16.msra.mxu1 %v12520_v23  ;;  %v12585_v22 = vcombine.high %v2462_v17, %v2466_v18  ;;  %v2469_v23 = vld [vmem:[#allocation8 + $0x900] sm:$0xff] }
 0x2ed   :  { %5318 = vmatprep.subr.bf16.mxu0 %v12527_v24  ;;  %5482 = vmatprep.subr.bf16.mxu1 %v12529_v27  ;;  %v2473_v24 = vld [vmem:[#allocation8 + $0x920] sm:$0xff]  ;;  %v2470_v27 = vld [vmem:[#allocation8 + $0x908] sm:$0xff] }
 0x2ee   :  { %v12591_v31 = vcombine.high %v2469_v23, %v2473_v24  ;;  %v12590_v38 = vcombine.low %v2469_v23, %v2473_v24  ;;  %v12592_v39 = vcombine.low %v2470_v27, %v2474_v28 }
 0x2f0   :  { %5319 = vmatpush1.bf16.msra.mxu0 %v12526_v32  ;;  %5483 = vmatpush1.bf16.msra.mxu1 %v12528_v33  ;;  %v12593_v32 = vcombine.high %v2470_v27, %v2474_v28  ;;  %v2477_v33 = vld [vmem:[#allocation8 + $0x940] sm:$0xff] }
 0x2f1   :  { %5320 = vmatprep.subr.bf16.mxu0 %v12535_v34  ;;  %5484 = vmatprep.subr.bf16.mxu1 %v12537_v36  ;;  %v2481_v34 = vld [vmem:[#allocation8 + $0x960] sm:$0xff]  ;;  %v2478_v36 = vld [vmem:[#allocation8 + $0x948] sm:$0xff] }
 0x2f2   :  { %v12599_v41 = vcombine.high %v2477_v33, %v2481_v34  ;;  %v12598_v47 = vcombine.low %v2477_v33, %v2481_v34  ;;  %v12600_v49 = vcombine.low %v2478_v36, %v2482_v37 }
 0x2f4   :  { %5321 = vmatpush1.bf16.msra.mxu0 %v12534_v42  ;;  %5485 = vmatpush1.bf16.msra.mxu1 %v12536_v43  ;;  %v12601_v42 = vcombine.high %v2478_v36, %v2482_v37  ;;  %v2485_v43 = vld [vmem:[#allocation8 + $0x980] sm:$0xff] }
 0x2f5   :  { %5322 = vmatprep.subr.bf16.mxu0 %v12543_v44  ;;  %5486 = vmatprep.subr.bf16.mxu1 %v12545_v45  ;;  %v2489_v44 = vld [vmem:[#allocation8 + $0x9a0] sm:$0xff]  ;;  %v2486_v45 = vld [vmem:[#allocation8 + $0x988] sm:$0xff] }
 0x2f6   :  { %v12607_v50 = vcombine.high %v2485_v43, %v2489_v44  ;;  %v12606_v56 = vcombine.low %v2485_v43, %v2489_v44  ;;  %v12608_v57 = vcombine.low %v2486_v45, %v2490_v46 }
 0x2f8   :  { %5323 = vmatpush1.bf16.msra.mxu0 %v12542_v51  ;;  %5487 = vmatpush1.bf16.msra.mxu1 %v12544_v52  ;;  %v12609_v51 = vcombine.high %v2486_v45, %v2490_v46  ;;  %v2493_v52 = vld [vmem:[#allocation8 + $0x9c0] sm:$0xff] }
 0x2f9   :  { %5324 = vmatprep.subr.bf16.mxu0 %v12551_v53  ;;  %5488 = vmatprep.subr.bf16.mxu1 %v12553_v54  ;;  %v2497_v53 = vld [vmem:[#allocation8 + $0x9e0] sm:$0xff]  ;;  %v2494_v54 = vld [vmem:[#allocation8 + $0x9c8] sm:$0xff] }
 0x2fa   :  { %v12615_v58 = vcombine.high %v2493_v52, %v2497_v53  ;;  %v12614_v0 = vcombine.low %v2493_v52, %v2497_v53  ;;  %v12616_v40 = vcombine.low %v2494_v54, %v2498_v55 }
 0x2fc   :  { %5325 = vmatpush1.bf16.msra.mxu0 %v12550_v60  ;;  %5489 = vmatpush1.bf16.msra.mxu1 %v12552_v61  ;;  %v12617_v60 = vcombine.high %v2494_v54, %v2498_v55  ;;  %v2501_v61 = vld [vmem:[#allocation8 + $0xa00] sm:$0xff] }
 0x2fd   :  { %5335 = vmatprep.subr.bf16.mxu0 %v12559_v62  ;;  %5499 = vmatprep.subr.bf16.mxu1 %v12561_v63  ;;  %v2502_v62 = vld [vmem:[#allocation8 + $0xa08] sm:$0xff]  ;;  %v12623_v1 = vcombine.high %v2501_v61, %v2505_v26  ;;  %v12622_v8 = vcombine.low %v2501_v61, %v2505_v26 }
 0x2fe   :  { %v2506_v63 = vld [vmem:[#allocation8 + $0xa28] sm:$0xff] }
 0x2ff   :  { %5327 = vmatmul.mubr.bf16.vlgmr.msra.gmra.mrb[8].mxu0 %v14845_v5  ;;  %5491 = vmatmul.mubr.bf16.vlgmr.msra.gmra.mrb[16].mxu1 %v14845_v5  ;;  %v12625_v3 = vcombine.high %v2502_v62, %v2506_v63  ;;  %v12624_v35 = vcombine.low %v2502_v62, %v2506_v63 }
 0x300   :  { %5336 = vmatpush1.bf16.msra.mxu0 %v12558_v48  ;;  %5500 = vmatpush1.bf16.msra.mxu1 %v12560_v4  ;;  %v2509_v48 = vld [vmem:[#allocation8 + $0xa40] sm:$0xff] }
 0x301   :  { %5337 = vmatprep.subr.bf16.mxu0 %v12567_v6  ;;  %5501 = vmatprep.subr.bf16.mxu1 %v12569_v7  ;;  %v2513_v4 = vld [vmem:[#allocation8 + $0xa60] sm:$0xff]  ;;  %v2510_v6 = vld [vmem:[#allocation8 + $0xa48] sm:$0xff] }
 0x302   :  { %v2514_v7 = vld [vmem:[#allocation8 + $0xa68] sm:$0xff]  ;;  %v12631_v9 = vcombine.high %v2509_v48, %v2513_v4  ;;  %v12630_v15 = vcombine.low %v2509_v48, %v2513_v4 }
 0x303   :  { %v12633_v10 = vcombine.high %v2510_v6, %v2514_v7  ;;  %v12632_v16 = vcombine.low %v2510_v6, %v2514_v7 }
 0x304   :  { %5338 = vmatpush1.bf16.msra.mxu0 %v12566_v11  ;;  %5502 = vmatpush1.bf16.msra.mxu1 %v12568_v12  ;;  %v2517_v11 = vld [vmem:[#allocation8 + $0xa80] sm:$0xff] }
 0x305   :  { %5339 = vmatprep.subr.bf16.mxu0 %v12575_v13  ;;  %5503 = vmatprep.subr.bf16.mxu1 %v12577_v14  ;;  %v2521_v12 = vld [vmem:[#allocation8 + $0xaa0] sm:$0xff]  ;;  %v2518_v13 = vld [vmem:[#allocation8 + $0xa88] sm:$0xff] }
 0x306   :  { %v2522_v14 = vld [vmem:[#allocation8 + $0xaa8] sm:$0xff]  ;;  %v12639_v17 = vcombine.high %v2517_v11, %v2521_v12  ;;  %v12638_v23 = vcombine.low %v2517_v11, %v2521_v12 }
 0x307   :  { %v12641_v18 = vcombine.high %v2518_v13, %v2522_v14  ;;  %v12640_v24 = vcombine.low %v2518_v13, %v2522_v14  ;;  %v2573_v14 = vld [vmem:[#allocation8 + $0xc40] sm:$0xff] }
 0x308   :  { %5340 = vmatpush1.bf16.msra.mxu0 %v12574_v19  ;;  %5504 = vmatpush1.bf16.msra.mxu1 %v12576_v20  ;;  %v2525_v19 = vld [vmem:[#allocation8 + $0xac0] sm:$0xff] }
 0x309   :  { %5341 = vmatprep.subr.bf16.mxu0 %v12583_v21  ;;  %5505 = vmatprep.subr.bf16.mxu1 %v12585_v22  ;;  %v2529_v20 = vld [vmem:[#allocation8 + $0xae0] sm:$0xff]  ;;  %v2526_v21 = vld [vmem:[#allocation8 + $0xac8] sm:$0xff] }
 0x30a   :  { %v2530_v22 = vld [vmem:[#allocation8 + $0xae8] sm:$0xff]  ;;  %v12647_v27 = vcombine.high %v2525_v19, %v2529_v20  ;;  %v12646_v33 = vcombine.low %v2525_v19, %v2529_v20 }
 0x30b   :  { %v12649_v28 = vcombine.high %v2526_v21, %v2530_v22  ;;  %v12648_v34 = vcombine.low %v2526_v21, %v2530_v22  ;;  %v2574_v19 = vld [vmem:[#allocation8 + $0xc48] sm:$0xff] }
 0x30c   :  { %5342 = vmatpush1.bf16.msra.mxu0 %v12582_v29  ;;  %5506 = vmatpush1.bf16.msra.mxu1 %v12584_v30  ;;  %v2533_v29 = vld [vmem:[#allocation8 + $0xb00] sm:$0xff]  ;;  %v2578_v20 = vld [vmem:[#allocation8 + $0xc68] sm:$0xff] }
 0x30d   :  { %5343 = vmatprep.subr.bf16.mxu0 %v12591_v31  ;;  %5507 = vmatprep.subr.bf16.mxu1 %v12593_v32  ;;  %v2537_v30 = vld [vmem:[#allocation8 + $0xb20] sm:$0xff]  ;;  %v2534_v31 = vld [vmem:[#allocation8 + $0xb08] sm:$0xff] }
 0x30e   :  { %v2538_v32 = vld [vmem:[#allocation8 + $0xb28] sm:$0xff]  ;;  %v12655_v36 = vcombine.high %v2533_v29, %v2537_v30  ;;  %v12654_v43 = vcombine.low %v2533_v29, %v2537_v30  ;;  %v12697_v30 = vcombine.high %v2574_v19, %v2578_v20 }
 0x30f   :  { %v12657_v37 = vcombine.high %v2534_v31, %v2538_v32  ;;  %v12656_v44 = vcombine.low %v2534_v31, %v2538_v32  ;;  %v2585_v31 = vld [vmem:[#allocation8 + $0xca0] sm:$0xff]  ;;  %v2582_v32 = vld [vmem:[#allocation8 + $0xc88] sm:$0xff] }
 0x310   :  { %5344 = vmatpush1.bf16.msra.mxu0 %v12590_v38  ;;  %5508 = vmatpush1.bf16.msra.mxu1 %v12592_v39  ;;  %v2541_v38 = vld [vmem:[#allocation8 + $0xb40] sm:$0xff] }
 0x311   :  { %5345 = vmatprep.subr.bf16.mxu0 %v12599_v41  ;;  %5509 = vmatprep.subr.bf16.mxu1 %v12601_v42  ;;  %v2545_v39 = vld [vmem:[#allocation8 + $0xb60] sm:$0xff]  ;;  %v2542_v41 = vld [vmem:[#allocation8 + $0xb48] sm:$0xff] }
 0x312   :  { %v2546_v42 = vld [vmem:[#allocation8 + $0xb68] sm:$0xff]  ;;  %v12663_v45 = vcombine.high %v2541_v38, %v2545_v39  ;;  %v12662_v52 = vcombine.low %v2541_v38, %v2545_v39 }
 0x313   :  { %v12665_v46 = vcombine.high %v2542_v41, %v2546_v42  ;;  %v12664_v53 = vcombine.low %v2542_v41, %v2546_v42  ;;  %v2589_v41 = vld [vmem:[#allocation8 + $0xcc0] sm:$0xff] }
 0x314   :  { %5346 = vmatpush1.bf16.msra.mxu0 %v12598_v47  ;;  %5510 = vmatpush1.bf16.msra.mxu1 %v12600_v49  ;;  %v2549_v47 = vld [vmem:[#allocation8 + $0xb80] sm:$0xff] }
 0x315   :  { %5347 = vmatprep.subr.bf16.mxu0 %v12607_v50  ;;  %5511 = vmatprep.subr.bf16.mxu1 %v12609_v51  ;;  %v2553_v49 = vld [vmem:[#allocation8 + $0xba0] sm:$0xff]  ;;  %v2550_v50 = vld [vmem:[#allocation8 + $0xb88] sm:$0xff] }
 0x316   :  { %v2554_v51 = vld [vmem:[#allocation8 + $0xba8] sm:$0xff]  ;;  %v12671_v54 = vcombine.high %v2549_v47, %v2553_v49  ;;  %v12670_v61 = vcombine.low %v2549_v47, %v2553_v49  ;;  %v2593_v42 = vld [vmem:[#allocation8 + $0xce0] sm:$0xff] }
 0x317   :  { %v12673_v55 = vcombine.high %v2550_v50, %v2554_v51  ;;  %v12672_v26 = vcombine.low %v2550_v50, %v2554_v51  ;;  %v12711_v47 = vcombine.high %v2589_v41, %v2593_v42  ;;  %v2597_v50 = vld [vmem:[#allocation8 + $0xd00] sm:$0xff] }
 0x318   :  { %5348 = vmatpush1.bf16.msra.mxu0 %v12606_v56  ;;  %5512 = vmatpush1.bf16.msra.mxu1 %v12608_v57  ;;  %v2557_v56 = vld [vmem:[#allocation8 + $0xbc0] sm:$0xff] }
 0x319   :  { %5349 = vmatprep.subr.bf16.mxu0 %v12615_v58  ;;  %5513 = vmatprep.subr.bf16.mxu1 %v12617_v60  ;;  %v2561_v57 = vld [vmem:[#allocation8 + $0xbe0] sm:$0xff]  ;;  %v2558_v58 = vld [vmem:[#allocation8 + $0xbc8] sm:$0xff] }
 0x31a   :  { %v2562_v60 = vld [vmem:[#allocation8 + $0xbe8] sm:$0xff]  ;;  %v12679_v62 = vcombine.high %v2557_v56, %v2561_v57  ;;  %v12678_v4 = vcombine.low %v2557_v56, %v2561_v57  ;;  %v2601_v51 = vld [vmem:[#allocation8 + $0xd20] sm:$0xff] }
 0x31b   :  { %v12681_v63 = vcombine.high %v2558_v58, %v2562_v60  ;;  %v12680_v6 = vcombine.low %v2558_v58, %v2562_v60  ;;  %v12719_v56 = vcombine.high %v2597_v50, %v2601_v51  ;;  %v2605_v58 = vld [vmem:[#allocation8 + $0xd40] sm:$0xff] }
 0x31c   :  { %5350 = vmatpush1.bf16.msra.mxu0 %v12614_v0  ;;  %5514 = vmatpush1.bf16.msra.mxu1 %v12616_v40  ;;  %v2565_v0 = vld [vmem:[#allocation8 + $0xc00] sm:$0xff] }
 0x31d   :  { %5351 = vmatprep.subr.bf16.mxu0 %v12623_v1  ;;  %5515 = vmatprep.subr.bf16.mxu1 %v12625_v3  ;;  %v2569_v40 = vld [vmem:[#allocation8 + $0xc20] sm:$0xff]  ;;  %v2566_v1 = vld [vmem:[#allocation8 + $0xc08] sm:$0xff] }
 0x31e   :  { %v2570_v3 = vld [vmem:[#allocation8 + $0xc28] sm:$0xff]  ;;  %v2609_v60 = vld [vmem:[#allocation8 + $0xd60] sm:$0xff] }
 0x320   :  { %5352 = vmatpush1.bf16.msra.mxu0 %v12622_v8  ;;  %5516 = vmatpush1.bf16.msra.mxu1 %v12624_v35 }
 0x321   :  { %5353 = vmatprep.subr.bf16.mxu0 %v12631_v9  ;;  %5517 = vmatprep.subr.bf16.mxu1 %v12633_v10  ;;  %v12687_v9 = vcombine.high %v2565_v0, %v2569_v40  ;;  %v12689_v10 = vcombine.high %v2566_v1, %v2570_v3 }
 0x324   :  { %5354 = vmatpush1.bf16.msra.mxu0 %v12630_v15  ;;  %5518 = vmatpush1.bf16.msra.mxu1 %v12632_v16 }
 0x325   :  { %5355 = vmatprep.subr.bf16.mxu0 %v12639_v17  ;;  %5519 = vmatprep.subr.bf16.mxu1 %v12641_v18  ;;  %v2577_v18 = vld [vmem:[#allocation8 + $0xc60] sm:$0xff] }
 0x326   :  { %v12695_v29 = vcombine.high %v2573_v14, %v2577_v18 }
 0x328   :  { %5356 = vmatpush1.bf16.msra.mxu0 %v12638_v23  ;;  %5520 = vmatpush1.bf16.msra.mxu1 %v12640_v24  ;;  %v12686_v23 = vcombine.low %v2565_v0, %v2569_v40  ;;  %v12688_v24 = vcombine.low %v2566_v1, %v2570_v3  ;;  %v12727_v0 = vcombine.high %v2605_v58, %v2609_v60  ;;  %v2613_v1 = vld [vmem:[#allocation8 + $0xd80] sm:$0xff] }
 0x329   :  { %5357 = vmatprep.subr.bf16.mxu0 %v12647_v27  ;;  %5521 = vmatprep.subr.bf16.mxu1 %v12649_v28  ;;  %v2581_v28 = vld [vmem:[#allocation8 + $0xc80] sm:$0xff] }
 0x32a   :  { %v12703_v38 = vcombine.high %v2581_v28, %v2585_v31  ;;  %v2617_v3 = vld [vmem:[#allocation8 + $0xda0] sm:$0xff] }
 0x32c   :  { %5358 = vmatpush1.bf16.msra.mxu0 %v12646_v33  ;;  %5522 = vmatpush1.bf16.msra.mxu1 %v12648_v34  ;;  %v2586_v33 = vld [vmem:[#allocation8 + $0xca8] sm:$0xff] }
 0x32d   :  { %5359 = vmatprep.subr.bf16.mxu0 %v12655_v36  ;;  %5523 = vmatprep.subr.bf16.mxu1 %v12657_v37  ;;  %v12694_v36 = vcombine.low %v2573_v14, %v2577_v18  ;;  %v12696_v37 = vcombine.low %v2574_v19, %v2578_v20  ;;  %v12705_v39 = vcombine.high %v2582_v32, %v2586_v33  ;;  %v2629_v18 = vld [vmem:[#allocation8 + $0xe00] sm:$0xff]  ;;  %v2630_v20 = vld [vmem:[#allocation8 + $0xe08] sm:$0xff] }
 0x32e   :  { %v12734_v14 = vcombine.low %v2613_v1, %v2617_v3  ;;  %v2633_v19 = vld [vmem:[#allocation8 + $0xe20] sm:$0xff] }
 0x330   :  { %5360 = vmatpush1.bf16.msra.mxu0 %v12654_v43  ;;  %5524 = vmatpush1.bf16.msra.mxu1 %v12656_v44  ;;  %v2590_v43 = vld [vmem:[#allocation8 + $0xcc8] sm:$0xff] }
 0x331   :  { %5361 = vmatprep.subr.bf16.mxu0 %v12663_v45  ;;  %5525 = vmatprep.subr.bf16.mxu1 %v12665_v46  ;;  %v2594_v44 = vld [vmem:[#allocation8 + $0xce8] sm:$0xff]  ;;  %v12702_v45 = vcombine.low %v2581_v28, %v2585_v31  ;;  %v12704_v46 = vcombine.low %v2582_v32, %v2586_v33  ;;  %v12751_v28 = vcombine.high %v2629_v18, %v2633_v19  ;;  %v2641_v31 = vld [vmem:[#allocation8 + $0xe60] sm:$0xff] }
 0x332   :  { %v12713_v49 = vcombine.high %v2590_v43, %v2594_v44  ;;  %v2638_v32 = vld [vmem:[#allocation8 + $0xe48] sm:$0xff] }
 0x333   :  { %v2642_v33 = vld [vmem:[#allocation8 + $0xe68] sm:$0xff] }
 0x334   :  { %5362 = vmatpush1.bf16.msra.mxu0 %v12662_v52  ;;  %5526 = vmatpush1.bf16.msra.mxu1 %v12664_v53  ;;  %v2598_v52 = vld [vmem:[#allocation8 + $0xd08] sm:$0xff] }
 0x335   :  { %5363 = vmatprep.subr.bf16.mxu0 %v12671_v54  ;;  %5527 = vmatprep.subr.bf16.mxu1 %v12673_v55  ;;  %v2602_v53 = vld [vmem:[#allocation8 + $0xd28] sm:$0xff]  ;;  %v12710_v54 = vcombine.low %v2589_v41, %v2593_v42  ;;  %v12712_v55 = vcombine.low %v2590_v43, %v2594_v44  ;;  %v2645_v41 = vld [vmem:[#allocation8 + $0xe80] sm:$0xff] }
 0x336   :  { %v12721_v57 = vcombine.high %v2598_v52, %v2602_v53  ;;  %v2649_v42 = vld [vmem:[#allocation8 + $0xea0] sm:$0xff]  ;;  %v2646_v43 = vld [vmem:[#allocation8 + $0xe88] sm:$0xff] }
 0x337   :  { %v2650_v44 = vld [vmem:[#allocation8 + $0xea8] sm:$0xff] }
 0x338   :  { %5364 = vmatpush1.bf16.msra.mxu0 %v12670_v61  ;;  %5528 = vmatpush1.bf16.msra.mxu1 %v12672_v26  ;;  %v2076_v48 = vpop.f32.mrb[4].mxu0  ;;  %v2606_v61 = vld [vmem:[#allocation8 + $0xd48] sm:$0xff] }
 0x339   :  { %v2169_v7 = vmax.f32 %v2076_v48, 0.0  ;;  %v14849_v8 = vpop.f32.mrb[12].mxu1  ;;  %v2078_v35 = vpop.f32.mrb[5].mxu0  ;;  %5365 = vmatprep.subr.bf16.mxu0 %v12679_v62  ;;  %5529 = vmatprep.subr.bf16.mxu1 %v12681_v63  ;;  %v2610_v26 = vld [vmem:[#allocation8 + $0xd68] sm:$0xff]  ;;  %v12718_v62 = vcombine.low %v2597_v50, %v2601_v51  ;;  %v12720_v63 = vcombine.low %v2598_v52, %v2602_v53  ;;  %v2653_v50 = vld [vmem:[#allocation8 + $0xec0] sm:$0xff] }
 0x33a   :  { %v2170_v11 = vmax.f32 %v2078_v35, 0.0  ;;  %v2160_v12 = vpop.f32.mrb[13].mxu1  ;;  %v2080_v13 = vpop.f32.mrb[6].mxu0  ;;  %v12729_v40 = vcombine.high %v2606_v61, %v2610_v26  ;;  %v2614_v48 = vld [vmem:[#allocation8 + $0xd88] sm:$0xff]  ;;  %v12735_v35 = vcombine.high %v2613_v1, %v2617_v3  ;;  %v2657_v51 = vld [vmem:[#allocation8 + $0xee0] sm:$0xff] }
 0x33b   :  { %v2172_v15 = vmax.f32 %v2160_v12, 0.0  ;;  %v2162_v16 = vpop.f32.mrb[14].mxu1  ;;  %v2081_v17 = vpop.f32.mrb[7].mxu0  ;;  %v14853_v27 = vpack.c.bf16 %v2169_v7, %v2169_v7  ;;  %v12728_v7 = vcombine.low %v2606_v61, %v2610_v26  ;;  %v2622_v12 = vld [vmem:[#allocation8 + $0xdc8] sm:$0xff]  ;;  %v2669_v1 = vld [vmem:[#allocation8 + $0xf40] sm:$0xff] }
 0x33c   :  { %v14851_v21 = vpack.c.bf16 %v2170_v11, %v2170_v11  ;;  %v2163_v22 = vpop.f32.mrb[15].mxu1  ;;  %5366 = vmatpush1.bf16.msra.mxu0 %v12678_v4  ;;  %5530 = vmatpush1.bf16.msra.mxu1 %v12680_v6  ;;  %v2618_v4 = vld [vmem:[#allocation8 + $0xda8] sm:$0xff]  ;;  %v12726_v6 = vcombine.low %v2605_v58, %v2609_v60  ;;  %v2625_v11 = vld [vmem:[#allocation8 + $0xde0] sm:$0xff] }
 0x33d   :  { %5376 = vmatprep.subr.bf16.mxu0 %v12687_v9  ;;  %5540 = vmatprep.subr.bf16.mxu1 %v12689_v10  ;;  %v14857_v34 = vpack.c.bf16 %v2172_v15, %v2172_v15  ;;  %v12737_v9 = vcombine.high %v2614_v48, %v2618_v4  ;;  %v2621_v10 = vld [vmem:[#allocation8 + $0xdc0] sm:$0xff]  ;;  %v2626_v13 = vld [vmem:[#allocation8 + $0xde8] sm:$0xff]  ;;  %v12736_v15 = vcombine.low %v2614_v48, %v2618_v4 }
 0x33e   :  { %5367 = vmatprep.mubr.bf16.mxu0 %v14851_v21  ;;  %5531 = vmatprep.mubr.bf16.mxu1 %v14851_v21  ;;  %v12743_v16 = vcombine.high %v2621_v10, %v2625_v11  ;;  %v12745_v17 = vcombine.high %v2622_v12, %v2626_v13  ;;  %v2634_v22 = vld [vmem:[#allocation8 + $0xe28] sm:$0xff]  ;;  %v2661_v58 = vld [vmem:[#allocation8 + $0xf00] sm:$0xff] }
 0x33f   :  { %5368 = vmatmul.mubr.bf16.vlgmr.msra.gmra.mrb[8].mxu0 %v14853_v27  ;;  %5532 = vmatmul.mubr.bf16.vlgmr.msra.gmra.mrb[16].mxu1 %v14853_v27  ;;  %v2654_v52 = vld [vmem:[#allocation8 + $0xec8] sm:$0xff]  ;;  %v2665_v60 = vld [vmem:[#allocation8 + $0xf20] sm:$0xff] }
 0x340   :  { %5377 = vmatpush1.bf16.msra.mxu0 %v12686_v23  ;;  %5541 = vmatpush1.bf16.msra.mxu1 %v12688_v24  ;;  %v12742_v23 = vcombine.low %v2621_v10, %v2625_v11  ;;  %v12744_v24 = vcombine.low %v2622_v12, %v2626_v13  ;;  %v2658_v53 = vld [vmem:[#allocation8 + $0xee8] sm:$0xff]  ;;  %v2673_v3 = vld [vmem:[#allocation8 + $0xf60] sm:$0xff] }
 0x341   :  { %5408 = vmatprep.mubr.bf16.mxu0 %v14857_v34  ;;  %5572 = vmatprep.mubr.bf16.mxu1 %v14857_v34  ;;  %v2662_v61 = vld [vmem:[#allocation8 + $0xf08] sm:$0xff]  ;;  %v2677_v10 = vld [vmem:[#allocation8 + $0xf80] sm:$0xff] }
 0x342   :  { %5378 = vmatprep.subr.bf16.mxu0 %v12695_v29  ;;  %5542 = vmatprep.subr.bf16.mxu1 %v12697_v30  ;;  %v12753_v29 = vcombine.high %v2630_v20, %v2634_v22  ;;  %v2637_v30 = vld [vmem:[#allocation8 + $0xe40] sm:$0xff]  ;;  %v2666_v26 = vld [vmem:[#allocation8 + $0xf28] sm:$0xff] }
 0x343   :  { %v2670_v48 = vld [vmem:[#allocation8 + $0xf48] sm:$0xff]  ;;  %v2681_v11 = vld [vmem:[#allocation8 + $0xfa0] sm:$0xff] }
 0x344   :  { %5379 = vmatpush1.bf16.msra.mxu0 %v12694_v36  ;;  %5543 = vmatpush1.bf16.msra.mxu1 %v12696_v37  ;;  %v12750_v36 = vcombine.low %v2629_v18, %v2633_v19  ;;  %v12752_v37 = vcombine.low %v2630_v20, %v2634_v22  ;;  %v2674_v4 = vld [vmem:[#allocation8 + $0xf68] sm:$0xff]  ;;  %v2685_v18 = vld [vmem:[#allocation8 + $0xfc0] sm:$0xff] }
 0x345   :  { %5380 = vmatprep.subr.bf16.mxu0 %v12703_v38  ;;  %5544 = vmatprep.subr.bf16.mxu1 %v12705_v39  ;;  %v12759_v38 = vcombine.high %v2637_v30, %v2641_v31  ;;  %v12761_v39 = vcombine.high %v2638_v32, %v2642_v33  ;;  %v2678_v12 = vld [vmem:[#allocation8 + $0xf88] sm:$0xff]  ;;  %v2689_v19 = vld [vmem:[#allocation8 + $0xfe0] sm:$0xff] }
 0x346   :  { %v2682_v13 = vld [vmem:[#allocation8 + $0xfa8] sm:$0xff] }
 0x347   :  { %v2686_v20 = vld [vmem:[#allocation8 + $0xfc8] sm:$0xff] }
 0x348   :  { %5381 = vmatpush1.bf16.msra.mxu0 %v12702_v45  ;;  %5545 = vmatpush1.bf16.msra.mxu1 %v12704_v46  ;;  %v12758_v45 = vcombine.low %v2637_v30, %v2641_v31  ;;  %v12760_v46 = vcombine.low %v2638_v32, %v2642_v33  ;;  %v2690_v22 = vld [vmem:[#allocation8 + $0xfe8] sm:$0xff]  ;;  %v2183_v30 = vld [vmem:[#allocation8 + $0x10] sm:$0xff]  ;;  %v2184_v32 = vld [vmem:[#allocation8 + $0x18] sm:$0xff] }
 0x349   :  { %5382 = vmatprep.subr.bf16.mxu0 %v12711_v47  ;;  %5546 = vmatprep.subr.bf16.mxu1 %v12713_v49  ;;  %v12767_v47 = vcombine.high %v2645_v41, %v2649_v42  ;;  %v12769_v49 = vcombine.high %v2646_v43, %v2650_v44  ;;  %v2187_v31 = vld [vmem:[#allocation8 + $0x30] sm:$0xff]  ;;  %v2188_v33 = vld [vmem:[#allocation8 + $0x38] sm:$0xff] }
 0x34c   :  { %5383 = vmatpush1.bf16.msra.mxu0 %v12710_v54  ;;  %5547 = vmatpush1.bf16.msra.mxu1 %v12712_v55  ;;  %v12766_v54 = vcombine.low %v2645_v41, %v2649_v42  ;;  %v12768_v55 = vcombine.low %v2646_v43, %v2650_v44  ;;  %v12309_v41 = vcombine.high %v2184_v32, %v2188_v33  ;;  %v2191_v42 = vld [vmem:[#allocation8 + $0x50] sm:$0xff]  ;;  %v2192_v44 = vld [vmem:[#allocation8 + $0x58] sm:$0xff] }
 0x34d   :  { %5384 = vmatprep.subr.bf16.mxu0 %v12719_v56  ;;  %5548 = vmatprep.subr.bf16.mxu1 %v12721_v57  ;;  %v12775_v56 = vcombine.high %v2653_v50, %v2657_v51  ;;  %v12777_v57 = vcombine.high %v2654_v52, %v2658_v53  ;;  %v2195_v43 = vld [vmem:[#allocation8 + $0x70] sm:$0xff] }
 0x350   :  { %5385 = vmatpush1.bf16.msra.mxu0 %v12718_v62  ;;  %5549 = vmatpush1.bf16.msra.mxu1 %v12720_v63  ;;  %v12774_v62 = vcombine.low %v2653_v50, %v2657_v51  ;;  %v12776_v63 = vcombine.low %v2654_v52, %v2658_v53  ;;  %v12315_v50 = vcombine.high %v2191_v42, %v2195_v43  ;;  %v2199_v52 = vld [vmem:[#allocation8 + $0x90] sm:$0xff]  ;;  %v2200_v53 = vld [vmem:[#allocation8 + $0x98] sm:$0xff] }
 0x351   :  { %5386 = vmatprep.subr.bf16.mxu0 %v12727_v0  ;;  %5550 = vmatprep.subr.bf16.mxu1 %v12729_v40  ;;  %v12783_v0 = vcombine.high %v2661_v58, %v2665_v60  ;;  %v12785_v40 = vcombine.high %v2662_v61, %v2666_v26 }
 0x354   :  { %5387 = vmatpush1.bf16.msra.mxu0 %v12726_v6  ;;  %5551 = vmatpush1.bf16.msra.mxu1 %v12728_v7  ;;  %v12782_v6 = vcombine.low %v2661_v58, %v2665_v60  ;;  %v12784_v7 = vcombine.low %v2662_v61, %v2666_v26  ;;  %v2207_v60 = vld [vmem:[#allocation8 + $0xd0] sm:$0xff]  ;;  %v2208_v26 = vld [vmem:[#allocation8 + $0xd8] sm:$0xff] }
 0x355   :  { %5388 = vmatprep.subr.bf16.mxu0 %v12735_v35  ;;  %5552 = vmatprep.subr.bf16.mxu1 %v12737_v9  ;;  %v12791_v35 = vcombine.high %v2669_v1, %v2673_v3  ;;  %v12793_v9 = vcombine.high %v2670_v48, %v2674_v4  ;;  %v2211_v61 = vld [vmem:[#allocation8 + $0xf0] sm:$0xff] }
 0x358   :  { %5389 = vmatpush1.bf16.msra.mxu0 %v12734_v14  ;;  %5553 = vmatpush1.bf16.msra.mxu1 %v12736_v15  ;;  %v12790_v14 = vcombine.low %v2669_v1, %v2673_v3  ;;  %v12792_v15 = vcombine.low %v2670_v48, %v2674_v4  ;;  %v2215_v3 = vld [vmem:[#allocation8 + $0x110] sm:$0xff]  ;;  %v2220_v4 = vld [vmem:[#allocation8 + $0x138] sm:$0xff] }
 0x359   :  { %5390 = vmatprep.subr.bf16.mxu0 %v12743_v16  ;;  %5554 = vmatprep.subr.bf16.mxu1 %v12745_v17  ;;  %v12799_v16 = vcombine.high %v2677_v10, %v2681_v11  ;;  %v12801_v17 = vcombine.high %v2678_v12, %v2682_v13  ;;  %v2219_v48 = vld [vmem:[#allocation8 + $0x130] sm:$0xff] }
 0x35c   :  { %5391 = vmatpush1.bf16.msra.mxu0 %v12742_v23  ;;  %5555 = vmatpush1.bf16.msra.mxu1 %v12744_v24  ;;  %v12798_v23 = vcombine.low %v2677_v10, %v2681_v11  ;;  %v12800_v24 = vcombine.low %v2678_v12, %v2682_v13  ;;  %v2223_v10 = vld [vmem:[#allocation8 + $0x150] sm:$0xff]  ;;  %v2224_v12 = vld [vmem:[#allocation8 + $0x158] sm:$0xff] }
 0x35d   :  { %5392 = vmatprep.subr.bf16.mxu0 %v12751_v28  ;;  %5556 = vmatprep.subr.bf16.mxu1 %v12753_v29  ;;  %v12807_v28 = vcombine.high %v2685_v18, %v2689_v19  ;;  %v12809_v29 = vcombine.high %v2686_v20, %v2690_v22  ;;  %v2227_v11 = vld [vmem:[#allocation8 + $0x170] sm:$0xff]  ;;  %v2228_v13 = vld [vmem:[#allocation8 + $0x178] sm:$0xff] }
 0x360   :  { %5393 = vmatpush1.bf16.msra.mxu0 %v12750_v36  ;;  %5557 = vmatpush1.bf16.msra.mxu1 %v12752_v37  ;;  %v12806_v36 = vcombine.low %v2685_v18, %v2689_v19  ;;  %v12808_v37 = vcombine.low %v2686_v20, %v2690_v22  ;;  %v2231_v18 = vld [vmem:[#allocation8 + $0x190] sm:$0xff]  ;;  %v2232_v20 = vld [vmem:[#allocation8 + $0x198] sm:$0xff] }
 0x361   :  { %5394 = vmatprep.subr.bf16.mxu0 %v12759_v38  ;;  %5558 = vmatprep.subr.bf16.mxu1 %v12761_v39  ;;  %v2171_v38 = vmax.f32 %v14849_v8, 0.0  ;;  %v12307_v39 = vcombine.high %v2183_v30, %v2187_v31  ;;  %v2203_v8 = vld [vmem:[#allocation8 + $0xb0] sm:$0xff]  ;;  %v2236_v22 = vld [vmem:[#allocation8 + $0x1b8] sm:$0xff] }
 0x362   :  { %v2235_v19 = vld [vmem:[#allocation8 + $0x1b0] sm:$0xff] }
 0x364   :  { %5395 = vmatpush1.bf16.msra.mxu0 %v12758_v45  ;;  %5559 = vmatpush1.bf16.msra.mxu1 %v12760_v46  ;;  %v2196_v45 = vld [vmem:[#allocation8 + $0x78] sm:$0xff]  ;;  %v12306_v46 = vcombine.low %v2183_v30, %v2187_v31  ;;  %v2239_v30 = vld [vmem:[#allocation8 + $0x1d0] sm:$0xff] }
 0x365   :  { %5396 = vmatprep.subr.bf16.mxu0 %v12767_v47  ;;  %5560 = vmatprep.subr.bf16.mxu1 %v12769_v49  ;;  %v14864_v47 = vpack.c.bf16 %v2171_v38, %v2171_v38  ;;  %v12308_v49 = vcombine.low %v2184_v32, %v2188_v33  ;;  %v12317_v51 = vcombine.high %v2192_v44, %v2196_v45  ;;  %v2243_v31 = vld [vmem:[#allocation8 + $0x1f0] sm:$0xff]  ;;  %v2240_v32 = vld [vmem:[#allocation8 + $0x1d8] sm:$0xff] }
 0x366   :  { %v2244_v33 = vld [vmem:[#allocation8 + $0x1f8] sm:$0xff]  ;;  %v12363_v38 = vcombine.high %v2239_v30, %v2243_v31 }
 0x368   :  { %5397 = vmatpush1.bf16.msra.mxu0 %v12766_v54  ;;  %5561 = vmatpush1.bf16.msra.mxu1 %v12768_v55  ;;  %v2204_v54 = vld [vmem:[#allocation8 + $0xb8] sm:$0xff]  ;;  %v12314_v55 = vcombine.low %v2191_v42, %v2195_v43  ;;  %v2251_v42 = vld [vmem:[#allocation8 + $0x230] sm:$0xff] }
 0x369   :  { %5398 = vmatprep.subr.bf16.mxu0 %v12775_v56  ;;  %5562 = vmatprep.subr.bf16.mxu1 %v12777_v57  ;;  %v12316_v56 = vcombine.low %v2192_v44, %v2196_v45  ;;  %v12323_v57 = vcombine.high %v2199_v52, %v2203_v8  ;;  %v12325_v58 = vcombine.high %v2200_v53, %v2204_v54  ;;  %v2248_v43 = vld [vmem:[#allocation8 + $0x218] sm:$0xff] }
 0x36a   :  { %v2252_v44 = vld [vmem:[#allocation8 + $0x238] sm:$0xff]  ;;  %v12362_v45 = vcombine.low %v2239_v30, %v2243_v31  ;;  %v2299_v30 = vld [vmem:[#allocation8 + $0x3b0] sm:$0xff] }
 0x36b   :  { %v2296_v31 = vld [vmem:[#allocation8 + $0x398] sm:$0xff] }
 0x36c   :  { %5399 = vmatpush1.bf16.msra.mxu0 %v12774_v62  ;;  %5563 = vmatpush1.bf16.msra.mxu1 %v12776_v63  ;;  %v2212_v62 = vld [vmem:[#allocation8 + $0xf8] sm:$0xff]  ;;  %v12322_v63 = vcombine.low %v2199_v52, %v2203_v8  ;;  %v2259_v52 = vld [vmem:[#allocation8 + $0x270] sm:$0xff] }
 0x36d   :  { %5400 = vmatprep.subr.bf16.mxu0 %v12783_v0  ;;  %5564 = vmatprep.subr.bf16.mxu1 %v12785_v40  ;;  %v12324_v0 = vcombine.low %v2200_v53, %v2204_v54  ;;  %v12331_v40 = vcombine.high %v2207_v60, %v2211_v61  ;;  %v12333_v1 = vcombine.high %v2208_v26, %v2212_v62  ;;  %v2256_v8 = vld [vmem:[#allocation8 + $0x258] sm:$0xff] }
 0x36e   :  { %v2260_v53 = vld [vmem:[#allocation8 + $0x278] sm:$0xff] }
 0x370   :  { %5401 = vmatpush1.bf16.msra.mxu0 %v12782_v6  ;;  %5565 = vmatpush1.bf16.msra.mxu1 %v12784_v7  ;;  %v12330_v6 = vcombine.low %v2207_v60, %v2211_v61  ;;  %v12332_v7 = vcombine.low %v2208_v26, %v2212_v62  ;;  %v2267_v60 = vld [vmem:[#allocation8 + $0x2b0] sm:$0xff]  ;;  %v2264_v61 = vld [vmem:[#allocation8 + $0x298] sm:$0xff] }
 0x371   :  { %5402 = vmatprep.subr.bf16.mxu0 %v12791_v35  ;;  %5566 = vmatprep.subr.bf16.mxu1 %v12793_v9  ;;  %v12339_v35 = vcombine.high %v2215_v3, %v2219_v48  ;;  %v2268_v26 = vld [vmem:[#allocation8 + $0x2b8] sm:$0xff] }
 0x374   :  { %5403 = vmatpush1.bf16.msra.mxu0 %v12790_v14  ;;  %5567 = vmatpush1.bf16.msra.mxu1 %v12792_v15  ;;  %v12338_v14 = vcombine.low %v2215_v3, %v2219_v48  ;;  %v2275_v3 = vld [vmem:[#allocation8 + $0x2f0] sm:$0xff]  ;;  %v2272_v48 = vld [vmem:[#allocation8 + $0x2d8] sm:$0xff] }
 0x375   :  { %5404 = vmatprep.subr.bf16.mxu0 %v12799_v16  ;;  %5568 = vmatprep.subr.bf16.mxu1 %v12801_v17  ;;  %v12347_v16 = vcombine.high %v2223_v10, %v2227_v11  ;;  %v12349_v17 = vcombine.high %v2224_v12, %v2228_v13 }
 0x378   :  { %5405 = vmatpush1.bf16.msra.mxu0 %v12798_v23  ;;  %5569 = vmatpush1.bf16.msra.mxu1 %v12800_v24  ;;  %v12346_v23 = vcombine.low %v2223_v10, %v2227_v11  ;;  %v12348_v24 = vcombine.low %v2224_v12, %v2228_v13  ;;  %v2283_v10 = vld [vmem:[#allocation8 + $0x330] sm:$0xff]  ;;  %v2280_v11 = vld [vmem:[#allocation8 + $0x318] sm:$0xff] }
 0x379   :  { %5406 = vmatprep.subr.bf16.mxu0 %v12807_v28  ;;  %5570 = vmatprep.subr.bf16.mxu1 %v12809_v29  ;;  %v12355_v28 = vcombine.high %v2231_v18, %v2235_v19  ;;  %v12357_v29 = vcombine.high %v2232_v20, %v2236_v22  ;;  %v2284_v12 = vld [vmem:[#allocation8 + $0x338] sm:$0xff] }
 0x37c   :  { %5407 = vmatpush1.bf16.msra.mxu0 %v12806_v36  ;;  %5571 = vmatpush1.bf16.msra.mxu1 %v12808_v37  ;;  %v12354_v36 = vcombine.low %v2231_v18, %v2235_v19  ;;  %v12356_v37 = vcombine.low %v2232_v20, %v2236_v22  ;;  %v2291_v18 = vld [vmem:[#allocation8 + $0x370] sm:$0xff]  ;;  %v2288_v19 = vld [vmem:[#allocation8 + $0x358] sm:$0xff] }
 0x37d   :  { %5581 = vmatprep.subr.bf16.mxu0 %v12307_v39  ;;  %5745 = vmatprep.subr.bf16.mxu1 %v12309_v41  ;;  %v12365_v39 = vcombine.high %v2240_v32, %v2244_v33  ;;  %v2247_v41 = vld [vmem:[#allocation8 + $0x210] sm:$0xff]  ;;  %v2292_v20 = vld [vmem:[#allocation8 + $0x378] sm:$0xff] }
 0x37e   :  { %v12370_v54 = vcombine.low %v2247_v41, %v2251_v42 }
 0x37f   :  { %5409 = vmatmul.mubr.bf16.vlgmr.msra.gmra.mrb[8].mxu0 %v14864_v47  ;;  %5573 = vmatmul.mubr.bf16.vlgmr.msra.gmra.mrb[16].mxu1 %v14864_v47 }
 0x380   :  { %5582 = vmatpush1.bf16.msra.mxu0 %v12306_v46  ;;  %5613 = vmatprep.mubr.bf16.mxu0 %v14832_v59  ;;  %v12364_v46 = vcombine.low %v2240_v32, %v2244_v33  ;;  %v2300_v32 = vld [vmem:[#allocation8 + $0x3b8] sm:$0xff] }
 0x381   :  { %5746 = vmatpush1.bf16.msra.mxu1 %v12308_v49  ;;  %5777 = vmatprep.mubr.bf16.mxu1 %v14832_v59  ;;  %v2216_v59 = vld [vmem:[#allocation8 + $0x118] sm:$0xff]  ;;  %v12371_v49 = vcombine.high %v2247_v41, %v2251_v42  ;;  %v2307_v41 = vld [vmem:[#allocation8 + $0x3f0] sm:$0xff] }
 0x382   :  { %5583 = vmatprep.subr.bf16.mxu0 %v12315_v50  ;;  %5747 = vmatprep.subr.bf16.mxu1 %v12317_v51  ;;  %v12341_v9 = vcombine.high %v2216_v59, %v2220_v4  ;;  %v12340_v15 = vcombine.low %v2216_v59, %v2220_v4  ;;  %v12373_v50 = vcombine.high %v2248_v43, %v2252_v44  ;;  %v2255_v51 = vld [vmem:[#allocation8 + $0x250] sm:$0xff]  ;;  %v2276_v59 = vld [vmem:[#allocation8 + $0x2f8] sm:$0xff] }
 0x383   :  { %v12378_v62 = vcombine.low %v2255_v51, %v2259_v52  ;;  %v2304_v42 = vld [vmem:[#allocation8 + $0x3d8] sm:$0xff] }
 0x384   :  { %5584 = vmatpush1.bf16.msra.mxu0 %v12314_v55  ;;  %v12372_v55 = vcombine.low %v2248_v43, %v2252_v44  ;;  %v2308_v43 = vld [vmem:[#allocation8 + $0x3f8] sm:$0xff] }
 0x385   :  { %5748 = vmatpush1.bf16.msra.mxu1 %v12316_v56  ;;  %5585 = vmatprep.subr.bf16.mxu0 %v12323_v57  ;;  %v12379_v56 = vcombine.high %v2255_v51, %v2259_v52  ;;  %v12381_v57 = vcombine.high %v2256_v8, %v2260_v53  ;;  %v2315_v51 = vld [vmem:[#allocation8 + $0x430] sm:$0xff]  ;;  %v2312_v52 = vld [vmem:[#allocation8 + $0x418] sm:$0xff] }
 0x386   :  { %5749 = vmatprep.subr.bf16.mxu1 %v12325_v58  ;;  %v2263_v58 = vld [vmem:[#allocation8 + $0x290] sm:$0xff] }
 0x387   :  { %v12386_v4 = vcombine.low %v2263_v58, %v2267_v60 }
 0x388   :  { %5586 = vmatpush1.bf16.msra.mxu0 %v12322_v63  ;;  %v12380_v63 = vcombine.low %v2256_v8, %v2260_v53  ;;  %v2316_v8 = vld [vmem:[#allocation8 + $0x438] sm:$0xff] }
 0x389   :  { %5750 = vmatpush1.bf16.msra.mxu1 %v12324_v0  ;;  %5587 = vmatprep.subr.bf16.mxu0 %v12331_v40  ;;  %v12387_v0 = vcombine.high %v2263_v58, %v2267_v60  ;;  %v12389_v40 = vcombine.high %v2264_v61, %v2268_v26  ;;  %v2323_v58 = vld [vmem:[#allocation8 + $0x470] sm:$0xff] }
 0x38a   :  { %5751 = vmatprep.subr.bf16.mxu1 %v12333_v1  ;;  %v2271_v1 = vld [vmem:[#allocation8 + $0x2d0] sm:$0xff] }
 0x38b   :  { %v12394_v13 = vcombine.low %v2271_v1, %v2275_v3 }
 0x38c   :  { %5588 = vmatpush1.bf16.msra.mxu0 %v12330_v6  ;;  %v12388_v6 = vcombine.low %v2264_v61, %v2268_v26  ;;  %v2320_v61 = vld [vmem:[#allocation8 + $0x458] sm:$0xff] }
 0x38d   :  { %5752 = vmatpush1.bf16.msra.mxu1 %v12332_v7  ;;  %5589 = vmatprep.subr.bf16.mxu0 %v12339_v35  ;;  %v12395_v7 = vcombine.high %v2271_v1, %v2275_v3  ;;  %v12397_v35 = vcombine.high %v2272_v48, %v2276_v59  ;;  %v2324_v26 = vld [vmem:[#allocation8 + $0x478] sm:$0xff] }
 0x38e   :  { %5753 = vmatprep.subr.bf16.mxu1 %v12341_v9  ;;  %v2279_v9 = vld [vmem:[#allocation8 + $0x310] sm:$0xff]  ;;  %v12445_v1 = vcombine.high %v2320_v61, %v2324_v26  ;;  %v2328_v3 = vld [vmem:[#allocation8 + $0x498] sm:$0xff] }
 0x38f   :  { %v12402_v22 = vcombine.low %v2279_v9, %v2283_v10 }
 0x390   :  { %5590 = vmatpush1.bf16.msra.mxu0 %v12338_v14  ;;  %v12396_v14 = vcombine.low %v2272_v48, %v2276_v59  ;;  %v2332_v48 = vld [vmem:[#allocation8 + $0x4b8] sm:$0xff] }
 0x391   :  { %5754 = vmatpush1.bf16.msra.mxu1 %v12340_v15  ;;  %5591 = vmatprep.subr.bf16.mxu0 %v12347_v16  ;;  %v12403_v15 = vcombine.high %v2279_v9, %v2283_v10  ;;  %v12405_v16 = vcombine.high %v2280_v11, %v2284_v12  ;;  %v2339_v9 = vld [vmem:[#allocation8 + $0x4f0] sm:$0xff]  ;;  %v2336_v10 = vld [vmem:[#allocation8 + $0x4d8] sm:$0xff] }
 0x392   :  { %5755 = vmatprep.subr.bf16.mxu1 %v12349_v17  ;;  %v2287_v17 = vld [vmem:[#allocation8 + $0x350] sm:$0xff] }
 0x393   :  { %v12410_v33 = vcombine.low %v2287_v17, %v2291_v18 }
 0x394   :  { %5592 = vmatpush1.bf16.msra.mxu0 %v12346_v23  ;;  %v12404_v23 = vcombine.low %v2280_v11, %v2284_v12  ;;  %v2340_v11 = vld [vmem:[#allocation8 + $0x4f8] sm:$0xff] }
 0x395   :  { %5756 = vmatpush1.bf16.msra.mxu1 %v12348_v24  ;;  %5593 = vmatprep.subr.bf16.mxu0 %v12355_v28  ;;  %v12411_v24 = vcombine.high %v2287_v17, %v2291_v18  ;;  %v12413_v28 = vcombine.high %v2288_v19, %v2292_v20  ;;  %v2344_v17 = vld [vmem:[#allocation8 + $0x518] sm:$0xff] }
 0x396   :  { %5757 = vmatprep.subr.bf16.mxu1 %v12357_v29  ;;  %v2295_v29 = vld [vmem:[#allocation8 + $0x390] sm:$0xff]  ;;  %v2348_v18 = vld [vmem:[#allocation8 + $0x538] sm:$0xff] }
 0x397   :  { %v12418_v44 = vcombine.low %v2295_v29, %v2299_v30 }
 0x398   :  { %5594 = vmatpush1.bf16.msra.mxu0 %v12354_v36  ;;  %v12412_v36 = vcombine.low %v2288_v19, %v2292_v20  ;;  %v12460_v19 = vcombine.low %v2336_v10, %v2340_v11 }
 0x399   :  { %5758 = vmatpush1.bf16.msra.mxu1 %v12356_v37  ;;  %5595 = vmatprep.subr.bf16.mxu0 %v12363_v38  ;;  %v12419_v37 = vcombine.high %v2295_v29, %v2299_v30  ;;  %v12421_v38 = vcombine.high %v2296_v31, %v2300_v32  ;;  %v2356_v29 = vld [vmem:[#allocation8 + $0x578] sm:$0xff] }
 0x39a   :  { %5759 = vmatprep.subr.bf16.mxu1 %v12365_v39  ;;  %v2303_v39 = vld [vmem:[#allocation8 + $0x3d0] sm:$0xff] }
 0x39b   :  { %v12426_v53 = vcombine.low %v2303_v39, %v2307_v41 }
 0x39c   :  { %5596 = vmatpush1.bf16.msra.mxu0 %v12362_v45  ;;  %v12420_v45 = vcombine.low %v2296_v31, %v2300_v32  ;;  %v12468_v31 = vcombine.low %v2344_v17, %v2348_v18 }
 0x39d   :  { %5760 = vmatpush1.bf16.msra.mxu1 %v12364_v46  ;;  %5597 = vmatprep.subr.bf16.mxu0 %v12371_v49  ;;  %v12427_v46 = vcombine.high %v2303_v39, %v2307_v41  ;;  %v12429_v49 = vcombine.high %v2304_v42, %v2308_v43  ;;  %v2364_v39 = vld [vmem:[#allocation8 + $0x5b8] sm:$0xff] }
 0x39e   :  { %5761 = vmatprep.subr.bf16.mxu1 %v12373_v50  ;;  %v2311_v50 = vld [vmem:[#allocation8 + $0x410] sm:$0xff] }
 0x39f   :  { %v12434_v60 = vcombine.low %v2311_v50, %v2315_v51 }
 0x3a0   :  { %5598 = vmatpush1.bf16.msra.mxu0 %v12370_v54  ;;  %v12428_v54 = vcombine.low %v2304_v42, %v2308_v43 }
 0x3a1   :  { %5762 = vmatpush1.bf16.msra.mxu1 %v12372_v55  ;;  %5599 = vmatprep.subr.bf16.mxu0 %v12379_v56  ;;  %v12435_v55 = vcombine.high %v2311_v50, %v2315_v51  ;;  %v12437_v56 = vcombine.high %v2312_v52, %v2316_v8  ;;  %v2372_v50 = vld [vmem:[#allocation8 + $0x5f8] sm:$0xff] }
 0x3a2   :  { %5763 = vmatprep.subr.bf16.mxu1 %v12381_v57  ;;  %v2319_v57 = vld [vmem:[#allocation8 + $0x450] sm:$0xff] }
 0x3a3   :  { %v12442_v59 = vcombine.low %v2319_v57, %v2323_v58 }
 0x3a4   :  { %5600 = vmatpush1.bf16.msra.mxu0 %v12378_v62  ;;  %v12436_v62 = vcombine.low %v2312_v52, %v2316_v8 }
 0x3a5   :  { %5764 = vmatpush1.bf16.msra.mxu1 %v12380_v63  ;;  %5601 = vmatprep.subr.bf16.mxu0 %v12387_v0  ;;  %v12443_v63 = vcombine.high %v2319_v57, %v2323_v58  ;;  %v2327_v0 = vld [vmem:[#allocation8 + $0x490] sm:$0xff]  ;;  %v2380_v57 = vld [vmem:[#allocation8 + $0x638] sm:$0xff] }
 0x3a6   :  { %5765 = vmatprep.subr.bf16.mxu1 %v12389_v40  ;;  %v2331_v40 = vld [vmem:[#allocation8 + $0x4b0] sm:$0xff] }
 0x3a7   :  { %v12450_v12 = vcombine.low %v2327_v0, %v2331_v40 }
 0x3a8   :  { %5602 = vmatpush1.bf16.msra.mxu0 %v12386_v4  ;;  %v12444_v4 = vcombine.low %v2320_v61, %v2324_v26 }
 0x3a9   :  { %5766 = vmatpush1.bf16.msra.mxu1 %v12388_v6  ;;  %5603 = vmatprep.subr.bf16.mxu0 %v12395_v7  ;;  %v12451_v6 = vcombine.high %v2327_v0, %v2331_v40  ;;  %v12453_v7 = vcombine.high %v2328_v3, %v2332_v48  ;;  %v2384_v0 = vld [vmem:[#allocation8 + $0x658] sm:$0xff] }
 0x3aa   :  { %5767 = vmatprep.subr.bf16.mxu1 %v12397_v35  ;;  %v2335_v35 = vld [vmem:[#allocation8 + $0x4d0] sm:$0xff]  ;;  %v2388_v40 = vld [vmem:[#allocation8 + $0x678] sm:$0xff] }
 0x3ac   :  { %5604 = vmatpush1.bf16.msra.mxu0 %v12394_v13  ;;  %v12459_v13 = vcombine.high %v2335_v35, %v2339_v9 }
 0x3ad   :  { %5768 = vmatpush1.bf16.msra.mxu1 %v12396_v14  ;;  %5605 = vmatprep.subr.bf16.mxu0 %v12403_v15  ;;  %v12461_v14 = vcombine.high %v2336_v10, %v2340_v11  ;;  %v2343_v15 = vld [vmem:[#allocation8 + $0x510] sm:$0xff]  ;;  %v12508_v10 = vcombine.low %v2384_v0, %v2388_v40 }
 0x3ae   :  { %5769 = vmatprep.subr.bf16.mxu1 %v12405_v16  ;;  %v2347_v16 = vld [vmem:[#allocation8 + $0x530] sm:$0xff] }
 0x3af   :  { %v12467_v20 = vcombine.high %v2343_v15, %v2347_v16  ;;  %v12466_v30 = vcombine.low %v2343_v15, %v2347_v16  ;;  %v2404_v15 = vld [vmem:[#allocation8 + $0x6f8] sm:$0xff] }
 0x3b0   :  { %5606 = vmatpush1.bf16.msra.mxu0 %v12402_v22  ;;  %v12469_v22 = vcombine.high %v2344_v17, %v2348_v18 }
 0x3b1   :  { %5770 = vmatpush1.bf16.msra.mxu1 %v12404_v23  ;;  %5607 = vmatprep.subr.bf16.mxu0 %v12411_v24  ;;  %v2351_v23 = vld [vmem:[#allocation8 + $0x550] sm:$0xff] }
 0x3b2   :  { %5771 = vmatprep.subr.bf16.mxu1 %v12413_v28  ;;  %v2355_v24 = vld [vmem:[#allocation8 + $0x570] sm:$0xff]  ;;  %v2352_v28 = vld [vmem:[#allocation8 + $0x558] sm:$0xff] }
 0x3b3   :  { %v12475_v32 = vcombine.high %v2351_v23, %v2355_v24  ;;  %v12474_v41 = vcombine.low %v2351_v23, %v2355_v24  ;;  %v12476_v42 = vcombine.low %v2352_v28, %v2356_v29  ;;  %v2412_v23 = vld [vmem:[#allocation8 + $0x738] sm:$0xff] }
 0x3b4   :  { %5608 = vmatpush1.bf16.msra.mxu0 %v12410_v33  ;;  %v12477_v33 = vcombine.high %v2352_v28, %v2356_v29 }
 0x3b5   :  { %5772 = vmatpush1.bf16.msra.mxu1 %v12412_v36  ;;  %5609 = vmatprep.subr.bf16.mxu0 %v12419_v37  ;;  %v2359_v36 = vld [vmem:[#allocation8 + $0x590] sm:$0xff] }
 0x3b6   :  { %5773 = vmatprep.subr.bf16.mxu1 %v12421_v38  ;;  %v2363_v37 = vld [vmem:[#allocation8 + $0x5b0] sm:$0xff]  ;;  %v2360_v38 = vld [vmem:[#allocation8 + $0x598] sm:$0xff] }
 0x3b7   :  { %v12483_v43 = vcombine.high %v2359_v36, %v2363_v37  ;;  %v12482_v51 = vcombine.low %v2359_v36, %v2363_v37  ;;  %v12484_v52 = vcombine.low %v2360_v38, %v2364_v39  ;;  %v2420_v36 = vld [vmem:[#allocation8 + $0x778] sm:$0xff] }
 0x3b8   :  { %5610 = vmatpush1.bf16.msra.mxu0 %v12418_v44  ;;  %v12485_v44 = vcombine.high %v2360_v38, %v2364_v39 }
 0x3b9   :  { %5774 = vmatpush1.bf16.msra.mxu1 %v12420_v45  ;;  %5611 = vmatprep.subr.bf16.mxu0 %v12427_v46  ;;  %v2367_v45 = vld [vmem:[#allocation8 + $0x5d0] sm:$0xff] }
 0x3ba   :  { %5775 = vmatprep.subr.bf16.mxu1 %v12429_v49  ;;  %v2371_v46 = vld [vmem:[#allocation8 + $0x5f0] sm:$0xff]  ;;  %v2368_v49 = vld [vmem:[#allocation8 + $0x5d8] sm:$0xff] }
 0x3bb   :  { %v12491_v8 = vcombine.high %v2367_v45, %v2371_v46  ;;  %v12490_v58 = vcombine.low %v2367_v45, %v2371_v46  ;;  %v2428_v45 = vld [vmem:[#allocation8 + $0x7b8] sm:$0xff] }
 0x3bc   :  { %5612 = vmatpush1.bf16.msra.mxu0 %v12426_v53  ;;  %v12493_v53 = vcombine.high %v2368_v49, %v2372_v50 }
 0x3bd   :  { %5776 = vmatpush1.bf16.msra.mxu1 %v12428_v54  ;;  %5622 = vmatprep.subr.bf16.mxu0 %v12435_v55  ;;  %v2375_v54 = vld [vmem:[#allocation8 + $0x610] sm:$0xff] }
 0x3be   :  { %5786 = vmatprep.subr.bf16.mxu1 %v12437_v56  ;;  %v2379_v55 = vld [vmem:[#allocation8 + $0x630] sm:$0xff]  ;;  %v2376_v56 = vld [vmem:[#allocation8 + $0x618] sm:$0xff] }
 0x3bf   :  { %5614 = vmatmul.mubr.bf16.vlgmr.msra.gmra.mrb[12].mxu0 %v14834_v25  ;;  %v12499_v61 = vcombine.high %v2375_v54, %v2379_v55  ;;  %v12501_v26 = vcombine.high %v2376_v56, %v2380_v57 }
 0x3c0   :  { %5778 = vmatmul.mubr.bf16.vlgmr.msra.gmra.mrb[20].mxu1 %v14834_v25  ;;  %5623 = vmatpush1.bf16.msra.mxu0 %v12434_v60  ;;  %v12452_v25 = vcombine.low %v2328_v3, %v2332_v48  ;;  %v12492_v60 = vcombine.low %v2368_v49, %v2372_v50  ;;  %v12500_v3 = vcombine.low %v2376_v56, %v2380_v57 }
 0x3c1   :  { %5654 = vmatprep.mubr.bf16.mxu0 %v14838_v2  ;;  %5787 = vmatpush1.bf16.msra.mxu1 %v12436_v62  ;;  %v2383_v62 = vld [vmem:[#allocation8 + $0x650] sm:$0xff] }
 0x3c2   :  { %5818 = vmatprep.mubr.bf16.mxu1 %v14838_v2  ;;  %5624 = vmatprep.subr.bf16.mxu0 %v12443_v63  ;;  %v12458_v2 = vcombine.low %v2335_v35, %v2339_v9  ;;  %v2387_v63 = vld [vmem:[#allocation8 + $0x670] sm:$0xff]  ;;  %v2396_v35 = vld [vmem:[#allocation8 + $0x6b8] sm:$0xff] }
 0x3c3   :  { %5788 = vmatprep.subr.bf16.mxu1 %v12445_v1  ;;  %v12498_v1 = vcombine.low %v2375_v54, %v2379_v55  ;;  %v12507_v48 = vcombine.high %v2383_v62, %v2387_v63  ;;  %v12506_v9 = vcombine.low %v2383_v62, %v2387_v63  ;;  %v2436_v54 = vld [vmem:[#allocation8 + $0x7f8] sm:$0xff] }
 0x3c4   :  { %5625 = vmatpush1.bf16.msra.mxu0 %v12442_v59  ;;  %v12509_v59 = vcombine.high %v2384_v0, %v2388_v40  ;;  %v2444_v62 = vld [vmem:[#allocation8 + $0x838] sm:$0xff] }
 0x3c5   :  { %5789 = vmatpush1.bf16.msra.mxu1 %v12444_v4  ;;  %5626 = vmatprep.subr.bf16.mxu0 %v12451_v6  ;;  %v2391_v4 = vld [vmem:[#allocation8 + $0x690] sm:$0xff] }
 0x3c6   :  { %5790 = vmatprep.subr.bf16.mxu1 %v12453_v7  ;;  %v2395_v6 = vld [vmem:[#allocation8 + $0x6b0] sm:$0xff]  ;;  %v2392_v7 = vld [vmem:[#allocation8 + $0x698] sm:$0xff] }
 0x3c7   :  { %v12515_v11 = vcombine.high %v2391_v4, %v2395_v6  ;;  %v12514_v16 = vcombine.low %v2391_v4, %v2395_v6  ;;  %v12516_v17 = vcombine.low %v2392_v7, %v2396_v35  ;;  %v2448_v4 = vld [vmem:[#allocation8 + $0x858] sm:$0xff] }
 0x3c8   :  { %5627 = vmatpush1.bf16.msra.mxu0 %v12450_v12  ;;  %v12517_v12 = vcombine.high %v2392_v7, %v2396_v35  ;;  %v2452_v6 = vld [vmem:[#allocation8 + $0x878] sm:$0xff] }
 0x3c9   :  { %5791 = vmatpush1.bf16.msra.mxu1 %v12452_v25  ;;  %5628 = vmatprep.subr.bf16.mxu0 %v12459_v13  ;;  %v2399_v25 = vld [vmem:[#allocation8 + $0x6d0] sm:$0xff] }
 0x3ca   :  { %5792 = vmatprep.subr.bf16.mxu1 %v12461_v14  ;;  %v2403_v13 = vld [vmem:[#allocation8 + $0x6f0] sm:$0xff]  ;;  %v2400_v14 = vld [vmem:[#allocation8 + $0x6d8] sm:$0xff] }
 0x3cb   :  { %v12523_v18 = vcombine.high %v2399_v25, %v2403_v13  ;;  %v12522_v24 = vcombine.low %v2399_v25, %v2403_v13  ;;  %v12524_v28 = vcombine.low %v2400_v14, %v2404_v15  ;;  %v2460_v25 = vld [vmem:[#allocation8 + $0x8b8] sm:$0xff] }
 0x3cc   :  { %5629 = vmatpush1.bf16.msra.mxu0 %v12458_v2  ;;  %v12525_v2 = vcombine.high %v2400_v14, %v2404_v15  ;;  %v12572_v14 = vcombine.low %v2448_v4, %v2452_v6 }
 0x3cd   :  { %5793 = vmatpush1.bf16.msra.mxu1 %v12460_v19  ;;  %5630 = vmatprep.subr.bf16.mxu0 %v12467_v20  ;;  %v2407_v19 = vld [vmem:[#allocation8 + $0x710] sm:$0xff] }
 0x3ce   :  { %5794 = vmatprep.subr.bf16.mxu1 %v12469_v22  ;;  %v2411_v20 = vld [vmem:[#allocation8 + $0x730] sm:$0xff]  ;;  %v2408_v22 = vld [vmem:[#allocation8 + $0x718] sm:$0xff] }
 0x3cf   :  { %v12531_v29 = vcombine.high %v2407_v19, %v2411_v20  ;;  %v12530_v37 = vcombine.low %v2407_v19, %v2411_v20  ;;  %v12532_v38 = vcombine.low %v2408_v22, %v2412_v23  ;;  %v2468_v19 = vld [vmem:[#allocation8 + $0x8f8] sm:$0xff] }
 0x3d0   :  { %5631 = vmatpush1.bf16.msra.mxu0 %v12466_v30  ;;  %v12533_v30 = vcombine.high %v2408_v22, %v2412_v23 }
 0x3d1   :  { %5795 = vmatpush1.bf16.msra.mxu1 %v12468_v31  ;;  %5632 = vmatprep.subr.bf16.mxu0 %v12475_v32  ;;  %v2415_v31 = vld [vmem:[#allocation8 + $0x750] sm:$0xff] }
 0x3d2   :  { %5796 = vmatprep.subr.bf16.mxu1 %v12477_v33  ;;  %v2419_v32 = vld [vmem:[#allocation8 + $0x770] sm:$0xff]  ;;  %v2416_v33 = vld [vmem:[#allocation8 + $0x758] sm:$0xff] }
 0x3d3   :  { %v12539_v39 = vcombine.high %v2415_v31, %v2419_v32  ;;  %v12538_v46 = vcombine.low %v2415_v31, %v2419_v32  ;;  %v12540_v49 = vcombine.low %v2416_v33, %v2420_v36 }
 0x3d4   :  { %5633 = vmatpush1.bf16.msra.mxu0 %v12474_v41  ;;  %v12541_v41 = vcombine.high %v2416_v33, %v2420_v36  ;;  %v2479_v36 = vld [vmem:[#allocation8 + $0x950] sm:$0xff] }
 0x3d5   :  { %5797 = vmatpush1.bf16.msra.mxu1 %v12476_v42  ;;  %5634 = vmatprep.subr.bf16.mxu0 %v12483_v43  ;;  %v2423_v42 = vld [vmem:[#allocation8 + $0x790] sm:$0xff] }
 0x3d6   :  { %5798 = vmatprep.subr.bf16.mxu1 %v12485_v44  ;;  %v2427_v43 = vld [vmem:[#allocation8 + $0x7b0] sm:$0xff]  ;;  %v2424_v44 = vld [vmem:[#allocation8 + $0x798] sm:$0xff] }
 0x3d7   :  { %v12547_v50 = vcombine.high %v2423_v42, %v2427_v43  ;;  %v12546_v55 = vcombine.low %v2423_v42, %v2427_v43  ;;  %v12548_v56 = vcombine.low %v2424_v44, %v2428_v45 }
 0x3d8   :  { %5635 = vmatpush1.bf16.msra.mxu0 %v12482_v51  ;;  %v12549_v51 = vcombine.high %v2424_v44, %v2428_v45  ;;  %v2487_v45 = vld [vmem:[#allocation8 + $0x990] sm:$0xff] }
 0x3d9   :  { %5799 = vmatpush1.bf16.msra.mxu1 %v12484_v52  ;;  %5636 = vmatprep.subr.bf16.mxu0 %v12491_v8  ;;  %v2431_v52 = vld [vmem:[#allocation8 + $0x7d0] sm:$0xff] }
 0x3da   :  { %5800 = vmatprep.subr.bf16.mxu1 %v12493_v53  ;;  %v2435_v8 = vld [vmem:[#allocation8 + $0x7f0] sm:$0xff]  ;;  %v2432_v53 = vld [vmem:[#allocation8 + $0x7d8] sm:$0xff] }
 0x3db   :  { %v12555_v57 = vcombine.high %v2431_v52, %v2435_v8  ;;  %v12554_v63 = vcombine.low %v2431_v52, %v2435_v8  ;;  %v12556_v0 = vcombine.low %v2432_v53, %v2436_v54 }
 0x3dc   :  { %5637 = vmatpush1.bf16.msra.mxu0 %v12490_v58  ;;  %v12557_v58 = vcombine.high %v2432_v53, %v2436_v54  ;;  %v2495_v54 = vld [vmem:[#allocation8 + $0x9d0] sm:$0xff] }
 0x3dd   :  { %5801 = vmatpush1.bf16.msra.mxu1 %v12492_v60  ;;  %5638 = vmatprep.subr.bf16.mxu0 %v12499_v61  ;;  %v2439_v60 = vld [vmem:[#allocation8 + $0x810] sm:$0xff] }
 0x3de   :  { %5802 = vmatprep.subr.bf16.mxu1 %v12501_v26  ;;  %v2443_v61 = vld [vmem:[#allocation8 + $0x830] sm:$0xff]  ;;  %v2440_v26 = vld [vmem:[#allocation8 + $0x818] sm:$0xff] }
 0x3df   :  { %v12563_v40 = vcombine.high %v2439_v60, %v2443_v61  ;;  %v12564_v7 = vcombine.low %v2440_v26, %v2444_v62 }
 0x3e0   :  { %5639 = vmatpush1.bf16.msra.mxu0 %v12498_v1  ;;  %v12565_v1 = vcombine.high %v2440_v26, %v2444_v62  ;;  %v2503_v62 = vld [vmem:[#allocation8 + $0xa10] sm:$0xff] }
 0x3e1   :  { %5803 = vmatpush1.bf16.msra.mxu1 %v12500_v3  ;;  %5640 = vmatprep.subr.bf16.mxu0 %v12507_v48  ;;  %v2447_v3 = vld [vmem:[#allocation8 + $0x850] sm:$0xff] }
 0x3e2   :  { %5804 = vmatprep.subr.bf16.mxu1 %v12509_v59  ;;  %v2451_v48 = vld [vmem:[#allocation8 + $0x870] sm:$0xff]  ;;  %v12562_v59 = vcombine.low %v2439_v60, %v2443_v61 }
 0x3e3   :  { %v12571_v35 = vcombine.high %v2447_v3, %v2451_v48  ;;  %v12570_v13 = vcombine.low %v2447_v3, %v2451_v48 }
 0x3e4   :  { %5641 = vmatpush1.bf16.msra.mxu0 %v12506_v9  ;;  %v2455_v9 = vld [vmem:[#allocation8 + $0x890] sm:$0xff] }
 0x3e5   :  { %5805 = vmatpush1.bf16.msra.mxu1 %v12508_v10  ;;  %5642 = vmatprep.subr.bf16.mxu0 %v12515_v11  ;;  %v2459_v10 = vld [vmem:[#allocation8 + $0x8b0] sm:$0xff]  ;;  %v12573_v11 = vcombine.high %v2448_v4, %v2452_v6 }
 0x3e6   :  { %5806 = vmatprep.subr.bf16.mxu1 %v12517_v12  ;;  %v2456_v12 = vld [vmem:[#allocation8 + $0x898] sm:$0xff]  ;;  %v12579_v15 = vcombine.high %v2455_v9, %v2459_v10  ;;  %v12578_v20 = vcombine.low %v2455_v9, %v2459_v10  ;;  %v2511_v4 = vld [vmem:[#allocation8 + $0xa50] sm:$0xff] }
 0x3e7   :  { %v2515_v6 = vld [vmem:[#allocation8 + $0xa70] sm:$0xff] }
 0x3e8   :  { %5643 = vmatpush1.bf16.msra.mxu0 %v12514_v16  ;;  %v12581_v16 = vcombine.high %v2456_v12, %v2460_v25 }
 0x3e9   :  { %5807 = vmatpush1.bf16.msra.mxu1 %v12516_v17  ;;  %5644 = vmatprep.subr.bf16.mxu0 %v12523_v18  ;;  %v2463_v17 = vld [vmem:[#allocation8 + $0x8d0] sm:$0xff] }
 0x3ea   :  { %5808 = vmatprep.subr.bf16.mxu1 %v12525_v2  ;;  %v2467_v18 = vld [vmem:[#allocation8 + $0x8f0] sm:$0xff]  ;;  %v2464_v2 = vld [vmem:[#allocation8 + $0x8d8] sm:$0xff] }
 0x3eb   :  { %v12587_v22 = vcombine.high %v2463_v17, %v2467_v18  ;;  %v12589_v23 = vcombine.high %v2464_v2, %v2468_v19  ;;  %v12588_v31 = vcombine.low %v2464_v2, %v2468_v19  ;;  %v2527_v19 = vld [vmem:[#allocation8 + $0xad0] sm:$0xff] }
 0x3ec   :  { %5645 = vmatpush1.bf16.msra.mxu0 %v12522_v24  ;;  %v2471_v24 = vld [vmem:[#allocation8 + $0x910] sm:$0xff] }
 0x3ed   :  { %5809 = vmatpush1.bf16.msra.mxu1 %v12524_v28  ;;  %5646 = vmatprep.subr.bf16.mxu0 %v12531_v29  ;;  %v2475_v28 = vld [vmem:[#allocation8 + $0x930] sm:$0xff]  ;;  %v2472_v29 = vld [vmem:[#allocation8 + $0x918] sm:$0xff] }
 0x3ee   :  { %5810 = vmatprep.subr.bf16.mxu1 %v12533_v30  ;;  %v2476_v30 = vld [vmem:[#allocation8 + $0x938] sm:$0xff]  ;;  %v12595_v32 = vcombine.high %v2471_v24, %v2475_v28 }
 0x3ef   :  { %v12597_v33 = vcombine.high %v2472_v29, %v2476_v30  ;;  %v12596_v42 = vcombine.low %v2472_v29, %v2476_v30  ;;  %v2535_v30 = vld [vmem:[#allocation8 + $0xb10] sm:$0xff] }
 0x3f0   :  { %5647 = vmatpush1.bf16.msra.mxu0 %v12530_v37  ;;  %v2483_v37 = vld [vmem:[#allocation8 + $0x970] sm:$0xff] }
 0x3f1   :  { %5811 = vmatpush1.bf16.msra.mxu1 %v12532_v38  ;;  %5648 = vmatprep.subr.bf16.mxu0 %v12539_v39  ;;  %v2480_v38 = vld [vmem:[#allocation8 + $0x958] sm:$0xff]  ;;  %v12603_v43 = vcombine.high %v2479_v36, %v2483_v37 }
 0x3f2   :  { %5812 = vmatprep.subr.bf16.mxu1 %v12541_v41  ;;  %v2484_v39 = vld [vmem:[#allocation8 + $0x978] sm:$0xff]  ;;  %v12594_v41 = vcombine.low %v2471_v24, %v2475_v28 }
 0x3f3   :  { %v12605_v44 = vcombine.high %v2480_v38, %v2484_v39  ;;  %v12604_v52 = vcombine.low %v2480_v38, %v2484_v39  ;;  %v2543_v39 = vld [vmem:[#allocation8 + $0xb50] sm:$0xff] }
 0x3f4   :  { %5649 = vmatpush1.bf16.msra.mxu0 %v12538_v46  ;;  %v2491_v46 = vld [vmem:[#allocation8 + $0x9b0] sm:$0xff] }
 0x3f5   :  { %5813 = vmatpush1.bf16.msra.mxu1 %v12540_v49  ;;  %5650 = vmatprep.subr.bf16.mxu0 %v12547_v50  ;;  %v2488_v49 = vld [vmem:[#allocation8 + $0x998] sm:$0xff]  ;;  %v12611_v8 = vcombine.high %v2487_v45, %v2491_v46 }
 0x3f6   :  { %5814 = vmatprep.subr.bf16.mxu1 %v12549_v51  ;;  %v2492_v50 = vld [vmem:[#allocation8 + $0x9b8] sm:$0xff]  ;;  %v12602_v51 = vcombine.low %v2479_v36, %v2483_v37 }
 0x3f7   :  { %v12613_v53 = vcombine.high %v2488_v49, %v2492_v50  ;;  %v12612_v60 = vcombine.low %v2488_v49, %v2492_v50  ;;  %v2551_v50 = vld [vmem:[#allocation8 + $0xb90] sm:$0xff] }
 0x3f8   :  { %5651 = vmatpush1.bf16.msra.mxu0 %v12546_v55  ;;  %v2499_v55 = vld [vmem:[#allocation8 + $0x9f0] sm:$0xff] }
 0x3f9   :  { %5815 = vmatpush1.bf16.msra.mxu1 %v12548_v56  ;;  %5652 = vmatprep.subr.bf16.mxu0 %v12555_v57  ;;  %v2496_v56 = vld [vmem:[#allocation8 + $0x9d8] sm:$0xff]  ;;  %v12619_v61 = vcombine.high %v2495_v54, %v2499_v55 }
 0x3fa   :  { %5816 = vmatprep.subr.bf16.mxu1 %v12557_v58  ;;  %v2500_v57 = vld [vmem:[#allocation8 + $0x9f8] sm:$0xff]  ;;  %v12610_v58 = vcombine.low %v2487_v45, %v2491_v46 }
 0x3fb   :  { %v12621_v26 = vcombine.high %v2496_v56, %v2500_v57  ;;  %v12620_v3 = vcombine.low %v2496_v56, %v2500_v57  ;;  %v2559_v57 = vld [vmem:[#allocation8 + $0xbd0] sm:$0xff] }
 0x3fc   :  { %5653 = vmatpush1.bf16.msra.mxu0 %v12554_v63  ;;  %v2507_v63 = vld [vmem:[#allocation8 + $0xa30] sm:$0xff] }
 0x3fd   :  { %5817 = vmatpush1.bf16.msra.mxu1 %v12556_v0  ;;  %5663 = vmatprep.subr.bf16.mxu0 %v12563_v40  ;;  %v2504_v0 = vld [vmem:[#allocation8 + $0xa18] sm:$0xff]  ;;  %v12627_v48 = vcombine.high %v2503_v62, %v2507_v63  ;;  %v12626_v9 = vcombine.low %v2503_v62, %v2507_v63 }
 0x3fe   :  { %5827 = vmatprep.subr.bf16.mxu1 %v12565_v1  ;;  %v2508_v40 = vld [vmem:[#allocation8 + $0xa38] sm:$0xff]  ;;  %v12618_v1 = vcombine.low %v2495_v54, %v2499_v55 }
 0x3ff   :  { %5655 = vmatmul.mubr.bf16.vlgmr.msra.gmra.mrb[12].mxu0 %v14845_v5  ;;  %v12628_v10 = vcombine.low %v2504_v0, %v2508_v40 }
 0x400   :  { %5819 = vmatmul.mubr.bf16.vlgmr.msra.gmra.mrb[20].mxu1 %v14845_v5  ;;  %5664 = vmatpush1.bf16.msra.mxu0 %v12562_v59  ;;  %v12580_v5 = vcombine.low %v2456_v12, %v2460_v25  ;;  %v12629_v59 = vcombine.high %v2504_v0, %v2508_v40  ;;  %v2519_v25 = vld [vmem:[#allocation8 + $0xa90] sm:$0xff] }
 0x401   :  { %5695 = vmatprep.mubr.bf16.mxu0 %v14851_v21  ;;  %5828 = vmatpush1.bf16.msra.mxu1 %v12564_v7  ;;  %v2512_v7 = vld [vmem:[#allocation8 + $0xa58] sm:$0xff]  ;;  %v2567_v40 = vld [vmem:[#allocation8 + $0xc10] sm:$0xff] }
 0x402   :  { %5859 = vmatprep.mubr.bf16.mxu1 %v14851_v21  ;;  %5665 = vmatprep.subr.bf16.mxu0 %v12571_v35  ;;  %v12586_v21 = vcombine.low %v2463_v17, %v2467_v18  ;;  %v2516_v35 = vld [vmem:[#allocation8 + $0xa78] sm:$0xff] }
 0x403   :  { %5829 = vmatprep.subr.bf16.mxu1 %v12573_v11  ;;  %v12635_v11 = vcombine.high %v2511_v4, %v2515_v6  ;;  %v12637_v12 = vcombine.high %v2512_v7, %v2516_v35  ;;  %v12636_v17 = vcombine.low %v2512_v7, %v2516_v35  ;;  %v2575_v35 = vld [vmem:[#allocation8 + $0xc50] sm:$0xff] }
 0x404   :  { %5666 = vmatpush1.bf16.msra.mxu0 %v12570_v13  ;;  %v2523_v13 = vld [vmem:[#allocation8 + $0xab0] sm:$0xff] }
 0x405   :  { %5830 = vmatpush1.bf16.msra.mxu1 %v12572_v14  ;;  %5667 = vmatprep.subr.bf16.mxu0 %v12579_v15  ;;  %v2520_v14 = vld [vmem:[#allocation8 + $0xa98] sm:$0xff]  ;;  %v12643_v18 = vcombine.high %v2519_v25, %v2523_v13 }
 0x406   :  { %5831 = vmatprep.subr.bf16.mxu1 %v12581_v16  ;;  %v2524_v15 = vld [vmem:[#allocation8 + $0xab8] sm:$0xff]  ;;  %v12634_v16 = vcombine.low %v2511_v4, %v2515_v6 }
 0x407   :  { %v12645_v2 = vcombine.high %v2520_v14, %v2524_v15  ;;  %v12644_v24 = vcombine.low %v2520_v14, %v2524_v15  ;;  %v2583_v14 = vld [vmem:[#allocation8 + $0xc90] sm:$0xff] }
 0x408   :  { %5668 = vmatpush1.bf16.msra.mxu0 %v12578_v20  ;;  %v2531_v20 = vld [vmem:[#allocation8 + $0xaf0] sm:$0xff] }
 0x409   :  { %5832 = vmatpush1.bf16.msra.mxu1 %v12580_v5  ;;  %5669 = vmatprep.subr.bf16.mxu0 %v12587_v22  ;;  %v2528_v5 = vld [vmem:[#allocation8 + $0xad8] sm:$0xff]  ;;  %v12651_v28 = vcombine.high %v2527_v19, %v2531_v20  ;;  %v2587_v15 = vld [vmem:[#allocation8 + $0xcb0] sm:$0xff] }
 0x40a   :  { %5833 = vmatprep.subr.bf16.mxu1 %v12589_v23  ;;  %v2532_v22 = vld [vmem:[#allocation8 + $0xaf8] sm:$0xff]  ;;  %v12642_v23 = vcombine.low %v2519_v25, %v2523_v13 }
 0x40b   :  { %v12653_v29 = vcombine.high %v2528_v5, %v2532_v22  ;;  %v12652_v36 = vcombine.low %v2528_v5, %v2532_v22  ;;  %v2591_v22 = vld [vmem:[#allocation8 + $0xcd0] sm:$0xff] }
 0x40c   :  { %5670 = vmatpush1.bf16.msra.mxu0 %v12586_v21  ;;  %v2539_v21 = vld [vmem:[#allocation8 + $0xb30] sm:$0xff] }
 0x40d   :  { %5834 = vmatpush1.bf16.msra.mxu1 %v12588_v31  ;;  %5671 = vmatprep.subr.bf16.mxu0 %v12595_v32  ;;  %v2536_v31 = vld [vmem:[#allocation8 + $0xb18] sm:$0xff]  ;;  %v12659_v37 = vcombine.high %v2535_v30, %v2539_v21 }
 0x40e   :  { %5835 = vmatprep.subr.bf16.mxu1 %v12597_v33  ;;  %v2540_v32 = vld [vmem:[#allocation8 + $0xb38] sm:$0xff]  ;;  %v12650_v33 = vcombine.low %v2527_v19, %v2531_v20  ;;  %v12707_v20 = vcombine.high %v2583_v14, %v2587_v15 }
 0x40f   :  { %v12661_v38 = vcombine.high %v2536_v31, %v2540_v32  ;;  %v12660_v45 = vcombine.low %v2536_v31, %v2540_v32  ;;  %v2599_v31 = vld [vmem:[#allocation8 + $0xd10] sm:$0xff] }
 0x410   :  { %5672 = vmatpush1.bf16.msra.mxu0 %v12594_v41  ;;  %v2547_v41 = vld [vmem:[#allocation8 + $0xb70] sm:$0xff] }
 0x411   :  { %5836 = vmatpush1.bf16.msra.mxu1 %v12596_v42  ;;  %5673 = vmatprep.subr.bf16.mxu0 %v12603_v43  ;;  %v2544_v42 = vld [vmem:[#allocation8 + $0xb58] sm:$0xff]  ;;  %v12667_v46 = vcombine.high %v2543_v39, %v2547_v41  ;;  %v2603_v32 = vld [vmem:[#allocation8 + $0xd30] sm:$0xff] }
 0x412   :  { %5837 = vmatprep.subr.bf16.mxu1 %v12605_v44  ;;  %v2548_v43 = vld [vmem:[#allocation8 + $0xb78] sm:$0xff]  ;;  %v12658_v44 = vcombine.low %v2535_v30, %v2539_v21 }
 0x413   :  { %v12669_v49 = vcombine.high %v2544_v42, %v2548_v43  ;;  %v12668_v54 = vcombine.low %v2544_v42, %v2548_v43  ;;  %v2611_v42 = vld [vmem:[#allocation8 + $0xd70] sm:$0xff]  ;;  %v2608_v43 = vld [vmem:[#allocation8 + $0xd58] sm:$0xff] }
 0x414   :  { %5674 = vmatpush1.bf16.msra.mxu0 %v12602_v51  ;;  %v2555_v51 = vld [vmem:[#allocation8 + $0xbb0] sm:$0xff] }
 0x415   :  { %5838 = vmatpush1.bf16.msra.mxu1 %v12604_v52  ;;  %5675 = vmatprep.subr.bf16.mxu0 %v12611_v8  ;;  %v2552_v52 = vld [vmem:[#allocation8 + $0xb98] sm:$0xff]  ;;  %v12675_v55 = vcombine.high %v2551_v50, %v2555_v51 }
 0x416   :  { %5839 = vmatprep.subr.bf16.mxu1 %v12613_v53  ;;  %v2556_v8 = vld [vmem:[#allocation8 + $0xbb8] sm:$0xff]  ;;  %v12666_v53 = vcombine.low %v2543_v39, %v2547_v41  ;;  %v2607_v41 = vld [vmem:[#allocation8 + $0xd50] sm:$0xff] }
 0x417   :  { %v12677_v56 = vcombine.high %v2552_v52, %v2556_v8  ;;  %v12676_v62 = vcombine.low %v2552_v52, %v2556_v8  ;;  %v2619_v52 = vld [vmem:[#allocation8 + $0xdb0] sm:$0xff]  ;;  %v2616_v8 = vld [vmem:[#allocation8 + $0xd98] sm:$0xff] }
 0x418   :  { %5676 = vmatpush1.bf16.msra.mxu0 %v12610_v58  ;;  %v2563_v58 = vld [vmem:[#allocation8 + $0xbf0] sm:$0xff] }
 0x419   :  { %5840 = vmatpush1.bf16.msra.mxu1 %v12612_v60  ;;  %5677 = vmatprep.subr.bf16.mxu0 %v12619_v61  ;;  %v2560_v60 = vld [vmem:[#allocation8 + $0xbd8] sm:$0xff]  ;;  %v12683_v63 = vcombine.high %v2559_v57, %v2563_v58 }
 0x41a   :  { %5841 = vmatprep.subr.bf16.mxu1 %v12621_v26  ;;  %v2564_v61 = vld [vmem:[#allocation8 + $0xbf8] sm:$0xff]  ;;  %v12674_v26 = vcombine.low %v2551_v50, %v2555_v51  ;;  %v2615_v51 = vld [vmem:[#allocation8 + $0xd90] sm:$0xff] }
 0x41b   :  { %v12685_v0 = vcombine.high %v2560_v60, %v2564_v61  ;;  %v12684_v4 = vcombine.low %v2560_v60, %v2564_v61  ;;  %v2623_v61 = vld [vmem:[#allocation8 + $0xdd0] sm:$0xff] }
 0x41c   :  { %5678 = vmatpush1.bf16.msra.mxu0 %v12618_v1  ;;  %v2571_v1 = vld [vmem:[#allocation8 + $0xc30] sm:$0xff] }
 0x41d   :  { %5842 = vmatpush1.bf16.msra.mxu1 %v12620_v3  ;;  %5679 = vmatprep.subr.bf16.mxu0 %v12627_v48  ;;  %v2568_v3 = vld [vmem:[#allocation8 + $0xc18] sm:$0xff]  ;;  %v12691_v6 = vcombine.high %v2567_v40, %v2571_v1 }
 0x41e   :  { %5843 = vmatprep.subr.bf16.mxu1 %v12629_v59  ;;  %v2572_v48 = vld [vmem:[#allocation8 + $0xc38] sm:$0xff]  ;;  %v12682_v59 = vcombine.low %v2559_v57, %v2563_v58 }
 0x41f   :  { %v12693_v7 = vcombine.high %v2568_v3, %v2572_v48  ;;  %v12692_v25 = vcombine.low %v2568_v3, %v2572_v48  ;;  %v12738_v48 = vcombine.low %v2615_v51, %v2619_v52 }
 0x420   :  { %5680 = vmatpush1.bf16.msra.mxu0 %v12626_v9  ;;  %v2579_v9 = vld [vmem:[#allocation8 + $0xc70] sm:$0xff] }
 0x421   :  { %5844 = vmatpush1.bf16.msra.mxu1 %v12628_v10  ;;  %5681 = vmatprep.subr.bf16.mxu0 %v12635_v11  ;;  %v12690_v10 = vcombine.low %v2567_v40, %v2571_v1  ;;  %v2576_v11 = vld [vmem:[#allocation8 + $0xc58] sm:$0xff]  ;;  %v12699_v13 = vcombine.high %v2575_v35, %v2579_v9 }
 0x422   :  { %5845 = vmatprep.subr.bf16.mxu1 %v12637_v12  ;;  %v2580_v12 = vld [vmem:[#allocation8 + $0xc78] sm:$0xff] }
 0x423   :  { %v12700_v19 = vcombine.low %v2576_v11, %v2580_v12  ;;  %v2628_v40 = vld [vmem:[#allocation8 + $0xdf8] sm:$0xff] }
 0x424   :  { %5682 = vmatpush1.bf16.msra.mxu0 %v12634_v16  ;;  %v12701_v16 = vcombine.high %v2576_v11, %v2580_v12  ;;  %v2632_v11 = vld [vmem:[#allocation8 + $0xe18] sm:$0xff] }
 0x425   :  { %5846 = vmatpush1.bf16.msra.mxu1 %v12636_v17  ;;  %5683 = vmatprep.subr.bf16.mxu0 %v12643_v18  ;;  %v2584_v17 = vld [vmem:[#allocation8 + $0xc98] sm:$0xff] }
 0x426   :  { %5847 = vmatprep.subr.bf16.mxu1 %v12645_v2  ;;  %v2588_v18 = vld [vmem:[#allocation8 + $0xcb8] sm:$0xff]  ;;  %v12698_v2 = vcombine.low %v2575_v35, %v2579_v9  ;;  %v2631_v9 = vld [vmem:[#allocation8 + $0xe10] sm:$0xff] }
 0x427   :  { %v12709_v5 = vcombine.high %v2584_v17, %v2588_v18  ;;  %v2636_v12 = vld [vmem:[#allocation8 + $0xe38] sm:$0xff] }
 0x428   :  { %5684 = vmatpush1.bf16.msra.mxu0 %v12642_v23  ;;  %v2595_v23 = vld [vmem:[#allocation8 + $0xcf0] sm:$0xff] }
 0x429   :  { %5848 = vmatpush1.bf16.msra.mxu1 %v12644_v24  ;;  %5685 = vmatprep.subr.bf16.mxu0 %v12651_v28  ;;  %v2592_v24 = vld [vmem:[#allocation8 + $0xcd8] sm:$0xff]  ;;  %v12715_v30 = vcombine.high %v2591_v22, %v2595_v23 }
 0x42a   :  { %5849 = vmatprep.subr.bf16.mxu1 %v12653_v29  ;;  %v2596_v28 = vld [vmem:[#allocation8 + $0xcf8] sm:$0xff]  ;;  %v12706_v29 = vcombine.low %v2583_v14, %v2587_v15  ;;  %v12757_v15 = vcombine.high %v2632_v11, %v2636_v12 }
 0x42b   :  { %v12717_v21 = vcombine.high %v2592_v24, %v2596_v28 }
 0x42c   :  { %5686 = vmatpush1.bf16.msra.mxu0 %v12650_v33  ;;  %v2600_v33 = vld [vmem:[#allocation8 + $0xd18] sm:$0xff] }
 0x42d   :  { %5850 = vmatpush1.bf16.msra.mxu1 %v12652_v36  ;;  %5687 = vmatprep.subr.bf16.mxu0 %v12659_v37  ;;  %v2604_v36 = vld [vmem:[#allocation8 + $0xd38] sm:$0xff]  ;;  %v12716_v37 = vcombine.low %v2592_v24, %v2596_v28  ;;  %v2651_v24 = vld [vmem:[#allocation8 + $0xeb0] sm:$0xff] }
 0x42e   :  { %5851 = vmatprep.subr.bf16.mxu1 %v12661_v38  ;;  %v12723_v38 = vcombine.high %v2599_v31, %v2603_v32  ;;  %v12725_v39 = vcombine.high %v2600_v33, %v2604_v36  ;;  %v2648_v28 = vld [vmem:[#allocation8 + $0xe98] sm:$0xff] }
 0x430   :  { %5688 = vmatpush1.bf16.msra.mxu0 %v12658_v44  ;;  %v2612_v44 = vld [vmem:[#allocation8 + $0xd78] sm:$0xff] }
 0x431   :  { %5852 = vmatpush1.bf16.msra.mxu1 %v12660_v45  ;;  %5689 = vmatprep.subr.bf16.mxu0 %v12667_v46  ;;  %v12722_v45 = vcombine.low %v2599_v31, %v2603_v32  ;;  %v12724_v46 = vcombine.low %v2600_v33, %v2604_v36  ;;  %v12733_v50 = vcombine.high %v2608_v43, %v2612_v44  ;;  %v2655_v32 = vld [vmem:[#allocation8 + $0xed0] sm:$0xff]  ;;  %v2656_v36 = vld [vmem:[#allocation8 + $0xed8] sm:$0xff] }
 0x432   :  { %5853 = vmatprep.subr.bf16.mxu1 %v12669_v49  ;;  %v12731_v49 = vcombine.high %v2607_v41, %v2611_v42  ;;  %v2659_v33 = vld [vmem:[#allocation8 + $0xef0] sm:$0xff] }
 0x434   :  { %5690 = vmatpush1.bf16.msra.mxu0 %v12666_v53  ;;  %v2620_v53 = vld [vmem:[#allocation8 + $0xdb8] sm:$0xff] }
 0x435   :  { %5854 = vmatpush1.bf16.msra.mxu1 %v12668_v54  ;;  %5691 = vmatprep.subr.bf16.mxu0 %v12675_v55  ;;  %v12730_v54 = vcombine.low %v2607_v41, %v2611_v42  ;;  %v12732_v55 = vcombine.low %v2608_v43, %v2612_v44  ;;  %v12741_v60 = vcombine.high %v2616_v8, %v2620_v53  ;;  %v2663_v42 = vld [vmem:[#allocation8 + $0xf10] sm:$0xff]  ;;  %v2664_v44 = vld [vmem:[#allocation8 + $0xf18] sm:$0xff] }
 0x436   :  { %5855 = vmatprep.subr.bf16.mxu1 %v12677_v56  ;;  %v12739_v56 = vcombine.high %v2615_v51, %v2619_v52  ;;  %v2667_v43 = vld [vmem:[#allocation8 + $0xf30] sm:$0xff] }
 0x437   :  { %v2671_v52 = vld [vmem:[#allocation8 + $0xf50] sm:$0xff] }
 0x438   :  { %5692 = vmatpush1.bf16.msra.mxu0 %v12674_v26  ;;  %v2627_v26 = vld [vmem:[#allocation8 + $0xdf0] sm:$0xff] }
 0x439   :  { %5856 = vmatpush1.bf16.msra.mxu1 %v12676_v62  ;;  %5693 = vmatprep.subr.bf16.mxu0 %v12683_v63 }
 0x43a   :  { %5857 = vmatprep.subr.bf16.mxu1 %v12685_v0  ;;  %v2624_v0 = vld [vmem:[#allocation8 + $0xdd8] sm:$0xff] }
 0x43b   :  { %v12749_v35 = vcombine.high %v2624_v0, %v2628_v40 }
 0x43c   :  { %5694 = vmatpush1.bf16.msra.mxu0 %v12682_v59 }
 0x43d   :  { %5858 = vmatpush1.bf16.msra.mxu1 %v12684_v4  ;;  %5704 = vmatprep.subr.bf16.mxu0 %v12691_v6  ;;  %v12740_v6 = vcombine.low %v2616_v8, %v2620_v53  ;;  %v2675_v8 = vld [vmem:[#allocation8 + $0xf70] sm:$0xff]  ;;  %v2672_v53 = vld [vmem:[#allocation8 + $0xf58] sm:$0xff] }
 0x43e   :  { %5868 = vmatprep.subr.bf16.mxu1 %v12693_v7  ;;  %v12747_v7 = vcombine.high %v2623_v61, %v2627_v26 }
 0x43f   :  { %5696 = vmatmul.mubr.bf16.vlgmr.msra.gmra.mrb[12].mxu0 %v14853_v27 }
 0x440   :  { %5860 = vmatmul.mubr.bf16.vlgmr.msra.gmra.mrb[20].mxu1 %v14853_v27  ;;  %5705 = vmatpush1.bf16.msra.mxu0 %v12690_v10  ;;  %v12708_v27 = vcombine.low %v2584_v17, %v2588_v18  ;;  %v2635_v10 = vld [vmem:[#allocation8 + $0xe30] sm:$0xff]  ;;  %v2640_v18 = vld [vmem:[#allocation8 + $0xe58] sm:$0xff] }
 0x441   :  { %5736 = vmatprep.mubr.bf16.mxu0 %v14857_v34  ;;  %5869 = vmatpush1.bf16.msra.mxu1 %v12692_v25  ;;  %v12746_v25 = vcombine.low %v2623_v61, %v2627_v26  ;;  %v12755_v14 = vcombine.high %v2631_v9, %v2635_v10  ;;  %v2643_v17 = vld [vmem:[#allocation8 + $0xe70] sm:$0xff] }
 0x442   :  { %5900 = vmatprep.mubr.bf16.mxu1 %v14857_v34  ;;  %5706 = vmatprep.subr.bf16.mxu0 %v12699_v13  ;;  %v12714_v34 = vcombine.low %v2591_v22, %v2595_v23  ;;  %v12748_v13 = vcombine.low %v2624_v0, %v2628_v40  ;;  %v2647_v23 = vld [vmem:[#allocation8 + $0xe90] sm:$0xff]  ;;  %v2680_v40 = vld [vmem:[#allocation8 + $0xf98] sm:$0xff] }
 0x443   :  { %5870 = vmatprep.subr.bf16.mxu1 %v12701_v16  ;;  %v2639_v16 = vld [vmem:[#allocation8 + $0xe50] sm:$0xff] }
 0x444   :  { %5707 = vmatpush1.bf16.msra.mxu0 %v12698_v2  ;;  %v2644_v2 = vld [vmem:[#allocation8 + $0xe78] sm:$0xff]  ;;  %v2679_v26 = vld [vmem:[#allocation8 + $0xf90] sm:$0xff] }
 0x445   :  { %5871 = vmatpush1.bf16.msra.mxu1 %v12700_v19  ;;  %5708 = vmatprep.subr.bf16.mxu0 %v12707_v20  ;;  %v12754_v19 = vcombine.low %v2631_v9, %v2635_v10  ;;  %v12756_v20 = vcombine.low %v2632_v11, %v2636_v12  ;;  %v12765_v22 = vcombine.high %v2640_v18, %v2644_v2  ;;  %v2683_v0 = vld [vmem:[#allocation8 + $0xfb0] sm:$0xff]  ;;  %v2692_v9 = vld [vmem:[#allocation8 + $0xff8] sm:$0xff] }
 0x446   :  { %5872 = vmatprep.subr.bf16.mxu1 %v12709_v5  ;;  %v12763_v5 = vcombine.high %v2639_v16, %v2643_v17  ;;  %v12802_v10 = vcombine.low %v2679_v26, %v2683_v0 }
 0x448   :  { %5709 = vmatpush1.bf16.msra.mxu0 %v12706_v29  ;;  %v2652_v29 = vld [vmem:[#allocation8 + $0xeb8] sm:$0xff] }
 0x449   :  { %5873 = vmatpush1.bf16.msra.mxu1 %v12708_v27  ;;  %5710 = vmatprep.subr.bf16.mxu0 %v12715_v30  ;;  %v12762_v27 = vcombine.low %v2639_v16, %v2643_v17  ;;  %v12764_v30 = vcombine.low %v2640_v18, %v2644_v2  ;;  %v12773_v31 = vcombine.high %v2648_v28, %v2652_v29  ;;  %v5930_v16 = vld [vmem:[#allocation10 + $0x28] sm:$0xff] }
 0x44a   :  { %5874 = vmatprep.subr.bf16.mxu1 %v12717_v21  ;;  %v12771_v21 = vcombine.high %v2647_v23, %v2651_v24 }
 0x44c   :  { %5711 = vmatpush1.bf16.msra.mxu0 %v12714_v34  ;;  %v2660_v34 = vld [vmem:[#allocation8 + $0xef8] sm:$0xff] }
 0x44d   :  { %5875 = vmatpush1.bf16.msra.mxu1 %v12716_v37  ;;  %5712 = vmatprep.subr.bf16.mxu0 %v12723_v38  ;;  %v12770_v37 = vcombine.low %v2647_v23, %v2651_v24  ;;  %v12772_v38 = vcombine.low %v2648_v28, %v2652_v29  ;;  %v12781_v41 = vcombine.high %v2656_v36, %v2660_v34  ;;  %v5934_v24 = vld [vmem:[#allocation10 + $0x48] sm:$0xff] }
 0x44e   :  { %5876 = vmatprep.subr.bf16.mxu1 %v12725_v39  ;;  %v12779_v39 = vcombine.high %v2655_v32, %v2659_v33  ;;  %v5938_v28 = vld [vmem:[#allocation10 + $0x68] sm:$0xff] }
 0x450   :  { %5713 = vmatpush1.bf16.msra.mxu0 %v12722_v45  ;;  %v2668_v45 = vld [vmem:[#allocation8 + $0xf38] sm:$0xff] }
 0x451   :  { %5877 = vmatpush1.bf16.msra.mxu1 %v12724_v46  ;;  %5714 = vmatprep.subr.bf16.mxu0 %v12731_v49  ;;  %v12778_v46 = vcombine.low %v2655_v32, %v2659_v33  ;;  %v12780_v49 = vcombine.low %v2656_v36, %v2660_v34  ;;  %v12789_v51 = vcombine.high %v2664_v44, %v2668_v45  ;;  %v5942_v33 = vld [vmem:[#allocation10 + $0x88] sm:$0xff] }
 0x452   :  { %v14882_v57 = vpop.f32.mrb[8].mxu0  ;;  %v14884_v58 = vpop.f32.mrb[16].mxu1  ;;  %5878 = vmatprep.subr.bf16.mxu1 %v12733_v50  ;;  %v12787_v50 = vcombine.high %v2663_v42, %v2667_v43  ;;  %v12825_v32 = vcombine.high %v5934_v24, %v5938_v28  ;;  %v12824_v34 = vcombine.low %v5934_v24, %v5938_v28  ;;  %v5997_v28 = vld [vmem:[#allocation10 + $0x240] sm:$0xff] }
 0x453   :  { %v14886_v62 = vpop.f32.mrb[9].mxu0  ;;  %v14888_v63 = vpop.f32.mrb[17].mxu1 }
 0x454   :  { %v5414_v1 = vpop.f32.mrb[10].mxu0  ;;  %v5578_v3 = vpop.f32.mrb[18].mxu1  ;;  %5715 = vmatpush1.bf16.msra.mxu0 %v12730_v54  ;;  %v2676_v54 = vld [vmem:[#allocation8 + $0xf78] sm:$0xff] }
 0x455   :  { %5879 = vmatpush1.bf16.msra.mxu1 %v12732_v55  ;;  %v5415_v59 = vpop.f32.mrb[11].mxu0  ;;  %v5579_v4 = vpop.f32.mrb[19].mxu1  ;;  %5716 = vmatprep.subr.bf16.mxu0 %v12739_v56  ;;  %v12786_v55 = vcombine.low %v2663_v42, %v2667_v43  ;;  %v12788_v56 = vcombine.low %v2664_v44, %v2668_v45  ;;  %v12797_v61 = vcombine.high %v2672_v53, %v2676_v54  ;;  %v2684_v1 = vld [vmem:[#allocation8 + $0xfb8] sm:$0xff]  ;;  %v5950_v42 = vld [vmem:[#allocation10 + $0xc8] sm:$0xff] }
 0x456   :  { %5880 = vmatprep.subr.bf16.mxu1 %v12741_v60  ;;  %v12795_v60 = vcombine.high %v2671_v52, %v2675_v8  ;;  %v12794_v3 = vcombine.low %v2671_v52, %v2675_v8  ;;  %v12803_v59 = vcombine.high %v2679_v26, %v2683_v0  ;;  %v12805_v4 = vcombine.high %v2680_v40, %v2684_v1  ;;  %v5954_v43 = vld [vmem:[#allocation10 + $0xe8] sm:$0xff] }
 0x457   :  { %v12804_v11 = vcombine.low %v2680_v40, %v2684_v1  ;;  %v5962_v52 = vld [vmem:[#allocation10 + $0x128] sm:$0xff] }
 0x458   :  { %5717 = vmatpush1.bf16.msra.mxu0 %v12738_v48  ;;  %v12796_v48 = vcombine.low %v2672_v53, %v2676_v54  ;;  %v12840_v53 = vcombine.low %v5950_v42, %v5954_v43  ;;  %v5970_v26 = vld [vmem:[#allocation10 + $0x168] sm:$0xff] }
 0x459   :  { %5881 = vmatpush1.bf16.msra.mxu1 %v12740_v6  ;;  %5718 = vmatprep.subr.bf16.mxu0 %v12747_v7  ;;  %v2687_v6 = vld [vmem:[#allocation8 + $0xfd0] sm:$0xff] }
 0x45a   :  { %5882 = vmatprep.subr.bf16.mxu1 %v12749_v35  ;;  %v2691_v7 = vld [vmem:[#allocation8 + $0xff0] sm:$0xff]  ;;  %v2688_v35 = vld [vmem:[#allocation8 + $0xfd8] sm:$0xff] }
 0x45b   :  { %v12811_v12 = vcombine.high %v2687_v6, %v2691_v7  ;;  %v12810_v17 = vcombine.low %v2687_v6, %v2691_v7  ;;  %v12812_v18 = vcombine.low %v2688_v35, %v2692_v9  ;;  %v5978_v6 = vld [vmem:[#allocation10 + $0x1a8] sm:$0xff] }
 0x45c   :  { %5719 = vmatpush1.bf16.msra.mxu0 %v12746_v25  ;;  %v12813_v25 = vcombine.high %v2688_v35, %v2692_v9 }
 0x45d   :  { %5883 = vmatpush1.bf16.msra.mxu1 %v12748_v13  ;;  %5720 = vmatprep.subr.bf16.mxu0 %v12755_v14  ;;  %v5925_v13 = vld [vmem:[#allocation10] sm:$0xff] }
 0x45e   :  { %5884 = vmatprep.subr.bf16.mxu1 %v12757_v15  ;;  %v5929_v14 = vld [vmem:[#allocation10 + $0x20] sm:$0xff]  ;;  %v5926_v15 = vld [vmem:[#allocation10 + $0x8] sm:$0xff] }
 0x45f   :  { %v12815_v2 = vcombine.high %v5925_v13, %v5929_v14  ;;  %v12814_v23 = vcombine.low %v5925_v13, %v5929_v14  ;;  %v12816_v29 = vcombine.low %v5926_v15, %v5930_v16  ;;  %v5986_v13 = vld [vmem:[#allocation10 + $0x1e8] sm:$0xff] }
 0x460   :  { %5721 = vmatpush1.bf16.msra.mxu0 %v12754_v19  ;;  %v12817_v19 = vcombine.high %v5926_v15, %v5930_v16 }
 0x461   :  { %5885 = vmatpush1.bf16.msra.mxu1 %v12756_v20  ;;  %5722 = vmatprep.subr.bf16.mxu0 %v12763_v5  ;;  %v5910_v20 = vmax.f32 %v14886_v62, 0.0  ;;  %v5933_v5 = vld [vmem:[#allocation10 + $0x40] sm:$0xff]  ;;  %v5946_v62 = vld [vmem:[#allocation10 + $0xa8] sm:$0xff] }
 0x462   :  { %5886 = vmatprep.subr.bf16.mxu1 %v12765_v22  ;;  %v5937_v22 = vld [vmem:[#allocation10 + $0x60] sm:$0xff] }
 0x463   :  { %v12822_v36 = vcombine.low %v5933_v5, %v5937_v22 }
 0x464   :  { %5723 = vmatpush1.bf16.msra.mxu0 %v12762_v27  ;;  %v12823_v27 = vcombine.high %v5933_v5, %v5937_v22 }
 0x465   :  { %5887 = vmatpush1.bf16.msra.mxu1 %v12764_v30  ;;  %5724 = vmatprep.subr.bf16.mxu0 %v12771_v21  ;;  %v5941_v30 = vld [vmem:[#allocation10 + $0x80] sm:$0xff] }
 0x466   :  { %5888 = vmatprep.subr.bf16.mxu1 %v12773_v31  ;;  %v5945_v21 = vld [vmem:[#allocation10 + $0xa0] sm:$0xff]  ;;  %v14891_v31 = vpack.c.bf16 %v5910_v20, %v5910_v20  ;;  %v5994_v20 = vld [vmem:[#allocation10 + $0x228] sm:$0xff] }
 0x467   :  { %v12830_v44 = vcombine.low %v5941_v30, %v5945_v21 }
 0x468   :  { %5725 = vmatpush1.bf16.msra.mxu0 %v12770_v37  ;;  %v12831_v37 = vcombine.high %v5941_v30, %v5945_v21  ;;  %v6002_v30 = vld [vmem:[#allocation10 + $0x268] sm:$0xff] }
 0x469   :  { %5889 = vmatpush1.bf16.msra.mxu1 %v12772_v38  ;;  %5726 = vmatprep.subr.bf16.mxu0 %v12779_v39  ;;  %v12833_v38 = vcombine.high %v5942_v33, %v5946_v62  ;;  %v5949_v39 = vld [vmem:[#allocation10 + $0xc0] sm:$0xff] }
 0x46a   :  { %5890 = vmatprep.subr.bf16.mxu1 %v12781_v41  ;;  %v5953_v41 = vld [vmem:[#allocation10 + $0xe0] sm:$0xff] }
 0x46b   :  { %v12839_v45 = vcombine.high %v5949_v39, %v5953_v41  ;;  %v12838_v8 = vcombine.low %v5949_v39, %v5953_v41 }
 0x46c   :  { %5727 = vmatpush1.bf16.msra.mxu0 %v12778_v46  ;;  %v12841_v46 = vcombine.high %v5950_v42, %v5954_v43 }
 0x46d   :  { %5891 = vmatpush1.bf16.msra.mxu1 %v12780_v49  ;;  %5728 = vmatprep.subr.bf16.mxu0 %v12787_v50  ;;  %v5957_v49 = vld [vmem:[#allocation10 + $0x100] sm:$0xff] }
 0x46e   :  { %5892 = vmatprep.subr.bf16.mxu1 %v12789_v51  ;;  %v5961_v50 = vld [vmem:[#allocation10 + $0x120] sm:$0xff]  ;;  %v5958_v51 = vld [vmem:[#allocation10 + $0x108] sm:$0xff] }
 0x46f   :  { %v12847_v54 = vcombine.high %v5957_v49, %v5961_v50  ;;  %v12846_v0 = vcombine.low %v5957_v49, %v5961_v50  ;;  %v12848_v40 = vcombine.low %v5958_v51, %v5962_v52 }
 0x470   :  { %5729 = vmatpush1.bf16.msra.mxu0 %v12786_v55  ;;  %v12849_v55 = vcombine.high %v5958_v51, %v5962_v52 }
 0x471   :  { %5893 = vmatpush1.bf16.msra.mxu1 %v12788_v56  ;;  %5730 = vmatprep.subr.bf16.mxu0 %v12795_v60  ;;  %v5965_v56 = vld [vmem:[#allocation10 + $0x140] sm:$0xff] }
 0x472   :  { %5894 = vmatprep.subr.bf16.mxu1 %v12797_v61  ;;  %v5969_v60 = vld [vmem:[#allocation10 + $0x160] sm:$0xff]  ;;  %v5966_v61 = vld [vmem:[#allocation10 + $0x148] sm:$0xff] }
 0x473   :  { %v12855_v1 = vcombine.high %v5965_v56, %v5969_v60  ;;  %v12854_v7 = vcombine.low %v5965_v56, %v5969_v60  ;;  %v12856_v35 = vcombine.low %v5966_v61, %v5970_v26 }
 0x474   :  { %5731 = vmatpush1.bf16.msra.mxu0 %v12794_v3  ;;  %v12857_v3 = vcombine.high %v5966_v61, %v5970_v26 }
 0x475   :  { %5895 = vmatpush1.bf16.msra.mxu1 %v12796_v48  ;;  %5732 = vmatprep.subr.bf16.mxu0 %v12803_v59  ;;  %v5973_v48 = vld [vmem:[#allocation10 + $0x180] sm:$0xff] }
 0x476   :  { %5896 = vmatprep.subr.bf16.mxu1 %v12805_v4  ;;  %v5977_v59 = vld [vmem:[#allocation10 + $0x1a0] sm:$0xff]  ;;  %v5974_v4 = vld [vmem:[#allocation10 + $0x188] sm:$0xff] }
 0x477   :  { %v12863_v9 = vcombine.high %v5973_v48, %v5977_v59  ;;  %v12862_v14 = vcombine.low %v5973_v48, %v5977_v59  ;;  %v12864_v15 = vcombine.low %v5974_v4, %v5978_v6 }
 0x478   :  { %5733 = vmatpush1.bf16.msra.mxu0 %v12802_v10  ;;  %v12865_v10 = vcombine.high %v5974_v4, %v5978_v6 }
 0x479   :  { %5897 = vmatpush1.bf16.msra.mxu1 %v12804_v11  ;;  %5734 = vmatprep.subr.bf16.mxu0 %v12811_v12  ;;  %v5981_v11 = vld [vmem:[#allocation10 + $0x1c0] sm:$0xff] }
 0x47a   :  { %5898 = vmatprep.subr.bf16.mxu1 %v12813_v25  ;;  %v5985_v12 = vld [vmem:[#allocation10 + $0x1e0] sm:$0xff]  ;;  %v5982_v25 = vld [vmem:[#allocation10 + $0x1c8] sm:$0xff] }
 0x47b   :  { %v12871_v16 = vcombine.high %v5981_v11, %v5985_v12  ;;  %v12870_v5 = vcombine.low %v5981_v11, %v5985_v12  ;;  %v12872_v22 = vcombine.low %v5982_v25, %v5986_v13 }
 0x47c   :  { %5735 = vmatpush1.bf16.msra.mxu0 %v12810_v17  ;;  %v12873_v17 = vcombine.high %v5982_v25, %v5986_v13 }
 0x47d   :  { %5899 = vmatpush1.bf16.msra.mxu1 %v12812_v18  ;;  %8997 = vmatprep.subr.bf16.mxu0 %v12815_v2  ;;  %v5989_v18 = vld [vmem:[#allocation10 + $0x200] sm:$0xff] }
 0x47e   :  { %9161 = vmatprep.subr.bf16.mxu1 %v12817_v19  ;;  %v5993_v2 = vld [vmem:[#allocation10 + $0x220] sm:$0xff]  ;;  %v5990_v19 = vld [vmem:[#allocation10 + $0x208] sm:$0xff] }
 0x47f   :  { %5737 = vmatmul.mubr.bf16.vlgmr.msra.gmra.mrb[12].mxu0 %v14864_v47  ;;  %v12881_v24 = vcombine.high %v5990_v19, %v5994_v20  ;;  %v12878_v21 = vcombine.low %v5989_v18, %v5993_v2 }
 0x480   :  { %5901 = vmatmul.mubr.bf16.vlgmr.msra.gmra.mrb[20].mxu1 %v14864_v47  ;;  %8998 = vmatpush1.bf16.msra.mxu0 %v12814_v23  ;;  %v12832_v47 = vcombine.low %v5942_v33, %v5946_v62  ;;  %v12879_v23 = vcombine.high %v5989_v18, %v5993_v2 }
 0x481   :  { %9029 = vmatprep.mubr.bf16.mxu0 %v14891_v31  ;;  %9162 = vmatpush1.bf16.msra.mxu1 %v12816_v29  ;;  %v6001_v29 = vld [vmem:[#allocation10 + $0x260] sm:$0xff] }
 0x482   :  { %9193 = vmatprep.mubr.bf16.mxu1 %v14891_v31  ;;  %8999 = vmatprep.subr.bf16.mxu0 %v12823_v27  ;;  %v5998_v27 = vld [vmem:[#allocation10 + $0x248] sm:$0xff]  ;;  %v12887_v33 = vcombine.high %v5997_v28, %v6001_v29  ;;  %v12886_v39 = vcombine.low %v5997_v28, %v6001_v29  ;;  %v5909_v29 = vmax.f32 %v14882_v57, 0.0 }
 0x483   :  { %9163 = vmatprep.subr.bf16.mxu1 %v12825_v32  ;;  %v12880_v32 = vcombine.low %v5990_v19, %v5994_v20  ;;  %v12889_v62 = vcombine.high %v5998_v27, %v6002_v30  ;;  %v12888_v41 = vcombine.low %v5998_v27, %v6002_v30 }
 0x484   :  { %9000 = vmatpush1.bf16.msra.mxu0 %v12822_v36  ;;  %v6005_v36 = vld [vmem:[#allocation10 + $0x280] sm:$0xff] }
 0x485   :  { %9164 = vmatpush1.bf16.msra.mxu1 %v12824_v34  ;;  %9001 = vmatprep.subr.bf16.mxu0 %v12831_v37  ;;  %v6009_v34 = vld [vmem:[#allocation10 + $0x2a0] sm:$0xff]  ;;  %v6006_v37 = vld [vmem:[#allocation10 + $0x288] sm:$0xff] }
 0x486   :  { %9165 = vmatprep.subr.bf16.mxu1 %v12833_v38  ;;  %v6010_v38 = vld [vmem:[#allocation10 + $0x2a8] sm:$0xff]  ;;  %v12895_v42 = vcombine.high %v6005_v36, %v6009_v34  ;;  %v12894_v49 = vcombine.low %v6005_v36, %v6009_v34 }
 0x487   :  { %v12897_v43 = vcombine.high %v6006_v37, %v6010_v38  ;;  %v12896_v50 = vcombine.low %v6006_v37, %v6010_v38  ;;  %v6062_v34 = vld [vmem:[#allocation10 + $0x448] sm:$0xff]  ;;  %v14899_v38 = vpack.c.bf16 %v5909_v29, %v5909_v29 }
 0x488   :  { %9002 = vmatpush1.bf16.msra.mxu0 %v12830_v44  ;;  %v6013_v44 = vld [vmem:[#allocation10 + $0x2c0] sm:$0xff]  ;;  %v6066_v37 = vld [vmem:[#allocation10 + $0x468] sm:$0xff] }
 0x489   :  { %9166 = vmatpush1.bf16.msra.mxu1 %v12832_v47  ;;  %9003 = vmatprep.subr.bf16.mxu0 %v12839_v45  ;;  %v6017_v47 = vld [vmem:[#allocation10 + $0x2e0] sm:$0xff]  ;;  %v6014_v45 = vld [vmem:[#allocation10 + $0x2c8] sm:$0xff] }
 0x48a   :  { %9167 = vmatprep.subr.bf16.mxu1 %v12841_v46  ;;  %v6018_v46 = vld [vmem:[#allocation10 + $0x2e8] sm:$0xff]  ;;  %v12903_v51 = vcombine.high %v6013_v44, %v6017_v47  ;;  %v12902_v56 = vcombine.low %v6013_v44, %v6017_v47 }
 0x48b   :  { %v12905_v52 = vcombine.high %v6014_v45, %v6018_v46  ;;  %v12904_v60 = vcombine.low %v6014_v45, %v6018_v46  ;;  %v6070_v44 = vld [vmem:[#allocation10 + $0x488] sm:$0xff]  ;;  %v12952_v46 = vcombine.low %v6062_v34, %v6066_v37 }
 0x48c   :  { %9004 = vmatpush1.bf16.msra.mxu0 %v12838_v8  ;;  %v6021_v8 = vld [vmem:[#allocation10 + $0x300] sm:$0xff]  ;;  %v6074_v47 = vld [vmem:[#allocation10 + $0x4a8] sm:$0xff] }
 0x48d   :  { %9168 = vmatpush1.bf16.msra.mxu1 %v12840_v53  ;;  %9005 = vmatprep.subr.bf16.mxu0 %v12847_v54  ;;  %v6025_v53 = vld [vmem:[#allocation10 + $0x320] sm:$0xff]  ;;  %v6022_v54 = vld [vmem:[#allocation10 + $0x308] sm:$0xff] }
 0x48e   :  { %9169 = vmatprep.subr.bf16.mxu1 %v12849_v55  ;;  %v6026_v55 = vld [vmem:[#allocation10 + $0x328] sm:$0xff]  ;;  %v12911_v61 = vcombine.high %v6021_v8, %v6025_v53  ;;  %v12910_v48 = vcombine.low %v6021_v8, %v6025_v53 }
 0x48f   :  { %v12913_v26 = vcombine.high %v6022_v54, %v6026_v55  ;;  %v12912_v59 = vcombine.low %v6022_v54, %v6026_v55  ;;  %v6078_v8 = vld [vmem:[#allocation10 + $0x4c8] sm:$0xff]  ;;  %v12960_v55 = vcombine.low %v6070_v44, %v6074_v47 }
 0x490   :  { %9006 = vmatpush1.bf16.msra.mxu0 %v12846_v0  ;;  %v6029_v0 = vld [vmem:[#allocation10 + $0x340] sm:$0xff]  ;;  %v6082_v53 = vld [vmem:[#allocation10 + $0x4e8] sm:$0xff] }
 0x491   :  { %9170 = vmatpush1.bf16.msra.mxu1 %v12848_v40  ;;  %9007 = vmatprep.subr.bf16.mxu0 %v12855_v1  ;;  %v6033_v40 = vld [vmem:[#allocation10 + $0x360] sm:$0xff]  ;;  %v6030_v1 = vld [vmem:[#allocation10 + $0x348] sm:$0xff] }
 0x492   :  { %9171 = vmatprep.subr.bf16.mxu1 %v12857_v3  ;;  %v6034_v3 = vld [vmem:[#allocation10 + $0x368] sm:$0xff]  ;;  %v12919_v4 = vcombine.high %v6029_v0, %v6033_v40  ;;  %v12918_v11 = vcombine.low %v6029_v0, %v6033_v40 }
 0x493   :  { %v12921_v6 = vcombine.high %v6030_v1, %v6034_v3  ;;  %v12920_v12 = vcombine.low %v6030_v1, %v6034_v3  ;;  %v6086_v0 = vld [vmem:[#allocation10 + $0x508] sm:$0xff]  ;;  %v12968_v3 = vcombine.low %v6078_v8, %v6082_v53 }
 0x494   :  { %9008 = vmatpush1.bf16.msra.mxu0 %v12854_v7  ;;  %v6037_v7 = vld [vmem:[#allocation10 + $0x380] sm:$0xff]  ;;  %v6090_v40 = vld [vmem:[#allocation10 + $0x528] sm:$0xff] }
 0x495   :  { %9172 = vmatpush1.bf16.msra.mxu1 %v12856_v35  ;;  %9009 = vmatprep.subr.bf16.mxu0 %v12863_v9  ;;  %v6041_v35 = vld [vmem:[#allocation10 + $0x3a0] sm:$0xff]  ;;  %v6038_v9 = vld [vmem:[#allocation10 + $0x388] sm:$0xff] }
 0x496   :  { %9173 = vmatprep.subr.bf16.mxu1 %v12865_v10  ;;  %v6042_v10 = vld [vmem:[#allocation10 + $0x3a8] sm:$0xff]  ;;  %v12927_v25 = vcombine.high %v6037_v7, %v6041_v35  ;;  %v12926_v18 = vcombine.low %v6037_v7, %v6041_v35 }
 0x497   :  { %v12929_v13 = vcombine.high %v6038_v9, %v6042_v10  ;;  %v12928_v2 = vcombine.low %v6038_v9, %v6042_v10  ;;  %v6094_v7 = vld [vmem:[#allocation10 + $0x548] sm:$0xff]  ;;  %v12976_v10 = vcombine.low %v6086_v0, %v6090_v40 }
 0x498   :  { %9010 = vmatpush1.bf16.msra.mxu0 %v12862_v14  ;;  %v6045_v14 = vld [vmem:[#allocation10 + $0x3c0] sm:$0xff]  ;;  %v6098_v35 = vld [vmem:[#allocation10 + $0x568] sm:$0xff] }
 0x499   :  { %9174 = vmatpush1.bf16.msra.mxu1 %v12864_v15  ;;  %9011 = vmatprep.subr.bf16.mxu0 %v12871_v16  ;;  %v6049_v15 = vld [vmem:[#allocation10 + $0x3e0] sm:$0xff]  ;;  %v6046_v16 = vld [vmem:[#allocation10 + $0x3c8] sm:$0xff] }
 0x49a   :  { %9175 = vmatprep.subr.bf16.mxu1 %v12873_v17  ;;  %v6050_v17 = vld [vmem:[#allocation10 + $0x3e8] sm:$0xff]  ;;  %v12935_v19 = vcombine.high %v6045_v14, %v6049_v15  ;;  %v12934_v28 = vcombine.low %v6045_v14, %v6049_v15 }
 0x49b   :  { %v12937_v20 = vcombine.high %v6046_v16, %v6050_v17  ;;  %v12936_v27 = vcombine.low %v6046_v16, %v6050_v17  ;;  %v6102_v14 = vld [vmem:[#allocation10 + $0x588] sm:$0xff]  ;;  %v12984_v17 = vcombine.low %v6094_v7, %v6098_v35 }
 0x49c   :  { %9012 = vmatpush1.bf16.msra.mxu0 %v12870_v5  ;;  %v6053_v5 = vld [vmem:[#allocation10 + $0x400] sm:$0xff]  ;;  %v6106_v15 = vld [vmem:[#allocation10 + $0x5a8] sm:$0xff] }
 0x49d   :  { %9176 = vmatpush1.bf16.msra.mxu1 %v12872_v22  ;;  %9013 = vmatprep.subr.bf16.mxu0 %v12879_v23  ;;  %v6057_v22 = vld [vmem:[#allocation10 + $0x420] sm:$0xff]  ;;  %v6054_v23 = vld [vmem:[#allocation10 + $0x408] sm:$0xff] }
 0x49e   :  { %9177 = vmatprep.subr.bf16.mxu1 %v12881_v24  ;;  %v6058_v24 = vld [vmem:[#allocation10 + $0x428] sm:$0xff]  ;;  %v12943_v30 = vcombine.high %v6053_v5, %v6057_v22  ;;  %v12942_v36 = vcombine.low %v6053_v5, %v6057_v22 }
 0x49f   :  { %v6110_v5 = vld [vmem:[#allocation10 + $0x5c8] sm:$0xff] }
 0x4a0   :  { %9014 = vmatpush1.bf16.msra.mxu0 %v12878_v21  ;;  %v12945_v21 = vcombine.high %v6054_v23, %v6058_v24  ;;  %v6114_v22 = vld [vmem:[#allocation10 + $0x5e8] sm:$0xff] }
 0x4a1   :  { %9178 = vmatpush1.bf16.msra.mxu1 %v12880_v32  ;;  %9015 = vmatprep.subr.bf16.mxu0 %v12887_v33  ;;  %v5912_v32 = vmax.f32 %v14888_v63, 0.0  ;;  %v6061_v33 = vld [vmem:[#allocation10 + $0x440] sm:$0xff]  ;;  %v12953_v63 = vcombine.high %v6062_v34, %v6066_v37  ;;  %v13001_v29 = vcombine.high %v6110_v5, %v6114_v22 }
 0x4a2   :  { %9179 = vmatprep.subr.bf16.mxu1 %v12889_v62  ;;  %v6065_v62 = vld [vmem:[#allocation10 + $0x460] sm:$0xff] }
 0x4a3   :  { %v12951_v57 = vcombine.high %v6061_v33, %v6065_v62  ;;  %v12950_v45 = vcombine.low %v6061_v33, %v6065_v62  ;;  %v13000_v62 = vcombine.low %v6110_v5, %v6114_v22  ;;  %v6125_v37 = vld [vmem:[#allocation10 + $0x640] sm:$0xff] }
 0x4a4   :  { %9016 = vmatpush1.bf16.msra.mxu0 %v12886_v39  ;;  %v12944_v39 = vcombine.low %v6054_v23, %v6058_v24  ;;  %v12992_v24 = vcombine.low %v6102_v14, %v6106_v15 }
 0x4a5   :  { %9180 = vmatpush1.bf16.msra.mxu1 %v12888_v41  ;;  %9017 = vmatprep.subr.bf16.mxu0 %v12895_v42  ;;  %v6069_v41 = vld [vmem:[#allocation10 + $0x480] sm:$0xff] }
 0x4a6   :  { %9181 = vmatprep.subr.bf16.mxu1 %v12897_v43  ;;  %v6073_v42 = vld [vmem:[#allocation10 + $0x4a0] sm:$0xff]  ;;  %v14901_v43 = vpack.c.bf16 %v5912_v32, %v5912_v32  ;;  %v6122_v32 = vld [vmem:[#allocation10 + $0x628] sm:$0xff] }
 0x4a7   :  { %v12958_v54 = vcombine.low %v6069_v41, %v6073_v42 }
 0x4a8   :  { %9018 = vmatpush1.bf16.msra.mxu0 %v12894_v49  ;;  %v12959_v49 = vcombine.high %v6069_v41, %v6073_v42  ;;  %v6130_v41 = vld [vmem:[#allocation10 + $0x668] sm:$0xff] }
 0x4a9   :  { %9182 = vmatpush1.bf16.msra.mxu1 %v12896_v50  ;;  %9019 = vmatprep.subr.bf16.mxu0 %v12903_v51  ;;  %v12961_v50 = vcombine.high %v6070_v44, %v6074_v47  ;;  %v6077_v51 = vld [vmem:[#allocation10 + $0x4c0] sm:$0xff] }
 0x4aa   :  { %9183 = vmatprep.subr.bf16.mxu1 %v12905_v52  ;;  %v6081_v52 = vld [vmem:[#allocation10 + $0x4e0] sm:$0xff] }
 0x4ab   :  { %v12966_v1 = vcombine.low %v6077_v51, %v6081_v52 }
 0x4ac   :  { %9020 = vmatpush1.bf16.msra.mxu0 %v12902_v56  ;;  %v12967_v56 = vcombine.high %v6077_v51, %v6081_v52 }
 0x4ad   :  { %9184 = vmatpush1.bf16.msra.mxu1 %v12904_v60  ;;  %9021 = vmatprep.subr.bf16.mxu0 %v12911_v61  ;;  %v12969_v60 = vcombine.high %v6078_v8, %v6082_v53  ;;  %v6085_v61 = vld [vmem:[#allocation10 + $0x500] sm:$0xff] }
 0x4ae   :  { %9185 = vmatprep.subr.bf16.mxu1 %v12913_v26  ;;  %v6089_v26 = vld [vmem:[#allocation10 + $0x520] sm:$0xff] }
 0x4af   :  { %v12974_v9 = vcombine.low %v6085_v61, %v6089_v26 }
 0x4b0   :  { %9022 = vmatpush1.bf16.msra.mxu0 %v12910_v48  ;;  %v12975_v48 = vcombine.high %v6085_v61, %v6089_v26 }
 0x4b1   :  { %9186 = vmatpush1.bf16.msra.mxu1 %v12912_v59  ;;  %9023 = vmatprep.subr.bf16.mxu0 %v12919_v4  ;;  %v12977_v59 = vcombine.high %v6086_v0, %v6090_v40  ;;  %v6093_v4 = vld [vmem:[#allocation10 + $0x540] sm:$0xff] }
 0x4b2   :  { %9187 = vmatprep.subr.bf16.mxu1 %v12921_v6  ;;  %v6097_v6 = vld [vmem:[#allocation10 + $0x560] sm:$0xff] }
 0x4b3   :  { %v12982_v16 = vcombine.low %v6093_v4, %v6097_v6 }
 0x4b4   :  { %9024 = vmatpush1.bf16.msra.mxu0 %v12918_v11  ;;  %v12983_v11 = vcombine.high %v6093_v4, %v6097_v6 }
 0x4b5   :  { %9188 = vmatpush1.bf16.msra.mxu1 %v12920_v12  ;;  %9025 = vmatprep.subr.bf16.mxu0 %v12927_v25  ;;  %v12985_v12 = vcombine.high %v6094_v7, %v6098_v35  ;;  %v6101_v25 = vld [vmem:[#allocation10 + $0x580] sm:$0xff] }
 0x4b6   :  { %9189 = vmatprep.subr.bf16.mxu1 %v12929_v13  ;;  %v6105_v13 = vld [vmem:[#allocation10 + $0x5a0] sm:$0xff] }
 0x4b7   :  { %v12990_v23 = vcombine.low %v6101_v25, %v6105_v13 }
 0x4b8   :  { %9026 = vmatpush1.bf16.msra.mxu0 %v12926_v18  ;;  %v12991_v18 = vcombine.high %v6101_v25, %v6105_v13 }
 0x4b9   :  { %9190 = vmatpush1.bf16.msra.mxu1 %v12928_v2  ;;  %9027 = vmatprep.subr.bf16.mxu0 %v12935_v19  ;;  %v12993_v2 = vcombine.high %v6102_v14, %v6106_v15  ;;  %v6109_v19 = vld [vmem:[#allocation10 + $0x5c0] sm:$0xff] }
 0x4ba   :  { %9191 = vmatprep.subr.bf16.mxu1 %v12937_v20  ;;  %v6113_v20 = vld [vmem:[#allocation10 + $0x5e0] sm:$0xff] }
 0x4bb   :  { %v12998_v33 = vcombine.low %v6109_v19, %v6113_v20 }
 0x4bc   :  { %9028 = vmatpush1.bf16.msra.mxu0 %v12934_v28  ;;  %v12999_v28 = vcombine.high %v6109_v19, %v6113_v20 }
 0x4bd   :  { %9192 = vmatpush1.bf16.msra.mxu1 %v12936_v27  ;;  %9038 = vmatprep.subr.bf16.mxu0 %v12943_v30  ;;  %v6117_v27 = vld [vmem:[#allocation10 + $0x600] sm:$0xff] }
 0x4be   :  { %9202 = vmatprep.subr.bf16.mxu1 %v12945_v21  ;;  %v6121_v30 = vld [vmem:[#allocation10 + $0x620] sm:$0xff]  ;;  %v6118_v21 = vld [vmem:[#allocation10 + $0x608] sm:$0xff] }
 0x4bf   :  { %9030 = vmatmul.mubr.bf16.vlgmr.msra.gmra.mrb[16].mxu0 %v14899_v38  ;;  %v13009_v34 = vcombine.high %v6118_v21, %v6122_v32  ;;  %v13006_v42 = vcombine.low %v6117_v27, %v6121_v30 }
 0x4c0   :  { %9194 = vmatmul.mubr.bf16.vlgmr.msra.gmra.mrb[24].mxu1 %v14899_v38  ;;  %9039 = vmatpush1.bf16.msra.mxu0 %v12942_v36  ;;  %v13007_v36 = vcombine.high %v6117_v27, %v6121_v30 }
 0x4c1   :  { %9070 = vmatprep.mubr.bf16.mxu0 %v14901_v43  ;;  %9203 = vmatpush1.bf16.msra.mxu1 %v12944_v39  ;;  %v6129_v39 = vld [vmem:[#allocation10 + $0x660] sm:$0xff] }
 0x4c2   :  { %9234 = vmatprep.mubr.bf16.mxu1 %v14901_v43  ;;  %9040 = vmatprep.subr.bf16.mxu0 %v12951_v57  ;;  %v6126_v57 = vld [vmem:[#allocation10 + $0x648] sm:$0xff]  ;;  %v13015_v44 = vcombine.high %v6125_v37, %v6129_v39  ;;  %v13014_v51 = vcombine.low %v6125_v37, %v6129_v39  ;;  %v5911_v39 = vmax.f32 %v14884_v58, 0.0 }
 0x4c3   :  { %9204 = vmatprep.subr.bf16.mxu1 %v12953_v63  ;;  %v13008_v63 = vcombine.low %v6118_v21, %v6122_v32  ;;  %v13017_v47 = vcombine.high %v6126_v57, %v6130_v41  ;;  %v13016_v52 = vcombine.low %v6126_v57, %v6130_v41 }
 0x4c4   :  { %9041 = vmatpush1.bf16.msra.mxu0 %v12950_v45  ;;  %v6133_v45 = vld [vmem:[#allocation10 + $0x680] sm:$0xff] }
 0x4c5   :  { %9205 = vmatpush1.bf16.msra.mxu1 %v12952_v46  ;;  %9042 = vmatprep.subr.bf16.mxu0 %v12959_v49  ;;  %v6137_v46 = vld [vmem:[#allocation10 + $0x6a0] sm:$0xff]  ;;  %v6134_v49 = vld [vmem:[#allocation10 + $0x688] sm:$0xff] }
 0x4c6   :  { %9206 = vmatprep.subr.bf16.mxu1 %v12961_v50  ;;  %v6138_v50 = vld [vmem:[#allocation10 + $0x6a8] sm:$0xff]  ;;  %v13023_v8 = vcombine.high %v6133_v45, %v6137_v46  ;;  %v13022_v61 = vcombine.low %v6133_v45, %v6137_v46 }
 0x4c7   :  { %v13025_v53 = vcombine.high %v6134_v49, %v6138_v50  ;;  %v13024_v26 = vcombine.low %v6134_v49, %v6138_v50  ;;  %v6194_v45 = vld [vmem:[#allocation10 + $0x868] sm:$0xff]  ;;  %v14908_v49 = vpack.c.bf16 %v5911_v39, %v5911_v39  ;;  %v6245_v39 = vld [vmem:[#allocation10 + $0xa00] sm:$0xff] }
 0x4c8   :  { %9043 = vmatpush1.bf16.msra.mxu0 %v12958_v54  ;;  %v6141_v54 = vld [vmem:[#allocation10 + $0x6c0] sm:$0xff] }
 0x4c9   :  { %9207 = vmatpush1.bf16.msra.mxu1 %v12960_v55  ;;  %9044 = vmatprep.subr.bf16.mxu0 %v12967_v56  ;;  %v6145_v55 = vld [vmem:[#allocation10 + $0x6e0] sm:$0xff]  ;;  %v6142_v56 = vld [vmem:[#allocation10 + $0x6c8] sm:$0xff] }
 0x4ca   :  { %9208 = vmatprep.subr.bf16.mxu1 %v12969_v60  ;;  %v6146_v60 = vld [vmem:[#allocation10 + $0x6e8] sm:$0xff]  ;;  %v13031_v0 = vcombine.high %v6141_v54, %v6145_v55  ;;  %v13030_v4 = vcombine.low %v6141_v54, %v6145_v55 }
 0x4cb   :  { %v13033_v40 = vcombine.high %v6142_v56, %v6146_v60  ;;  %v13032_v6 = vcombine.low %v6142_v56, %v6146_v60  ;;  %v6202_v54 = vld [vmem:[#allocation10 + $0x8a8] sm:$0xff] }
 0x4cc   :  { %9045 = vmatpush1.bf16.msra.mxu0 %v12966_v1  ;;  %v6149_v1 = vld [vmem:[#allocation10 + $0x700] sm:$0xff] }
 0x4cd   :  { %9209 = vmatpush1.bf16.msra.mxu1 %v12968_v3  ;;  %9046 = vmatprep.subr.bf16.mxu0 %v12975_v48  ;;  %v6153_v3 = vld [vmem:[#allocation10 + $0x720] sm:$0xff]  ;;  %v6150_v48 = vld [vmem:[#allocation10 + $0x708] sm:$0xff] }
 0x4ce   :  { %9210 = vmatprep.subr.bf16.mxu1 %v12977_v59  ;;  %v6154_v59 = vld [vmem:[#allocation10 + $0x728] sm:$0xff]  ;;  %v13039_v7 = vcombine.high %v6149_v1, %v6153_v3  ;;  %v13038_v25 = vcombine.low %v6149_v1, %v6153_v3 }
 0x4cf   :  { %v13041_v35 = vcombine.high %v6150_v48, %v6154_v59  ;;  %v13040_v13 = vcombine.low %v6150_v48, %v6154_v59  ;;  %v6210_v1 = vld [vmem:[#allocation10 + $0x8e8] sm:$0xff] }
 0x4d0   :  { %9047 = vmatpush1.bf16.msra.mxu0 %v12974_v9  ;;  %v6157_v9 = vld [vmem:[#allocation10 + $0x740] sm:$0xff] }
 0x4d1   :  { %9211 = vmatpush1.bf16.msra.mxu1 %v12976_v10  ;;  %9048 = vmatprep.subr.bf16.mxu0 %v12983_v11  ;;  %v6161_v10 = vld [vmem:[#allocation10 + $0x760] sm:$0xff]  ;;  %v6158_v11 = vld [vmem:[#allocation10 + $0x748] sm:$0xff] }
 0x4d2   :  { %9212 = vmatprep.subr.bf16.mxu1 %v12985_v12  ;;  %v6162_v12 = vld [vmem:[#allocation10 + $0x768] sm:$0xff]  ;;  %v13047_v14 = vcombine.high %v6157_v9, %v6161_v10  ;;  %v13046_v19 = vcombine.low %v6157_v9, %v6161_v10 }
 0x4d3   :  { %v13049_v15 = vcombine.high %v6158_v11, %v6162_v12  ;;  %v13048_v20 = vcombine.low %v6158_v11, %v6162_v12  ;;  %v6218_v9 = vld [vmem:[#allocation10 + $0x928] sm:$0xff] }
 0x4d4   :  { %9049 = vmatpush1.bf16.msra.mxu0 %v12982_v16  ;;  %v6165_v16 = vld [vmem:[#allocation10 + $0x780] sm:$0xff] }
 0x4d5   :  { %9213 = vmatpush1.bf16.msra.mxu1 %v12984_v17  ;;  %9050 = vmatprep.subr.bf16.mxu0 %v12991_v18  ;;  %v6169_v17 = vld [vmem:[#allocation10 + $0x7a0] sm:$0xff]  ;;  %v6166_v18 = vld [vmem:[#allocation10 + $0x788] sm:$0xff] }
 0x4d6   :  { %9214 = vmatprep.subr.bf16.mxu1 %v12993_v2  ;;  %v6170_v2 = vld [vmem:[#allocation10 + $0x7a8] sm:$0xff]  ;;  %v13055_v5 = vcombine.high %v6165_v16, %v6169_v17  ;;  %v13054_v27 = vcombine.low %v6165_v16, %v6169_v17 }
 0x4d7   :  { %v13057_v22 = vcombine.high %v6166_v18, %v6170_v2  ;;  %v13056_v30 = vcombine.low %v6166_v18, %v6170_v2  ;;  %v6226_v16 = vld [vmem:[#allocation10 + $0x968] sm:$0xff] }
 0x4d8   :  { %9051 = vmatpush1.bf16.msra.mxu0 %v12990_v23  ;;  %v6173_v23 = vld [vmem:[#allocation10 + $0x7c0] sm:$0xff] }
 0x4d9   :  { %9215 = vmatpush1.bf16.msra.mxu1 %v12992_v24  ;;  %9052 = vmatprep.subr.bf16.mxu0 %v12999_v28  ;;  %v6177_v24 = vld [vmem:[#allocation10 + $0x7e0] sm:$0xff]  ;;  %v6174_v28 = vld [vmem:[#allocation10 + $0x7c8] sm:$0xff] }
 0x4da   :  { %9216 = vmatprep.subr.bf16.mxu1 %v13001_v29  ;;  %v6178_v29 = vld [vmem:[#allocation10 + $0x7e8] sm:$0xff]  ;;  %v13063_v21 = vcombine.high %v6173_v23, %v6177_v24  ;;  %v13062_v37 = vcombine.low %v6173_v23, %v6177_v24 }
 0x4db   :  { %v13065_v32 = vcombine.high %v6174_v28, %v6178_v29  ;;  %v13064_v57 = vcombine.low %v6174_v28, %v6178_v29  ;;  %v6234_v23 = vld [vmem:[#allocation10 + $0x9a8] sm:$0xff] }
 0x4dc   :  { %9053 = vmatpush1.bf16.msra.mxu0 %v12998_v33  ;;  %v6181_v33 = vld [vmem:[#allocation10 + $0x800] sm:$0xff] }
 0x4dd   :  { %9217 = vmatpush1.bf16.msra.mxu1 %v13000_v62  ;;  %9054 = vmatprep.subr.bf16.mxu0 %v13007_v36  ;;  %v6185_v62 = vld [vmem:[#allocation10 + $0x820] sm:$0xff]  ;;  %v6182_v36 = vld [vmem:[#allocation10 + $0x808] sm:$0xff] }
 0x4de   :  { %9218 = vmatprep.subr.bf16.mxu1 %v13009_v34  ;;  %v6186_v34 = vld [vmem:[#allocation10 + $0x828] sm:$0xff]  ;;  %v13071_v41 = vcombine.high %v6181_v33, %v6185_v62  ;;  %v13070_v46 = vcombine.low %v6181_v33, %v6185_v62 }
 0x4df   :  { %v13072_v50 = vcombine.low %v6182_v36, %v6186_v34  ;;  %v6242_v33 = vld [vmem:[#allocation10 + $0x9e8] sm:$0xff] }
 0x4e0   :  { %9055 = vmatpush1.bf16.msra.mxu0 %v13006_v42  ;;  %v13073_v42 = vcombine.high %v6182_v36, %v6186_v34 }
 0x4e1   :  { %9219 = vmatpush1.bf16.msra.mxu1 %v13008_v63  ;;  %9056 = vmatprep.subr.bf16.mxu0 %v13015_v44  ;;  %v6189_v63 = vld [vmem:[#allocation10 + $0x840] sm:$0xff] }
 0x4e2   :  { %9220 = vmatprep.subr.bf16.mxu1 %v13017_v47  ;;  %v6193_v44 = vld [vmem:[#allocation10 + $0x860] sm:$0xff]  ;;  %v6190_v47 = vld [vmem:[#allocation10 + $0x848] sm:$0xff] }
 0x4e3   :  { %v13081_v58 = vcombine.high %v6190_v47, %v6194_v45  ;;  %v13078_v55 = vcombine.low %v6189_v63, %v6193_v44  ;;  %v13080_v56 = vcombine.low %v6190_v47, %v6194_v45 }
 0x4e4   :  { %9057 = vmatpush1.bf16.msra.mxu0 %v13014_v51  ;;  %v13079_v51 = vcombine.high %v6189_v63, %v6193_v44 }
 0x4e5   :  { %9221 = vmatpush1.bf16.msra.mxu1 %v13016_v52  ;;  %9058 = vmatprep.subr.bf16.mxu0 %v13023_v8  ;;  %v6197_v52 = vld [vmem:[#allocation10 + $0x880] sm:$0xff] }
 0x4e6   :  { %9222 = vmatprep.subr.bf16.mxu1 %v13025_v53  ;;  %v6201_v8 = vld [vmem:[#allocation10 + $0x8a0] sm:$0xff]  ;;  %v6198_v53 = vld [vmem:[#allocation10 + $0x888] sm:$0xff] }
 0x4e7   :  { %v13087_v60 = vcombine.high %v6197_v52, %v6201_v8  ;;  %v13086_v3 = vcombine.low %v6197_v52, %v6201_v8  ;;  %v13088_v48 = vcombine.low %v6198_v53, %v6202_v54 }
 0x4e8   :  { %9059 = vmatpush1.bf16.msra.mxu0 %v13022_v61  ;;  %v13089_v61 = vcombine.high %v6198_v53, %v6202_v54 }
 0x4e9   :  { %9223 = vmatpush1.bf16.msra.mxu1 %v13024_v26  ;;  %9060 = vmatprep.subr.bf16.mxu0 %v13031_v0  ;;  %v6205_v26 = vld [vmem:[#allocation10 + $0x8c0] sm:$0xff] }
 0x4ea   :  { %9224 = vmatprep.subr.bf16.mxu1 %v13033_v40  ;;  %v6209_v0 = vld [vmem:[#allocation10 + $0x8e0] sm:$0xff]  ;;  %v6206_v40 = vld [vmem:[#allocation10 + $0x8c8] sm:$0xff] }
 0x4eb   :  { %v13095_v59 = vcombine.high %v6205_v26, %v6209_v0  ;;  %v13094_v10 = vcombine.low %v6205_v26, %v6209_v0  ;;  %v13096_v11 = vcombine.low %v6206_v40, %v6210_v1 }
 0x4ec   :  { %9061 = vmatpush1.bf16.msra.mxu0 %v13030_v4  ;;  %v13097_v4 = vcombine.high %v6206_v40, %v6210_v1 }
 0x4ed   :  { %9225 = vmatpush1.bf16.msra.mxu1 %v13032_v6  ;;  %9062 = vmatprep.subr.bf16.mxu0 %v13039_v7  ;;  %v6213_v6 = vld [vmem:[#allocation10 + $0x900] sm:$0xff] }
 0x4ee   :  { %9226 = vmatprep.subr.bf16.mxu1 %v13041_v35  ;;  %v6217_v7 = vld [vmem:[#allocation10 + $0x920] sm:$0xff]  ;;  %v6214_v35 = vld [vmem:[#allocation10 + $0x908] sm:$0xff] }
 0x4ef   :  { %v13103_v12 = vcombine.high %v6213_v6, %v6217_v7  ;;  %v13102_v17 = vcombine.low %v6213_v6, %v6217_v7  ;;  %v13104_v18 = vcombine.low %v6214_v35, %v6218_v9 }
 0x4f0   :  { %9063 = vmatpush1.bf16.msra.mxu0 %v13038_v25  ;;  %v13105_v25 = vcombine.high %v6214_v35, %v6218_v9 }
 0x4f1   :  { %9227 = vmatpush1.bf16.msra.mxu1 %v13040_v13  ;;  %9064 = vmatprep.subr.bf16.mxu0 %v13047_v14  ;;  %v6221_v13 = vld [vmem:[#allocation10 + $0x940] sm:$0xff] }
 0x4f2   :  { %9228 = vmatprep.subr.bf16.mxu1 %v13049_v15  ;;  %v6225_v14 = vld [vmem:[#allocation10 + $0x960] sm:$0xff]  ;;  %v6222_v15 = vld [vmem:[#allocation10 + $0x948] sm:$0xff] }
 0x4f3   :  { %v13111_v2 = vcombine.high %v6221_v13, %v6225_v14  ;;  %v13110_v24 = vcombine.low %v6221_v13, %v6225_v14  ;;  %v13112_v28 = vcombine.low %v6222_v15, %v6226_v16 }
 0x4f4   :  { %9065 = vmatpush1.bf16.msra.mxu0 %v13046_v19  ;;  %v13113_v19 = vcombine.high %v6222_v15, %v6226_v16 }
 0x4f5   :  { %9229 = vmatpush1.bf16.msra.mxu1 %v13048_v20  ;;  %9066 = vmatprep.subr.bf16.mxu0 %v13055_v5  ;;  %v6229_v20 = vld [vmem:[#allocation10 + $0x980] sm:$0xff] }
 0x4f6   :  { %9230 = vmatprep.subr.bf16.mxu1 %v13057_v22  ;;  %v6233_v5 = vld [vmem:[#allocation10 + $0x9a0] sm:$0xff]  ;;  %v6230_v22 = vld [vmem:[#allocation10 + $0x988] sm:$0xff] }
 0x4f7   :  { %v13119_v29 = vcombine.high %v6229_v20, %v6233_v5  ;;  %v13118_v62 = vcombine.low %v6229_v20, %v6233_v5  ;;  %v13120_v36 = vcombine.low %v6230_v22, %v6234_v23 }
 0x4f8   :  { %9067 = vmatpush1.bf16.msra.mxu0 %v13054_v27  ;;  %v13121_v27 = vcombine.high %v6230_v22, %v6234_v23 }
 0x4f9   :  { %9231 = vmatpush1.bf16.msra.mxu1 %v13056_v30  ;;  %9068 = vmatprep.subr.bf16.mxu0 %v13063_v21  ;;  %v6237_v30 = vld [vmem:[#allocation10 + $0x9c0] sm:$0xff] }
 0x4fa   :  { %9232 = vmatprep.subr.bf16.mxu1 %v13065_v32  ;;  %v6241_v21 = vld [vmem:[#allocation10 + $0x9e0] sm:$0xff]  ;;  %v6238_v32 = vld [vmem:[#allocation10 + $0x9c8] sm:$0xff] }
 0x4fb   :  { %v13127_v34 = vcombine.high %v6237_v30, %v6241_v21  ;;  %v13126_v63 = vcombine.low %v6237_v30, %v6241_v21  ;;  %v13128_v44 = vcombine.low %v6238_v32, %v6242_v33 }
 0x4fc   :  { %9069 = vmatpush1.bf16.msra.mxu0 %v13062_v37  ;;  %v13129_v37 = vcombine.high %v6238_v32, %v6242_v33 }
 0x4fd   :  { %9233 = vmatpush1.bf16.msra.mxu1 %v13064_v57  ;;  %9079 = vmatprep.subr.bf16.mxu0 %v13071_v41  ;;  %v6249_v57 = vld [vmem:[#allocation10 + $0xa20] sm:$0xff]  ;;  %v6246_v41 = vld [vmem:[#allocation10 + $0xa08] sm:$0xff] }
 0x4fe   :  { %9243 = vmatprep.subr.bf16.mxu1 %v13073_v42  ;;  %v6250_v42 = vld [vmem:[#allocation10 + $0xa28] sm:$0xff]  ;;  %v13135_v47 = vcombine.high %v6245_v39, %v6249_v57  ;;  %v13134_v52 = vcombine.low %v6245_v39, %v6249_v57 }
 0x4ff   :  { %9071 = vmatmul.mubr.bf16.vlgmr.msra.gmra.mrb[16].mxu0 %v14908_v49  ;;  %v13137_v45 = vcombine.high %v6246_v41, %v6250_v42  ;;  %v13136_v8 = vcombine.low %v6246_v41, %v6250_v42 }
 0x500   :  { %9235 = vmatmul.mubr.bf16.vlgmr.msra.gmra.mrb[24].mxu1 %v14908_v49  ;;  %9080 = vmatpush1.bf16.msra.mxu0 %v13070_v46  ;;  %v6253_v46 = vld [vmem:[#allocation10 + $0xa40] sm:$0xff] }
 0x501   :  { %9244 = vmatpush1.bf16.msra.mxu1 %v13072_v50  ;;  %9081 = vmatprep.subr.bf16.mxu0 %v13079_v51  ;;  %v6257_v50 = vld [vmem:[#allocation10 + $0xa60] sm:$0xff]  ;;  %v6254_v51 = vld [vmem:[#allocation10 + $0xa48] sm:$0xff] }
 0x502   :  { %9245 = vmatprep.subr.bf16.mxu1 %v13081_v58  ;;  %v6258_v58 = vld [vmem:[#allocation10 + $0xa68] sm:$0xff]  ;;  %v13143_v53 = vcombine.high %v6253_v46, %v6257_v50  ;;  %v13142_v26 = vcombine.low %v6253_v46, %v6257_v50 }
 0x503   :  { %v13145_v54 = vcombine.high %v6254_v51, %v6258_v58  ;;  %v13144_v0 = vcombine.low %v6254_v51, %v6258_v58 }
 0x504   :  { %9082 = vmatpush1.bf16.msra.mxu0 %v13078_v55  ;;  %v6261_v55 = vld [vmem:[#allocation10 + $0xa80] sm:$0xff] }
 0x505   :  { %9246 = vmatpush1.bf16.msra.mxu1 %v13080_v56  ;;  %9083 = vmatprep.subr.bf16.mxu0 %v13087_v60  ;;  %v6265_v56 = vld [vmem:[#allocation10 + $0xaa0] sm:$0xff]  ;;  %v6262_v60 = vld [vmem:[#allocation10 + $0xa88] sm:$0xff] }
 0x506   :  { %9247 = vmatprep.subr.bf16.mxu1 %v13089_v61  ;;  %v6266_v61 = vld [vmem:[#allocation10 + $0xaa8] sm:$0xff]  ;;  %v13151_v40 = vcombine.high %v6261_v55, %v6265_v56  ;;  %v13150_v6 = vcombine.low %v6261_v55, %v6265_v56 }
 0x507   :  { %v13153_v1 = vcombine.high %v6262_v60, %v6266_v61  ;;  %v13152_v7 = vcombine.low %v6262_v60, %v6266_v61  ;;  %v6317_v61 = vld [vmem:[#allocation10 + $0xc40] sm:$0xff] }
 0x508   :  { %9084 = vmatpush1.bf16.msra.mxu0 %v13086_v3  ;;  %v6269_v3 = vld [vmem:[#allocation10 + $0xac0] sm:$0xff] }
 0x509   :  { %9248 = vmatpush1.bf16.msra.mxu1 %v13088_v48  ;;  %9085 = vmatprep.subr.bf16.mxu0 %v13095_v59  ;;  %v6273_v48 = vld [vmem:[#allocation10 + $0xae0] sm:$0xff]  ;;  %v6270_v59 = vld [vmem:[#allocation10 + $0xac8] sm:$0xff] }
 0x50a   :  { %9249 = vmatprep.subr.bf16.mxu1 %v13097_v4  ;;  %v6274_v4 = vld [vmem:[#allocation10 + $0xae8] sm:$0xff]  ;;  %v13159_v35 = vcombine.high %v6269_v3, %v6273_v48  ;;  %v13158_v13 = vcombine.low %v6269_v3, %v6273_v48 }
 0x50b   :  { %v13161_v9 = vcombine.high %v6270_v59, %v6274_v4  ;;  %v13160_v14 = vcombine.low %v6270_v59, %v6274_v4  ;;  %v6318_v3 = vld [vmem:[#allocation10 + $0xc48] sm:$0xff] }
 0x50c   :  { %9086 = vmatpush1.bf16.msra.mxu0 %v13094_v10  ;;  %v6277_v10 = vld [vmem:[#allocation10 + $0xb00] sm:$0xff]  ;;  %v6322_v48 = vld [vmem:[#allocation10 + $0xc68] sm:$0xff] }
 0x50d   :  { %9250 = vmatpush1.bf16.msra.mxu1 %v13096_v11  ;;  %9087 = vmatprep.subr.bf16.mxu0 %v13103_v12  ;;  %v6281_v11 = vld [vmem:[#allocation10 + $0xb20] sm:$0xff]  ;;  %v6278_v12 = vld [vmem:[#allocation10 + $0xb08] sm:$0xff] }
 0x50e   :  { %9251 = vmatprep.subr.bf16.mxu1 %v13105_v25  ;;  %v6282_v25 = vld [vmem:[#allocation10 + $0xb28] sm:$0xff]  ;;  %v13167_v15 = vcombine.high %v6277_v10, %v6281_v11  ;;  %v13166_v20 = vcombine.low %v6277_v10, %v6281_v11  ;;  %v13209_v11 = vcombine.high %v6318_v3, %v6322_v48 }
 0x50f   :  { %v13169_v16 = vcombine.high %v6278_v12, %v6282_v25  ;;  %v13168_v5 = vcombine.low %v6278_v12, %v6282_v25  ;;  %v6329_v12 = vld [vmem:[#allocation10 + $0xca0] sm:$0xff]  ;;  %v6326_v25 = vld [vmem:[#allocation10 + $0xc88] sm:$0xff] }
 0x510   :  { %9088 = vmatpush1.bf16.msra.mxu0 %v13102_v17  ;;  %v6285_v17 = vld [vmem:[#allocation10 + $0xb40] sm:$0xff] }
 0x511   :  { %9252 = vmatpush1.bf16.msra.mxu1 %v13104_v18  ;;  %9089 = vmatprep.subr.bf16.mxu0 %v13111_v2  ;;  %v6289_v18 = vld [vmem:[#allocation10 + $0xb60] sm:$0xff]  ;;  %v6286_v2 = vld [vmem:[#allocation10 + $0xb48] sm:$0xff] }
 0x512   :  { %9253 = vmatprep.subr.bf16.mxu1 %v13113_v19  ;;  %v6290_v19 = vld [vmem:[#allocation10 + $0xb68] sm:$0xff]  ;;  %v13175_v22 = vcombine.high %v6285_v17, %v6289_v18  ;;  %v13174_v30 = vcombine.low %v6285_v17, %v6289_v18 }
 0x513   :  { %v13177_v23 = vcombine.high %v6286_v2, %v6290_v19  ;;  %v13176_v21 = vcombine.low %v6286_v2, %v6290_v19  ;;  %v6333_v2 = vld [vmem:[#allocation10 + $0xcc0] sm:$0xff] }
 0x514   :  { %9090 = vmatpush1.bf16.msra.mxu0 %v13110_v24  ;;  %v6293_v24 = vld [vmem:[#allocation10 + $0xb80] sm:$0xff] }
 0x515   :  { %9254 = vmatpush1.bf16.msra.mxu1 %v13112_v28  ;;  %9091 = vmatprep.subr.bf16.mxu0 %v13119_v29  ;;  %v6297_v28 = vld [vmem:[#allocation10 + $0xba0] sm:$0xff]  ;;  %v6294_v29 = vld [vmem:[#allocation10 + $0xb88] sm:$0xff] }
 0x516   :  { %9255 = vmatprep.subr.bf16.mxu1 %v13121_v27  ;;  %v6298_v27 = vld [vmem:[#allocation10 + $0xba8] sm:$0xff]  ;;  %v13183_v32 = vcombine.high %v6293_v24, %v6297_v28  ;;  %v13182_v39 = vcombine.low %v6293_v24, %v6297_v28  ;;  %v6337_v19 = vld [vmem:[#allocation10 + $0xce0] sm:$0xff] }
 0x517   :  { %v13185_v33 = vcombine.high %v6294_v29, %v6298_v27  ;;  %v13184_v57 = vcombine.low %v6294_v29, %v6298_v27  ;;  %v13223_v24 = vcombine.high %v6333_v2, %v6337_v19  ;;  %v6341_v29 = vld [vmem:[#allocation10 + $0xd00] sm:$0xff] }
 0x518   :  { %9092 = vmatpush1.bf16.msra.mxu0 %v13118_v62  ;;  %v6301_v62 = vld [vmem:[#allocation10 + $0xbc0] sm:$0xff] }
 0x519   :  { %9256 = vmatpush1.bf16.msra.mxu1 %v13120_v36  ;;  %9093 = vmatprep.subr.bf16.mxu0 %v13127_v34  ;;  %v6305_v36 = vld [vmem:[#allocation10 + $0xbe0] sm:$0xff]  ;;  %v6302_v34 = vld [vmem:[#allocation10 + $0xbc8] sm:$0xff] }
 0x51a   :  { %9257 = vmatprep.subr.bf16.mxu1 %v13129_v37  ;;  %v6306_v37 = vld [vmem:[#allocation10 + $0xbe8] sm:$0xff]  ;;  %v13191_v41 = vcombine.high %v6301_v62, %v6305_v36  ;;  %v13190_v46 = vcombine.low %v6301_v62, %v6305_v36  ;;  %v6345_v27 = vld [vmem:[#allocation10 + $0xd20] sm:$0xff] }
 0x51b   :  { %v13193_v42 = vcombine.high %v6302_v34, %v6306_v37  ;;  %v13192_v50 = vcombine.low %v6302_v34, %v6306_v37  ;;  %v13231_v62 = vcombine.high %v6341_v29, %v6345_v27  ;;  %v6349_v34 = vld [vmem:[#allocation10 + $0xd40] sm:$0xff] }
 0x51c   :  { %9094 = vmatpush1.bf16.msra.mxu0 %v13126_v63  ;;  %v6309_v63 = vld [vmem:[#allocation10 + $0xc00] sm:$0xff] }
 0x51d   :  { %9258 = vmatpush1.bf16.msra.mxu1 %v13128_v44  ;;  %9095 = vmatprep.subr.bf16.mxu0 %v13135_v47  ;;  %v6313_v44 = vld [vmem:[#allocation10 + $0xc20] sm:$0xff]  ;;  %v6310_v47 = vld [vmem:[#allocation10 + $0xc08] sm:$0xff] }
 0x51e   :  { %9259 = vmatprep.subr.bf16.mxu1 %v13137_v45  ;;  %v6314_v45 = vld [vmem:[#allocation10 + $0xc28] sm:$0xff]  ;;  %v13199_v51 = vcombine.high %v6309_v63, %v6313_v44  ;;  %v6353_v37 = vld [vmem:[#allocation10 + $0xd60] sm:$0xff] }
 0x51f   :  { %v13201_v58 = vcombine.high %v6310_v47, %v6314_v45 }
 0x520   :  { %9096 = vmatpush1.bf16.msra.mxu0 %v13134_v52 }
 0x521   :  { %9260 = vmatpush1.bf16.msra.mxu1 %v13136_v8  ;;  %9097 = vmatprep.subr.bf16.mxu0 %v13143_v53 }
 0x522   :  { %9261 = vmatprep.subr.bf16.mxu1 %v13145_v54 }
 0x524   :  { %9098 = vmatpush1.bf16.msra.mxu0 %v13142_v26 }
 0x525   :  { %9262 = vmatpush1.bf16.msra.mxu1 %v13144_v0  ;;  %9099 = vmatprep.subr.bf16.mxu0 %v13151_v40 }
 0x526   :  { %9263 = vmatprep.subr.bf16.mxu1 %v13153_v1  ;;  %v6321_v1 = vld [vmem:[#allocation10 + $0xc60] sm:$0xff] }
 0x527   :  { %v13207_v10 = vcombine.high %v6317_v61, %v6321_v1 }
 0x528   :  { %9100 = vmatpush1.bf16.msra.mxu0 %v13150_v6  ;;  %v13198_v6 = vcombine.low %v6309_v63, %v6313_v44  ;;  %v13239_v63 = vcombine.high %v6349_v34, %v6353_v37 }
 0x529   :  { %9264 = vmatpush1.bf16.msra.mxu1 %v13152_v7  ;;  %9101 = vmatprep.subr.bf16.mxu0 %v13159_v35  ;;  %v13200_v7 = vcombine.low %v6310_v47, %v6314_v45  ;;  %v6357_v47 = vld [vmem:[#allocation10 + $0xd80] sm:$0xff] }
 0x52a   :  { %9265 = vmatprep.subr.bf16.mxu1 %v13161_v9  ;;  %v6325_v9 = vld [vmem:[#allocation10 + $0xc80] sm:$0xff] }
 0x52b   :  { %v13215_v17 = vcombine.high %v6325_v9, %v6329_v12  ;;  %v6361_v45 = vld [vmem:[#allocation10 + $0xda0] sm:$0xff] }
 0x52c   :  { %9102 = vmatpush1.bf16.msra.mxu0 %v13158_v13  ;;  %v6330_v13 = vld [vmem:[#allocation10 + $0xca8] sm:$0xff] }
 0x52d   :  { %9266 = vmatpush1.bf16.msra.mxu1 %v13160_v14  ;;  %9103 = vmatprep.subr.bf16.mxu0 %v13167_v15  ;;  %v13206_v15 = vcombine.low %v6317_v61, %v6321_v1  ;;  %v13217_v18 = vcombine.high %v6326_v25, %v6330_v13  ;;  %v13246_v61 = vcombine.low %v6357_v47, %v6361_v45  ;;  %v6373_v1 = vld [vmem:[#allocation10 + $0xe00] sm:$0xff] }
 0x52e   :  { %9267 = vmatprep.subr.bf16.mxu1 %v13169_v16  ;;  %v13208_v16 = vcombine.low %v6318_v3, %v6322_v48  ;;  %v6377_v3 = vld [vmem:[#allocation10 + $0xe20] sm:$0xff]  ;;  %v6374_v48 = vld [vmem:[#allocation10 + $0xe08] sm:$0xff] }
 0x530   :  { %9104 = vmatpush1.bf16.msra.mxu0 %v13166_v20  ;;  %v6334_v20 = vld [vmem:[#allocation10 + $0xcc8] sm:$0xff] }
 0x531   :  { %9268 = vmatpush1.bf16.msra.mxu1 %v13168_v5  ;;  %9105 = vmatprep.subr.bf16.mxu0 %v13175_v22  ;;  %v6338_v5 = vld [vmem:[#allocation10 + $0xce8] sm:$0xff]  ;;  %v13214_v22 = vcombine.low %v6325_v9, %v6329_v12  ;;  %v13263_v9 = vcombine.high %v6373_v1, %v6377_v3  ;;  %v6385_v12 = vld [vmem:[#allocation10 + $0xe60] sm:$0xff] }
 0x532   :  { %9269 = vmatprep.subr.bf16.mxu1 %v13177_v23  ;;  %v13216_v23 = vcombine.low %v6326_v25, %v6330_v13  ;;  %v13225_v28 = vcombine.high %v6334_v20, %v6338_v5  ;;  %v6382_v25 = vld [vmem:[#allocation10 + $0xe48] sm:$0xff] }
 0x533   :  { %v6386_v13 = vld [vmem:[#allocation10 + $0xe68] sm:$0xff] }
 0x534   :  { %9106 = vmatpush1.bf16.msra.mxu0 %v13174_v30  ;;  %v6342_v30 = vld [vmem:[#allocation10 + $0xd08] sm:$0xff] }
 0x535   :  { %9270 = vmatpush1.bf16.msra.mxu1 %v13176_v21  ;;  %9107 = vmatprep.subr.bf16.mxu0 %v13183_v32  ;;  %v6346_v21 = vld [vmem:[#allocation10 + $0xd28] sm:$0xff]  ;;  %v13222_v32 = vcombine.low %v6333_v2, %v6337_v19  ;;  %v6389_v2 = vld [vmem:[#allocation10 + $0xe80] sm:$0xff] }
 0x536   :  { %9271 = vmatprep.subr.bf16.mxu1 %v13185_v33  ;;  %v13224_v33 = vcombine.low %v6334_v20, %v6338_v5  ;;  %v13233_v36 = vcombine.high %v6342_v30, %v6346_v21  ;;  %v6393_v19 = vld [vmem:[#allocation10 + $0xea0] sm:$0xff]  ;;  %v6390_v20 = vld [vmem:[#allocation10 + $0xe88] sm:$0xff] }
 0x537   :  { %v6394_v5 = vld [vmem:[#allocation10 + $0xea8] sm:$0xff] }
 0x538   :  { %9108 = vmatpush1.bf16.msra.mxu0 %v13182_v39  ;;  %v6350_v39 = vld [vmem:[#allocation10 + $0xd48] sm:$0xff] }
 0x539   :  { %9272 = vmatpush1.bf16.msra.mxu1 %v13184_v57  ;;  %9109 = vmatprep.subr.bf16.mxu0 %v13191_v41  ;;  %v6354_v57 = vld [vmem:[#allocation10 + $0xd68] sm:$0xff]  ;;  %v13230_v41 = vcombine.low %v6341_v29, %v6345_v27  ;;  %v6397_v29 = vld [vmem:[#allocation10 + $0xec0] sm:$0xff] }
 0x53a   :  { %9273 = vmatprep.subr.bf16.mxu1 %v13193_v42  ;;  %v13232_v42 = vcombine.low %v6342_v30, %v6346_v21  ;;  %v13241_v44 = vcombine.high %v6350_v39, %v6354_v57  ;;  %v6401_v27 = vld [vmem:[#allocation10 + $0xee0] sm:$0xff]  ;;  %v6398_v30 = vld [vmem:[#allocation10 + $0xec8] sm:$0xff] }
 0x53b   :  { %v6402_v21 = vld [vmem:[#allocation10 + $0xee8] sm:$0xff] }
 0x53c   :  { %9110 = vmatpush1.bf16.msra.mxu0 %v13190_v46  ;;  %v6358_v46 = vld [vmem:[#allocation10 + $0xd88] sm:$0xff] }
 0x53d   :  { %9274 = vmatpush1.bf16.msra.mxu1 %v13192_v50  ;;  %9120 = vmatprep.subr.bf16.mxu0 %v13199_v51  ;;  %v6362_v50 = vld [vmem:[#allocation10 + $0xda8] sm:$0xff]  ;;  %v13238_v51 = vcombine.low %v6349_v34, %v6353_v37  ;;  %v6405_v34 = vld [vmem:[#allocation10 + $0xf00] sm:$0xff] }
 0x53e   :  { %9284 = vmatprep.subr.bf16.mxu1 %v13201_v58  ;;  %v13240_v58 = vcombine.low %v6350_v39, %v6354_v57  ;;  %v6409_v37 = vld [vmem:[#allocation10 + $0xf20] sm:$0xff]  ;;  %v6406_v39 = vld [vmem:[#allocation10 + $0xf08] sm:$0xff] }
 0x53f   :  { %v6410_v57 = vld [vmem:[#allocation10 + $0xf28] sm:$0xff] }
 0x552   :  { %v5738_v52 = vpop.f32.mrb[12].mxu0 }
 0x553   :  { %v5913_v8 = vmax.f32 %v5738_v52, 0.0  ;;  %v14912_v53 = vpop.f32.mrb[20].mxu1  ;;  %v5740_v54 = vpop.f32.mrb[13].mxu0  ;;  %v13247_v52 = vcombine.high %v6357_v47, %v6361_v45  ;;  %v6413_v47 = vld [vmem:[#allocation10 + $0xf40] sm:$0xff] }
 0x554   :  { %v5914_v55 = vmax.f32 %v5740_v54, 0.0  ;;  %v5904_v56 = vpop.f32.mrb[21].mxu1  ;;  %v5742_v60 = vpop.f32.mrb[14].mxu0  ;;  %v6365_v54 = vld [vmem:[#allocation10 + $0xdc0] sm:$0xff] }
 0x555   :  { %v5916_v26 = vmax.f32 %v5904_v56, 0.0  ;;  %v5906_v0 = vpop.f32.mrb[22].mxu1  ;;  %v5743_v40 = vpop.f32.mrb[15].mxu0  ;;  %v14916_v35 = vpack.c.bf16 %v5913_v8, %v5913_v8  ;;  %v13249_v8 = vcombine.high %v6358_v46, %v6362_v50  ;;  %v6366_v56 = vld [vmem:[#allocation10 + $0xdc8] sm:$0xff]  ;;  %v6417_v45 = vld [vmem:[#allocation10 + $0xf60] sm:$0xff] }
 0x556   :  { %v14914_v59 = vpack.c.bf16 %v5914_v55, %v5914_v55  ;;  %v5907_v4 = vpop.f32.mrb[23].mxu1  ;;  %v6369_v55 = vld [vmem:[#allocation10 + $0xde0] sm:$0xff]  ;;  %v6370_v60 = vld [vmem:[#allocation10 + $0xde8] sm:$0xff] }
 0x557   :  { %v14920_v14 = vpack.c.bf16 %v5916_v26, %v5916_v26  ;;  %v13248_v26 = vcombine.low %v6358_v46, %v6362_v50  ;;  %v13255_v0 = vcombine.high %v6365_v54, %v6369_v55  ;;  %v13257_v40 = vcombine.high %v6366_v56, %v6370_v60  ;;  %v6378_v4 = vld [vmem:[#allocation10 + $0xe28] sm:$0xff] }
 0x558   :  { %9111 = vmatprep.mubr.bf16.mxu0 %v14914_v59  ;;  %9275 = vmatprep.mubr.bf16.mxu1 %v14914_v59  ;;  %v6414_v46 = vld [vmem:[#allocation10 + $0xf48] sm:$0xff] }
 0x559   :  { %9112 = vmatmul.mubr.bf16.vlgmr.msra.gmra.mrb[16].mxu0 %v14916_v35  ;;  %9276 = vmatmul.mubr.bf16.vlgmr.msra.gmra.mrb[24].mxu1 %v14916_v35  ;;  %v6418_v50 = vld [vmem:[#allocation10 + $0xf68] sm:$0xff] }
 0x55a   :  { %9121 = vmatpush1.bf16.msra.mxu0 %v13198_v6  ;;  %9285 = vmatpush1.bf16.msra.mxu1 %v13200_v7  ;;  %v13254_v6 = vcombine.low %v6365_v54, %v6369_v55  ;;  %v13256_v7 = vcombine.low %v6366_v56, %v6370_v60  ;;  %v6421_v54 = vld [vmem:[#allocation10 + $0xf80] sm:$0xff]  ;;  %v6422_v56 = vld [vmem:[#allocation10 + $0xf88] sm:$0xff] }
 0x55b   :  { %9152 = vmatprep.mubr.bf16.mxu0 %v14920_v14  ;;  %9316 = vmatprep.mubr.bf16.mxu1 %v14920_v14  ;;  %v6425_v55 = vld [vmem:[#allocation10 + $0xfa0] sm:$0xff]  ;;  %v6426_v60 = vld [vmem:[#allocation10 + $0xfa8] sm:$0xff] }
 0x55c   :  { %9122 = vmatprep.subr.bf16.mxu0 %v13207_v10  ;;  %9286 = vmatprep.subr.bf16.mxu1 %v13209_v11  ;;  %v13265_v10 = vcombine.high %v6374_v48, %v6378_v4  ;;  %v6381_v11 = vld [vmem:[#allocation10 + $0xe40] sm:$0xff] }
 0x55e   :  { %9123 = vmatpush1.bf16.msra.mxu0 %v13206_v15  ;;  %9287 = vmatpush1.bf16.msra.mxu1 %v13208_v16  ;;  %v13262_v15 = vcombine.low %v6373_v1, %v6377_v3  ;;  %v13264_v16 = vcombine.low %v6374_v48, %v6378_v4  ;;  %v6429_v1 = vld [vmem:[#allocation10 + $0xfc0] sm:$0xff]  ;;  %v6430_v48 = vld [vmem:[#allocation10 + $0xfc8] sm:$0xff] }
 0x55f   :  { %9124 = vmatprep.subr.bf16.mxu0 %v13215_v17  ;;  %9288 = vmatprep.subr.bf16.mxu1 %v13217_v18  ;;  %v13271_v17 = vcombine.high %v6381_v11, %v6385_v12  ;;  %v13273_v18 = vcombine.high %v6382_v25, %v6386_v13  ;;  %v6433_v3 = vld [vmem:[#allocation10 + $0xfe0] sm:$0xff]  ;;  %v6434_v4 = vld [vmem:[#allocation10 + $0xfe8] sm:$0xff] }
 0x562   :  { %9125 = vmatpush1.bf16.msra.mxu0 %v13214_v22  ;;  %9289 = vmatpush1.bf16.msra.mxu1 %v13216_v23  ;;  %v13270_v22 = vcombine.low %v6381_v11, %v6385_v12  ;;  %v13272_v23 = vcombine.low %v6382_v25, %v6386_v13  ;;  %v5927_v11 = vld [vmem:[#allocation10 + $0x10] sm:$0xff]  ;;  %v5928_v25 = vld [vmem:[#allocation10 + $0x18] sm:$0xff] }
 0x563   :  { %9126 = vmatprep.subr.bf16.mxu0 %v13223_v24  ;;  %9290 = vmatprep.subr.bf16.mxu1 %v13225_v28  ;;  %v13279_v24 = vcombine.high %v6389_v2, %v6393_v19  ;;  %v13281_v28 = vcombine.high %v6390_v20, %v6394_v5  ;;  %v5931_v12 = vld [vmem:[#allocation10 + $0x30] sm:$0xff]  ;;  %v5932_v13 = vld [vmem:[#allocation10 + $0x38] sm:$0xff] }
 0x566   :  { %9127 = vmatpush1.bf16.msra.mxu0 %v13222_v32  ;;  %9291 = vmatpush1.bf16.msra.mxu1 %v13224_v33  ;;  %v13278_v32 = vcombine.low %v6389_v2, %v6393_v19  ;;  %v13280_v33 = vcombine.low %v6390_v20, %v6394_v5  ;;  %v12821_v2 = vcombine.high %v5928_v25, %v5932_v13  ;;  %v5935_v19 = vld [vmem:[#allocation10 + $0x50] sm:$0xff]  ;;  %v5936_v5 = vld [vmem:[#allocation10 + $0x58] sm:$0xff] }
 0x567   :  { %9128 = vmatprep.subr.bf16.mxu0 %v13231_v62  ;;  %9292 = vmatprep.subr.bf16.mxu1 %v13233_v36  ;;  %v13287_v62 = vcombine.high %v6397_v29, %v6401_v27  ;;  %v13289_v36 = vcombine.high %v6398_v30, %v6402_v21  ;;  %v5939_v20 = vld [vmem:[#allocation10 + $0x70] sm:$0xff] }
 0x56a   :  { %9129 = vmatpush1.bf16.msra.mxu0 %v13230_v41  ;;  %9293 = vmatpush1.bf16.msra.mxu1 %v13232_v42  ;;  %v13286_v41 = vcombine.low %v6397_v29, %v6401_v27  ;;  %v13288_v42 = vcombine.low %v6398_v30, %v6402_v21  ;;  %v12827_v29 = vcombine.high %v5935_v19, %v5939_v20  ;;  %v5943_v30 = vld [vmem:[#allocation10 + $0x90] sm:$0xff]  ;;  %v5944_v21 = vld [vmem:[#allocation10 + $0x98] sm:$0xff] }
 0x56b   :  { %9130 = vmatprep.subr.bf16.mxu0 %v13239_v63  ;;  %9294 = vmatprep.subr.bf16.mxu1 %v13241_v44  ;;  %v13295_v63 = vcombine.high %v6405_v34, %v6409_v37  ;;  %v13297_v44 = vcombine.high %v6406_v39, %v6410_v57 }
 0x56e   :  { %9131 = vmatpush1.bf16.msra.mxu0 %v13238_v51  ;;  %9295 = vmatpush1.bf16.msra.mxu1 %v13240_v58  ;;  %v13294_v51 = vcombine.low %v6405_v34, %v6409_v37  ;;  %v13296_v58 = vcombine.low %v6406_v39, %v6410_v57  ;;  %v5951_v37 = vld [vmem:[#allocation10 + $0xd0] sm:$0xff]  ;;  %v5952_v57 = vld [vmem:[#allocation10 + $0xd8] sm:$0xff] }
 0x56f   :  { %9132 = vmatprep.subr.bf16.mxu0 %v13247_v52  ;;  %9296 = vmatprep.subr.bf16.mxu1 %v13249_v8  ;;  %v13303_v52 = vcombine.high %v6413_v47, %v6417_v45  ;;  %v13305_v8 = vcombine.high %v6414_v46, %v6418_v50  ;;  %v5955_v39 = vld [vmem:[#allocation10 + $0xf0] sm:$0xff] }
 0x572   :  { %9133 = vmatpush1.bf16.msra.mxu0 %v13246_v61  ;;  %9297 = vmatpush1.bf16.msra.mxu1 %v13248_v26  ;;  %v13302_v61 = vcombine.low %v6413_v47, %v6417_v45  ;;  %v13304_v26 = vcombine.low %v6414_v46, %v6418_v50  ;;  %v5959_v45 = vld [vmem:[#allocation10 + $0x110] sm:$0xff]  ;;  %v5964_v50 = vld [vmem:[#allocation10 + $0x138] sm:$0xff] }
 0x573   :  { %9134 = vmatprep.subr.bf16.mxu0 %v13255_v0  ;;  %9298 = vmatprep.subr.bf16.mxu1 %v13257_v40  ;;  %v13311_v0 = vcombine.high %v6421_v54, %v6425_v55  ;;  %v13313_v40 = vcombine.high %v6422_v56, %v6426_v60  ;;  %v5963_v46 = vld [vmem:[#allocation10 + $0x130] sm:$0xff] }
 0x576   :  { %9135 = vmatpush1.bf16.msra.mxu0 %v13254_v6  ;;  %9299 = vmatpush1.bf16.msra.mxu1 %v13256_v7  ;;  %v13310_v6 = vcombine.low %v6421_v54, %v6425_v55  ;;  %v13312_v7 = vcombine.low %v6422_v56, %v6426_v60  ;;  %v5967_v54 = vld [vmem:[#allocation10 + $0x150] sm:$0xff]  ;;  %v5968_v56 = vld [vmem:[#allocation10 + $0x158] sm:$0xff] }
 0x577   :  { %9136 = vmatprep.subr.bf16.mxu0 %v13263_v9  ;;  %9300 = vmatprep.subr.bf16.mxu1 %v13265_v10  ;;  %v13319_v9 = vcombine.high %v6429_v1, %v6433_v3  ;;  %v13321_v10 = vcombine.high %v6430_v48, %v6434_v4  ;;  %v5971_v55 = vld [vmem:[#allocation10 + $0x170] sm:$0xff]  ;;  %v5972_v60 = vld [vmem:[#allocation10 + $0x178] sm:$0xff] }
 0x57a   :  { %9137 = vmatpush1.bf16.msra.mxu0 %v13262_v15  ;;  %9301 = vmatpush1.bf16.msra.mxu1 %v13264_v16  ;;  %v13318_v15 = vcombine.low %v6429_v1, %v6433_v3  ;;  %v13320_v16 = vcombine.low %v6430_v48, %v6434_v4  ;;  %v5975_v1 = vld [vmem:[#allocation10 + $0x190] sm:$0xff]  ;;  %v5976_v48 = vld [vmem:[#allocation10 + $0x198] sm:$0xff] }
 0x57b   :  { %9138 = vmatprep.subr.bf16.mxu0 %v13271_v17  ;;  %9302 = vmatprep.subr.bf16.mxu1 %v13273_v18  ;;  %v5915_v17 = vmax.f32 %v14912_v53, 0.0  ;;  %v12819_v18 = vcombine.high %v5927_v11, %v5931_v12  ;;  %v5947_v53 = vld [vmem:[#allocation10 + $0xb0] sm:$0xff]  ;;  %v5980_v4 = vld [vmem:[#allocation10 + $0x1b8] sm:$0xff] }
 0x57c   :  { %v5979_v3 = vld [vmem:[#allocation10 + $0x1b0] sm:$0xff] }
 0x57e   :  { %9139 = vmatpush1.bf16.msra.mxu0 %v13270_v22  ;;  %9303 = vmatpush1.bf16.msra.mxu1 %v13272_v23  ;;  %v5940_v22 = vld [vmem:[#allocation10 + $0x78] sm:$0xff]  ;;  %v12818_v23 = vcombine.low %v5927_v11, %v5931_v12  ;;  %v5983_v11 = vld [vmem:[#allocation10 + $0x1d0] sm:$0xff] }
 0x57f   :  { %9140 = vmatprep.subr.bf16.mxu0 %v13279_v24  ;;  %9304 = vmatprep.subr.bf16.mxu1 %v13281_v28  ;;  %v14927_v24 = vpack.c.bf16 %v5915_v17, %v5915_v17  ;;  %v12820_v28 = vcombine.low %v5928_v25, %v5932_v13  ;;  %v12829_v27 = vcombine.high %v5936_v5, %v5940_v22  ;;  %v5987_v12 = vld [vmem:[#allocation10 + $0x1f0] sm:$0xff]  ;;  %v5984_v25 = vld [vmem:[#allocation10 + $0x1d8] sm:$0xff] }
 0x580   :  { %v5988_v13 = vld [vmem:[#allocation10 + $0x1f8] sm:$0xff]  ;;  %v12875_v17 = vcombine.high %v5983_v11, %v5987_v12 }
 0x582   :  { %9141 = vmatpush1.bf16.msra.mxu0 %v13278_v32  ;;  %9305 = vmatpush1.bf16.msra.mxu1 %v13280_v33  ;;  %v5948_v32 = vld [vmem:[#allocation10 + $0xb8] sm:$0xff]  ;;  %v12826_v33 = vcombine.low %v5935_v19, %v5939_v20  ;;  %v5995_v19 = vld [vmem:[#allocation10 + $0x230] sm:$0xff] }
 0x583   :  { %9142 = vmatprep.subr.bf16.mxu0 %v13287_v62  ;;  %9306 = vmatprep.subr.bf16.mxu1 %v13289_v36  ;;  %v12828_v62 = vcombine.low %v5936_v5, %v5940_v22  ;;  %v12835_v36 = vcombine.high %v5943_v30, %v5947_v53  ;;  %v12837_v34 = vcombine.high %v5944_v21, %v5948_v32  ;;  %v5992_v20 = vld [vmem:[#allocation10 + $0x218] sm:$0xff] }
 0x584   :  { %v5996_v5 = vld [vmem:[#allocation10 + $0x238] sm:$0xff]  ;;  %v12874_v22 = vcombine.low %v5983_v11, %v5987_v12  ;;  %v6043_v11 = vld [vmem:[#allocation10 + $0x3b0] sm:$0xff] }
 0x585   :  { %v6040_v12 = vld [vmem:[#allocation10 + $0x398] sm:$0xff] }
 0x586   :  { %9143 = vmatpush1.bf16.msra.mxu0 %v13286_v41  ;;  %9307 = vmatpush1.bf16.msra.mxu1 %v13288_v42  ;;  %v5956_v41 = vld [vmem:[#allocation10 + $0xf8] sm:$0xff]  ;;  %v12834_v42 = vcombine.low %v5943_v30, %v5947_v53  ;;  %v6003_v30 = vld [vmem:[#allocation10 + $0x270] sm:$0xff] }
 0x587   :  { %9144 = vmatprep.subr.bf16.mxu0 %v13295_v63  ;;  %9308 = vmatprep.subr.bf16.mxu1 %v13297_v44  ;;  %v12836_v63 = vcombine.low %v5944_v21, %v5948_v32  ;;  %v12843_v44 = vcombine.high %v5951_v37, %v5955_v39  ;;  %v12845_v47 = vcombine.high %v5952_v57, %v5956_v41  ;;  %v6000_v53 = vld [vmem:[#allocation10 + $0x258] sm:$0xff] }
 0x588   :  { %v6004_v21 = vld [vmem:[#allocation10 + $0x278] sm:$0xff] }
 0x58a   :  { %9145 = vmatpush1.bf16.msra.mxu0 %v13294_v51  ;;  %9309 = vmatpush1.bf16.msra.mxu1 %v13296_v58  ;;  %v12842_v51 = vcombine.low %v5951_v37, %v5955_v39  ;;  %v12844_v58 = vcombine.low %v5952_v57, %v5956_v41  ;;  %v6011_v37 = vld [vmem:[#allocation10 + $0x2b0] sm:$0xff]  ;;  %v6008_v39 = vld [vmem:[#allocation10 + $0x298] sm:$0xff] }
 0x58b   :  { %9146 = vmatprep.subr.bf16.mxu0 %v13303_v52  ;;  %9310 = vmatprep.subr.bf16.mxu1 %v13305_v8  ;;  %v12851_v52 = vcombine.high %v5959_v45, %v5963_v46  ;;  %v6012_v57 = vld [vmem:[#allocation10 + $0x2b8] sm:$0xff] }
 0x58e   :  { %9147 = vmatpush1.bf16.msra.mxu0 %v13302_v61  ;;  %9311 = vmatpush1.bf16.msra.mxu1 %v13304_v26  ;;  %v12850_v61 = vcombine.low %v5959_v45, %v5963_v46  ;;  %v6019_v45 = vld [vmem:[#allocation10 + $0x2f0] sm:$0xff]  ;;  %v6016_v46 = vld [vmem:[#allocation10 + $0x2d8] sm:$0xff] }
 0x58f   :  { %9148 = vmatprep.subr.bf16.mxu0 %v13311_v0  ;;  %9312 = vmatprep.subr.bf16.mxu1 %v13313_v40  ;;  %v12859_v0 = vcombine.high %v5967_v54, %v5971_v55  ;;  %v12861_v40 = vcombine.high %v5968_v56, %v5972_v60 }
 0x592   :  { %9149 = vmatpush1.bf16.msra.mxu0 %v13310_v6  ;;  %9313 = vmatpush1.bf16.msra.mxu1 %v13312_v7  ;;  %v12858_v6 = vcombine.low %v5967_v54, %v5971_v55  ;;  %v12860_v7 = vcombine.low %v5968_v56, %v5972_v60  ;;  %v6027_v54 = vld [vmem:[#allocation10 + $0x330] sm:$0xff]  ;;  %v6024_v55 = vld [vmem:[#allocation10 + $0x318] sm:$0xff] }
 0x593   :  { %9150 = vmatprep.subr.bf16.mxu0 %v13319_v9  ;;  %9314 = vmatprep.subr.bf16.mxu1 %v13321_v10  ;;  %v12867_v9 = vcombine.high %v5975_v1, %v5979_v3  ;;  %v12869_v10 = vcombine.high %v5976_v48, %v5980_v4  ;;  %v6028_v56 = vld [vmem:[#allocation10 + $0x338] sm:$0xff] }
 0x596   :  { %9151 = vmatpush1.bf16.msra.mxu0 %v13318_v15  ;;  %9315 = vmatpush1.bf16.msra.mxu1 %v13320_v16  ;;  %v12866_v15 = vcombine.low %v5975_v1, %v5979_v3  ;;  %v12868_v16 = vcombine.low %v5976_v48, %v5980_v4  ;;  %v6035_v1 = vld [vmem:[#allocation10 + $0x370] sm:$0xff]  ;;  %v6032_v3 = vld [vmem:[#allocation10 + $0x358] sm:$0xff] }
 0x597   :  { %9325 = vmatprep.subr.bf16.mxu0 %v12819_v18  ;;  %9489 = vmatprep.subr.bf16.mxu1 %v12821_v2  ;;  %v12877_v18 = vcombine.high %v5984_v25, %v5988_v13  ;;  %v5991_v2 = vld [vmem:[#allocation10 + $0x210] sm:$0xff]  ;;  %v6036_v48 = vld [vmem:[#allocation10 + $0x378] sm:$0xff] }
 0x598   :  { %v12882_v32 = vcombine.low %v5991_v2, %v5995_v19 }
 0x599   :  { %9153 = vmatmul.mubr.bf16.vlgmr.msra.gmra.mrb[16].mxu0 %v14927_v24  ;;  %9317 = vmatmul.mubr.bf16.vlgmr.msra.gmra.mrb[24].mxu1 %v14927_v24 }
 0x59a   :  { %9326 = vmatpush1.bf16.msra.mxu0 %v12818_v23  ;;  %9357 = vmatprep.mubr.bf16.mxu0 %v14891_v31  ;;  %v12876_v23 = vcombine.low %v5984_v25, %v5988_v13  ;;  %v6044_v25 = vld [vmem:[#allocation10 + $0x3b8] sm:$0xff] }
 0x59b   :  { %9490 = vmatpush1.bf16.msra.mxu1 %v12820_v28  ;;  %9521 = vmatprep.mubr.bf16.mxu1 %v14891_v31  ;;  %v5960_v31 = vld [vmem:[#allocation10 + $0x118] sm:$0xff]  ;;  %v12883_v28 = vcombine.high %v5991_v2, %v5995_v19  ;;  %v6051_v2 = vld [vmem:[#allocation10 + $0x3f0] sm:$0xff] }
 0x59c   :  { %9327 = vmatprep.subr.bf16.mxu0 %v12827_v29  ;;  %9491 = vmatprep.subr.bf16.mxu1 %v12829_v27  ;;  %v12853_v8 = vcombine.high %v5960_v31, %v5964_v50  ;;  %v12852_v26 = vcombine.low %v5960_v31, %v5964_v50  ;;  %v12885_v29 = vcombine.high %v5992_v20, %v5996_v5  ;;  %v5999_v27 = vld [vmem:[#allocation10 + $0x250] sm:$0xff]  ;;  %v6020_v31 = vld [vmem:[#allocation10 + $0x2f8] sm:$0xff] }
 0x59d   :  { %v12890_v41 = vcombine.low %v5999_v27, %v6003_v30  ;;  %v6048_v19 = vld [vmem:[#allocation10 + $0x3d8] sm:$0xff] }
 0x59e   :  { %9328 = vmatpush1.bf16.msra.mxu0 %v12826_v33  ;;  %v12884_v33 = vcombine.low %v5992_v20, %v5996_v5  ;;  %v6052_v20 = vld [vmem:[#allocation10 + $0x3f8] sm:$0xff] }
 0x59f   :  { %9492 = vmatpush1.bf16.msra.mxu1 %v12828_v62  ;;  %9329 = vmatprep.subr.bf16.mxu0 %v12835_v36  ;;  %v12891_v62 = vcombine.high %v5999_v27, %v6003_v30  ;;  %v12893_v36 = vcombine.high %v6000_v53, %v6004_v21  ;;  %v6059_v27 = vld [vmem:[#allocation10 + $0x430] sm:$0xff]  ;;  %v6056_v30 = vld [vmem:[#allocation10 + $0x418] sm:$0xff] }
 0x5a0   :  { %9493 = vmatprep.subr.bf16.mxu1 %v12837_v34  ;;  %v6007_v34 = vld [vmem:[#allocation10 + $0x290] sm:$0xff] }
 0x5a1   :  { %v12898_v50 = vcombine.low %v6007_v34, %v6011_v37 }
 0x5a2   :  { %9330 = vmatpush1.bf16.msra.mxu0 %v12834_v42  ;;  %v12892_v42 = vcombine.low %v6000_v53, %v6004_v21  ;;  %v6060_v53 = vld [vmem:[#allocation10 + $0x438] sm:$0xff] }
 0x5a3   :  { %9494 = vmatpush1.bf16.msra.mxu1 %v12836_v63  ;;  %9331 = vmatprep.subr.bf16.mxu0 %v12843_v44  ;;  %v12899_v63 = vcombine.high %v6007_v34, %v6011_v37  ;;  %v12901_v44 = vcombine.high %v6008_v39, %v6012_v57  ;;  %v6067_v34 = vld [vmem:[#allocation10 + $0x470] sm:$0xff] }
 0x5a4   :  { %9495 = vmatprep.subr.bf16.mxu1 %v12845_v47  ;;  %v6015_v47 = vld [vmem:[#allocation10 + $0x2d0] sm:$0xff] }
 0x5a5   :  { %v12906_v60 = vcombine.low %v6015_v47, %v6019_v45 }
 0x5a6   :  { %9332 = vmatpush1.bf16.msra.mxu0 %v12842_v51  ;;  %v12900_v51 = vcombine.low %v6008_v39, %v6012_v57  ;;  %v6064_v39 = vld [vmem:[#allocation10 + $0x458] sm:$0xff] }
 0x5a7   :  { %9496 = vmatpush1.bf16.msra.mxu1 %v12844_v58  ;;  %9333 = vmatprep.subr.bf16.mxu0 %v12851_v52  ;;  %v12907_v58 = vcombine.high %v6015_v47, %v6019_v45  ;;  %v12909_v52 = vcombine.high %v6016_v46, %v6020_v31  ;;  %v6068_v57 = vld [vmem:[#allocation10 + $0x478] sm:$0xff] }
 0x5a8   :  { %9497 = vmatprep.subr.bf16.mxu1 %v12853_v8  ;;  %v6023_v8 = vld [vmem:[#allocation10 + $0x310] sm:$0xff]  ;;  %v12957_v47 = vcombine.high %v6064_v39, %v6068_v57  ;;  %v6072_v45 = vld [vmem:[#allocation10 + $0x498] sm:$0xff] }
 0x5a9   :  { %v12914_v4 = vcombine.low %v6023_v8, %v6027_v54 }
 0x5aa   :  { %9334 = vmatpush1.bf16.msra.mxu0 %v12850_v61  ;;  %v12908_v61 = vcombine.low %v6016_v46, %v6020_v31  ;;  %v6076_v46 = vld [vmem:[#allocation10 + $0x4b8] sm:$0xff] }
 0x5ab   :  { %9498 = vmatpush1.bf16.msra.mxu1 %v12852_v26  ;;  %9335 = vmatprep.subr.bf16.mxu0 %v12859_v0  ;;  %v12915_v26 = vcombine.high %v6023_v8, %v6027_v54  ;;  %v12917_v0 = vcombine.high %v6024_v55, %v6028_v56  ;;  %v6083_v8 = vld [vmem:[#allocation10 + $0x4f0] sm:$0xff]  ;;  %v6080_v54 = vld [vmem:[#allocation10 + $0x4d8] sm:$0xff] }
 0x5ac   :  { %9499 = vmatprep.subr.bf16.mxu1 %v12861_v40  ;;  %v6031_v40 = vld [vmem:[#allocation10 + $0x350] sm:$0xff] }
 0x5ad   :  { %v12922_v13 = vcombine.low %v6031_v40, %v6035_v1 }
 0x5ae   :  { %9336 = vmatpush1.bf16.msra.mxu0 %v12858_v6  ;;  %v12916_v6 = vcombine.low %v6024_v55, %v6028_v56  ;;  %v6084_v55 = vld [vmem:[#allocation10 + $0x4f8] sm:$0xff] }
 0x5af   :  { %9500 = vmatpush1.bf16.msra.mxu1 %v12860_v7  ;;  %9337 = vmatprep.subr.bf16.mxu0 %v12867_v9  ;;  %v12923_v7 = vcombine.high %v6031_v40, %v6035_v1  ;;  %v12925_v9 = vcombine.high %v6032_v3, %v6036_v48  ;;  %v6088_v40 = vld [vmem:[#allocation10 + $0x518] sm:$0xff] }
 0x5b0   :  { %9501 = vmatprep.subr.bf16.mxu1 %v12869_v10  ;;  %v6039_v10 = vld [vmem:[#allocation10 + $0x390] sm:$0xff]  ;;  %v6092_v1 = vld [vmem:[#allocation10 + $0x538] sm:$0xff] }
 0x5b1   :  { %v12930_v5 = vcombine.low %v6039_v10, %v6043_v11 }
 0x5b2   :  { %9338 = vmatpush1.bf16.msra.mxu0 %v12866_v15  ;;  %v12924_v15 = vcombine.low %v6032_v3, %v6036_v48  ;;  %v12972_v3 = vcombine.low %v6080_v54, %v6084_v55 }
 0x5b3   :  { %9502 = vmatpush1.bf16.msra.mxu1 %v12868_v16  ;;  %9339 = vmatprep.subr.bf16.mxu0 %v12875_v17  ;;  %v12931_v16 = vcombine.high %v6039_v10, %v6043_v11  ;;  %v12933_v17 = vcombine.high %v6040_v12, %v6044_v25  ;;  %v6100_v10 = vld [vmem:[#allocation10 + $0x578] sm:$0xff] }
 0x5b4   :  { %9503 = vmatprep.subr.bf16.mxu1 %v12877_v18  ;;  %v6047_v18 = vld [vmem:[#allocation10 + $0x3d0] sm:$0xff] }
 0x5b5   :  { %v12938_v21 = vcombine.low %v6047_v18, %v6051_v2 }
 0x5b6   :  { %9340 = vmatpush1.bf16.msra.mxu0 %v12874_v22  ;;  %v12932_v22 = vcombine.low %v6040_v12, %v6044_v25  ;;  %v12980_v12 = vcombine.low %v6088_v40, %v6092_v1 }
 0x5b7   :  { %9504 = vmatpush1.bf16.msra.mxu1 %v12876_v23  ;;  %9341 = vmatprep.subr.bf16.mxu0 %v12883_v28  ;;  %v12939_v23 = vcombine.high %v6047_v18, %v6051_v2  ;;  %v12941_v28 = vcombine.high %v6048_v19, %v6052_v20  ;;  %v6108_v18 = vld [vmem:[#allocation10 + $0x5b8] sm:$0xff] }
 0x5b8   :  { %9505 = vmatprep.subr.bf16.mxu1 %v12885_v29  ;;  %v6055_v29 = vld [vmem:[#allocation10 + $0x410] sm:$0xff] }
 0x5b9   :  { %v12946_v37 = vcombine.low %v6055_v29, %v6059_v27 }
 0x5ba   :  { %9342 = vmatpush1.bf16.msra.mxu0 %v12882_v32  ;;  %v12940_v32 = vcombine.low %v6048_v19, %v6052_v20 }
 0x5bb   :  { %9506 = vmatpush1.bf16.msra.mxu1 %v12884_v33  ;;  %9343 = vmatprep.subr.bf16.mxu0 %v12891_v62  ;;  %v12947_v33 = vcombine.high %v6055_v29, %v6059_v27  ;;  %v12949_v62 = vcombine.high %v6056_v30, %v6060_v53  ;;  %v6116_v29 = vld [vmem:[#allocation10 + $0x5f8] sm:$0xff] }
 0x5bc   :  { %9507 = vmatprep.subr.bf16.mxu1 %v12893_v36  ;;  %v6063_v36 = vld [vmem:[#allocation10 + $0x450] sm:$0xff] }
 0x5bd   :  { %v12954_v31 = vcombine.low %v6063_v36, %v6067_v34 }
 0x5be   :  { %9344 = vmatpush1.bf16.msra.mxu0 %v12890_v41  ;;  %v12948_v41 = vcombine.low %v6056_v30, %v6060_v53 }
 0x5bf   :  { %9508 = vmatpush1.bf16.msra.mxu1 %v12892_v42  ;;  %9345 = vmatprep.subr.bf16.mxu0 %v12899_v63  ;;  %v12955_v42 = vcombine.high %v6063_v36, %v6067_v34  ;;  %v6071_v63 = vld [vmem:[#allocation10 + $0x490] sm:$0xff]  ;;  %v6124_v36 = vld [vmem:[#allocation10 + $0x638] sm:$0xff] }
 0x5c0   :  { %9509 = vmatprep.subr.bf16.mxu1 %v12901_v44  ;;  %v6075_v44 = vld [vmem:[#allocation10 + $0x4b0] sm:$0xff] }
 0x5c1   :  { %v12962_v56 = vcombine.low %v6071_v63, %v6075_v44 }
 0x5c2   :  { %9346 = vmatpush1.bf16.msra.mxu0 %v12898_v50  ;;  %v12956_v50 = vcombine.low %v6064_v39, %v6068_v57 }
 0x5c3   :  { %9510 = vmatpush1.bf16.msra.mxu1 %v12900_v51  ;;  %9347 = vmatprep.subr.bf16.mxu0 %v12907_v58  ;;  %v12963_v51 = vcombine.high %v6071_v63, %v6075_v44  ;;  %v12965_v58 = vcombine.high %v6072_v45, %v6076_v46  ;;  %v6128_v63 = vld [vmem:[#allocation10 + $0x658] sm:$0xff] }
 0x5c4   :  { %9511 = vmatprep.subr.bf16.mxu1 %v12909_v52  ;;  %v6079_v52 = vld [vmem:[#allocation10 + $0x4d0] sm:$0xff]  ;;  %v6132_v44 = vld [vmem:[#allocation10 + $0x678] sm:$0xff] }
 0x5c6   :  { %9348 = vmatpush1.bf16.msra.mxu0 %v12906_v60  ;;  %v12971_v60 = vcombine.high %v6079_v52, %v6083_v8 }
 0x5c7   :  { %9512 = vmatpush1.bf16.msra.mxu1 %v12908_v61  ;;  %9349 = vmatprep.subr.bf16.mxu0 %v12915_v26  ;;  %v12973_v61 = vcombine.high %v6080_v54, %v6084_v55  ;;  %v6087_v26 = vld [vmem:[#allocation10 + $0x510] sm:$0xff]  ;;  %v13020_v54 = vcombine.low %v6128_v63, %v6132_v44 }
 0x5c8   :  { %9513 = vmatprep.subr.bf16.mxu1 %v12917_v0  ;;  %v6091_v0 = vld [vmem:[#allocation10 + $0x530] sm:$0xff] }
 0x5c9   :  { %v12979_v48 = vcombine.high %v6087_v26, %v6091_v0  ;;  %v12978_v11 = vcombine.low %v6087_v26, %v6091_v0  ;;  %v6148_v26 = vld [vmem:[#allocation10 + $0x6f8] sm:$0xff] }
 0x5ca   :  { %9350 = vmatpush1.bf16.msra.mxu0 %v12914_v4  ;;  %v12981_v4 = vcombine.high %v6088_v40, %v6092_v1 }
 0x5cb   :  { %9514 = vmatpush1.bf16.msra.mxu1 %v12916_v6  ;;  %9351 = vmatprep.subr.bf16.mxu0 %v12923_v7  ;;  %v6095_v6 = vld [vmem:[#allocation10 + $0x550] sm:$0xff] }
 0x5cc   :  { %9515 = vmatprep.subr.bf16.mxu1 %v12925_v9  ;;  %v6099_v7 = vld [vmem:[#allocation10 + $0x570] sm:$0xff]  ;;  %v6096_v9 = vld [vmem:[#allocation10 + $0x558] sm:$0xff] }
 0x5cd   :  { %v12987_v25 = vcombine.high %v6095_v6, %v6099_v7  ;;  %v12986_v2 = vcombine.low %v6095_v6, %v6099_v7  ;;  %v12988_v19 = vcombine.low %v6096_v9, %v6100_v10  ;;  %v6156_v6 = vld [vmem:[#allocation10 + $0x738] sm:$0xff] }
 0x5ce   :  { %9352 = vmatpush1.bf16.msra.mxu0 %v12922_v13  ;;  %v12989_v13 = vcombine.high %v6096_v9, %v6100_v10 }
 0x5cf   :  { %9516 = vmatpush1.bf16.msra.mxu1 %v12924_v15  ;;  %9353 = vmatprep.subr.bf16.mxu0 %v12931_v16  ;;  %v6103_v15 = vld [vmem:[#allocation10 + $0x590] sm:$0xff] }
 0x5d0   :  { %9517 = vmatprep.subr.bf16.mxu1 %v12933_v17  ;;  %v6107_v16 = vld [vmem:[#allocation10 + $0x5b0] sm:$0xff]  ;;  %v6104_v17 = vld [vmem:[#allocation10 + $0x598] sm:$0xff] }
 0x5d1   :  { %v12995_v20 = vcombine.high %v6103_v15, %v6107_v16  ;;  %v12994_v27 = vcombine.low %v6103_v15, %v6107_v16  ;;  %v12996_v30 = vcombine.low %v6104_v17, %v6108_v18  ;;  %v6164_v15 = vld [vmem:[#allocation10 + $0x778] sm:$0xff] }
 0x5d2   :  { %9354 = vmatpush1.bf16.msra.mxu0 %v12930_v5  ;;  %v12997_v5 = vcombine.high %v6104_v17, %v6108_v18 }
 0x5d3   :  { %9518 = vmatpush1.bf16.msra.mxu1 %v12932_v22  ;;  %9355 = vmatprep.subr.bf16.mxu0 %v12939_v23  ;;  %v6111_v22 = vld [vmem:[#allocation10 + $0x5d0] sm:$0xff] }
 0x5d4   :  { %9519 = vmatprep.subr.bf16.mxu1 %v12941_v28  ;;  %v6115_v23 = vld [vmem:[#allocation10 + $0x5f0] sm:$0xff]  ;;  %v6112_v28 = vld [vmem:[#allocation10 + $0x5d8] sm:$0xff] }
 0x5d5   :  { %v13003_v53 = vcombine.high %v6111_v22, %v6115_v23  ;;  %v13002_v34 = vcombine.low %v6111_v22, %v6115_v23  ;;  %v6172_v22 = vld [vmem:[#allocation10 + $0x7b8] sm:$0xff] }
 0x5d6   :  { %9356 = vmatpush1.bf16.msra.mxu0 %v12938_v21  ;;  %v13005_v21 = vcombine.high %v6112_v28, %v6116_v29 }
 0x5d7   :  { %9520 = vmatpush1.bf16.msra.mxu1 %v12940_v32  ;;  %9366 = vmatprep.subr.bf16.mxu0 %v12947_v33  ;;  %v6119_v32 = vld [vmem:[#allocation10 + $0x610] sm:$0xff] }
 0x5d8   :  { %9530 = vmatprep.subr.bf16.mxu1 %v12949_v62  ;;  %v6123_v33 = vld [vmem:[#allocation10 + $0x630] sm:$0xff]  ;;  %v6120_v62 = vld [vmem:[#allocation10 + $0x618] sm:$0xff] }
 0x5d9   :  { %9358 = vmatmul.mubr.bf16.vlgmr.msra.gmra.mrb[20].mxu0 %v14899_v38  ;;  %v13011_v39 = vcombine.high %v6119_v32, %v6123_v33  ;;  %v13013_v57 = vcombine.high %v6120_v62, %v6124_v36 }
 0x5da   :  { %9522 = vmatmul.mubr.bf16.vlgmr.msra.gmra.mrb[28].mxu1 %v14899_v38  ;;  %9367 = vmatpush1.bf16.msra.mxu0 %v12946_v37  ;;  %v12964_v38 = vcombine.low %v6072_v45, %v6076_v46  ;;  %v13004_v37 = vcombine.low %v6112_v28, %v6116_v29  ;;  %v13012_v45 = vcombine.low %v6120_v62, %v6124_v36 }
 0x5db   :  { %9398 = vmatprep.mubr.bf16.mxu0 %v14901_v43  ;;  %9531 = vmatpush1.bf16.msra.mxu1 %v12948_v41  ;;  %v6127_v41 = vld [vmem:[#allocation10 + $0x650] sm:$0xff] }
 0x5dc   :  { %9562 = vmatprep.mubr.bf16.mxu1 %v14901_v43  ;;  %9368 = vmatprep.subr.bf16.mxu0 %v12955_v42  ;;  %v12970_v43 = vcombine.low %v6079_v52, %v6083_v8  ;;  %v6131_v42 = vld [vmem:[#allocation10 + $0x670] sm:$0xff]  ;;  %v6140_v52 = vld [vmem:[#allocation10 + $0x6b8] sm:$0xff] }
 0x5dd   :  { %9532 = vmatprep.subr.bf16.mxu1 %v12957_v47  ;;  %v13010_v47 = vcombine.low %v6119_v32, %v6123_v33  ;;  %v13019_v46 = vcombine.high %v6127_v41, %v6131_v42  ;;  %v13018_v8 = vcombine.low %v6127_v41, %v6131_v42  ;;  %v6180_v32 = vld [vmem:[#allocation10 + $0x7f8] sm:$0xff] }
 0x5de   :  { %9369 = vmatpush1.bf16.msra.mxu0 %v12954_v31  ;;  %v13021_v31 = vcombine.high %v6128_v63, %v6132_v44  ;;  %v6188_v41 = vld [vmem:[#allocation10 + $0x838] sm:$0xff] }
 0x5df   :  { %9533 = vmatpush1.bf16.msra.mxu1 %v12956_v50  ;;  %9370 = vmatprep.subr.bf16.mxu0 %v12963_v51  ;;  %v6135_v50 = vld [vmem:[#allocation10 + $0x690] sm:$0xff] }
 0x5e0   :  { %9534 = vmatprep.subr.bf16.mxu1 %v12965_v58  ;;  %v6139_v51 = vld [vmem:[#allocation10 + $0x6b0] sm:$0xff]  ;;  %v6136_v58 = vld [vmem:[#allocation10 + $0x698] sm:$0xff] }
 0x5e1   :  { %v13027_v55 = vcombine.high %v6135_v50, %v6139_v51  ;;  %v13026_v0 = vcombine.low %v6135_v50, %v6139_v51  ;;  %v13028_v40 = vcombine.low %v6136_v58, %v6140_v52  ;;  %v6192_v50 = vld [vmem:[#allocation10 + $0x858] sm:$0xff] }
 0x5e2   :  { %9371 = vmatpush1.bf16.msra.mxu0 %v12962_v56  ;;  %v13029_v56 = vcombine.high %v6136_v58, %v6140_v52  ;;  %v6196_v51 = vld [vmem:[#allocation10 + $0x878] sm:$0xff] }
 0x5e3   :  { %9535 = vmatpush1.bf16.msra.mxu1 %v12964_v38  ;;  %9372 = vmatprep.subr.bf16.mxu0 %v12971_v60  ;;  %v6143_v38 = vld [vmem:[#allocation10 + $0x6d0] sm:$0xff] }
 0x5e4   :  { %9536 = vmatprep.subr.bf16.mxu1 %v12973_v61  ;;  %v6147_v60 = vld [vmem:[#allocation10 + $0x6f0] sm:$0xff]  ;;  %v6144_v61 = vld [vmem:[#allocation10 + $0x6d8] sm:$0xff] }
 0x5e5   :  { %v13035_v1 = vcombine.high %v6143_v38, %v6147_v60  ;;  %v13034_v7 = vcombine.low %v6143_v38, %v6147_v60  ;;  %v13036_v9 = vcombine.low %v6144_v61, %v6148_v26  ;;  %v6204_v38 = vld [vmem:[#allocation10 + $0x8b8] sm:$0xff] }
 0x5e6   :  { %9373 = vmatpush1.bf16.msra.mxu0 %v12970_v43  ;;  %v13037_v43 = vcombine.high %v6144_v61, %v6148_v26  ;;  %v13084_v61 = vcombine.low %v6192_v50, %v6196_v51 }
 0x5e7   :  { %9537 = vmatpush1.bf16.msra.mxu1 %v12972_v3  ;;  %9374 = vmatprep.subr.bf16.mxu0 %v12979_v48  ;;  %v6151_v3 = vld [vmem:[#allocation10 + $0x710] sm:$0xff] }
 0x5e8   :  { %9538 = vmatprep.subr.bf16.mxu1 %v12981_v4  ;;  %v6155_v48 = vld [vmem:[#allocation10 + $0x730] sm:$0xff]  ;;  %v6152_v4 = vld [vmem:[#allocation10 + $0x718] sm:$0xff] }
 0x5e9   :  { %v13043_v10 = vcombine.high %v6151_v3, %v6155_v48  ;;  %v13042_v16 = vcombine.low %v6151_v3, %v6155_v48  ;;  %v13044_v17 = vcombine.low %v6152_v4, %v6156_v6  ;;  %v6212_v3 = vld [vmem:[#allocation10 + $0x8f8] sm:$0xff] }
 0x5ea   :  { %9375 = vmatpush1.bf16.msra.mxu0 %v12978_v11  ;;  %v13045_v11 = vcombine.high %v6152_v4, %v6156_v6 }
 0x5eb   :  { %9539 = vmatpush1.bf16.msra.mxu1 %v12980_v12  ;;  %9376 = vmatprep.subr.bf16.mxu0 %v12987_v25  ;;  %v6159_v12 = vld [vmem:[#allocation10 + $0x750] sm:$0xff] }
 0x5ec   :  { %9540 = vmatprep.subr.bf16.mxu1 %v12989_v13  ;;  %v6163_v25 = vld [vmem:[#allocation10 + $0x770] sm:$0xff]  ;;  %v6160_v13 = vld [vmem:[#allocation10 + $0x758] sm:$0xff] }
 0x5ed   :  { %v13051_v18 = vcombine.high %v6159_v12, %v6163_v25  ;;  %v13050_v23 = vcombine.low %v6159_v12, %v6163_v25  ;;  %v13052_v28 = vcombine.low %v6160_v13, %v6164_v15 }
 0x5ee   :  { %9377 = vmatpush1.bf16.msra.mxu0 %v12986_v2  ;;  %v13053_v2 = vcombine.high %v6160_v13, %v6164_v15  ;;  %v6223_v15 = vld [vmem:[#allocation10 + $0x950] sm:$0xff] }
 0x5ef   :  { %9541 = vmatpush1.bf16.msra.mxu1 %v12988_v19  ;;  %9378 = vmatprep.subr.bf16.mxu0 %v12995_v20  ;;  %v6167_v19 = vld [vmem:[#allocation10 + $0x790] sm:$0xff] }
 0x5f0   :  { %9542 = vmatprep.subr.bf16.mxu1 %v12997_v5  ;;  %v6171_v20 = vld [vmem:[#allocation10 + $0x7b0] sm:$0xff]  ;;  %v6168_v5 = vld [vmem:[#allocation10 + $0x798] sm:$0xff] }
 0x5f1   :  { %v13059_v29 = vcombine.high %v6167_v19, %v6171_v20  ;;  %v13058_v33 = vcombine.low %v6167_v19, %v6171_v20  ;;  %v13060_v62 = vcombine.low %v6168_v5, %v6172_v22 }
 0x5f2   :  { %9379 = vmatpush1.bf16.msra.mxu0 %v12994_v27  ;;  %v13061_v27 = vcombine.high %v6168_v5, %v6172_v22  ;;  %v6231_v22 = vld [vmem:[#allocation10 + $0x990] sm:$0xff] }
 0x5f3   :  { %9543 = vmatpush1.bf16.msra.mxu1 %v12996_v30  ;;  %9380 = vmatprep.subr.bf16.mxu0 %v13003_v53  ;;  %v6175_v30 = vld [vmem:[#allocation10 + $0x7d0] sm:$0xff] }
 0x5f4   :  { %9544 = vmatprep.subr.bf16.mxu1 %v13005_v21  ;;  %v6179_v53 = vld [vmem:[#allocation10 + $0x7f0] sm:$0xff]  ;;  %v6176_v21 = vld [vmem:[#allocation10 + $0x7d8] sm:$0xff] }
 0x5f5   :  { %v13067_v36 = vcombine.high %v6175_v30, %v6179_v53  ;;  %v13066_v42 = vcombine.low %v6175_v30, %v6179_v53  ;;  %v13068_v63 = vcombine.low %v6176_v21, %v6180_v32 }
 0x5f6   :  { %9381 = vmatpush1.bf16.msra.mxu0 %v13002_v34  ;;  %v13069_v34 = vcombine.high %v6176_v21, %v6180_v32  ;;  %v6239_v32 = vld [vmem:[#allocation10 + $0x9d0] sm:$0xff] }
 0x5f7   :  { %9545 = vmatpush1.bf16.msra.mxu1 %v13004_v37  ;;  %9382 = vmatprep.subr.bf16.mxu0 %v13011_v39  ;;  %v6183_v37 = vld [vmem:[#allocation10 + $0x810] sm:$0xff] }
 0x5f8   :  { %9546 = vmatprep.subr.bf16.mxu1 %v13013_v57  ;;  %v6187_v39 = vld [vmem:[#allocation10 + $0x830] sm:$0xff]  ;;  %v6184_v57 = vld [vmem:[#allocation10 + $0x818] sm:$0xff] }
 0x5f9   :  { %v13075_v44 = vcombine.high %v6183_v37, %v6187_v39  ;;  %v13076_v58 = vcombine.low %v6184_v57, %v6188_v41 }
 0x5fa   :  { %9383 = vmatpush1.bf16.msra.mxu0 %v13010_v47  ;;  %v13077_v47 = vcombine.high %v6184_v57, %v6188_v41  ;;  %v6247_v41 = vld [vmem:[#allocation10 + $0xa10] sm:$0xff] }
 0x5fb   :  { %9547 = vmatpush1.bf16.msra.mxu1 %v13012_v45  ;;  %9384 = vmatprep.subr.bf16.mxu0 %v13019_v46  ;;  %v6191_v45 = vld [vmem:[#allocation10 + $0x850] sm:$0xff] }
 0x5fc   :  { %9548 = vmatprep.subr.bf16.mxu1 %v13021_v31  ;;  %v6195_v46 = vld [vmem:[#allocation10 + $0x870] sm:$0xff]  ;;  %v13074_v31 = vcombine.low %v6183_v37, %v6187_v39 }
 0x5fd   :  { %v13083_v52 = vcombine.high %v6191_v45, %v6195_v46  ;;  %v13082_v60 = vcombine.low %v6191_v45, %v6195_v46 }
 0x5fe   :  { %9385 = vmatpush1.bf16.msra.mxu0 %v13018_v8  ;;  %v6199_v8 = vld [vmem:[#allocation10 + $0x890] sm:$0xff] }
 0x5ff   :  { %9549 = vmatpush1.bf16.msra.mxu1 %v13020_v54  ;;  %9386 = vmatprep.subr.bf16.mxu0 %v13027_v55  ;;  %v6203_v54 = vld [vmem:[#allocation10 + $0x8b0] sm:$0xff]  ;;  %v13085_v55 = vcombine.high %v6192_v50, %v6196_v51 }
 0x600   :  { %9550 = vmatprep.subr.bf16.mxu1 %v13029_v56  ;;  %v6200_v56 = vld [vmem:[#allocation10 + $0x898] sm:$0xff]  ;;  %v13091_v26 = vcombine.high %v6199_v8, %v6203_v54  ;;  %v13090_v48 = vcombine.low %v6199_v8, %v6203_v54  ;;  %v6255_v50 = vld [vmem:[#allocation10 + $0xa50] sm:$0xff] }
 0x601   :  { %v6259_v51 = vld [vmem:[#allocation10 + $0xa70] sm:$0xff] }
 0x602   :  { %9387 = vmatpush1.bf16.msra.mxu0 %v13026_v0  ;;  %v13093_v0 = vcombine.high %v6200_v56, %v6204_v38 }
 0x603   :  { %9551 = vmatpush1.bf16.msra.mxu1 %v13028_v40  ;;  %9388 = vmatprep.subr.bf16.mxu0 %v13035_v1  ;;  %v6207_v40 = vld [vmem:[#allocation10 + $0x8d0] sm:$0xff] }
 0x604   :  { %9552 = vmatprep.subr.bf16.mxu1 %v13037_v43  ;;  %v6211_v1 = vld [vmem:[#allocation10 + $0x8f0] sm:$0xff]  ;;  %v6208_v43 = vld [vmem:[#allocation10 + $0x8d8] sm:$0xff] }
 0x605   :  { %v13099_v4 = vcombine.high %v6207_v40, %v6211_v1  ;;  %v13101_v6 = vcombine.high %v6208_v43, %v6212_v3  ;;  %v13100_v12 = vcombine.low %v6208_v43, %v6212_v3  ;;  %v6271_v3 = vld [vmem:[#allocation10 + $0xad0] sm:$0xff] }
 0x606   :  { %9389 = vmatpush1.bf16.msra.mxu0 %v13034_v7  ;;  %v6215_v7 = vld [vmem:[#allocation10 + $0x910] sm:$0xff] }
 0x607   :  { %9553 = vmatpush1.bf16.msra.mxu1 %v13036_v9  ;;  %9390 = vmatprep.subr.bf16.mxu0 %v13043_v10  ;;  %v6219_v9 = vld [vmem:[#allocation10 + $0x930] sm:$0xff]  ;;  %v6216_v10 = vld [vmem:[#allocation10 + $0x918] sm:$0xff] }
 0x608   :  { %9554 = vmatprep.subr.bf16.mxu1 %v13045_v11  ;;  %v6220_v11 = vld [vmem:[#allocation10 + $0x938] sm:$0xff]  ;;  %v13107_v25 = vcombine.high %v6215_v7, %v6219_v9 }
 0x609   :  { %v13109_v13 = vcombine.high %v6216_v10, %v6220_v11  ;;  %v13108_v19 = vcombine.low %v6216_v10, %v6220_v11  ;;  %v6279_v11 = vld [vmem:[#allocation10 + $0xb10] sm:$0xff] }
 0x60a   :  { %9391 = vmatpush1.bf16.msra.mxu0 %v13042_v16  ;;  %v6227_v16 = vld [vmem:[#allocation10 + $0x970] sm:$0xff] }
 0x60b   :  { %9555 = vmatpush1.bf16.msra.mxu1 %v13044_v17  ;;  %9392 = vmatprep.subr.bf16.mxu0 %v13051_v18  ;;  %v6224_v17 = vld [vmem:[#allocation10 + $0x958] sm:$0xff]  ;;  %v13115_v20 = vcombine.high %v6223_v15, %v6227_v16 }
 0x60c   :  { %9556 = vmatprep.subr.bf16.mxu1 %v13053_v2  ;;  %v6228_v18 = vld [vmem:[#allocation10 + $0x978] sm:$0xff]  ;;  %v13106_v2 = vcombine.low %v6215_v7, %v6219_v9 }
 0x60d   :  { %v13117_v5 = vcombine.high %v6224_v17, %v6228_v18  ;;  %v13116_v30 = vcombine.low %v6224_v17, %v6228_v18  ;;  %v6287_v18 = vld [vmem:[#allocation10 + $0xb50] sm:$0xff] }
 0x60e   :  { %9393 = vmatpush1.bf16.msra.mxu0 %v13050_v23  ;;  %v6235_v23 = vld [vmem:[#allocation10 + $0x9b0] sm:$0xff] }
 0x60f   :  { %9557 = vmatpush1.bf16.msra.mxu1 %v13052_v28  ;;  %9394 = vmatprep.subr.bf16.mxu0 %v13059_v29  ;;  %v6232_v28 = vld [vmem:[#allocation10 + $0x998] sm:$0xff]  ;;  %v13123_v53 = vcombine.high %v6231_v22, %v6235_v23 }
 0x610   :  { %9558 = vmatprep.subr.bf16.mxu1 %v13061_v27  ;;  %v6236_v29 = vld [vmem:[#allocation10 + $0x9b8] sm:$0xff]  ;;  %v13114_v27 = vcombine.low %v6223_v15, %v6227_v16 }
 0x611   :  { %v13125_v21 = vcombine.high %v6232_v28, %v6236_v29  ;;  %v13124_v37 = vcombine.low %v6232_v28, %v6236_v29  ;;  %v6295_v29 = vld [vmem:[#allocation10 + $0xb90] sm:$0xff] }
 0x612   :  { %9395 = vmatpush1.bf16.msra.mxu0 %v13058_v33  ;;  %v6243_v33 = vld [vmem:[#allocation10 + $0x9f0] sm:$0xff] }
 0x613   :  { %9559 = vmatpush1.bf16.msra.mxu1 %v13060_v62  ;;  %9396 = vmatprep.subr.bf16.mxu0 %v13067_v36  ;;  %v6240_v62 = vld [vmem:[#allocation10 + $0x9d8] sm:$0xff]  ;;  %v13131_v39 = vcombine.high %v6239_v32, %v6243_v33 }
 0x614   :  { %9560 = vmatprep.subr.bf16.mxu1 %v13069_v34  ;;  %v6244_v36 = vld [vmem:[#allocation10 + $0x9f8] sm:$0xff]  ;;  %v13122_v34 = vcombine.low %v6231_v22, %v6235_v23 }
 0x615   :  { %v13133_v57 = vcombine.high %v6240_v62, %v6244_v36  ;;  %v13132_v45 = vcombine.low %v6240_v62, %v6244_v36  ;;  %v6303_v36 = vld [vmem:[#allocation10 + $0xbd0] sm:$0xff] }
 0x616   :  { %9397 = vmatpush1.bf16.msra.mxu0 %v13066_v42  ;;  %v6251_v42 = vld [vmem:[#allocation10 + $0xa30] sm:$0xff] }
 0x617   :  { %9561 = vmatpush1.bf16.msra.mxu1 %v13068_v63  ;;  %9407 = vmatprep.subr.bf16.mxu0 %v13075_v44  ;;  %v6248_v63 = vld [vmem:[#allocation10 + $0xa18] sm:$0xff]  ;;  %v13139_v46 = vcombine.high %v6247_v41, %v6251_v42  ;;  %v13138_v8 = vcombine.low %v6247_v41, %v6251_v42 }
 0x618   :  { %9571 = vmatprep.subr.bf16.mxu1 %v13077_v47  ;;  %v6252_v44 = vld [vmem:[#allocation10 + $0xa38] sm:$0xff]  ;;  %v13130_v47 = vcombine.low %v6239_v32, %v6243_v33 }
 0x619   :  { %9399 = vmatmul.mubr.bf16.vlgmr.msra.gmra.mrb[20].mxu0 %v14908_v49  ;;  %v13140_v54 = vcombine.low %v6248_v63, %v6252_v44 }
 0x61a   :  { %9563 = vmatmul.mubr.bf16.vlgmr.msra.gmra.mrb[28].mxu1 %v14908_v49  ;;  %9408 = vmatpush1.bf16.msra.mxu0 %v13074_v31  ;;  %v13092_v49 = vcombine.low %v6200_v56, %v6204_v38  ;;  %v13141_v31 = vcombine.high %v6248_v63, %v6252_v44  ;;  %v6263_v38 = vld [vmem:[#allocation10 + $0xa90] sm:$0xff] }
 0x61b   :  { %9439 = vmatprep.mubr.bf16.mxu0 %v14914_v59  ;;  %9572 = vmatpush1.bf16.msra.mxu1 %v13076_v58  ;;  %v6256_v58 = vld [vmem:[#allocation10 + $0xa58] sm:$0xff]  ;;  %v6311_v44 = vld [vmem:[#allocation10 + $0xc10] sm:$0xff] }
 0x61c   :  { %9603 = vmatprep.mubr.bf16.mxu1 %v14914_v59  ;;  %9409 = vmatprep.subr.bf16.mxu0 %v13083_v52  ;;  %v13098_v59 = vcombine.low %v6207_v40, %v6211_v1  ;;  %v6260_v52 = vld [vmem:[#allocation10 + $0xa78] sm:$0xff] }
 0x61d   :  { %9573 = vmatprep.subr.bf16.mxu1 %v13085_v55  ;;  %v13147_v55 = vcombine.high %v6255_v50, %v6259_v51  ;;  %v13149_v56 = vcombine.high %v6256_v58, %v6260_v52  ;;  %v13148_v40 = vcombine.low %v6256_v58, %v6260_v52  ;;  %v6319_v52 = vld [vmem:[#allocation10 + $0xc50] sm:$0xff] }
 0x61e   :  { %9410 = vmatpush1.bf16.msra.mxu0 %v13082_v60  ;;  %v6267_v60 = vld [vmem:[#allocation10 + $0xab0] sm:$0xff] }
 0x61f   :  { %9574 = vmatpush1.bf16.msra.mxu1 %v13084_v61  ;;  %9411 = vmatprep.subr.bf16.mxu0 %v13091_v26  ;;  %v6264_v61 = vld [vmem:[#allocation10 + $0xa98] sm:$0xff]  ;;  %v13155_v1 = vcombine.high %v6263_v38, %v6267_v60 }
 0x620   :  { %9575 = vmatprep.subr.bf16.mxu1 %v13093_v0  ;;  %v6268_v26 = vld [vmem:[#allocation10 + $0xab8] sm:$0xff]  ;;  %v13146_v0 = vcombine.low %v6255_v50, %v6259_v51 }
 0x621   :  { %v13157_v43 = vcombine.high %v6264_v61, %v6268_v26  ;;  %v13156_v7 = vcombine.low %v6264_v61, %v6268_v26  ;;  %v6327_v61 = vld [vmem:[#allocation10 + $0xc90] sm:$0xff] }
 0x622   :  { %9412 = vmatpush1.bf16.msra.mxu0 %v13090_v48  ;;  %v6275_v48 = vld [vmem:[#allocation10 + $0xaf0] sm:$0xff] }
 0x623   :  { %9576 = vmatpush1.bf16.msra.mxu1 %v13092_v49  ;;  %9413 = vmatprep.subr.bf16.mxu0 %v13099_v4  ;;  %v6272_v49 = vld [vmem:[#allocation10 + $0xad8] sm:$0xff]  ;;  %v13163_v9 = vcombine.high %v6271_v3, %v6275_v48  ;;  %v6331_v26 = vld [vmem:[#allocation10 + $0xcb0] sm:$0xff] }
 0x624   :  { %9577 = vmatprep.subr.bf16.mxu1 %v13101_v6  ;;  %v6276_v4 = vld [vmem:[#allocation10 + $0xaf8] sm:$0xff]  ;;  %v13154_v6 = vcombine.low %v6263_v38, %v6267_v60 }
 0x625   :  { %v13165_v10 = vcombine.high %v6272_v49, %v6276_v4  ;;  %v13164_v15 = vcombine.low %v6272_v49, %v6276_v4  ;;  %v6335_v4 = vld [vmem:[#allocation10 + $0xcd0] sm:$0xff] }
 0x626   :  { %9414 = vmatpush1.bf16.msra.mxu0 %v13098_v59  ;;  %v6283_v59 = vld [vmem:[#allocation10 + $0xb30] sm:$0xff] }
 0x627   :  { %9578 = vmatpush1.bf16.msra.mxu1 %v13100_v12  ;;  %9415 = vmatprep.subr.bf16.mxu0 %v13107_v25  ;;  %v6280_v12 = vld [vmem:[#allocation10 + $0xb18] sm:$0xff]  ;;  %v13171_v16 = vcombine.high %v6279_v11, %v6283_v59 }
 0x628   :  { %9579 = vmatprep.subr.bf16.mxu1 %v13109_v13  ;;  %v6284_v25 = vld [vmem:[#allocation10 + $0xb38] sm:$0xff]  ;;  %v13162_v13 = vcombine.low %v6271_v3, %v6275_v48  ;;  %v13219_v48 = vcombine.high %v6327_v61, %v6331_v26 }
 0x629   :  { %v13173_v17 = vcombine.high %v6280_v12, %v6284_v25  ;;  %v13172_v22 = vcombine.low %v6280_v12, %v6284_v25  ;;  %v6343_v12 = vld [vmem:[#allocation10 + $0xd10] sm:$0xff] }
 0x62a   :  { %9416 = vmatpush1.bf16.msra.mxu0 %v13106_v2  ;;  %v6291_v2 = vld [vmem:[#allocation10 + $0xb70] sm:$0xff] }
 0x62b   :  { %9580 = vmatpush1.bf16.msra.mxu1 %v13108_v19  ;;  %9417 = vmatprep.subr.bf16.mxu0 %v13115_v20  ;;  %v6288_v19 = vld [vmem:[#allocation10 + $0xb58] sm:$0xff]  ;;  %v13179_v23 = vcombine.high %v6287_v18, %v6291_v2  ;;  %v6347_v25 = vld [vmem:[#allocation10 + $0xd30] sm:$0xff] }
 0x62c   :  { %9581 = vmatprep.subr.bf16.mxu1 %v13117_v5  ;;  %v6292_v20 = vld [vmem:[#allocation10 + $0xb78] sm:$0xff]  ;;  %v13170_v5 = vcombine.low %v6279_v11, %v6283_v59 }
 0x62d   :  { %v13181_v28 = vcombine.high %v6288_v19, %v6292_v20  ;;  %v13180_v32 = vcombine.low %v6288_v19, %v6292_v20  ;;  %v6355_v19 = vld [vmem:[#allocation10 + $0xd70] sm:$0xff]  ;;  %v6352_v20 = vld [vmem:[#allocation10 + $0xd58] sm:$0xff] }
 0x62e   :  { %9418 = vmatpush1.bf16.msra.mxu0 %v13114_v27  ;;  %v6299_v27 = vld [vmem:[#allocation10 + $0xbb0] sm:$0xff] }
 0x62f   :  { %9582 = vmatpush1.bf16.msra.mxu1 %v13116_v30  ;;  %9419 = vmatprep.subr.bf16.mxu0 %v13123_v53  ;;  %v6296_v30 = vld [vmem:[#allocation10 + $0xb98] sm:$0xff]  ;;  %v13187_v33 = vcombine.high %v6295_v29, %v6299_v27 }
 0x630   :  { %9583 = vmatprep.subr.bf16.mxu1 %v13125_v21  ;;  %v6300_v53 = vld [vmem:[#allocation10 + $0xbb8] sm:$0xff]  ;;  %v13178_v21 = vcombine.low %v6287_v18, %v6291_v2  ;;  %v6351_v2 = vld [vmem:[#allocation10 + $0xd50] sm:$0xff] }
 0x631   :  { %v13189_v62 = vcombine.high %v6296_v30, %v6300_v53  ;;  %v13188_v41 = vcombine.low %v6296_v30, %v6300_v53  ;;  %v6363_v30 = vld [vmem:[#allocation10 + $0xdb0] sm:$0xff]  ;;  %v6360_v53 = vld [vmem:[#allocation10 + $0xd98] sm:$0xff] }
 0x632   :  { %9420 = vmatpush1.bf16.msra.mxu0 %v13122_v34  ;;  %v6307_v34 = vld [vmem:[#allocation10 + $0xbf0] sm:$0xff] }
 0x633   :  { %9584 = vmatpush1.bf16.msra.mxu1 %v13124_v37  ;;  %9421 = vmatprep.subr.bf16.mxu0 %v13131_v39  ;;  %v6304_v37 = vld [vmem:[#allocation10 + $0xbd8] sm:$0xff]  ;;  %v13195_v42 = vcombine.high %v6303_v36, %v6307_v34 }
 0x634   :  { %9585 = vmatprep.subr.bf16.mxu1 %v13133_v57  ;;  %v6308_v39 = vld [vmem:[#allocation10 + $0xbf8] sm:$0xff]  ;;  %v13186_v57 = vcombine.low %v6295_v29, %v6299_v27  ;;  %v6359_v27 = vld [vmem:[#allocation10 + $0xd90] sm:$0xff] }
 0x635   :  { %v13197_v63 = vcombine.high %v6304_v37, %v6308_v39  ;;  %v13196_v50 = vcombine.low %v6304_v37, %v6308_v39  ;;  %v6367_v39 = vld [vmem:[#allocation10 + $0xdd0] sm:$0xff] }
 0x636   :  { %9422 = vmatpush1.bf16.msra.mxu0 %v13130_v47  ;;  %v6315_v47 = vld [vmem:[#allocation10 + $0xc30] sm:$0xff] }
 0x637   :  { %9586 = vmatpush1.bf16.msra.mxu1 %v13132_v45  ;;  %9423 = vmatprep.subr.bf16.mxu0 %v13139_v46  ;;  %v6312_v45 = vld [vmem:[#allocation10 + $0xc18] sm:$0xff]  ;;  %v13203_v51 = vcombine.high %v6311_v44, %v6315_v47 }
 0x638   :  { %9587 = vmatprep.subr.bf16.mxu1 %v13141_v31  ;;  %v6316_v46 = vld [vmem:[#allocation10 + $0xc38] sm:$0xff]  ;;  %v13194_v31 = vcombine.low %v6303_v36, %v6307_v34 }
 0x639   :  { %v13205_v58 = vcombine.high %v6312_v45, %v6316_v46  ;;  %v13204_v38 = vcombine.low %v6312_v45, %v6316_v46  ;;  %v13250_v46 = vcombine.low %v6359_v27, %v6363_v30 }
 0x63a   :  { %9424 = vmatpush1.bf16.msra.mxu0 %v13138_v8  ;;  %v6323_v8 = vld [vmem:[#allocation10 + $0xc70] sm:$0xff] }
 0x63b   :  { %9588 = vmatpush1.bf16.msra.mxu1 %v13140_v54  ;;  %9425 = vmatprep.subr.bf16.mxu0 %v13147_v55  ;;  %v13202_v54 = vcombine.low %v6311_v44, %v6315_v47  ;;  %v6320_v55 = vld [vmem:[#allocation10 + $0xc58] sm:$0xff]  ;;  %v13211_v60 = vcombine.high %v6319_v52, %v6323_v8 }
 0x63c   :  { %9589 = vmatprep.subr.bf16.mxu1 %v13149_v56  ;;  %v6324_v56 = vld [vmem:[#allocation10 + $0xc78] sm:$0xff] }
 0x63d   :  { %v13212_v3 = vcombine.low %v6320_v55, %v6324_v56  ;;  %v6372_v44 = vld [vmem:[#allocation10 + $0xdf8] sm:$0xff] }
 0x63e   :  { %9426 = vmatpush1.bf16.msra.mxu0 %v13146_v0  ;;  %v13213_v0 = vcombine.high %v6320_v55, %v6324_v56  ;;  %v6376_v55 = vld [vmem:[#allocation10 + $0xe18] sm:$0xff] }
 0x63f   :  { %9590 = vmatpush1.bf16.msra.mxu1 %v13148_v40  ;;  %9427 = vmatprep.subr.bf16.mxu0 %v13155_v1  ;;  %v6328_v40 = vld [vmem:[#allocation10 + $0xc98] sm:$0xff] }
 0x640   :  { %9591 = vmatprep.subr.bf16.mxu1 %v13157_v43  ;;  %v6332_v1 = vld [vmem:[#allocation10 + $0xcb8] sm:$0xff]  ;;  %v13210_v43 = vcombine.low %v6319_v52, %v6323_v8  ;;  %v6375_v8 = vld [vmem:[#allocation10 + $0xe10] sm:$0xff] }
 0x641   :  { %v13221_v49 = vcombine.high %v6328_v40, %v6332_v1  ;;  %v6380_v56 = vld [vmem:[#allocation10 + $0xe38] sm:$0xff] }
 0x642   :  { %9428 = vmatpush1.bf16.msra.mxu0 %v13154_v6  ;;  %v6339_v6 = vld [vmem:[#allocation10 + $0xcf0] sm:$0xff] }
 0x643   :  { %9592 = vmatpush1.bf16.msra.mxu1 %v13156_v7  ;;  %9429 = vmatprep.subr.bf16.mxu0 %v13163_v9  ;;  %v6336_v7 = vld [vmem:[#allocation10 + $0xcd8] sm:$0xff]  ;;  %v13227_v11 = vcombine.high %v6335_v4, %v6339_v6 }
 0x644   :  { %9593 = vmatprep.subr.bf16.mxu1 %v13165_v10  ;;  %v6340_v9 = vld [vmem:[#allocation10 + $0xcf8] sm:$0xff]  ;;  %v13218_v10 = vcombine.low %v6327_v61, %v6331_v26  ;;  %v13269_v26 = vcombine.high %v6376_v55, %v6380_v56 }
 0x645   :  { %v13229_v59 = vcombine.high %v6336_v7, %v6340_v9 }
 0x646   :  { %9430 = vmatpush1.bf16.msra.mxu0 %v13162_v13  ;;  %v6344_v13 = vld [vmem:[#allocation10 + $0xd18] sm:$0xff] }
 0x647   :  { %9594 = vmatpush1.bf16.msra.mxu1 %v13164_v15  ;;  %9431 = vmatprep.subr.bf16.mxu0 %v13171_v16  ;;  %v6348_v15 = vld [vmem:[#allocation10 + $0xd38] sm:$0xff]  ;;  %v13228_v16 = vcombine.low %v6336_v7, %v6340_v9  ;;  %v6395_v7 = vld [vmem:[#allocation10 + $0xeb0] sm:$0xff] }
 0x648   :  { %9595 = vmatprep.subr.bf16.mxu1 %v13173_v17  ;;  %v13235_v17 = vcombine.high %v6343_v12, %v6347_v25  ;;  %v13237_v18 = vcombine.high %v6344_v13, %v6348_v15  ;;  %v6392_v9 = vld [vmem:[#allocation10 + $0xe98] sm:$0xff] }
 0x64a   :  { %9432 = vmatpush1.bf16.msra.mxu0 %v13170_v5  ;;  %v6356_v5 = vld [vmem:[#allocation10 + $0xd78] sm:$0xff] }
 0x64b   :  { %9596 = vmatpush1.bf16.msra.mxu1 %v13172_v22  ;;  %9433 = vmatprep.subr.bf16.mxu0 %v13179_v23  ;;  %v13234_v22 = vcombine.low %v6343_v12, %v6347_v25  ;;  %v13236_v23 = vcombine.low %v6344_v13, %v6348_v15  ;;  %v13245_v29 = vcombine.high %v6352_v20, %v6356_v5  ;;  %v6399_v25 = vld [vmem:[#allocation10 + $0xed0] sm:$0xff]  ;;  %v6400_v15 = vld [vmem:[#allocation10 + $0xed8] sm:$0xff] }
 0x64c   :  { %9597 = vmatprep.subr.bf16.mxu1 %v13181_v28  ;;  %v13243_v28 = vcombine.high %v6351_v2, %v6355_v19  ;;  %v6403_v13 = vld [vmem:[#allocation10 + $0xef0] sm:$0xff] }
 0x64e   :  { %9434 = vmatpush1.bf16.msra.mxu0 %v13178_v21  ;;  %v6364_v21 = vld [vmem:[#allocation10 + $0xdb8] sm:$0xff] }
 0x64f   :  { %9598 = vmatpush1.bf16.msra.mxu1 %v13180_v32  ;;  %9435 = vmatprep.subr.bf16.mxu0 %v13187_v33  ;;  %v13242_v32 = vcombine.low %v6351_v2, %v6355_v19  ;;  %v13244_v33 = vcombine.low %v6352_v20, %v6356_v5  ;;  %v13253_v37 = vcombine.high %v6360_v53, %v6364_v21  ;;  %v6407_v19 = vld [vmem:[#allocation10 + $0xf10] sm:$0xff]  ;;  %v6408_v5 = vld [vmem:[#allocation10 + $0xf18] sm:$0xff] }
 0x650   :  { %9599 = vmatprep.subr.bf16.mxu1 %v13189_v62  ;;  %v13251_v62 = vcombine.high %v6359_v27, %v6363_v30  ;;  %v6411_v20 = vld [vmem:[#allocation10 + $0xf30] sm:$0xff] }
 0x651   :  { %v6415_v30 = vld [vmem:[#allocation10 + $0xf50] sm:$0xff] }
 0x652   :  { %9436 = vmatpush1.bf16.msra.mxu0 %v13186_v57  ;;  %v6371_v57 = vld [vmem:[#allocation10 + $0xdf0] sm:$0xff] }
 0x653   :  { %9600 = vmatpush1.bf16.msra.mxu1 %v13188_v41  ;;  %9437 = vmatprep.subr.bf16.mxu0 %v13195_v42 }
 0x654   :  { %9601 = vmatprep.subr.bf16.mxu1 %v13197_v63  ;;  %v6368_v63 = vld [vmem:[#allocation10 + $0xdd8] sm:$0xff] }
 0x655   :  { %v13261_v52 = vcombine.high %v6368_v63, %v6372_v44 }
 0x656   :  { %9438 = vmatpush1.bf16.msra.mxu0 %v13194_v31 }
 0x657   :  { %9602 = vmatpush1.bf16.msra.mxu1 %v13196_v50  ;;  %9448 = vmatprep.subr.bf16.mxu0 %v13203_v51  ;;  %v13252_v51 = vcombine.low %v6360_v53, %v6364_v21  ;;  %v6419_v53 = vld [vmem:[#allocation10 + $0xf70] sm:$0xff]  ;;  %v6416_v21 = vld [vmem:[#allocation10 + $0xf58] sm:$0xff] }
 0x658   :  { %9612 = vmatprep.subr.bf16.mxu1 %v13205_v58  ;;  %v13259_v58 = vcombine.high %v6367_v39, %v6371_v57 }
 0x659   :  { %9440 = vmatmul.mubr.bf16.vlgmr.msra.gmra.mrb[20].mxu0 %v14916_v35 }
 0x65a   :  { %9604 = vmatmul.mubr.bf16.vlgmr.msra.gmra.mrb[28].mxu1 %v14916_v35  ;;  %9449 = vmatpush1.bf16.msra.mxu0 %v13202_v54  ;;  %v13220_v35 = vcombine.low %v6328_v40, %v6332_v1  ;;  %v6379_v54 = vld [vmem:[#allocation10 + $0xe30] sm:$0xff]  ;;  %v6384_v1 = vld [vmem:[#allocation10 + $0xe58] sm:$0xff] }
 0x65b   :  { %9480 = vmatprep.mubr.bf16.mxu0 %v14920_v14  ;;  %9613 = vmatpush1.bf16.msra.mxu1 %v13204_v38  ;;  %v13258_v38 = vcombine.low %v6367_v39, %v6371_v57  ;;  %v13267_v61 = vcombine.high %v6375_v8, %v6379_v54  ;;  %v6387_v40 = vld [vmem:[#allocation10 + $0xe70] sm:$0xff] }
 0x65c   :  { %9644 = vmatprep.mubr.bf16.mxu1 %v14920_v14  ;;  %9450 = vmatprep.subr.bf16.mxu0 %v13211_v60  ;;  %v13226_v14 = vcombine.low %v6335_v4, %v6339_v6  ;;  %v13260_v60 = vcombine.low %v6368_v63, %v6372_v44  ;;  %v6391_v6 = vld [vmem:[#allocation10 + $0xe90] sm:$0xff]  ;;  %v6424_v44 = vld [vmem:[#allocation10 + $0xf98] sm:$0xff] }
 0x65d   :  { %9614 = vmatprep.subr.bf16.mxu1 %v13213_v0  ;;  %v6383_v0 = vld [vmem:[#allocation10 + $0xe50] sm:$0xff] }
 0x65e   :  { %9451 = vmatpush1.bf16.msra.mxu0 %v13210_v43  ;;  %v6388_v43 = vld [vmem:[#allocation10 + $0xe78] sm:$0xff]  ;;  %v6423_v57 = vld [vmem:[#allocation10 + $0xf90] sm:$0xff] }
 0x65f   :  { %9615 = vmatpush1.bf16.msra.mxu1 %v13212_v3  ;;  %9452 = vmatprep.subr.bf16.mxu0 %v13219_v48  ;;  %v13266_v3 = vcombine.low %v6375_v8, %v6379_v54  ;;  %v13268_v48 = vcombine.low %v6376_v55, %v6380_v56  ;;  %v13277_v4 = vcombine.high %v6384_v1, %v6388_v43  ;;  %v6427_v63 = vld [vmem:[#allocation10 + $0xfb0] sm:$0xff]  ;;  %v6436_v8 = vld [vmem:[#allocation10 + $0xff8] sm:$0xff] }
 0x660   :  { %9616 = vmatprep.subr.bf16.mxu1 %v13221_v49  ;;  %v13275_v49 = vcombine.high %v6383_v0, %v6387_v40  ;;  %v13314_v54 = vcombine.low %v6423_v57, %v6427_v63 }
 0x662   :  { %9453 = vmatpush1.bf16.msra.mxu0 %v13218_v10  ;;  %v6396_v10 = vld [vmem:[#allocation10 + $0xeb8] sm:$0xff] }
 0x663   :  { %9617 = vmatpush1.bf16.msra.mxu1 %v13220_v35  ;;  %9454 = vmatprep.subr.bf16.mxu0 %v13227_v11  ;;  %v13274_v35 = vcombine.low %v6383_v0, %v6387_v40  ;;  %v13276_v11 = vcombine.low %v6384_v1, %v6388_v43  ;;  %v13285_v12 = vcombine.high %v6392_v9, %v6396_v10  ;;  %v13869_v0 = vld [vmem:[#allocation11 + $0xc] ss:$16 sps:$4 sm:$0xff]   ;;  %v13864_v1 = vld [vmem:[#allocation11] ss:$16 sps:$4 sm:$0xff]   ;;  %v13867_v43 = vld [vmem:[#allocation11 + $0x8] ss:$16 sps:$4 sm:$0xff]  }
 0x664   :  { %9618 = vmatprep.subr.bf16.mxu1 %v13229_v59  ;;  %v13283_v59 = vcombine.high %v6391_v6, %v6395_v7 }
 0x666   :  { %9455 = vmatpush1.bf16.msra.mxu0 %v13226_v14  ;;  %v6404_v14 = vld [vmem:[#allocation10 + $0xef8] sm:$0xff] }
 0x667   :  { %9619 = vmatpush1.bf16.msra.mxu1 %v13228_v16  ;;  %9456 = vmatprep.subr.bf16.mxu0 %v13235_v17  ;;  %v13282_v16 = vcombine.low %v6391_v6, %v6395_v7  ;;  %v13284_v17 = vcombine.low %v6392_v9, %v6396_v10  ;;  %v13293_v2 = vcombine.high %v6400_v15, %v6404_v14  ;;  %v13873_v6 = vld [vmem:[#allocation11 + $0x28] ss:$16 sps:$4 sm:$0xff]   ;;  %v13878_v7 = vld [vmem:[#allocation11 + $0x44] ss:$16 sps:$4 sm:$0xff]   ;;  %v13876_v9 = vld [vmem:[#allocation11 + $0x40] ss:$16 sps:$4 sm:$0xff]  }
 0x668   :  { %9620 = vmatprep.subr.bf16.mxu1 %v13237_v18  ;;  %v13291_v18 = vcombine.high %v6399_v25, %v6403_v13  ;;  %v13879_v10 = vld [vmem:[#allocation11 + $0x48] ss:$16 sps:$4 sm:$0xff]  }
 0x66a   :  { %9457 = vmatpush1.bf16.msra.mxu0 %v13234_v22  ;;  %v6412_v22 = vld [vmem:[#allocation10 + $0xf38] sm:$0xff] }
 0x66b   :  { %9621 = vmatpush1.bf16.msra.mxu1 %v13236_v23  ;;  %9458 = vmatprep.subr.bf16.mxu0 %v13243_v28  ;;  %v13290_v23 = vcombine.low %v6399_v25, %v6403_v13  ;;  %v13292_v28 = vcombine.low %v6400_v15, %v6404_v14  ;;  %v13301_v27 = vcombine.high %v6408_v5, %v6412_v22  ;;  %v13893_v25 = vld [vmem:[#allocation11 + $0x8c] ss:$16 sps:$4 sm:$0xff]   ;;  %v13888_v13 = vld [vmem:[#allocation11 + $0x80] ss:$16 sps:$4 sm:$0xff]   ;;  %v13891_v15 = vld [vmem:[#allocation11 + $0x88] ss:$16 sps:$4 sm:$0xff]  }
 0x66c   :  { %v14945_v36 = vpop.f32.mrb[16].mxu0  ;;  %v14947_v34 = vpop.f32.mrb[24].mxu1  ;;  %9622 = vmatprep.subr.bf16.mxu1 %v13245_v29  ;;  %v13299_v29 = vcombine.high %v6407_v19, %v6411_v20  ;;  %v13896_v14 = vld [vmem:[#allocation11 + $0xa4] ss:$16 sps:$4 sm:$0xff]  }
 0x66d   :  { %v14949_v41 = vpop.f32.mrb[17].mxu0  ;;  %v14951_v42 = vpop.f32.mrb[25].mxu1 }
 0x66e   :  { %v9158_v47 = vpop.f32.mrb[18].mxu0  ;;  %v9322_v45 = vpop.f32.mrb[26].mxu1  ;;  %9459 = vmatpush1.bf16.msra.mxu0 %v13242_v32  ;;  %v6420_v32 = vld [vmem:[#allocation10 + $0xf78] sm:$0xff]  ;;  %v9654_v40 = vmax.f32 %v14949_v41, 0.0 }
 0x66f   :  { %9623 = vmatpush1.bf16.msra.mxu1 %v13244_v33  ;;  %v9159_v31 = vpop.f32.mrb[19].mxu0  ;;  %v9323_v50 = vpop.f32.mrb[27].mxu1  ;;  %9460 = vmatprep.subr.bf16.mxu0 %v13251_v62  ;;  %v13298_v33 = vcombine.low %v6407_v19, %v6411_v20  ;;  %v13300_v62 = vcombine.low %v6408_v5, %v6412_v22  ;;  %v13309_v39 = vcombine.high %v6416_v21, %v6420_v32  ;;  %v6428_v47 = vld [vmem:[#allocation10 + $0xfb8] sm:$0xff]  ;;  %v13900_v20 = vld [vmem:[#allocation11 + $0xc0] ss:$16 sps:$4 sm:$0xff]  }
 0x670   :  { %9624 = vmatprep.subr.bf16.mxu1 %v13253_v37  ;;  %v13307_v37 = vcombine.high %v6415_v30, %v6419_v53  ;;  %v13306_v45 = vcombine.low %v6415_v30, %v6419_v53  ;;  %v13315_v31 = vcombine.high %v6423_v57, %v6427_v63  ;;  %v13317_v50 = vcombine.high %v6424_v44, %v6428_v47  ;;  %v13881_v41 = vld [vmem:[#allocation11 + $0x4c] ss:$16 sps:$4 sm:$0xff]   ;;  %v13903_v5 = vld [vmem:[#allocation11 + $0xc8] ss:$16 sps:$4 sm:$0xff]   ;;  %v13908_v22 = vld [vmem:[#allocation11 + $0xe4] ss:$16 sps:$4 sm:$0xff]  }
 0x671   :  { %v13316_v55 = vcombine.low %v6424_v44, %v6428_v47  ;;  %v13905_v19 = vld [vmem:[#allocation11 + $0xcc] ss:$16 sps:$4 sm:$0xff]   ;;  %v13912_v53 = vld [vmem:[#allocation11 + $0x100] ss:$16 sps:$4 sm:$0xff]   ;;  %v13927_v44 = vld [vmem:[#allocation11 + $0x148] ss:$16 sps:$4 sm:$0xff]  }
 0x672   :  { %9461 = vmatpush1.bf16.msra.mxu0 %v13250_v46  ;;  %v13308_v46 = vcombine.low %v6416_v21, %v6420_v32  ;;  %v13917_v30 = vld [vmem:[#allocation11 + $0x10c] ss:$16 sps:$4 sm:$0xff]   ;;  %v13915_v21 = vld [vmem:[#allocation11 + $0x108] ss:$16 sps:$4 sm:$0xff]   ;;  %v13920_v32 = vld [vmem:[#allocation11 + $0x124] ss:$16 sps:$4 sm:$0xff]  }
 0x673   :  { %9625 = vmatpush1.bf16.msra.mxu1 %v13252_v51  ;;  %9462 = vmatprep.subr.bf16.mxu0 %v13259_v58  ;;  %v6431_v51 = vld [vmem:[#allocation10 + $0xfd0] sm:$0xff]  ;;  %v13929_v57 = vld [vmem:[#allocation11 + $0x14c] ss:$16 sps:$4 sm:$0xff]  }
 0x674   :  { %9626 = vmatprep.subr.bf16.mxu1 %v13261_v52  ;;  %v6435_v58 = vld [vmem:[#allocation10 + $0xff0] sm:$0xff]  ;;  %v6432_v52 = vld [vmem:[#allocation10 + $0xfd8] sm:$0xff] }
 0x675   :  { %v13323_v56 = vcombine.high %v6431_v51, %v6435_v58  ;;  %v13924_v63 = vld [vmem:[#allocation11 + $0x140] ss:$16 sps:$4 sm:$0xff]   ;;  %v13932_v47 = vld [vmem:[#allocation11 + $0x164] ss:$16 sps:$4 sm:$0xff]  }
 0x676   :  { %9463 = vmatpush1.bf16.msra.mxu0 %v13258_v38  ;;  %v13325_v38 = vcombine.high %v6432_v52, %v6436_v8 }
 0x677   :  { %9627 = vmatpush1.bf16.msra.mxu1 %v13260_v60  ;;  %9464 = vmatprep.subr.bf16.mxu0 %v13267_v61  ;;  %v13322_v60 = vcombine.low %v6431_v51, %v6435_v58  ;;  %v13324_v61 = vcombine.low %v6432_v52, %v6436_v8  ;;  %v13941_v51 = vld [vmem:[#allocation11 + $0x18c] ss:$16 sps:$4 sm:$0xff]   ;;  %v13936_v58 = vld [vmem:[#allocation11 + $0x180] ss:$16 sps:$4 sm:$0xff]   ;;  %v13939_v52 = vld [vmem:[#allocation11 + $0x188] ss:$16 sps:$4 sm:$0xff]  }
 0x678   :  { %9628 = vmatprep.subr.bf16.mxu1 %v13269_v26  ;;  %v13866_v26 = vld [vmem:[#allocation11 + $0x4] ss:$16 sps:$4 sm:$0xff]  }
 0x679   :  { %v13944_v8 = vld [vmem:[#allocation11 + $0x1a4] ss:$16 sps:$4 sm:$0xff]  }
 0x67a   :  { %9465 = vmatpush1.bf16.msra.mxu0 %v13266_v3  ;;  %v13872_v3 = vld [vmem:[#allocation11 + $0x24] ss:$16 sps:$4 sm:$0xff]  }
 0x67b   :  { %9629 = vmatpush1.bf16.msra.mxu1 %v13268_v48  ;;  %9466 = vmatprep.subr.bf16.mxu0 %v13275_v49  ;;  %v9662_v48 = vpack.c.bf16 %v9654_v40, %v9654_v40  ;;  %v13875_v49 = vld [vmem:[#allocation11 + $0x2c] ss:$16 sps:$4 sm:$0xff]  }
 0x67c   :  { %9630 = vmatprep.subr.bf16.mxu1 %v13277_v4  ;;  %v13870_v4 = vld [vmem:[#allocation11 + $0x20] ss:$16 sps:$4 sm:$0xff]   ;;  %v13959_v40 = vld [vmem:[#allocation11 + $0x1ec] ss:$16 sps:$4 sm:$0xff]  }
 0x67e   :  { %9467 = vmatpush1.bf16.msra.mxu0 %v13274_v35  ;;  %v13884_v35 = vld [vmem:[#allocation11 + $0x64] ss:$16 sps:$4 sm:$0xff]  }
 0x67f   :  { %9631 = vmatpush1.bf16.msra.mxu1 %v13276_v11  ;;  %9468 = vmatprep.subr.bf16.mxu0 %v13283_v59  ;;  %v13887_v11 = vld [vmem:[#allocation11 + $0x6c] ss:$16 sps:$4 sm:$0xff]   ;;  %v13885_v59 = vld [vmem:[#allocation11 + $0x68] ss:$16 sps:$4 sm:$0xff]  }
 0x680   :  { %9632 = vmatprep.subr.bf16.mxu1 %v13285_v12  ;;  %v13890_v12 = vld [vmem:[#allocation11 + $0x84] ss:$16 sps:$4 sm:$0xff]  }
 0x682   :  { %9469 = vmatpush1.bf16.msra.mxu0 %v13282_v16  ;;  %v13899_v16 = vld [vmem:[#allocation11 + $0xac] ss:$16 sps:$4 sm:$0xff]  }
 0x683   :  { %9633 = vmatpush1.bf16.msra.mxu1 %v13284_v17  ;;  %9470 = vmatprep.subr.bf16.mxu0 %v13291_v18  ;;  %v13894_v17 = vld [vmem:[#allocation11 + $0xa0] ss:$16 sps:$4 sm:$0xff]   ;;  %v13897_v18 = vld [vmem:[#allocation11 + $0xa8] ss:$16 sps:$4 sm:$0xff]  }
 0x684   :  { %9634 = vmatprep.subr.bf16.mxu1 %v13293_v2  ;;  %v13902_v2 = vld [vmem:[#allocation11 + $0xc4] ss:$16 sps:$4 sm:$0xff]  }
 0x686   :  { %9471 = vmatpush1.bf16.msra.mxu0 %v13290_v23  ;;  %v13911_v23 = vld [vmem:[#allocation11 + $0xec] ss:$16 sps:$4 sm:$0xff]  }
 0x687   :  { %9635 = vmatpush1.bf16.msra.mxu1 %v13292_v28  ;;  %9472 = vmatprep.subr.bf16.mxu0 %v13299_v29  ;;  %v13906_v28 = vld [vmem:[#allocation11 + $0xe0] ss:$16 sps:$4 sm:$0xff]   ;;  %v13909_v29 = vld [vmem:[#allocation11 + $0xe8] ss:$16 sps:$4 sm:$0xff]  }
 0x688   :  { %9636 = vmatprep.subr.bf16.mxu1 %v13301_v27  ;;  %v13914_v27 = vld [vmem:[#allocation11 + $0x104] ss:$16 sps:$4 sm:$0xff]  }
 0x68a   :  { %9473 = vmatpush1.bf16.msra.mxu0 %v13298_v33  ;;  %v13923_v33 = vld [vmem:[#allocation11 + $0x12c] ss:$16 sps:$4 sm:$0xff]  }
 0x68b   :  { %9637 = vmatpush1.bf16.msra.mxu1 %v13300_v62  ;;  %9474 = vmatprep.subr.bf16.mxu0 %v13307_v37  ;;  %v13918_v62 = vld [vmem:[#allocation11 + $0x120] ss:$16 sps:$4 sm:$0xff]   ;;  %v13921_v37 = vld [vmem:[#allocation11 + $0x128] ss:$16 sps:$4 sm:$0xff]  }
 0x68c   :  { %9638 = vmatprep.subr.bf16.mxu1 %v13309_v39  ;;  %v13926_v39 = vld [vmem:[#allocation11 + $0x144] ss:$16 sps:$4 sm:$0xff]  }
 0x68e   :  { %9475 = vmatpush1.bf16.msra.mxu0 %v13306_v45  ;;  %v13935_v45 = vld [vmem:[#allocation11 + $0x16c] ss:$16 sps:$4 sm:$0xff]  }
 0x68f   :  { %9639 = vmatpush1.bf16.msra.mxu1 %v13308_v46  ;;  %9476 = vmatprep.subr.bf16.mxu0 %v13315_v31  ;;  %v13930_v46 = vld [vmem:[#allocation11 + $0x160] ss:$16 sps:$4 sm:$0xff]   ;;  %v13933_v31 = vld [vmem:[#allocation11 + $0x168] ss:$16 sps:$4 sm:$0xff]  }
 0x690   :  { %9640 = vmatprep.subr.bf16.mxu1 %v13317_v50  ;;  %v13938_v50 = vld [vmem:[#allocation11 + $0x184] ss:$16 sps:$4 sm:$0xff]  }
 0x692   :  { %9477 = vmatpush1.bf16.msra.mxu0 %v13314_v54  ;;  %v13947_v54 = vld [vmem:[#allocation11 + $0x1ac] ss:$16 sps:$4 sm:$0xff]  }
 0x693   :  { %9641 = vmatpush1.bf16.msra.mxu1 %v13316_v55  ;;  %9478 = vmatprep.subr.bf16.mxu0 %v13323_v56  ;;  %v13942_v55 = vld [vmem:[#allocation11 + $0x1a0] ss:$16 sps:$4 sm:$0xff]   ;;  %v13945_v56 = vld [vmem:[#allocation11 + $0x1a8] ss:$16 sps:$4 sm:$0xff]  }
 0x694   :  { %9642 = vmatprep.subr.bf16.mxu1 %v13325_v38  ;;  %v13950_v38 = vld [vmem:[#allocation11 + $0x1c4] ss:$16 sps:$4 sm:$0xff]  }
 0x696   :  { %9479 = vmatpush1.bf16.msra.mxu0 %v13322_v60  ;;  %v13953_v60 = vld [vmem:[#allocation11 + $0x1cc] ss:$16 sps:$4 sm:$0xff]  }
 0x697   :  { %9643 = vmatpush1.bf16.msra.mxu1 %v13324_v61  ;;  %11227 = vmatprep.subr.bf16.mxu0 %v13866_v26  ;;  %v13948_v61 = vld [vmem:[#allocation11 + $0x1c0] ss:$16 sps:$4 sm:$0xff]   ;;  %v13951_v26 = vld [vmem:[#allocation11 + $0x1c8] ss:$16 sps:$4 sm:$0xff]  }
 0x698   :  { %11391 = vmatprep.subr.bf16.mxu1 %v13869_v0  ;;  %v13956_v0 = vld [vmem:[#allocation11 + $0x1e4] ss:$16 sps:$4 sm:$0xff]  }
 0x699   :  { %9481 = vmatmul.mubr.bf16.vlgmr.msra.gmra.mrb[20].mxu0 %v14927_v24 }
 0x69a   :  { %9645 = vmatmul.mubr.bf16.vlgmr.msra.gmra.mrb[28].mxu1 %v14927_v24  ;;  %11228 = vmatpush1.bf16.msra.mxu0 %v13864_v1  ;;  %v13882_v24 = vld [vmem:[#allocation11 + $0x60] ss:$16 sps:$4 sm:$0xff]  }
 0x69b   :  { %11259 = vmatprep.mubr.bf16.mxu0 %v9662_v48  ;;  %11392 = vmatpush1.bf16.msra.mxu1 %v13867_v43  ;;  %v13954_v1 = vld [vmem:[#allocation11 + $0x1e0] ss:$16 sps:$4 sm:$0xff]   ;;  %v9653_v43 = vmax.f32 %v14945_v36, 0.0 }
 0x69c   :  { %11423 = vmatprep.mubr.bf16.mxu1 %v9662_v48  ;;  %11229 = vmatprep.subr.bf16.mxu0 %v13872_v3  ;;  %v13957_v3 = vld [vmem:[#allocation11 + $0x1e8] ss:$16 sps:$4 sm:$0xff]   ;;  %v13962_v48 = vld [vmem:[#allocation11 + $0x204] ss:$16 sps:$4 sm:$0xff]   ;;  %v13966_v36 = vld [vmem:[#allocation11 + $0x220] ss:$16 sps:$4 sm:$0xff]  }
 0x69d   :  { %11393 = vmatprep.subr.bf16.mxu1 %v13875_v49  ;;  %v13965_v49 = vld [vmem:[#allocation11 + $0x20c] ss:$16 sps:$4 sm:$0xff]  }
 0x69e   :  { %11230 = vmatpush1.bf16.msra.mxu0 %v13870_v4  ;;  %v9656_v4 = vmax.f32 %v14951_v42, 0.0  ;;  %v13977_v42 = vld [vmem:[#allocation11 + $0x24c] ss:$16 sps:$4 sm:$0xff]  }
 0x69f   :  { %11394 = vmatpush1.bf16.msra.mxu1 %v13873_v6  ;;  %11231 = vmatprep.subr.bf16.mxu0 %v13878_v7  ;;  %v13960_v6 = vld [vmem:[#allocation11 + $0x200] ss:$16 sps:$4 sm:$0xff]   ;;  %v9661_v7 = vpack.c.bf16 %v9653_v43, %v9653_v43 }
 0x6a0   :  { %11395 = vmatprep.subr.bf16.mxu1 %v13881_v41  ;;  %v13963_v41 = vld [vmem:[#allocation11 + $0x208] ss:$16 sps:$4 sm:$0xff]   ;;  %v14044_v43 = vld [vmem:[#allocation11 + $0x3c0] ss:$16 sps:$4 sm:$0xff]  }
 0x6a2   :  { %11232 = vmatpush1.bf16.msra.mxu0 %v13876_v9  ;;  %v13968_v9 = vld [vmem:[#allocation11 + $0x224] ss:$16 sps:$4 sm:$0xff]  }
 0x6a3   :  { %11396 = vmatpush1.bf16.msra.mxu1 %v13879_v10  ;;  %11233 = vmatprep.subr.bf16.mxu0 %v13884_v35  ;;  %v9664_v10 = vpack.c.bf16 %v9656_v4, %v9656_v4  ;;  %v13971_v35 = vld [vmem:[#allocation11 + $0x22c] ss:$16 sps:$4 sm:$0xff]   ;;  %v14050_v4 = vld [vmem:[#allocation11 + $0x3e0] ss:$16 sps:$4 sm:$0xff]  }
 0x6a4   :  { %11397 = vmatprep.subr.bf16.mxu1 %v13887_v11  ;;  %v13969_v11 = vld [vmem:[#allocation11 + $0x228] ss:$16 sps:$4 sm:$0xff]  }
 0x6a6   :  { %11234 = vmatpush1.bf16.msra.mxu0 %v13882_v24  ;;  %v13974_v24 = vld [vmem:[#allocation11 + $0x244] ss:$16 sps:$4 sm:$0xff]  }
 0x6a7   :  { %11398 = vmatpush1.bf16.msra.mxu1 %v13885_v59  ;;  %11235 = vmatprep.subr.bf16.mxu0 %v13890_v12  ;;  %v13972_v59 = vld [vmem:[#allocation11 + $0x240] ss:$16 sps:$4 sm:$0xff]   ;;  %v13975_v12 = vld [vmem:[#allocation11 + $0x248] ss:$16 sps:$4 sm:$0xff]  }
 0x6a8   :  { %11399 = vmatprep.subr.bf16.mxu1 %v13893_v25  ;;  %v13980_v25 = vld [vmem:[#allocation11 + $0x264] ss:$16 sps:$4 sm:$0xff]  }
 0x6aa   :  { %11236 = vmatpush1.bf16.msra.mxu0 %v13888_v13  ;;  %v13983_v13 = vld [vmem:[#allocation11 + $0x26c] ss:$16 sps:$4 sm:$0xff]  }
 0x6ab   :  { %11400 = vmatpush1.bf16.msra.mxu1 %v13891_v15  ;;  %11237 = vmatprep.subr.bf16.mxu0 %v13896_v14  ;;  %v13978_v15 = vld [vmem:[#allocation11 + $0x260] ss:$16 sps:$4 sm:$0xff]   ;;  %v13981_v14 = vld [vmem:[#allocation11 + $0x268] ss:$16 sps:$4 sm:$0xff]  }
 0x6ac   :  { %11401 = vmatprep.subr.bf16.mxu1 %v13899_v16  ;;  %v13986_v16 = vld [vmem:[#allocation11 + $0x284] ss:$16 sps:$4 sm:$0xff]  }
 0x6ae   :  { %11238 = vmatpush1.bf16.msra.mxu0 %v13894_v17  ;;  %v13989_v17 = vld [vmem:[#allocation11 + $0x28c] ss:$16 sps:$4 sm:$0xff]  }
 0x6af   :  { %11402 = vmatpush1.bf16.msra.mxu1 %v13897_v18  ;;  %11239 = vmatprep.subr.bf16.mxu0 %v13902_v2  ;;  %v13984_v18 = vld [vmem:[#allocation11 + $0x280] ss:$16 sps:$4 sm:$0xff]   ;;  %v13987_v2 = vld [vmem:[#allocation11 + $0x288] ss:$16 sps:$4 sm:$0xff]  }
 0x6b0   :  { %11403 = vmatprep.subr.bf16.mxu1 %v13905_v19  ;;  %v13992_v19 = vld [vmem:[#allocation11 + $0x2a4] ss:$16 sps:$4 sm:$0xff]  }
 0x6b2   :  { %11240 = vmatpush1.bf16.msra.mxu0 %v13900_v20  ;;  %v13995_v20 = vld [vmem:[#allocation11 + $0x2ac] ss:$16 sps:$4 sm:$0xff]  }
 0x6b3   :  { %11404 = vmatpush1.bf16.msra.mxu1 %v13903_v5  ;;  %11241 = vmatprep.subr.bf16.mxu0 %v13908_v22  ;;  %v13990_v5 = vld [vmem:[#allocation11 + $0x2a0] ss:$16 sps:$4 sm:$0xff]   ;;  %v13993_v22 = vld [vmem:[#allocation11 + $0x2a8] ss:$16 sps:$4 sm:$0xff]  }
 0x6b4   :  { %11405 = vmatprep.subr.bf16.mxu1 %v13911_v23  ;;  %v13998_v23 = vld [vmem:[#allocation11 + $0x2c4] ss:$16 sps:$4 sm:$0xff]  }
 0x6b6   :  { %11242 = vmatpush1.bf16.msra.mxu0 %v13906_v28  ;;  %v14001_v28 = vld [vmem:[#allocation11 + $0x2cc] ss:$16 sps:$4 sm:$0xff]  }
 0x6b7   :  { %11406 = vmatpush1.bf16.msra.mxu1 %v13909_v29  ;;  %11243 = vmatprep.subr.bf16.mxu0 %v13914_v27  ;;  %v13996_v29 = vld [vmem:[#allocation11 + $0x2c0] ss:$16 sps:$4 sm:$0xff]   ;;  %v13999_v27 = vld [vmem:[#allocation11 + $0x2c8] ss:$16 sps:$4 sm:$0xff]  }
 0x6b8   :  { %11407 = vmatprep.subr.bf16.mxu1 %v13917_v30  ;;  %v14004_v30 = vld [vmem:[#allocation11 + $0x2e4] ss:$16 sps:$4 sm:$0xff]  }
 0x6ba   :  { %11244 = vmatpush1.bf16.msra.mxu0 %v13912_v53  ;;  %v14007_v53 = vld [vmem:[#allocation11 + $0x2ec] ss:$16 sps:$4 sm:$0xff]  }
 0x6bb   :  { %11408 = vmatpush1.bf16.msra.mxu1 %v13915_v21  ;;  %11245 = vmatprep.subr.bf16.mxu0 %v13920_v32  ;;  %v14002_v21 = vld [vmem:[#allocation11 + $0x2e0] ss:$16 sps:$4 sm:$0xff]   ;;  %v14005_v32 = vld [vmem:[#allocation11 + $0x2e8] ss:$16 sps:$4 sm:$0xff]  }
 0x6bc   :  { %11409 = vmatprep.subr.bf16.mxu1 %v13923_v33  ;;  %v14010_v33 = vld [vmem:[#allocation11 + $0x304] ss:$16 sps:$4 sm:$0xff]  }
 0x6be   :  { %11246 = vmatpush1.bf16.msra.mxu0 %v13918_v62  ;;  %v14013_v62 = vld [vmem:[#allocation11 + $0x30c] ss:$16 sps:$4 sm:$0xff]  }
 0x6bf   :  { %11410 = vmatpush1.bf16.msra.mxu1 %v13921_v37  ;;  %11247 = vmatprep.subr.bf16.mxu0 %v13926_v39  ;;  %v14008_v37 = vld [vmem:[#allocation11 + $0x300] ss:$16 sps:$4 sm:$0xff]   ;;  %v14011_v39 = vld [vmem:[#allocation11 + $0x308] ss:$16 sps:$4 sm:$0xff]  }
 0x6c0   :  { %11411 = vmatprep.subr.bf16.mxu1 %v13929_v57  ;;  %v14016_v57 = vld [vmem:[#allocation11 + $0x324] ss:$16 sps:$4 sm:$0xff]  }
 0x6c2   :  { %11248 = vmatpush1.bf16.msra.mxu0 %v13924_v63  ;;  %v14019_v63 = vld [vmem:[#allocation11 + $0x32c] ss:$16 sps:$4 sm:$0xff]  }
 0x6c3   :  { %11412 = vmatpush1.bf16.msra.mxu1 %v13927_v44  ;;  %11249 = vmatprep.subr.bf16.mxu0 %v13932_v47  ;;  %v14014_v44 = vld [vmem:[#allocation11 + $0x320] ss:$16 sps:$4 sm:$0xff]   ;;  %v14017_v47 = vld [vmem:[#allocation11 + $0x328] ss:$16 sps:$4 sm:$0xff]  }
 0x6c4   :  { %11413 = vmatprep.subr.bf16.mxu1 %v13935_v45  ;;  %v14022_v45 = vld [vmem:[#allocation11 + $0x344] ss:$16 sps:$4 sm:$0xff]  }
 0x6c6   :  { %11250 = vmatpush1.bf16.msra.mxu0 %v13930_v46  ;;  %v14025_v46 = vld [vmem:[#allocation11 + $0x34c] ss:$16 sps:$4 sm:$0xff]  }
 0x6c7   :  { %11414 = vmatpush1.bf16.msra.mxu1 %v13933_v31  ;;  %11251 = vmatprep.subr.bf16.mxu0 %v13938_v50  ;;  %v14020_v31 = vld [vmem:[#allocation11 + $0x340] ss:$16 sps:$4 sm:$0xff]   ;;  %v14023_v50 = vld [vmem:[#allocation11 + $0x348] ss:$16 sps:$4 sm:$0xff]  }
 0x6c8   :  { %11415 = vmatprep.subr.bf16.mxu1 %v13941_v51  ;;  %v14028_v51 = vld [vmem:[#allocation11 + $0x364] ss:$16 sps:$4 sm:$0xff]  }
 0x6ca   :  { %11252 = vmatpush1.bf16.msra.mxu0 %v13936_v58  ;;  %v14031_v58 = vld [vmem:[#allocation11 + $0x36c] ss:$16 sps:$4 sm:$0xff]  }
 0x6cb   :  { %11416 = vmatpush1.bf16.msra.mxu1 %v13939_v52  ;;  %11253 = vmatprep.subr.bf16.mxu0 %v13944_v8  ;;  %v14026_v52 = vld [vmem:[#allocation11 + $0x360] ss:$16 sps:$4 sm:$0xff]   ;;  %v14029_v8 = vld [vmem:[#allocation11 + $0x368] ss:$16 sps:$4 sm:$0xff]  }
 0x6cc   :  { %11417 = vmatprep.subr.bf16.mxu1 %v13947_v54  ;;  %v14034_v54 = vld [vmem:[#allocation11 + $0x384] ss:$16 sps:$4 sm:$0xff]  }
 0x6ce   :  { %11254 = vmatpush1.bf16.msra.mxu0 %v13942_v55  ;;  %v14037_v55 = vld [vmem:[#allocation11 + $0x38c] ss:$16 sps:$4 sm:$0xff]  }
 0x6cf   :  { %11418 = vmatpush1.bf16.msra.mxu1 %v13945_v56  ;;  %11255 = vmatprep.subr.bf16.mxu0 %v13950_v38  ;;  %v14032_v56 = vld [vmem:[#allocation11 + $0x380] ss:$16 sps:$4 sm:$0xff]   ;;  %v14035_v38 = vld [vmem:[#allocation11 + $0x388] ss:$16 sps:$4 sm:$0xff]  }
 0x6d0   :  { %11419 = vmatprep.subr.bf16.mxu1 %v13953_v60  ;;  %v14040_v60 = vld [vmem:[#allocation11 + $0x3a4] ss:$16 sps:$4 sm:$0xff]  }
 0x6d2   :  { %11256 = vmatpush1.bf16.msra.mxu0 %v13948_v61  ;;  %v14043_v61 = vld [vmem:[#allocation11 + $0x3ac] ss:$16 sps:$4 sm:$0xff]  }
 0x6d3   :  { %11420 = vmatpush1.bf16.msra.mxu1 %v13951_v26  ;;  %11257 = vmatprep.subr.bf16.mxu0 %v13956_v0  ;;  %v14038_v26 = vld [vmem:[#allocation11 + $0x3a0] ss:$16 sps:$4 sm:$0xff]   ;;  %v14041_v0 = vld [vmem:[#allocation11 + $0x3a8] ss:$16 sps:$4 sm:$0xff]  }
 0x6d4   :  { %11421 = vmatprep.subr.bf16.mxu1 %v13959_v40  ;;  %v14046_v40 = vld [vmem:[#allocation11 + $0x3c4] ss:$16 sps:$4 sm:$0xff]  }
 0x6d6   :  { %11258 = vmatpush1.bf16.msra.mxu0 %v13954_v1  ;;  %v14049_v1 = vld [vmem:[#allocation11 + $0x3cc] ss:$16 sps:$4 sm:$0xff]  }
 0x6d7   :  { %11422 = vmatpush1.bf16.msra.mxu1 %v13957_v3  ;;  %11268 = vmatprep.subr.bf16.mxu0 %v13962_v48  ;;  %v14047_v3 = vld [vmem:[#allocation11 + $0x3c8] ss:$16 sps:$4 sm:$0xff]   ;;  %v14052_v48 = vld [vmem:[#allocation11 + $0x3e4] ss:$16 sps:$4 sm:$0xff]  }
 0x6d8   :  { %11432 = vmatprep.subr.bf16.mxu1 %v13965_v49  ;;  %v14055_v49 = vld [vmem:[#allocation11 + $0x3ec] ss:$16 sps:$4 sm:$0xff]  }
 0x6d9   :  { %11260 = vmatmul.mubr.bf16.vlgmr.msra.gmra.mrb[24].mxu0 %v9661_v7 }
 0x6da   :  { %11424 = vmatmul.mubr.bf16.vlgmr.msra.gmra.mrb[32].mxu1 %v9661_v7  ;;  %11269 = vmatpush1.bf16.msra.mxu0 %v13960_v6  ;;  %v9655_v6 = vmax.f32 %v14947_v34, 0.0  ;;  %v14053_v7 = vld [vmem:[#allocation11 + $0x3e8] ss:$16 sps:$4 sm:$0xff]  }
 0x6db   :  { %11300 = vmatprep.mubr.bf16.mxu0 %v9664_v10  ;;  %11433 = vmatpush1.bf16.msra.mxu1 %v13963_v41  ;;  %v14058_v41 = vld [vmem:[#allocation11 + $0x404] ss:$16 sps:$4 sm:$0xff]   ;;  %v14065_v34 = vld [vmem:[#allocation11 + $0x428] ss:$16 sps:$4 sm:$0xff]  }
 0x6dc   :  { %11464 = vmatprep.mubr.bf16.mxu1 %v9664_v10  ;;  %11270 = vmatprep.subr.bf16.mxu0 %v13968_v9  ;;  %v14061_v9 = vld [vmem:[#allocation11 + $0x40c] ss:$16 sps:$4 sm:$0xff]   ;;  %v14056_v10 = vld [vmem:[#allocation11 + $0x400] ss:$16 sps:$4 sm:$0xff]  }
 0x6dd   :  { %11434 = vmatprep.subr.bf16.mxu1 %v13971_v35  ;;  %v9663_v35 = vpack.c.bf16 %v9655_v6, %v9655_v6  ;;  %v14151_v6 = vld [vmem:[#allocation11 + $0x5ec] ss:$16 sps:$4 sm:$0xff]  }
 0x6de   :  { %11271 = vmatpush1.bf16.msra.mxu0 %v13966_v36  ;;  %v14059_v36 = vld [vmem:[#allocation11 + $0x408] ss:$16 sps:$4 sm:$0xff]  }
 0x6df   :  { %11435 = vmatpush1.bf16.msra.mxu1 %v13969_v11  ;;  %11272 = vmatprep.subr.bf16.mxu0 %v13974_v24  ;;  %v14064_v11 = vld [vmem:[#allocation11 + $0x424] ss:$16 sps:$4 sm:$0xff]   ;;  %v14067_v24 = vld [vmem:[#allocation11 + $0x42c] ss:$16 sps:$4 sm:$0xff]  }
 0x6e0   :  { %11436 = vmatprep.subr.bf16.mxu1 %v13977_v42  ;;  %v14062_v42 = vld [vmem:[#allocation11 + $0x420] ss:$16 sps:$4 sm:$0xff]  }
 0x6e2   :  { %11273 = vmatpush1.bf16.msra.mxu0 %v13972_v59  ;;  %v14070_v59 = vld [vmem:[#allocation11 + $0x444] ss:$16 sps:$4 sm:$0xff]  }
 0x6e3   :  { %11437 = vmatpush1.bf16.msra.mxu1 %v13975_v12  ;;  %11274 = vmatprep.subr.bf16.mxu0 %v13980_v25  ;;  %v14073_v12 = vld [vmem:[#allocation11 + $0x44c] ss:$16 sps:$4 sm:$0xff]   ;;  %v14068_v25 = vld [vmem:[#allocation11 + $0x440] ss:$16 sps:$4 sm:$0xff]  }
 0x6e4   :  { %11438 = vmatprep.subr.bf16.mxu1 %v13983_v13  ;;  %v14071_v13 = vld [vmem:[#allocation11 + $0x448] ss:$16 sps:$4 sm:$0xff]  }
 0x6e6   :  { %11275 = vmatpush1.bf16.msra.mxu0 %v13978_v15  ;;  %v14076_v15 = vld [vmem:[#allocation11 + $0x464] ss:$16 sps:$4 sm:$0xff]  }
 0x6e7   :  { %11439 = vmatpush1.bf16.msra.mxu1 %v13981_v14  ;;  %11276 = vmatprep.subr.bf16.mxu0 %v13986_v16  ;;  %v14079_v14 = vld [vmem:[#allocation11 + $0x46c] ss:$16 sps:$4 sm:$0xff]   ;;  %v14074_v16 = vld [vmem:[#allocation11 + $0x460] ss:$16 sps:$4 sm:$0xff]  }
 0x6e8   :  { %11440 = vmatprep.subr.bf16.mxu1 %v13989_v17  ;;  %v14077_v17 = vld [vmem:[#allocation11 + $0x468] ss:$16 sps:$4 sm:$0xff]  }
 0x6ea   :  { %11277 = vmatpush1.bf16.msra.mxu0 %v13984_v18  ;;  %v14082_v18 = vld [vmem:[#allocation11 + $0x484] ss:$16 sps:$4 sm:$0xff]  }
 0x6eb   :  { %11441 = vmatpush1.bf16.msra.mxu1 %v13987_v2  ;;  %11278 = vmatprep.subr.bf16.mxu0 %v13992_v19  ;;  %v14085_v2 = vld [vmem:[#allocation11 + $0x48c] ss:$16 sps:$4 sm:$0xff]   ;;  %v14080_v19 = vld [vmem:[#allocation11 + $0x480] ss:$16 sps:$4 sm:$0xff]  }
 0x6ec   :  { %11442 = vmatprep.subr.bf16.mxu1 %v13995_v20  ;;  %v14083_v20 = vld [vmem:[#allocation11 + $0x488] ss:$16 sps:$4 sm:$0xff]  }
 0x6ee   :  { %11279 = vmatpush1.bf16.msra.mxu0 %v13990_v5  ;;  %v14088_v5 = vld [vmem:[#allocation11 + $0x4a4] ss:$16 sps:$4 sm:$0xff]  }
 0x6ef   :  { %11443 = vmatpush1.bf16.msra.mxu1 %v13993_v22  ;;  %11280 = vmatprep.subr.bf16.mxu0 %v13998_v23  ;;  %v14091_v22 = vld [vmem:[#allocation11 + $0x4ac] ss:$16 sps:$4 sm:$0xff]   ;;  %v14086_v23 = vld [vmem:[#allocation11 + $0x4a0] ss:$16 sps:$4 sm:$0xff]  }
 0x6f0   :  { %11444 = vmatprep.subr.bf16.mxu1 %v14001_v28  ;;  %v14089_v28 = vld [vmem:[#allocation11 + $0x4a8] ss:$16 sps:$4 sm:$0xff]  }
 0x6f2   :  { %11281 = vmatpush1.bf16.msra.mxu0 %v13996_v29  ;;  %v14094_v29 = vld [vmem:[#allocation11 + $0x4c4] ss:$16 sps:$4 sm:$0xff]  }
 0x6f3   :  { %11445 = vmatpush1.bf16.msra.mxu1 %v13999_v27  ;;  %11282 = vmatprep.subr.bf16.mxu0 %v14004_v30  ;;  %v14097_v27 = vld [vmem:[#allocation11 + $0x4cc] ss:$16 sps:$4 sm:$0xff]   ;;  %v14092_v30 = vld [vmem:[#allocation11 + $0x4c0] ss:$16 sps:$4 sm:$0xff]  }
 0x6f4   :  { %11446 = vmatprep.subr.bf16.mxu1 %v14007_v53  ;;  %v14095_v53 = vld [vmem:[#allocation11 + $0x4c8] ss:$16 sps:$4 sm:$0xff]  }
 0x6f6   :  { %11283 = vmatpush1.bf16.msra.mxu0 %v14002_v21  ;;  %v14100_v21 = vld [vmem:[#allocation11 + $0x4e4] ss:$16 sps:$4 sm:$0xff]  }
 0x6f7   :  { %11447 = vmatpush1.bf16.msra.mxu1 %v14005_v32  ;;  %11284 = vmatprep.subr.bf16.mxu0 %v14010_v33  ;;  %v14103_v32 = vld [vmem:[#allocation11 + $0x4ec] ss:$16 sps:$4 sm:$0xff]   ;;  %v14098_v33 = vld [vmem:[#allocation11 + $0x4e0] ss:$16 sps:$4 sm:$0xff]  }
 0x6f8   :  { %11448 = vmatprep.subr.bf16.mxu1 %v14013_v62  ;;  %v14101_v62 = vld [vmem:[#allocation11 + $0x4e8] ss:$16 sps:$4 sm:$0xff]  }
 0x6fa   :  { %11285 = vmatpush1.bf16.msra.mxu0 %v14008_v37  ;;  %v14106_v37 = vld [vmem:[#allocation11 + $0x504] ss:$16 sps:$4 sm:$0xff]  }
 0x6fb   :  { %11449 = vmatpush1.bf16.msra.mxu1 %v14011_v39  ;;  %11286 = vmatprep.subr.bf16.mxu0 %v14016_v57  ;;  %v14109_v39 = vld [vmem:[#allocation11 + $0x50c] ss:$16 sps:$4 sm:$0xff]   ;;  %v14104_v57 = vld [vmem:[#allocation11 + $0x500] ss:$16 sps:$4 sm:$0xff]  }
 0x6fc   :  { %11450 = vmatprep.subr.bf16.mxu1 %v14019_v63  ;;  %v14107_v63 = vld [vmem:[#allocation11 + $0x508] ss:$16 sps:$4 sm:$0xff]  }
 0x6fe   :  { %11287 = vmatpush1.bf16.msra.mxu0 %v14014_v44  ;;  %v14112_v44 = vld [vmem:[#allocation11 + $0x524] ss:$16 sps:$4 sm:$0xff]  }
 0x6ff   :  { %11451 = vmatpush1.bf16.msra.mxu1 %v14017_v47  ;;  %11288 = vmatprep.subr.bf16.mxu0 %v14022_v45  ;;  %v14115_v47 = vld [vmem:[#allocation11 + $0x52c] ss:$16 sps:$4 sm:$0xff]   ;;  %v14110_v45 = vld [vmem:[#allocation11 + $0x520] ss:$16 sps:$4 sm:$0xff]  }
 0x700   :  { %11452 = vmatprep.subr.bf16.mxu1 %v14025_v46  ;;  %v14113_v46 = vld [vmem:[#allocation11 + $0x528] ss:$16 sps:$4 sm:$0xff]  }
 0x702   :  { %11289 = vmatpush1.bf16.msra.mxu0 %v14020_v31  ;;  %v14118_v31 = vld [vmem:[#allocation11 + $0x544] ss:$16 sps:$4 sm:$0xff]  }
 0x703   :  { %11453 = vmatpush1.bf16.msra.mxu1 %v14023_v50  ;;  %11290 = vmatprep.subr.bf16.mxu0 %v14028_v51  ;;  %v14121_v50 = vld [vmem:[#allocation11 + $0x54c] ss:$16 sps:$4 sm:$0xff]   ;;  %v14116_v51 = vld [vmem:[#allocation11 + $0x540] ss:$16 sps:$4 sm:$0xff]  }
 0x704   :  { %11454 = vmatprep.subr.bf16.mxu1 %v14031_v58  ;;  %v14119_v58 = vld [vmem:[#allocation11 + $0x548] ss:$16 sps:$4 sm:$0xff]  }
 0x706   :  { %11291 = vmatpush1.bf16.msra.mxu0 %v14026_v52  ;;  %v14124_v52 = vld [vmem:[#allocation11 + $0x564] ss:$16 sps:$4 sm:$0xff]  }
 0x707   :  { %11455 = vmatpush1.bf16.msra.mxu1 %v14029_v8  ;;  %11292 = vmatprep.subr.bf16.mxu0 %v14034_v54  ;;  %v14127_v8 = vld [vmem:[#allocation11 + $0x56c] ss:$16 sps:$4 sm:$0xff]   ;;  %v14122_v54 = vld [vmem:[#allocation11 + $0x560] ss:$16 sps:$4 sm:$0xff]  }
 0x708   :  { %11456 = vmatprep.subr.bf16.mxu1 %v14037_v55  ;;  %v14125_v55 = vld [vmem:[#allocation11 + $0x568] ss:$16 sps:$4 sm:$0xff]  }
 0x70a   :  { %11293 = vmatpush1.bf16.msra.mxu0 %v14032_v56  ;;  %v14130_v56 = vld [vmem:[#allocation11 + $0x584] ss:$16 sps:$4 sm:$0xff]  }
 0x70b   :  { %11457 = vmatpush1.bf16.msra.mxu1 %v14035_v38  ;;  %11294 = vmatprep.subr.bf16.mxu0 %v14040_v60  ;;  %v14133_v38 = vld [vmem:[#allocation11 + $0x58c] ss:$16 sps:$4 sm:$0xff]   ;;  %v14128_v60 = vld [vmem:[#allocation11 + $0x580] ss:$16 sps:$4 sm:$0xff]  }
 0x70c   :  { %11458 = vmatprep.subr.bf16.mxu1 %v14043_v61  ;;  %v14131_v61 = vld [vmem:[#allocation11 + $0x588] ss:$16 sps:$4 sm:$0xff]  }
 0x70e   :  { %11295 = vmatpush1.bf16.msra.mxu0 %v14038_v26  ;;  %v14136_v26 = vld [vmem:[#allocation11 + $0x5a4] ss:$16 sps:$4 sm:$0xff]  }
 0x70f   :  { %11459 = vmatpush1.bf16.msra.mxu1 %v14041_v0  ;;  %11296 = vmatprep.subr.bf16.mxu0 %v14046_v40  ;;  %v14139_v0 = vld [vmem:[#allocation11 + $0x5ac] ss:$16 sps:$4 sm:$0xff]   ;;  %v14134_v40 = vld [vmem:[#allocation11 + $0x5a0] ss:$16 sps:$4 sm:$0xff]  }
 0x710   :  { %11460 = vmatprep.subr.bf16.mxu1 %v14049_v1  ;;  %v14137_v1 = vld [vmem:[#allocation11 + $0x5a8] ss:$16 sps:$4 sm:$0xff]  }
 0x712   :  { %11297 = vmatpush1.bf16.msra.mxu0 %v14044_v43  ;;  %v14142_v43 = vld [vmem:[#allocation11 + $0x5c4] ss:$16 sps:$4 sm:$0xff]  }
 0x713   :  { %11461 = vmatpush1.bf16.msra.mxu1 %v14047_v3  ;;  %11298 = vmatprep.subr.bf16.mxu0 %v14052_v48  ;;  %v14145_v3 = vld [vmem:[#allocation11 + $0x5cc] ss:$16 sps:$4 sm:$0xff]   ;;  %v14140_v48 = vld [vmem:[#allocation11 + $0x5c0] ss:$16 sps:$4 sm:$0xff]  }
 0x714   :  { %11462 = vmatprep.subr.bf16.mxu1 %v14055_v49  ;;  %v14143_v49 = vld [vmem:[#allocation11 + $0x5c8] ss:$16 sps:$4 sm:$0xff]  }
 0x716   :  { %11299 = vmatpush1.bf16.msra.mxu0 %v14050_v4  ;;  %v14148_v4 = vld [vmem:[#allocation11 + $0x5e4] ss:$16 sps:$4 sm:$0xff]  }
 0x717   :  { %11463 = vmatpush1.bf16.msra.mxu1 %v14053_v7  ;;  %11309 = vmatprep.subr.bf16.mxu0 %v14058_v41  ;;  %v14146_v7 = vld [vmem:[#allocation11 + $0x5e0] ss:$16 sps:$4 sm:$0xff]   ;;  %v14149_v41 = vld [vmem:[#allocation11 + $0x5e8] ss:$16 sps:$4 sm:$0xff]  }
 0x718   :  { %11473 = vmatprep.subr.bf16.mxu1 %v14061_v9  ;;  %v14154_v9 = vld [vmem:[#allocation11 + $0x604] ss:$16 sps:$4 sm:$0xff]  }
 0x719   :  { %11301 = vmatmul.mubr.bf16.vlgmr.msra.gmra.mrb[24].mxu0 %v9663_v35 }
 0x71a   :  { %11465 = vmatmul.mubr.bf16.vlgmr.msra.gmra.mrb[32].mxu1 %v9663_v35  ;;  %11310 = vmatpush1.bf16.msra.mxu0 %v14056_v10  ;;  %v14157_v10 = vld [vmem:[#allocation11 + $0x60c] ss:$16 sps:$4 sm:$0xff]  }
 0x71b   :  { %11474 = vmatpush1.bf16.msra.mxu1 %v14059_v36  ;;  %11311 = vmatprep.subr.bf16.mxu0 %v14064_v11 }
 0x71c   :  { %11475 = vmatprep.subr.bf16.mxu1 %v14067_v24 }
 0x71e   :  { %11312 = vmatpush1.bf16.msra.mxu0 %v14062_v42 }
 0x71f   :  { %11476 = vmatpush1.bf16.msra.mxu1 %v14065_v34  ;;  %11313 = vmatprep.subr.bf16.mxu0 %v14070_v59 }
 0x720   :  { %11477 = vmatprep.subr.bf16.mxu1 %v14073_v12 }
 0x722   :  { %11314 = vmatpush1.bf16.msra.mxu0 %v14068_v25 }
 0x723   :  { %11478 = vmatpush1.bf16.msra.mxu1 %v14071_v13  ;;  %11315 = vmatprep.subr.bf16.mxu0 %v14076_v15 }
 0x724   :  { %11479 = vmatprep.subr.bf16.mxu1 %v14079_v14 }
 0x726   :  { %11316 = vmatpush1.bf16.msra.mxu0 %v14074_v16  ;;  %v14152_v16 = vld [vmem:[#allocation11 + $0x600] ss:$16 sps:$4 sm:$0xff]  }
 0x727   :  { %11480 = vmatpush1.bf16.msra.mxu1 %v14077_v17  ;;  %11317 = vmatprep.subr.bf16.mxu0 %v14082_v18  ;;  %v14155_v17 = vld [vmem:[#allocation11 + $0x608] ss:$16 sps:$4 sm:$0xff]  }
 0x728   :  { %11481 = vmatprep.subr.bf16.mxu1 %v14085_v2  ;;  %v14160_v2 = vld [vmem:[#allocation11 + $0x624] ss:$16 sps:$4 sm:$0xff]  }
 0x72a   :  { %11318 = vmatpush1.bf16.msra.mxu0 %v14080_v19  ;;  %v14163_v19 = vld [vmem:[#allocation11 + $0x62c] ss:$16 sps:$4 sm:$0xff]  }
 0x72b   :  { %11482 = vmatpush1.bf16.msra.mxu1 %v14083_v20  ;;  %11319 = vmatprep.subr.bf16.mxu0 %v14088_v5  ;;  %v14158_v5 = vld [vmem:[#allocation11 + $0x620] ss:$16 sps:$4 sm:$0xff]  }
 0x72c   :  { %11483 = vmatprep.subr.bf16.mxu1 %v14091_v22  ;;  %v14161_v22 = vld [vmem:[#allocation11 + $0x628] ss:$16 sps:$4 sm:$0xff]  }
 0x72e   :  { %11320 = vmatpush1.bf16.msra.mxu0 %v14086_v23  ;;  %v14166_v23 = vld [vmem:[#allocation11 + $0x644] ss:$16 sps:$4 sm:$0xff]  }
 0x72f   :  { %11484 = vmatpush1.bf16.msra.mxu1 %v14089_v28  ;;  %11321 = vmatprep.subr.bf16.mxu0 %v14094_v29  ;;  %v14169_v28 = vld [vmem:[#allocation11 + $0x64c] ss:$16 sps:$4 sm:$0xff]   ;;  %v14164_v29 = vld [vmem:[#allocation11 + $0x640] ss:$16 sps:$4 sm:$0xff]  }
 0x730   :  { %11485 = vmatprep.subr.bf16.mxu1 %v14097_v27  ;;  %v14167_v27 = vld [vmem:[#allocation11 + $0x648] ss:$16 sps:$4 sm:$0xff]  }
 0x732   :  { %11322 = vmatpush1.bf16.msra.mxu0 %v14092_v30  ;;  %v14172_v30 = vld [vmem:[#allocation11 + $0x664] ss:$16 sps:$4 sm:$0xff]  }
 0x733   :  { %11486 = vmatpush1.bf16.msra.mxu1 %v14095_v53  ;;  %11323 = vmatprep.subr.bf16.mxu0 %v14100_v21  ;;  %v14175_v53 = vld [vmem:[#allocation11 + $0x66c] ss:$16 sps:$4 sm:$0xff]   ;;  %v14170_v21 = vld [vmem:[#allocation11 + $0x660] ss:$16 sps:$4 sm:$0xff]  }
 0x734   :  { %11487 = vmatprep.subr.bf16.mxu1 %v14103_v32  ;;  %v14173_v32 = vld [vmem:[#allocation11 + $0x668] ss:$16 sps:$4 sm:$0xff]  }
 0x736   :  { %11324 = vmatpush1.bf16.msra.mxu0 %v14098_v33  ;;  %v14178_v33 = vld [vmem:[#allocation11 + $0x684] ss:$16 sps:$4 sm:$0xff]  }
 0x737   :  { %11488 = vmatpush1.bf16.msra.mxu1 %v14101_v62  ;;  %11325 = vmatprep.subr.bf16.mxu0 %v14106_v37  ;;  %v14181_v62 = vld [vmem:[#allocation11 + $0x68c] ss:$16 sps:$4 sm:$0xff]   ;;  %v14176_v37 = vld [vmem:[#allocation11 + $0x680] ss:$16 sps:$4 sm:$0xff]  }
 0x738   :  { %11489 = vmatprep.subr.bf16.mxu1 %v14109_v39  ;;  %v14179_v39 = vld [vmem:[#allocation11 + $0x688] ss:$16 sps:$4 sm:$0xff]  }
 0x73a   :  { %11326 = vmatpush1.bf16.msra.mxu0 %v14104_v57  ;;  %v14184_v57 = vld [vmem:[#allocation11 + $0x6a4] ss:$16 sps:$4 sm:$0xff]  }
 0x73b   :  { %11490 = vmatpush1.bf16.msra.mxu1 %v14107_v63  ;;  %11327 = vmatprep.subr.bf16.mxu0 %v14112_v44  ;;  %v14187_v63 = vld [vmem:[#allocation11 + $0x6ac] ss:$16 sps:$4 sm:$0xff]   ;;  %v14182_v44 = vld [vmem:[#allocation11 + $0x6a0] ss:$16 sps:$4 sm:$0xff]  }
 0x73c   :  { %11491 = vmatprep.subr.bf16.mxu1 %v14115_v47  ;;  %v14185_v47 = vld [vmem:[#allocation11 + $0x6a8] ss:$16 sps:$4 sm:$0xff]  }
 0x73e   :  { %11328 = vmatpush1.bf16.msra.mxu0 %v14110_v45  ;;  %v14190_v45 = vld [vmem:[#allocation11 + $0x6c4] ss:$16 sps:$4 sm:$0xff]  }
 0x73f   :  { %11492 = vmatpush1.bf16.msra.mxu1 %v14113_v46  ;;  %11329 = vmatprep.subr.bf16.mxu0 %v14118_v31  ;;  %v14193_v46 = vld [vmem:[#allocation11 + $0x6cc] ss:$16 sps:$4 sm:$0xff]   ;;  %v14188_v31 = vld [vmem:[#allocation11 + $0x6c0] ss:$16 sps:$4 sm:$0xff]  }
 0x740   :  { %11493 = vmatprep.subr.bf16.mxu1 %v14121_v50  ;;  %v14191_v50 = vld [vmem:[#allocation11 + $0x6c8] ss:$16 sps:$4 sm:$0xff]  }
 0x742   :  { %11330 = vmatpush1.bf16.msra.mxu0 %v14116_v51  ;;  %v14196_v51 = vld [vmem:[#allocation11 + $0x6e4] ss:$16 sps:$4 sm:$0xff]  }
 0x743   :  { %11494 = vmatpush1.bf16.msra.mxu1 %v14119_v58  ;;  %11331 = vmatprep.subr.bf16.mxu0 %v14124_v52  ;;  %v14199_v58 = vld [vmem:[#allocation11 + $0x6ec] ss:$16 sps:$4 sm:$0xff]   ;;  %v14194_v52 = vld [vmem:[#allocation11 + $0x6e0] ss:$16 sps:$4 sm:$0xff]  }
 0x744   :  { %11495 = vmatprep.subr.bf16.mxu1 %v14127_v8  ;;  %v14197_v8 = vld [vmem:[#allocation11 + $0x6e8] ss:$16 sps:$4 sm:$0xff]  }
 0x746   :  { %11332 = vmatpush1.bf16.msra.mxu0 %v14122_v54  ;;  %v14202_v54 = vld [vmem:[#allocation11 + $0x704] ss:$16 sps:$4 sm:$0xff]  }
 0x747   :  { %11496 = vmatpush1.bf16.msra.mxu1 %v14125_v55  ;;  %11333 = vmatprep.subr.bf16.mxu0 %v14130_v56  ;;  %v14205_v55 = vld [vmem:[#allocation11 + $0x70c] ss:$16 sps:$4 sm:$0xff]   ;;  %v14200_v56 = vld [vmem:[#allocation11 + $0x700] ss:$16 sps:$4 sm:$0xff]  }
 0x748   :  { %11497 = vmatprep.subr.bf16.mxu1 %v14133_v38  ;;  %v14203_v38 = vld [vmem:[#allocation11 + $0x708] ss:$16 sps:$4 sm:$0xff]  }
 0x74a   :  { %11334 = vmatpush1.bf16.msra.mxu0 %v14128_v60  ;;  %v14208_v60 = vld [vmem:[#allocation11 + $0x724] ss:$16 sps:$4 sm:$0xff]  }
 0x74b   :  { %11498 = vmatpush1.bf16.msra.mxu1 %v14131_v61  ;;  %11335 = vmatprep.subr.bf16.mxu0 %v14136_v26  ;;  %v14211_v61 = vld [vmem:[#allocation11 + $0x72c] ss:$16 sps:$4 sm:$0xff]   ;;  %v14206_v26 = vld [vmem:[#allocation11 + $0x720] ss:$16 sps:$4 sm:$0xff]  }
 0x74c   :  { %11499 = vmatprep.subr.bf16.mxu1 %v14139_v0  ;;  %v14209_v0 = vld [vmem:[#allocation11 + $0x728] ss:$16 sps:$4 sm:$0xff]  }
 0x74e   :  { %11336 = vmatpush1.bf16.msra.mxu0 %v14134_v40  ;;  %v14214_v40 = vld [vmem:[#allocation11 + $0x744] ss:$16 sps:$4 sm:$0xff]  }
 0x74f   :  { %11500 = vmatpush1.bf16.msra.mxu1 %v14137_v1  ;;  %11337 = vmatprep.subr.bf16.mxu0 %v14142_v43  ;;  %v14217_v1 = vld [vmem:[#allocation11 + $0x74c] ss:$16 sps:$4 sm:$0xff]   ;;  %v14212_v43 = vld [vmem:[#allocation11 + $0x740] ss:$16 sps:$4 sm:$0xff]  }
 0x750   :  { %11501 = vmatprep.subr.bf16.mxu1 %v14145_v3  ;;  %v14215_v3 = vld [vmem:[#allocation11 + $0x748] ss:$16 sps:$4 sm:$0xff]  }
 0x752   :  { %11338 = vmatpush1.bf16.msra.mxu0 %v14140_v48  ;;  %v14220_v48 = vld [vmem:[#allocation11 + $0x764] ss:$16 sps:$4 sm:$0xff]  }
 0x753   :  { %11502 = vmatpush1.bf16.msra.mxu1 %v14143_v49  ;;  %11339 = vmatprep.subr.bf16.mxu0 %v14148_v4  ;;  %v14223_v49 = vld [vmem:[#allocation11 + $0x76c] ss:$16 sps:$4 sm:$0xff]   ;;  %v14218_v4 = vld [vmem:[#allocation11 + $0x760] ss:$16 sps:$4 sm:$0xff]  }
 0x754   :  { %11503 = vmatprep.subr.bf16.mxu1 %v14151_v6  ;;  %v14221_v6 = vld [vmem:[#allocation11 + $0x768] ss:$16 sps:$4 sm:$0xff]  }
 0x756   :  { %11340 = vmatpush1.bf16.msra.mxu0 %v14146_v7  ;;  %v14226_v7 = vld [vmem:[#allocation11 + $0x784] ss:$16 sps:$4 sm:$0xff]  }
 0x757   :  { %11504 = vmatpush1.bf16.msra.mxu1 %v14149_v41  ;;  %11350 = vmatprep.subr.bf16.mxu0 %v14154_v9  ;;  %v14229_v41 = vld [vmem:[#allocation11 + $0x78c] ss:$16 sps:$4 sm:$0xff]   ;;  %v14224_v9 = vld [vmem:[#allocation11 + $0x780] ss:$16 sps:$4 sm:$0xff]  }
 0x758   :  { %11514 = vmatprep.subr.bf16.mxu1 %v14157_v10  ;;  %v14227_v10 = vld [vmem:[#allocation11 + $0x788] ss:$16 sps:$4 sm:$0xff]  }
 0x76c   :  { %v9482_v35 = vpop.f32.mrb[20].mxu0 }
 0x76d   :  { %v9657_v36 = vmax.f32 %v9482_v35, 0.0  ;;  %v14959_v11 = vpop.f32.mrb[28].mxu1  ;;  %v9484_v24 = vpop.f32.mrb[21].mxu0  ;;  %v14232_v35 = vld [vmem:[#allocation11 + $0x7a4] ss:$16 sps:$4 sm:$0xff]  }
 0x76e   :  { %v9658_v42 = vmax.f32 %v9484_v24, 0.0  ;;  %v9648_v34 = vpop.f32.mrb[29].mxu1  ;;  %v9486_v59 = vpop.f32.mrb[22].mxu0  ;;  %v14230_v24 = vld [vmem:[#allocation11 + $0x7a0] ss:$16 sps:$4 sm:$0xff]  }
 0x76f   :  { %v9660_v12 = vmax.f32 %v9648_v34, 0.0  ;;  %v9650_v25 = vpop.f32.mrb[30].mxu1  ;;  %v9487_v13 = vpop.f32.mrb[23].mxu0  ;;  %v9665_v18 = vpack.c.bf16 %v9657_v36, %v9657_v36  ;;  %v14235_v36 = vld [vmem:[#allocation11 + $0x7ac] ss:$16 sps:$4 sm:$0xff]  }
 0x770   :  { %v9666_v15 = vpack.c.bf16 %v9658_v42, %v9658_v42  ;;  %v9651_v14 = vpop.f32.mrb[31].mxu1  ;;  %v14233_v42 = vld [vmem:[#allocation11 + $0x7a8] ss:$16 sps:$4 sm:$0xff]   ;;  %v14238_v34 = vld [vmem:[#allocation11 + $0x7c4] ss:$16 sps:$4 sm:$0xff]  }
 0x771   :  { %v9668_v20 = vpack.c.bf16 %v9660_v12, %v9660_v12  ;;  %v14241_v59 = vld [vmem:[#allocation11 + $0x7cc] ss:$16 sps:$4 sm:$0xff]   ;;  %v14236_v12 = vld [vmem:[#allocation11 + $0x7c0] ss:$16 sps:$4 sm:$0xff]   ;;  %v14239_v25 = vld [vmem:[#allocation11 + $0x7c8] ss:$16 sps:$4 sm:$0xff]  }
 0x772   :  { %11341 = vmatprep.mubr.bf16.mxu0 %v9666_v15  ;;  %11505 = vmatprep.mubr.bf16.mxu1 %v9666_v15  ;;  %v14244_v13 = vld [vmem:[#allocation11 + $0x7e4] ss:$16 sps:$4 sm:$0xff]   ;;  %v14247_v15 = vld [vmem:[#allocation11 + $0x7ec] ss:$16 sps:$4 sm:$0xff]   ;;  %v14242_v14 = vld [vmem:[#allocation11 + $0x7e0] ss:$16 sps:$4 sm:$0xff]  }
 0x773   :  { %11342 = vmatmul.mubr.bf16.vlgmr.msra.gmra.mrb[24].mxu0 %v9665_v18  ;;  %11506 = vmatmul.mubr.bf16.vlgmr.msra.gmra.mrb[32].mxu1 %v9665_v18  ;;  %v14248_v18 = vld [vmem:[#allocation14 + $0x40] sm:$0xff]  }
 0x774   :  { %11351 = vmatpush1.bf16.msra.mxu0 %v14152_v16  ;;  %11515 = vmatpush1.bf16.msra.mxu1 %v14155_v17  ;;  %v14245_v16 = vld [vmem:[#allocation11 + $0x7e8] ss:$16 sps:$4 sm:$0xff]   ;;  %v9659_v17 = vmax.f32 %v14959_v11, 0.0 }
 0x775   :  { %11382 = vmatprep.mubr.bf16.mxu0 %v9668_v20  ;;  %11546 = vmatprep.mubr.bf16.mxu1 %v9668_v20  ;;  %v14251_v20 = vld [vmem:[#allocation14 + $0x80] sm:$0xff]   ;;  %v14256_v11 = vld [vmem:[#allocation14 + $0x50] sm:$0xff]  }
 0x776   :  { %11352 = vmatprep.subr.bf16.mxu0 %v14160_v2  ;;  %11516 = vmatprep.subr.bf16.mxu1 %v14163_v19  ;;  %v14249_v2 = vld [vmem:[#allocation14 + $0xc0] sm:$0xff]  }
 0x777   :  { %v14250_v19 = vld [vmem:[#allocation14] sm:$0xff]  }
 0x778   :  { %11353 = vmatpush1.bf16.msra.mxu0 %v14158_v5  ;;  %11517 = vmatpush1.bf16.msra.mxu1 %v14161_v22  ;;  %v9667_v5 = vpack.c.bf16 %v9659_v17, %v9659_v17  ;;  %v14252_v22 = vld [vmem:[#allocation14 + $0x48] sm:$0xff]  }
 0x779   :  { %11354 = vmatprep.subr.bf16.mxu0 %v14166_v23  ;;  %11518 = vmatprep.subr.bf16.mxu1 %v14169_v28  ;;  %v14253_v23 = vld [vmem:[#allocation14 + $0xc8] sm:$0xff]  }
 0x77a   :  { %v14254_v28 = vld [vmem:[#allocation14 + $0x8] sm:$0xff]  }
 0x77b   :  { %v14280_v17 = vld [vmem:[#allocation17] sm:$0xff]  }
 0x77c   :  { %11355 = vmatpush1.bf16.msra.mxu0 %v14164_v29  ;;  %11519 = vmatpush1.bf16.msra.mxu1 %v14167_v27  ;;  %v14255_v29 = vld [vmem:[#allocation14 + $0x88] sm:$0xff]   ;;  %v14257_v27 = vld [vmem:[#allocation14 + $0xd0] sm:$0xff]  }
 0x77d   :  { %11356 = vmatprep.subr.bf16.mxu0 %v14172_v30  ;;  %11520 = vmatprep.subr.bf16.mxu1 %v14175_v53  ;;  %v14258_v30 = vld [vmem:[#allocation14 + $0x10] sm:$0xff]  }
 0x77e   :  { %v14259_v53 = vld [vmem:[#allocation14 + $0x90] sm:$0xff]  }
 0x780   :  { %11357 = vmatpush1.bf16.msra.mxu0 %v14170_v21  ;;  %11521 = vmatpush1.bf16.msra.mxu1 %v14173_v32  ;;  %v14260_v21 = vld [vmem:[#allocation14 + $0x58] sm:$0xff]  }
 0x781   :  { %11358 = vmatprep.subr.bf16.mxu0 %v14178_v33  ;;  %11522 = vmatprep.subr.bf16.mxu1 %v14181_v62  ;;  %v14261_v32 = vld [vmem:[#allocation14 + $0xd8] sm:$0xff]  }
 0x782   :  { %v14262_v33 = vld [vmem:[#allocation14 + $0x18] sm:$0xff]  }
 0x783   :  { %v14263_v62 = vld [vmem:[#allocation14 + $0x98] sm:$0xff]  }
 0x784   :  { %11359 = vmatpush1.bf16.msra.mxu0 %v14176_v37  ;;  %11523 = vmatpush1.bf16.msra.mxu1 %v14179_v39  ;;  %v14264_v37 = vld [vmem:[#allocation14 + $0x60] sm:$0xff]  }
 0x785   :  { %11360 = vmatprep.subr.bf16.mxu0 %v14184_v57  ;;  %11524 = vmatprep.subr.bf16.mxu1 %v14187_v63  ;;  %v14265_v39 = vld [vmem:[#allocation14 + $0xe0] sm:$0xff]  }
 0x786   :  { %v14266_v57 = vld [vmem:[#allocation14 + $0x20] sm:$0xff]  }
 0x787   :  { %v14267_v63 = vld [vmem:[#allocation14 + $0xa0] sm:$0xff]  }
 0x788   :  { %11361 = vmatpush1.bf16.msra.mxu0 %v14182_v44  ;;  %11525 = vmatpush1.bf16.msra.mxu1 %v14185_v47  ;;  %v14268_v44 = vld [vmem:[#allocation14 + $0x68] sm:$0xff]  }
 0x789   :  { %11362 = vmatprep.subr.bf16.mxu0 %v14190_v45  ;;  %11526 = vmatprep.subr.bf16.mxu1 %v14193_v46  ;;  %v14269_v47 = vld [vmem:[#allocation14 + $0xe8] sm:$0xff]  }
 0x78a   :  { %v14270_v45 = vld [vmem:[#allocation14 + $0x28] sm:$0xff]  }
 0x78b   :  { %v14271_v46 = vld [vmem:[#allocation14 + $0xa8] sm:$0xff]  }
 0x78c   :  { %11363 = vmatpush1.bf16.msra.mxu0 %v14188_v31  ;;  %11527 = vmatpush1.bf16.msra.mxu1 %v14191_v50  ;;  %v14272_v31 = vld [vmem:[#allocation14 + $0x70] sm:$0xff]  }
 0x78d   :  { %11364 = vmatprep.subr.bf16.mxu0 %v14196_v51  ;;  %11528 = vmatprep.subr.bf16.mxu1 %v14199_v58  ;;  %v14273_v50 = vld [vmem:[#allocation14 + $0xf0] sm:$0xff]  }
 0x78e   :  { %v14274_v51 = vld [vmem:[#allocation14 + $0x30] sm:$0xff]  }
 0x78f   :  { %v14275_v58 = vld [vmem:[#allocation14 + $0xb0] sm:$0xff]  }
 0x790   :  { %11365 = vmatpush1.bf16.msra.mxu0 %v14194_v52  ;;  %11529 = vmatpush1.bf16.msra.mxu1 %v14197_v8  ;;  %v14276_v52 = vld [vmem:[#allocation14 + $0x78] sm:$0xff]  }
 0x791   :  { %11366 = vmatprep.subr.bf16.mxu0 %v14202_v54  ;;  %11530 = vmatprep.subr.bf16.mxu1 %v14205_v55  ;;  %v14277_v8 = vld [vmem:[#allocation14 + $0xf8] sm:$0xff]  }
 0x792   :  { %v14278_v54 = vld [vmem:[#allocation14 + $0x38] sm:$0xff]  }
 0x793   :  { %v14279_v55 = vld [vmem:[#allocation14 + $0xb8] sm:$0xff]  }
 0x794   :  { %11367 = vmatpush1.bf16.msra.mxu0 %v14200_v56  ;;  %11531 = vmatpush1.bf16.msra.mxu1 %v14203_v38  ;;  %v14584_v56 = vmov 0.0   ;;  %v9927_v38 = vlaneseq }
 0x795   :  { %11368 = vmatprep.subr.bf16.mxu0 %v14208_v60  ;;  %11532 = vmatprep.subr.bf16.mxu1 %v14211_v61 }
 0x796   :  { %v9928_v60 = vshrl.u32 %v9927_v38, 7 }
 0x798   :  { %11369 = vmatpush1.bf16.msra.mxu0 %v14206_v26  ;;  %11533 = vmatpush1.bf16.msra.mxu1 %v14209_v0  ;;  %v9929_v61 = vsub.s32 0, %v9928_v60  ;;  %v9937_v26 = vsub.s32 2, %v9928_v60  ;;  %v9925_v0 = vld [vmem:[#allocation13] sm:$0xf] }
 0x799   :  { %11370 = vmatprep.subr.bf16.mxu0 %v14214_v40  ;;  %11534 = vmatprep.subr.bf16.mxu1 %v14217_v1  ;;  %v9933_v40 = vsub.s32 1, %v9928_v60  ;;  %v9941_v1 = vsub.s32 3, %v9928_v60 }
 0x79c   :  { %11371 = vmatpush1.bf16.msra.mxu0 %v14212_v43  ;;  %11535 = vmatpush1.bf16.msra.mxu1 %v14215_v3  ;;  %v9930_v43 = vrot.slane %v9925_v0, %v9929_v61  ;;  %v9938_v3 = vrot.slane %v9925_v0, %v9937_v26 }
 0x79d   :  { %11372 = vmatprep.subr.bf16.mxu0 %v14220_v48  ;;  %11536 = vmatprep.subr.bf16.mxu1 %v14223_v49  ;;  %v9934_v48 = vrot.slane %v9925_v0, %v9933_v40  ;;  %v9942_v49 = vrot.slane %v9925_v0, %v9941_v1 }
 0x7a0   :  { %11373 = vmatpush1.bf16.msra.mxu0 %v14218_v4  ;;  %11537 = vmatpush1.bf16.msra.mxu1 %v14221_v6 }
 0x7a1   :  { %11374 = vmatprep.subr.bf16.mxu0 %v14226_v7  ;;  %11538 = vmatprep.subr.bf16.mxu1 %v14229_v41 }
 0x7a4   :  { %11375 = vmatpush1.bf16.msra.mxu0 %v14224_v9  ;;  %11539 = vmatpush1.bf16.msra.mxu1 %v14227_v10 }
 0x7a5   :  { %11376 = vmatprep.subr.bf16.mxu0 %v14232_v35  ;;  %11540 = vmatprep.subr.bf16.mxu1 %v14235_v36 }
 0x7a8   :  { %11377 = vmatpush1.bf16.msra.mxu0 %v14230_v24  ;;  %11541 = vmatpush1.bf16.msra.mxu1 %v14233_v42 }
 0x7a9   :  { %11378 = vmatprep.subr.bf16.mxu0 %v14238_v34  ;;  %11542 = vmatprep.subr.bf16.mxu1 %v14241_v59 }
 0x7ac   :  { %11379 = vmatpush1.bf16.msra.mxu0 %v14236_v12  ;;  %11543 = vmatpush1.bf16.msra.mxu1 %v14239_v25 }
 0x7ad   :  { %11380 = vmatprep.subr.bf16.mxu0 %v14244_v13  ;;  %11544 = vmatprep.subr.bf16.mxu1 %v14247_v15 }
 0x7b0   :  { %11381 = vmatpush1.bf16.msra.mxu0 %v14242_v14  ;;  %11545 = vmatpush1.bf16.msra.mxu1 %v14245_v16 }
 0x7b1   :  { %13624 = vmatprep.subr.bf16.mxu0 %v14248_v18  ;;  %13646 = vmatprep.subr.bf16.mxu1 %v14249_v2 }
 0x7b3   :  { %11383 = vmatmul.mubr.bf16.vlgmr.msra.gmra.mrb[24].mxu0 %v9667_v5  ;;  %11547 = vmatmul.mubr.bf16.vlgmr.msra.gmra.mrb[32].mxu1 %v9667_v5  ;;  %v14283_v5 = vld [vmem:[#allocation17 + $0x18] sm:$0xff]  }
 0x7b4   :  { %13625 = vmatpush3.bf16.msra.mxu0 %v14250_v19  ;;  %13647 = vmatpush3.bf16.msra.mxu1 %v14251_v20  ;;  %v14281_v19 = vld [vmem:[#allocation17 + $0x8] sm:$0xff]   ;;  %v14282_v20 = vld [vmem:[#allocation17 + $0x10] sm:$0xff]  }
 0x7b5   :  { %13626 = vmatprep.subr.bf16.mxu0 %v14252_v22  ;;  %13648 = vmatprep.subr.bf16.mxu1 %v14253_v23  ;;  %v14284_v22 = vld [vmem:[#allocation17 + $0x20] sm:$0xff]   ;;  %v14285_v23 = vld [vmem:[#allocation17 + $0x28] sm:$0xff]  }
 0x7b8   :  { %13627 = vmatpush3.bf16.msra.mxu0 %v14254_v28  ;;  %13649 = vmatpush3.bf16.msra.mxu1 %v14255_v29  ;;  %v14286_v28 = vld [vmem:[#allocation17 + $0x30] sm:$0xff]   ;;  %v14287_v29 = vld [vmem:[#allocation17 + $0x38] sm:$0xff]  }
 0x7b9   :  { %13628 = vmatprep.subr.bf16.mxu0 %v14256_v11  ;;  %13650 = vmatprep.subr.bf16.mxu1 %v14257_v27 }
 0x7bc   :  { %13629 = vmatpush3.bf16.msra.mxu0 %v14258_v30  ;;  %13651 = vmatpush3.bf16.msra.mxu1 %v14259_v53  ;;  %v13582_v30 = vld [vmem:[#allocation16] ss:$0 sm:$0xff] }
 0x7bd   :  { %13630 = vmatprep.subr.bf16.mxu0 %v14260_v21  ;;  %13652 = vmatprep.subr.bf16.mxu1 %v14261_v32 }
 0x7c0   :  { %13631 = vmatpush3.bf16.msra.mxu0 %v14262_v33  ;;  %13653 = vmatpush3.bf16.msra.mxu1 %v14263_v62 }
 0x7c1   :  { %13632 = vmatprep.subr.bf16.mxu0 %v14264_v37  ;;  %13654 = vmatprep.subr.bf16.mxu1 %v14265_v39 }
 0x7c4   :  { %13633 = vmatpush3.bf16.msra.mxu0 %v14266_v57  ;;  %13655 = vmatpush3.bf16.msra.mxu1 %v14267_v63 }
 0x7c5   :  { %13634 = vmatprep.subr.bf16.mxu0 %v14268_v44  ;;  %13656 = vmatprep.subr.bf16.mxu1 %v14269_v47 }
 0x7c8   :  { %13635 = vmatpush3.bf16.msra.mxu0 %v14270_v45  ;;  %13657 = vmatpush3.bf16.msra.mxu1 %v14271_v46  ;;  %v13615_v46 = vld [vmem:[#allocation19] ss:$0 sm:$0xff] }
 0x7c9   :  { %13636 = vmatprep.subr.bf16.mxu0 %v14272_v31  ;;  %13658 = vmatprep.subr.bf16.mxu1 %v14273_v50 }
 0x7cc   :  { %13637 = vmatpush3.bf16.msra.mxu0 %v14274_v51  ;;  %13659 = vmatpush3.bf16.msra.mxu1 %v14275_v58 }
 0x7cd   :  { %13638 = vmatprep.subr.bf16.mxu0 %v14276_v52  ;;  %13660 = vmatprep.subr.bf16.mxu1 %v14277_v8 }
 0x7d0   :  { %13639 = vmatpush3.bf16.msra.mxu0 %v14278_v54  ;;  %13661 = vmatpush3.bf16.msra.mxu1 %v14279_v55 }
 0x7d1   :  { %13677 = vmatprep.subr.bf16.mxu0 %v14584_v56 }
 0x886   :  { %v11384_v4 = vpop.f32.mrb[24].mxu0  ;;  %v11548_v6 = vpop.f32.mrb[32].mxu1 }
 0x887   :  { %v13697_v7 = vadd.f32 %v11384_v4, %v9930_v43  ;;  %v13699_v41 = vadd.f32 %v11548_v6, %v9938_v3  ;;  %v11386_v9 = vpop.f32.mrb[25].mxu0  ;;  %v11550_v10 = vpop.f32.mrb[33].mxu1 }
 0x888   :  { %v13698_v35 = vadd.f32 %v11386_v9, %v9934_v48  ;;  %v13700_v36 = vadd.f32 %v11550_v10, %v9942_v49  ;;  %v11388_v24 = vpop.f32.mrb[26].mxu0  ;;  %v11552_v42 = vpop.f32.mrb[34].mxu1 }
 0x889   :  { %v11555_v34 = vmax.f32 %v13697_v7, 0.0  ;;  %v11557_v59 = vmax.f32 %v13699_v41, 0.0  ;;  %v11389_v12 = vpop.f32.mrb[27].mxu0  ;;  %v11553_v25 = vpop.f32.mrb[35].mxu1 }
 0x88a   :  { %v11556_v13 = vmax.f32 %v13698_v35, 0.0  ;;  %v11558_v15 = vmax.f32 %v13700_v36, 0.0 }
 0x88b   :  { %v11559_v18 = vpack.c.bf16 %v11555_v34, %v11555_v34  ;;  %v11561_v2 = vpack.c.bf16 %v11557_v59, %v11557_v59 }
 0x88c   :  { %v11560_v14 = vpack.c.bf16 %v11556_v13, %v11556_v13  ;;  %v11562_v16 = vpack.c.bf16 %v11558_v15, %v11558_v15 }
 0x88e   :  { %11858 = vmatprep.mubr.bf16.mxu0 %v11560_v14  ;;  %11898 = vmatprep.mubr.bf16.mxu1 %v11562_v16 }
 0x88f   :  { %11859 = vmatmul.mubr.bf16.vlgmr.msra.gmra.mrb[28].mxu0 %v11559_v18  ;;  %11899 = vmatmul.mubr.bf16.vlgmr.msra.gmra.mrb[36].mxu1 %v11561_v2 }
 0x890   :  { %13678 = vmatpush3.bf16.msra.mxu0 %v14280_v17  ;;  %13693 = vmatprep.mubr.msk.bf16.mxu0 %vm14585_vm1, %v14584_v56 }
 0x891   :  { %13679 = vmatprep.subr.bf16.mxu0 %v14584_v56 }
 0x894   :  { %13680 = vmatpush3.bf16.msra.mxu0 %v14281_v19 }
 0x895   :  { %13681 = vmatprep.subr.bf16.mxu0 %v14584_v56 }
 0x898   :  { %13682 = vmatpush3.bf16.msra.mxu0 %v14282_v20 }
 0x899   :  { %13683 = vmatprep.subr.bf16.mxu0 %v14584_v56 }
 0x89c   :  { %13684 = vmatpush3.bf16.msra.mxu0 %v14283_v5 }
 0x89d   :  { %13685 = vmatprep.subr.bf16.mxu0 %v14584_v56 }
 0x8a0   :  { %13686 = vmatpush3.bf16.msra.mxu0 %v14284_v22 }
 0x8a1   :  { %13687 = vmatprep.subr.bf16.mxu0 %v14584_v56 }
 0x8a4   :  { %13688 = vmatpush3.bf16.msra.mxu0 %v14285_v23 }
 0x8a5   :  { %13689 = vmatprep.subr.bf16.mxu0 %v14584_v56 }
 0x8a8   :  { %13690 = vmatpush3.bf16.msra.mxu0 %v14286_v28 }
 0x8a9   :  { %13691 = vmatprep.subr.bf16.mxu0 %v14584_v56 }
 0x8ac   :  { %13692 = vmatpush3.bf16.msra.mxu0 %v14287_v29 }
 0x962   :  { %v13640_v11 = vpop.f32.mrb[28].mxu0  ;;  %v13662_v27 = vpop.f32.mrb[36].mxu1 }
 0x963   :  { %v13641_v53 = vpop.f32.mrb[29].mxu0  ;;  %v13663_v21 = vpop.f32.mrb[37].mxu1 }
 0x964   :  { %v13642_v32 = vadd.f32 %v13641_v53, %v13640_v11  ;;  %v13664_v33 = vadd.f32 %v13663_v21, %v13662_v27  ;;  %v13643_v62 = vpop.f32.mrb[30].mxu0  ;;  %v13665_v37 = vpop.f32.mrb[38].mxu1 }
 0x965   :  { %v13644_v39 = vpop.f32.mrb[31].mxu0  ;;  %v13666_v57 = vpop.f32.mrb[39].mxu1 }
 0x966   :  { %v11861_v63 = vadd.f32 %v13642_v32, %v13582_v30 }
 0x968   :  { %v11901_v44 = vadd.f32 %v13664_v33, %v11861_v63 }
 0x96a   :  { %v11906_v47 = vmax.f32 %v11901_v44, 0.0 }
 0x96c   :  { %v11907_v45 = vpack.c.bf16 %v11906_v47, %v11906_v47 }
 0x96e   :  { %13694 = vmatmul.mubr.bf16.vlgmr.msra.gmra.mrb[32].mxu0 %v11907_v45 }
 0xa41   :  { %v12013_v31 = vpop.f32.mrb[32].mxu0 }
 0xa42   :  { %v12014_v50 = vadd.f32 %v13615_v46, %v12013_v31  ;;  %v13695_v51 = vpop.f32.mrb[33].mxu0 }
 0xa43   :  { %v12016_v58 = vpop.f32.mrb[34].mxu0 }
 0xa44   :  { %12019 = vst [vmem:[#allocation20] sm:$0x3] %v12014_v50  ;;  %v13696_v52 = vpop.f32.mrb[35].mxu0 }
 0xa45   :  { %14541 = shalt.err (!%p14538_p8)
}
 0xa46   :  { %s14542_s24 = scalar_lea.hbm %s14985_s11, 32 }
 0xa47   :  { %p14543_p9 = scmp.ne.s32.totalorder %s14985_s11, %s14542_s24  ;;  %p14546_p10 = scmp.lt.u32.totalorder %s14542_s24, %s14985_s11 }
 0xa49   :  { %p14548_p11 = pnand %p14546_p10, %p14543_p9 }
 0xa4b   :  { %14551 = shalt.err (!%p14548_p11)
}
 0xa4c   :  { %12029 = dma.vmem_to_hbm [thread:$0]  %s12027_s29, 32, %s14985_s11, [#allocation4]  }
 0xa4d   :  { %14564 = dma.done.wait [#allocation4], 32  }
 0xa4e   :  { %14565 = vsyncadd [#allocation4], 4294967264 }
 0xa4f   :  { %12033 = vsyncpa [#allocation3], 1 }
 0xa50   :  { %12034 = vsyncpa [#allocation6], 1 }
 0xa51   :  { %12035 = vsyncpa [#allocation9], 1 }
 0xa52   :  { %12036 = vsyncpa [#allocation12], 1 }
 0xa53   :  { %12037 = vsyncpa [#allocation15], 1 }
 0xa54   :  { %12038 = vsyncpa [#allocation18], 1 }
 0xa55   :  { %12039 = vsyncpa [#allocation4], 1 }

</bundles_post_ra>
